<compile_context>
chip_gen: v7x
topology: tpu7x:2x2x1
jax: 0.10.0
libtpu: 0.0.40
codegen_flags: <defaults>
</compile_context>

<pallas_src>
import jax
import jax.numpy as jnp
from jax import lax
from jax.experimental import pallas as pl
from jax.experimental.pallas import tpu as pltpu

LANE = 128
_EPS = 1e-5
_SLOPE = 0.1


def _round_up(x, m):
    return (x + m - 1) // m * m


def _device_kind():
    try:
        return jax.devices()[0].device_kind.lower()
    except Exception:
        return ""


def _vmem_limit_bytes():
    cap = None
    try:
        cap = int(pltpu.get_tpu_info().vmem_capacity_bytes)
    except Exception:
        cap = None
    if cap is None:
        cap = 64 * 1024 * 1024 if "v7" in _device_kind() else 128 * 1024 * 1024
    # leave headroom for Mosaic's own scratch / double buffers
    return min(int(cap * 3 // 4), 100 * 1024 * 1024)


_VMEM_LIMIT = _vmem_limit_bytes()

# v7x's MXU result buffer (MRB) accumulates in place, so K*K per-tap matmuls
# cost no extra VPU adds and we can drop the 9x im2col patch scratch and its
# bf16 store/reload traffic.  On v5e/v6e (MRF FIFO, VPU accumulate) a single
# matmul over a materialized im2col patch keeps the MXU better fed.
_USE_TAP_ACCUM = "v7" in _device_kind()


# --------------------------------------------------------------------------
# Kernel
# --------------------------------------------------------------------------
def _make_conv_stats_kernel(H, W, cin_pad, tile_cout, K, apply_pre_act,
                            use_tap_accum):
    """Fused [prev-layer BN + LeakyReLU] -> KxK conv -> partial BN stats."""
    pad = (K - 1) // 2
    HW = H * W

    def kernel(x_ref, w_ref, scale_ref, shift_ref,
               z_ref, sum_ref, sq_ref, *scratch):
        # x_ref:      (1, H, W, cin_pad) bf16  raw (pre-BN) output of prev layer
        # w_ref:      (K*K*cin_pad, tile_cout) bf16
        # scale/shift:(1, cin_pad) f32         folded BN of the previous layer
        # z_ref:      (1, H, W, tile_cout) bf16 raw conv output of this layer
        # sum/sq_ref: (1, 1, tile_cout) f32     per-(batch, cout-tile) BN sums
        j = pl.program_id(1)   # cout-tile index (inner grid axis)

        def activate(x2):
            # x2: (H*W, cin_pad) bf16
            if not apply_pre_act:
                return x2
            a = x2.astype(jnp.float32) * scale_ref[...] + shift_ref[...]
            a = jnp.where(a > 0, a, _SLOPE * a)
            return a.astype(jnp.bfloat16)

        if K == 1:
            if apply_pre_act:
                act_ref, = scratch

                @pl.when(j == 0)
                def _():
                    # built once per image, reused by every cout tile
                    act_ref[...] = activate(x_ref[...].reshape(HW, cin_pad))

                lhs = act_ref[...]
            else:
                lhs = x_ref[...].reshape(HW, cin_pad)
            z = jnp.dot(lhs, w_ref[...], preferred_element_type=jnp.float32)
        else:
            if use_tap_accum:
                halo_ref, = scratch
            else:
                halo_ref, patch_ref = scratch

            @pl.when(j == 0)
            def _():
                # Zero only the 2*pad border strips; the interior is fully
                # overwritten below.  Per-build zeroing is cheap and
                # megacore-safe (a core whose batch shard never executes
                # program_id(0)==0 still gets an initialized border).
                zrow = jnp.zeros((pad, W + 2 * pad, cin_pad), jnp.bfloat16)
                zcol = jnp.zeros((H, pad, cin_pad), jnp.bfloat16)
                halo_ref[0:pad, :, :] = zrow
                halo_ref[pad + H:, :, :] = zrow
                halo_ref[pad:pad + H, 0:pad, :] = zcol
                halo_ref[pad:pad + H, pad + W:, :] = zcol
                a = activate(x_ref[...].reshape(HW, cin_pad))
                halo_ref[pad:pad + H, pad:pad + W, :] = a.reshape(H, W,
                                                                  cin_pad)
                if not use_tap_accum:
                    # im2col: taps concatenated along the lane axis -> ONE
                    # matmul with K*K*cin contraction; built once per image.
                    for ki in range(K):
                        for kj in range(K):
                            t = ki * K + kj
                            patch_ref[:, t * cin_pad:(t + 1) * cin_pad] = (
                                halo_ref[ki:ki + H, kj:kj + W, :]
                                .reshape(HW, cin_pad))

            if use_tap_accum:
                # v7x: K*K shifted-slice matmuls accumulated in f32 (MRB
                # accumulates in place) -> no patch scratch, no 9x bf16
                # store/reload of the activation.
                z = None
                for ki in range(K):
                    for kj in range(K):
                        t = ki * K + kj
                        a_tap = halo_ref[ki:ki + H, kj:kj + W, :].reshape(
                            HW, cin_pad)
                        d = jnp.dot(a_tap,
                                    w_ref[t * cin_pad:(t + 1) * cin_pad, :],
                                    preferred_element_type=jnp.float32)
                        z = d if z is None else z + d
            else:
                z = jnp.dot(patch_ref[...], w_ref[...],
                            preferred_element_type=jnp.float32)

        # Raw conv output stored bf16: halves inter-layer HBM traffic; BN
        # renormalizes in the next layer so the rounding washes out.
        z_ref[...] = z.astype(jnp.bfloat16).reshape(1, H, W, tile_cout)
        # BN batch statistics fused with the conv pass (f32 sums);
        # reductions use XLU/VPU slack while the MXU runs.
        sum_ref[0] = jnp.sum(z, axis=0, keepdims=True)
        sq_ref[0] = jnp.sum(z * z, axis=0, keepdims=True)

    return kernel


# --------------------------------------------------------------------------
# pallas_call wrapper
# --------------------------------------------------------------------------
def _conv_stats_call(z_prev, scale, shift, w, K, apply_pre_act):
    N, H, W, cin_pad = z_prev.shape
    cout_pad = w.shape[-1]
    pad = (K - 1) // 2

    # cout tile: cap the weight block (and MXU N) at 256 lanes; keep it a
    # divisor of cout_pad so all blocks stay unmasked and lane-dense.
    tile_cout = 256 if cout_pad % 256 == 0 else 128
    tile_cout = min(tile_cout, cout_pad)
    n_ct = cout_pad // tile_cout

    # TODO(synk): row-tile H for very large feature maps (52x52x512-class) to
    # bound the per-step VMEM working set on v7x's 64 MiB.
    scratch = []
    if K == 1:
        if apply_pre_act:
            scratch = [pltpu.VMEM((H * W, cin_pad), jnp.bfloat16)]
    else:
        scratch = [pltpu.VMEM((H + 2 * pad, W + 2 * pad, cin_pad),
                              jnp.bfloat16)]
        if not _USE_TAP_ACCUM:
            scratch.append(pltpu.VMEM((H * W, K * K * cin_pad),
                                      jnp.bfloat16))

    kernel = _make_conv_stats_kernel(H, W, cin_pad, tile_cout, K,
                                     apply_pre_act, _USE_TAP_ACCUM)
    return pl.pallas_call(
        kernel,
        out_shape=(
            jax.ShapeDtypeStruct((N, H, W, cout_pad), jnp.bfloat16),
            jax.ShapeDtypeStruct((N, 1, cout_pad), jnp.float32),
            jax.ShapeDtypeStruct((N, 1, cout_pad), jnp.float32),
        ),
        grid_spec=pltpu.PrefetchScalarGridSpec(
            num_scalar_prefetch=0,
            grid=(N, n_ct),
            in_specs=[
                pl.BlockSpec((1, H, W, cin_pad), lambda n, j: (n, 0, 0, 0)),
                pl.BlockSpec((K * K * cin_pad, tile_cout),
                             lambda n, j: (0, j)),
                pl.BlockSpec((1, cin_pad), lambda n, j: (0, 0)),
                pl.BlockSpec((1, cin_pad), lambda n, j: (0, 0)),
            ],
            out_specs=[
                pl.BlockSpec((1, H, W, tile_cout),
                             lambda n, j: (n, 0, 0, j)),
                pl.BlockSpec((1, 1, tile_cout), lambda n, j: (n, 0, j)),
                pl.BlockSpec((1, 1, tile_cout), lambda n, j: (n, 0, j)),
            ],
            scratch_shapes=scratch,
        ),
        compiler_params=pltpu.CompilerParams(
            dimension_semantics=("parallel", "arbitrary"),
            vmem_limit_bytes=_VMEM_LIMIT),
    )(z_prev, w, scale, shift)


def _finalize_stats(ssum, ssq, gamma, beta, count):
    """Tiny phase-2: batch stats -> folded per-channel scale/shift."""
    s = jnp.sum(ssum[:, 0, :], axis=0)
    sq = jnp.sum(ssq[:, 0, :], axis=0)
    mean = s / count
    var = jnp.maximum(sq / count - mean * mean, 0.0)   # biased (training mode)
    rstd = lax.rsqrt(var + _EPS)
    scale = gamma[0] * rstd
    shift = beta[0] - mean * scale
    return scale[None, :], shift[None, :]


# --------------------------------------------------------------------------
# Parameters + forward
# --------------------------------------------------------------------------
def init_convolutional_set(key, in_channels, out_channels):
    """Deterministic synthetic parameters matching the torch module's shapes,
    stored in the lane-padded (K*K*Cin_pad, Cout_pad) bf16 kernel layout."""
    configs = [
        (in_channels, out_channels, 1),
        (out_channels, in_channels, 3),
        (in_channels, out_channels, 1),
        (out_channels, in_channels, 3),
        (in_channels, out_channels, 1),
    ]
    params = []
    for cin, cout, k in configs:
        key, kw, kg, kb = jax.random.split(key, 4)
        fan_in = cin * k * k
        bound = 1.0 / (fan_in ** 0.5)   # torch kaiming_uniform(a=sqrt(5)) bound
        w_oikk = jax.random.uniform(kw, (cout, cin, k, k), jnp.float32,
                                    -bound, bound)
        cin_p = _round_up(cin, LANE)
        cout_p = _round_up(cout, LANE)
        # (Cout, Cin, K, K) -> (K, K, Cin, Cout), zero-pad channels to lanes,
        # fold taps into the contraction dim: (K*K*Cin_pad, Cout_pad).
        w = jnp.transpose(w_oikk, (2, 3, 1, 0))
        w = jnp.pad(w, ((0, 0), (0, 0), (0, cin_p - cin), (0, cout_p - cout)))
        w = w.reshape(k * k * cin_p, cout_p).astype(jnp.bfloat16)
        gamma = 1.0 + 0.1 * jax.random.normal(kg, (cout,), jnp.float32)
        beta = 0.1 * jax.random.normal(kb, (cout,), jnp.float32)
        # gamma padded with 1, beta with 0 -> padded channels stay exactly 0
        # through BN + LeakyReLU (and hit zero weight rows anyway).
        gamma = jnp.pad(gamma, (0, cout_p - cout), constant_values=1.0)[None]
        beta = jnp.pad(beta, (0, cout_p - cout))[None]
        params.append(dict(w=w, gamma=gamma, beta=beta, k=k,
                           cin=cin, cout=cout,
                           cin_pad=cin_p, cout_pad=cout_p))
    return params


def convolutional_set_forward(x_nchw, params):
    N, C, H, W = x_nchw.shape
    cin_pad0 = params[0]["cin_pad"]
    x = jnp.transpose(x_nchw, (0, 2, 3, 1))                        # NCHW->NHWC
    x = jnp.pad(x, ((0, 0), (0, 0), (0, 0), (0, cin_pad0 - C)))    # lane-dense
    x = x.astype(jnp.bfloat16)
    count = float(N * H * W)

    z = x
    scale = jnp.ones((1, cin_pad0), jnp.float32)    # ignored by the 1st layer
    shift = jnp.zeros((1, cin_pad0), jnp.float32)
    apply_pre_act = False
    for p in params:
        z, ssum, ssq = _conv_stats_call(z, scale, shift, p["w"], p["k"],
                                        apply_pre_act)
        scale, shift = _finalize_stats(ssum, ssq, p["gamma"], p["beta"], count)
        apply_pre_act = True

    # Last layer's BN + LeakyReLU in plain jnp: fuses with the channel slice
    # and the NHWC->NCHW transpose -> no extra HBM round trip of y.
    y = z.astype(jnp.float32) * scale[0] + shift[0]
    y = jnp.where(y > 0, y, _SLOPE * y)
    y = y[..., :params[-1]["cout"]]                 # drop lane padding
    return jnp.transpose(y, (0, 3, 1, 2))           # NHWC -> NCHW


if __name__ == "__main__":
    key = jax.random.PRNGKey(0)
    k_x, k_p = jax.random.split(key)

    batch, in_channels, out_channels, spatial = 2, 4, 8, 16
    x = jax.random.normal(k_x, (batch, in_channels, spatial, spatial),
                          jnp.float32)
    params = init_convolutional_set(k_p, in_channels, out_channels)

    fwd = jax.jit(lambda x_: convolutional_set_forward(x_, params))
    y = fwd(x)
    jax.block_until_ready(y)

    assert y.shape == (batch, out_channels, spatial, spatial), y.shape
    assert bool(jnp.all(jnp.isfinite(y)))
    print("KERNEL_OK")
</pallas_src>

<mosaic_0001>
module attributes {stable_mosaic.version = 11 : i64} {
  func.func @kernel(%arg0: i32, %arg1: i32, %arg2: memref<1x16x16x128xbf16, #tpu.memory_space<vmem>>, %arg3: memref<1152x128xbf16, #tpu.memory_space<vmem>>, %arg4: memref<1x128xf32, #tpu.memory_space<vmem>>, %arg5: memref<1x128xf32, #tpu.memory_space<vmem>>, %arg6: memref<1x16x16x128xbf16, #tpu.memory_space<vmem>>, %arg7: memref<1x1x128xf32, #tpu.memory_space<vmem>>, %arg8: memref<1x1x128xf32, #tpu.memory_space<vmem>>, %arg9: memref<18x18x128xbf16, #tpu.memory_space<vmem>>, %arg10: memref<256x1152xbf16, #tpu.memory_space<vmem>>) attributes {dimension_semantics = [#tpu.dimension_semantics<parallel>, #tpu.dimension_semantics<arbitrary>], iteration_bounds = array<i64: 2, 1>, scalar_prefetch = 0 : i64, scratch_operands = 2 : i64, tpu.core_type = #tpu.core_type<tc>, window_params = [{transform_indices = @transform_0, window_bounds = array<i64: 1, 16, 16, 128>}, {transform_indices = @transform_1, window_bounds = array<i64: 1152, 128>}, {pipeline_mode = #tpu.pipeline_mode<synchronous>, transform_indices = @transform_2, window_bounds = array<i64: 1, 128>}, {pipeline_mode = #tpu.pipeline_mode<synchronous>, transform_indices = @transform_3, window_bounds = array<i64: 1, 128>}, {transform_indices = @transform_4, window_bounds = array<i64: 1, 16, 16, 128>}, {transform_indices = @transform_5, window_bounds = array<i64: 1, 1, 128>}, {transform_indices = @transform_6, window_bounds = array<i64: 1, 1, 128>}]} {
    %c0_i32 = arith.constant 0 : i32
    %0 = arith.cmpi eq, %arg1, %c0_i32 : i32
    %1 = arith.extui %0 : i1 to i32
    %c0_i32_0 = arith.constant 0 : i32
    %2 = arith.cmpi ne, %1, %c0_i32_0 : i32
    scf.if %2 {
      %cst_16 = arith.constant 0.000000e+00 : bf16
      %20 = vector.broadcast %cst_16 : bf16 to vector<1x18x128xbf16>
      %cst_17 = arith.constant 0.000000e+00 : bf16
      %21 = vector.broadcast %cst_17 : bf16 to vector<16x1x128xbf16>
      %c0_18 = arith.constant 0 : index
      %c0_19 = arith.constant 0 : index
      %c0_20 = arith.constant 0 : index
      %22 = vector.load %arg9[%c0_18, %c0_19, %c0_20] : memref<18x18x128xbf16, #tpu.memory_space<vmem>>, vector<1x18x128xbf16>
      tpu.vector_store %arg9[%c0_18, %c0_19, %c0_20], %20 {strides = array<i32>} : memref<18x18x128xbf16, #tpu.memory_space<vmem>>, vector<1x18x128xbf16>,
      %c17 = arith.constant 17 : index
      %c0_21 = arith.constant 0 : index
      %c0_22 = arith.constant 0 : index
      %23 = vector.load %arg9[%c17, %c0_21, %c0_22] : memref<18x18x128xbf16, #tpu.memory_space<vmem>>, vector<1x18x128xbf16>
      tpu.vector_store %arg9[%c17, %c0_21, %c0_22], %20 {strides = array<i32>} : memref<18x18x128xbf16, #tpu.memory_space<vmem>>, vector<1x18x128xbf16>,
      %c1 = arith.constant 1 : index
      %c0_23 = arith.constant 0 : index
      %c0_24 = arith.constant 0 : index
      %24 = vector.load %arg9[%c1, %c0_23, %c0_24] : memref<18x18x128xbf16, #tpu.memory_space<vmem>>, vector<16x1x128xbf16>
      tpu.vector_store %arg9[%c1, %c0_23, %c0_24], %21 {strides = array<i32>} : memref<18x18x128xbf16, #tpu.memory_space<vmem>>, vector<16x1x128xbf16>,
      %c1_25 = arith.constant 1 : index
      %c17_26 = arith.constant 17 : index
      %c0_27 = arith.constant 0 : index
      %25 = vector.load %arg9[%c1_25, %c17_26, %c0_27] : memref<18x18x128xbf16, #tpu.memory_space<vmem>>, vector<16x1x128xbf16>
      tpu.vector_store %arg9[%c1_25, %c17_26, %c0_27], %21 {strides = array<i32>} : memref<18x18x128xbf16, #tpu.memory_space<vmem>>, vector<16x1x128xbf16>,
      %c0_28 = arith.constant 0 : index
      %c0_29 = arith.constant 0 : index
      %c0_30 = arith.constant 0 : index
      %c0_31 = arith.constant 0 : index
      %26 = vector.load %arg2[%c0_28, %c0_29, %c0_30, %c0_31] : memref<1x16x16x128xbf16, #tpu.memory_space<vmem>>, vector<1x16x16x128xbf16>
      %27 = vector.shape_cast %26 : vector<1x16x16x128xbf16> to vector<256x128xbf16>
      %28 = arith.extf %27 : vector<256x128xbf16> to vector<256x128xf32>
      %c0_32 = arith.constant 0 : index
      %c0_33 = arith.constant 0 : index
      %29 = vector.load %arg4[%c0_32, %c0_33] : memref<1x128xf32, #tpu.memory_space<vmem>>, vector<1x128xf32>
      %30 = vector.broadcast %29 : vector<1x128xf32> to vector<256x128xf32>
      %31 = arith.mulf %28, %30 : vector<256x128xf32>
      %c0_34 = arith.constant 0 : index
      %c0_35 = arith.constant 0 : index
      %32 = vector.load %arg5[%c0_34, %c0_35] : memref<1x128xf32, #tpu.memory_space<vmem>>, vector<1x128xf32>
      %33 = vector.broadcast %32 : vector<1x128xf32> to vector<256x128xf32>
      %34 = arith.addf %31, %33 : vector<256x128xf32>
      %cst_36 = arith.constant 0.000000e+00 : f32
      %35 = vector.broadcast %cst_36 : f32 to vector<256x128xf32>
      %36 = arith.cmpf ogt, %34, %35 : vector<256x128xf32>
      %cst_37 = arith.constant 1.000000e-01 : f32
      %37 = vector.broadcast %cst_37 : f32 to vector<256x128xf32>
      %38 = arith.mulf %37, %34 : vector<256x128xf32>
      %39 = arith.select %36, %34, %38 : vector<256x128xi1>, vector<256x128xf32>
      %40 = arith.truncf %39 : vector<256x128xf32> to vector<256x128xbf16>
      %41 = vector.shape_cast %40 : vector<256x128xbf16> to vector<16x16x128xbf16>
      %c1_38 = arith.constant 1 : index
      %c1_39 = arith.constant 1 : index
      %c0_40 = arith.constant 0 : index
      %42 = vector.load %arg9[%c1_38, %c1_39, %c0_40] : memref<18x18x128xbf16, #tpu.memory_space<vmem>>, vector<16x16x128xbf16>
      tpu.vector_store %arg9[%c1_38, %c1_39, %c0_40], %41 {strides = array<i32>} : memref<18x18x128xbf16, #tpu.memory_space<vmem>>, vector<16x16x128xbf16>,
      %c0_41 = arith.constant 0 : index
      %c0_42 = arith.constant 0 : index
      %c0_43 = arith.constant 0 : index
      %43 = vector.load %arg9[%c0_41, %c0_42, %c0_43] : memref<18x18x128xbf16, #tpu.memory_space<vmem>>, vector<16x16x128xbf16>
      %44 = vector.shape_cast %43 : vector<16x16x128xbf16> to vector<256x128xbf16>
      %c0_44 = arith.constant 0 : index
      %c0_45 = arith.constant 0 : index
      %45 = vector.load %arg10[%c0_44, %c0_45] : memref<256x1152xbf16, #tpu.memory_space<vmem>>, vector<256x128xbf16>
      tpu.vector_store %arg10[%c0_44, %c0_45], %44 {strides = array<i32>} : memref<256x1152xbf16, #tpu.memory_space<vmem>>, vector<256x128xbf16>,
      %c0_46 = arith.constant 0 : index
      %c1_47 = arith.constant 1 : index
      %c0_48 = arith.constant 0 : index
      %46 = vector.load %arg9[%c0_46, %c1_47, %c0_48] : memref<18x18x128xbf16, #tpu.memory_space<vmem>>, vector<16x16x128xbf16>
      %47 = vector.shape_cast %46 : vector<16x16x128xbf16> to vector<256x128xbf16>
      %c0_49 = arith.constant 0 : index
      %c128 = arith.constant 128 : index
      %48 = vector.load %arg10[%c0_49, %c128] : memref<256x1152xbf16, #tpu.memory_space<vmem>>, vector<256x128xbf16>
      tpu.vector_store %arg10[%c0_49, %c128], %47 {strides = array<i32>} : memref<256x1152xbf16, #tpu.memory_space<vmem>>, vector<256x128xbf16>,
      %c0_50 = arith.constant 0 : index
      %c2 = arith.constant 2 : index
      %c0_51 = arith.constant 0 : index
      %49 = vector.load %arg9[%c0_50, %c2, %c0_51] : memref<18x18x128xbf16, #tpu.memory_space<vmem>>, vector<16x16x128xbf16>
      %50 = vector.shape_cast %49 : vector<16x16x128xbf16> to vector<256x128xbf16>
      %c0_52 = arith.constant 0 : index
      %c256 = arith.constant 256 : index
      %51 = vector.load %arg10[%c0_52, %c256] : memref<256x1152xbf16, #tpu.memory_space<vmem>>, vector<256x128xbf16>
      tpu.vector_store %arg10[%c0_52, %c256], %50 {strides = array<i32>} : memref<256x1152xbf16, #tpu.memory_space<vmem>>, vector<256x128xbf16>,
      %c1_53 = arith.constant 1 : index
      %c0_54 = arith.constant 0 : index
      %c0_55 = arith.constant 0 : index
      %52 = vector.load %arg9[%c1_53, %c0_54, %c0_55] : memref<18x18x128xbf16, #tpu.memory_space<vmem>>, vector<16x16x128xbf16>
      %53 = vector.shape_cast %52 : vector<16x16x128xbf16> to vector<256x128xbf16>
      %c0_56 = arith.constant 0 : index
      %c384 = arith.constant 384 : index
      %54 = vector.load %arg10[%c0_56, %c384] : memref<256x1152xbf16, #tpu.memory_space<vmem>>, vector<256x128xbf16>
      tpu.vector_store %arg10[%c0_56, %c384], %53 {strides = array<i32>} : memref<256x1152xbf16, #tpu.memory_space<vmem>>, vector<256x128xbf16>,
      %c1_57 = arith.constant 1 : index
      %c1_58 = arith.constant 1 : index
      %c0_59 = arith.constant 0 : index
      %55 = vector.load %arg9[%c1_57, %c1_58, %c0_59] : memref<18x18x128xbf16, #tpu.memory_space<vmem>>, vector<16x16x128xbf16>
      %56 = vector.shape_cast %55 : vector<16x16x128xbf16> to vector<256x128xbf16>
      %c0_60 = arith.constant 0 : index
      %c512 = arith.constant 512 : index
      %57 = vector.load %arg10[%c0_60, %c512] : memref<256x1152xbf16, #tpu.memory_space<vmem>>, vector<256x128xbf16>
      tpu.vector_store %arg10[%c0_60, %c512], %56 {strides = array<i32>} : memref<256x1152xbf16, #tpu.memory_space<vmem>>, vector<256x128xbf16>,
      %c1_61 = arith.constant 1 : index
      %c2_62 = arith.constant 2 : index
      %c0_63 = arith.constant 0 : index
      %58 = vector.load %arg9[%c1_61, %c2_62, %c0_63] : memref<18x18x128xbf16, #tpu.memory_space<vmem>>, vector<16x16x128xbf16>
      %59 = vector.shape_cast %58 : vector<16x16x128xbf16> to vector<256x128xbf16>
      %c0_64 = arith.constant 0 : index
      %c640 = arith.constant 640 : index
      %60 = vector.load %arg10[%c0_64, %c640] : memref<256x1152xbf16, #tpu.memory_space<vmem>>, vector<256x128xbf16>
      tpu.vector_store %arg10[%c0_64, %c640], %59 {strides = array<i32>} : memref<256x1152xbf16, #tpu.memory_space<vmem>>, vector<256x128xbf16>,
      %c2_65 = arith.constant 2 : index
      %c0_66 = arith.constant 0 : index
      %c0_67 = arith.constant 0 : index
      %61 = vector.load %arg9[%c2_65, %c0_66, %c0_67] : memref<18x18x128xbf16, #tpu.memory_space<vmem>>, vector<16x16x128xbf16>
      %62 = vector.shape_cast %61 : vector<16x16x128xbf16> to vector<256x128xbf16>
      %c0_68 = arith.constant 0 : index
      %c768 = arith.constant 768 : index
      %63 = vector.load %arg10[%c0_68, %c768] : memref<256x1152xbf16, #tpu.memory_space<vmem>>, vector<256x128xbf16>
      tpu.vector_store %arg10[%c0_68, %c768], %62 {strides = array<i32>} : memref<256x1152xbf16, #tpu.memory_space<vmem>>, vector<256x128xbf16>,
      %c2_69 = arith.constant 2 : index
      %c1_70 = arith.constant 1 : index
      %c0_71 = arith.constant 0 : index
      %64 = vector.load %arg9[%c2_69, %c1_70, %c0_71] : memref<18x18x128xbf16, #tpu.memory_space<vmem>>, vector<16x16x128xbf16>
      %65 = vector.shape_cast %64 : vector<16x16x128xbf16> to vector<256x128xbf16>
      %c0_72 = arith.constant 0 : index
      %c896 = arith.constant 896 : index
      %66 = vector.load %arg10[%c0_72, %c896] : memref<256x1152xbf16, #tpu.memory_space<vmem>>, vector<256x128xbf16>
      tpu.vector_store %arg10[%c0_72, %c896], %65 {strides = array<i32>} : memref<256x1152xbf16, #tpu.memory_space<vmem>>, vector<256x128xbf16>,
      %c2_73 = arith.constant 2 : index
      %c2_74 = arith.constant 2 : index
      %c0_75 = arith.constant 0 : index
      %67 = vector.load %arg9[%c2_73, %c2_74, %c0_75] : memref<18x18x128xbf16, #tpu.memory_space<vmem>>, vector<16x16x128xbf16>
      %68 = vector.shape_cast %67 : vector<16x16x128xbf16> to vector<256x128xbf16>
      %c0_76 = arith.constant 0 : index
      %c1024 = arith.constant 1024 : index
      %69 = vector.load %arg10[%c0_76, %c1024] : memref<256x1152xbf16, #tpu.memory_space<vmem>>, vector<256x128xbf16>
      tpu.vector_store %arg10[%c0_76, %c1024], %68 {strides = array<i32>} : memref<256x1152xbf16, #tpu.memory_space<vmem>>, vector<256x128xbf16>,
    } else {
    }
    %c0 = arith.constant 0 : index
    %c0_1 = arith.constant 0 : index
    %3 = vector.load %arg10[%c0, %c0_1] : memref<256x1152xbf16, #tpu.memory_space<vmem>>, vector<256x1152xbf16>
    %c0_2 = arith.constant 0 : index
    %c0_3 = arith.constant 0 : index
    %4 = vector.load %arg3[%c0_2, %c0_3] : memref<1152x128xbf16, #tpu.memory_space<vmem>>, vector<1152x128xbf16>
    %cst = arith.constant dense<0.000000e+00> : vector<256x128xf32>
    %5 = tpu.matmul %3, %4, %cst {dimension_numbers = #tpu.dot_dimension_numbers<[1], [0], [0], [1], [0, 0, 1, 1], [], []>} : vector<256x1152xbf16>, vector<1152x128xbf16>, vector<256x128xf32> -> vector<256x128xf32>
    %6 = arith.truncf %5 : vector<256x128xf32> to vector<256x128xbf16>
    %7 = vector.shape_cast %6 : vector<256x128xbf16> to vector<1x16x16x128xbf16>
    %c0_4 = arith.constant 0 : index
    %c0_5 = arith.constant 0 : index
    %c0_6 = arith.constant 0 : index
    %c0_7 = arith.constant 0 : index
    %8 = vector.load %arg6[%c0_4, %c0_5, %c0_6, %c0_7] : memref<1x16x16x128xbf16, #tpu.memory_space<vmem>>, vector<1x16x16x128xbf16>
    tpu.vector_store %arg6[%c0_4, %c0_5, %c0_6, %c0_7], %7 {strides = array<i32>} : memref<1x16x16x128xbf16, #tpu.memory_space<vmem>>, vector<1x16x16x128xbf16>,
    %cst_8 = arith.constant dense<0.000000e+00> : vector<128xf32>
    %9 = vector.multi_reduction <add>, %5, %cst_8 [0] : vector<256x128xf32> to vector<128xf32>
    %10 = vector.shape_cast %9 : vector<128xf32> to vector<1x128xf32>
    %c0_9 = arith.constant 0 : index
    %c0_10 = arith.constant 0 : index
    %c0_11 = arith.constant 0 : index
    %11 = vector.load %arg7[%c0_9, %c0_10, %c0_11] : memref<1x1x128xf32, #tpu.memory_space<vmem>>, vector<1x1x128xf32>
    %12 = vector.shape_cast %11 : vector<1x1x128xf32> to vector<1x128xf32>
    %13 = vector.shape_cast %10 : vector<1x128xf32> to vector<1x1x128xf32>
    tpu.vector_store %arg7[%c0_9, %c0_10, %c0_11], %13 {strides = array<i32>} : memref<1x1x128xf32, #tpu.memory_space<vmem>>, vector<1x1x128xf32>,
    %14 = arith.mulf %5, %5 : vector<256x128xf32>
    %cst_12 = arith.constant dense<0.000000e+00> : vector<128xf32>
    %15 = vector.multi_reduction <add>, %14, %cst_12 [0] : vector<256x128xf32> to vector<128xf32>
    %16 = vector.shape_cast %15 : vector<128xf32> to vector<1x128xf32>
    %c0_13 = arith.constant 0 : index
    %c0_14 = arith.constant 0 : index
    %c0_15 = arith.constant 0 : index
    %17 = vector.load %arg8[%c0_13, %c0_14, %c0_15] : memref<1x1x128xf32, #tpu.memory_space<vmem>>, vector<1x1x128xf32>
    %18 = vector.shape_cast %17 : vector<1x1x128xf32> to vector<1x128xf32>
    %19 = vector.shape_cast %16 : vector<1x128xf32> to vector<1x1x128xf32>
    tpu.vector_store %arg8[%c0_13, %c0_14, %c0_15], %19 {strides = array<i32>} : memref<1x1x128xf32, #tpu.memory_space<vmem>>, vector<1x1x128xf32>,
    return
  }
  func.func @transform_0(%arg0: i32, %arg1: i32) -> (i32, i32, i32, i32) {
    %c0_i32 = arith.constant 0 : i32
    %c0_i32_0 = arith.constant 0 : i32
    %c0_i32_1 = arith.constant 0 : i32
    %c0_i32_2 = arith.constant 0 : i32
    return %arg0, %c0_i32, %c0_i32_0, %c0_i32_1 : i32, i32, i32, i32
  }
  func.func @transform_1(%arg0: i32, %arg1: i32) -> (i32, i32) {
    %c0_i32 = arith.constant 0 : i32
    %c0_i32_0 = arith.constant 0 : i32
    return %c0_i32, %arg1 : i32, i32
  }
  func.func @transform_2(%arg0: i32, %arg1: i32) -> (i32, i32) {
    %c0_i32 = arith.constant 0 : i32
    %c0_i32_0 = arith.constant 0 : i32
    %c0_i32_1 = arith.constant 0 : i32
    return %c0_i32, %c0_i32_0 : i32, i32
  }
  func.func @transform_3(%arg0: i32, %arg1: i32) -> (i32, i32) {
    %c0_i32 = arith.constant 0 : i32
    %c0_i32_0 = arith.constant 0 : i32
    %c0_i32_1 = arith.constant 0 : i32
    return %c0_i32, %c0_i32_0 : i32, i32
  }
  func.func @transform_4(%arg0: i32, %arg1: i32) -> (i32, i32, i32, i32) {
    %c0_i32 = arith.constant 0 : i32
    %c0_i32_0 = arith.constant 0 : i32
    %c0_i32_1 = arith.constant 0 : i32
    return %arg0, %c0_i32, %c0_i32_0, %arg1 : i32, i32, i32, i32
  }
  func.func @transform_5(%arg0: i32, %arg1: i32) -> (i32, i32, i32) {
    %c0_i32 = arith.constant 0 : i32
    %c0_i32_0 = arith.constant 0 : i32
    return %arg0, %c0_i32, %arg1 : i32, i32, i32
  }
  func.func @transform_6(%arg0: i32, %arg1: i32) -> (i32, i32, i32) {
    %c0_i32 = arith.constant 0 : i32
    %c0_i32_0 = arith.constant 0 : i32
    return %arg0, %c0_i32, %arg1 : i32, i32, i32
  }
}

module attributes {stable_mosaic.version = 11 : i64} {
  func.func @kernel(%arg0: i32, %arg1: i32, %arg2: memref<1x16x16x128xbf16, #tpu.memory_space<vmem>>, %arg3: memref<128x128xbf16, #tpu.memory_space<vmem>>, %arg4: memref<1x128xf32, #tpu.memory_space<vmem>>, %arg5: memref<1x128xf32, #tpu.memory_space<vmem>>, %arg6: memref<1x16x16x128xbf16, #tpu.memory_space<vmem>>, %arg7: memref<1x1x128xf32, #tpu.memory_space<vmem>>, %arg8: memref<1x1x128xf32, #tpu.memory_space<vmem>>, %arg9: memref<256x128xbf16, #tpu.memory_space<vmem>>) attributes {dimension_semantics = [#tpu.dimension_semantics<parallel>, #tpu.dimension_semantics<arbitrary>], iteration_bounds = array<i64: 2, 1>, scalar_prefetch = 0 : i64, scratch_operands = 1 : i64, tpu.core_type = #tpu.core_type<tc>, window_params = [{transform_indices = @transform_0, window_bounds = array<i64: 1, 16, 16, 128>}, {transform_indices = @transform_1, window_bounds = array<i64: 128, 128>}, {pipeline_mode = #tpu.pipeline_mode<synchronous>, transform_indices = @transform_2, window_bounds = array<i64: 1, 128>}, {pipeline_mode = #tpu.pipeline_mode<synchronous>, transform_indices = @transform_3, window_bounds = array<i64: 1, 128>}, {transform_indices = @transform_4, window_bounds = array<i64: 1, 16, 16, 128>}, {transform_indices = @transform_5, window_bounds = array<i64: 1, 1, 128>}, {transform_indices = @transform_6, window_bounds = array<i64: 1, 1, 128>}]} {
    %c0_i32 = arith.constant 0 : i32
    %0 = arith.cmpi eq, %arg1, %c0_i32 : i32
    %1 = arith.extui %0 : i1 to i32
    %c0_i32_0 = arith.constant 0 : i32
    %2 = arith.cmpi ne, %1, %c0_i32_0 : i32
    scf.if %2 {
      %c0_16 = arith.constant 0 : index
      %c0_17 = arith.constant 0 : index
      %c0_18 = arith.constant 0 : index
      %c0_19 = arith.constant 0 : index
      %20 = vector.load %arg2[%c0_16, %c0_17, %c0_18, %c0_19] : memref<1x16x16x128xbf16, #tpu.memory_space<vmem>>, vector<1x16x16x128xbf16>
      %21 = vector.shape_cast %20 : vector<1x16x16x128xbf16> to vector<256x128xbf16>
      %22 = arith.extf %21 : vector<256x128xbf16> to vector<256x128xf32>
      %c0_20 = arith.constant 0 : index
      %c0_21 = arith.constant 0 : index
      %23 = vector.load %arg4[%c0_20, %c0_21] : memref<1x128xf32, #tpu.memory_space<vmem>>, vector<1x128xf32>
      %24 = vector.broadcast %23 : vector<1x128xf32> to vector<256x128xf32>
      %25 = arith.mulf %22, %24 : vector<256x128xf32>
      %c0_22 = arith.constant 0 : index
      %c0_23 = arith.constant 0 : index
      %26 = vector.load %arg5[%c0_22, %c0_23] : memref<1x128xf32, #tpu.memory_space<vmem>>, vector<1x128xf32>
      %27 = vector.broadcast %26 : vector<1x128xf32> to vector<256x128xf32>
      %28 = arith.addf %25, %27 : vector<256x128xf32>
      %cst_24 = arith.constant 0.000000e+00 : f32
      %29 = vector.broadcast %cst_24 : f32 to vector<256x128xf32>
      %30 = arith.cmpf ogt, %28, %29 : vector<256x128xf32>
      %cst_25 = arith.constant 1.000000e-01 : f32
      %31 = vector.broadcast %cst_25 : f32 to vector<256x128xf32>
      %32 = arith.mulf %31, %28 : vector<256x128xf32>
      %33 = arith.select %30, %28, %32 : vector<256x128xi1>, vector<256x128xf32>
      %34 = arith.truncf %33 : vector<256x128xf32> to vector<256x128xbf16>
      %c0_26 = arith.constant 0 : index
      %c0_27 = arith.constant 0 : index
      %35 = vector.load %arg9[%c0_26, %c0_27] : memref<256x128xbf16, #tpu.memory_space<vmem>>, vector<256x128xbf16>
      tpu.vector_store %arg9[%c0_26, %c0_27], %34 {strides = array<i32>} : memref<256x128xbf16, #tpu.memory_space<vmem>>, vector<256x128xbf16>,
    } else {
    }
    %c0 = arith.constant 0 : index
    %c0_1 = arith.constant 0 : index
    %3 = vector.load %arg9[%c0, %c0_1] : memref<256x128xbf16, #tpu.memory_space<vmem>>, vector<256x128xbf16>
    %c0_2 = arith.constant 0 : index
    %c0_3 = arith.constant 0 : index
    %4 = vector.load %arg3[%c0_2, %c0_3] : memref<128x128xbf16, #tpu.memory_space<vmem>>, vector<128x128xbf16>
    %cst = arith.constant dense<0.000000e+00> : vector<256x128xf32>
    %5 = tpu.matmul %3, %4, %cst {dimension_numbers = #tpu.dot_dimension_numbers<[1], [0], [0], [1], [0, 0, 1, 1], [], []>} : vector<256x128xbf16>, vector<128x128xbf16>, vector<256x128xf32> -> vector<256x128xf32>
    %6 = arith.truncf %5 : vector<256x128xf32> to vector<256x128xbf16>
    %7 = vector.shape_cast %6 : vector<256x128xbf16> to vector<1x16x16x128xbf16>
    %c0_4 = arith.constant 0 : index
    %c0_5 = arith.constant 0 : index
    %c0_6 = arith.constant 0 : index
    %c0_7 = arith.constant 0 : index
    %8 = vector.load %arg6[%c0_4, %c0_5, %c0_6, %c0_7] : memref<1x16x16x128xbf16, #tpu.memory_space<vmem>>, vector<1x16x16x128xbf16>
    tpu.vector_store %arg6[%c0_4, %c0_5, %c0_6, %c0_7], %7 {strides = array<i32>} : memref<1x16x16x128xbf16, #tpu.memory_space<vmem>>, vector<1x16x16x128xbf16>,
    %cst_8 = arith.constant dense<0.000000e+00> : vector<128xf32>
    %9 = vector.multi_reduction <add>, %5, %cst_8 [0] : vector<256x128xf32> to vector<128xf32>
    %10 = vector.shape_cast %9 : vector<128xf32> to vector<1x128xf32>
    %c0_9 = arith.constant 0 : index
    %c0_10 = arith.constant 0 : index
    %c0_11 = arith.constant 0 : index
    %11 = vector.load %arg7[%c0_9, %c0_10, %c0_11] : memref<1x1x128xf32, #tpu.memory_space<vmem>>, vector<1x1x128xf32>
    %12 = vector.shape_cast %11 : vector<1x1x128xf32> to vector<1x128xf32>
    %13 = vector.shape_cast %10 : vector<1x128xf32> to vector<1x1x128xf32>
    tpu.vector_store %arg7[%c0_9, %c0_10, %c0_11], %13 {strides = array<i32>} : memref<1x1x128xf32, #tpu.memory_space<vmem>>, vector<1x1x128xf32>,
    %14 = arith.mulf %5, %5 : vector<256x128xf32>
    %cst_12 = arith.constant dense<0.000000e+00> : vector<128xf32>
    %15 = vector.multi_reduction <add>, %14, %cst_12 [0] : vector<256x128xf32> to vector<128xf32>
    %16 = vector.shape_cast %15 : vector<128xf32> to vector<1x128xf32>
    %c0_13 = arith.constant 0 : index
    %c0_14 = arith.constant 0 : index
    %c0_15 = arith.constant 0 : index
    %17 = vector.load %arg8[%c0_13, %c0_14, %c0_15] : memref<1x1x128xf32, #tpu.memory_space<vmem>>, vector<1x1x128xf32>
    %18 = vector.shape_cast %17 : vector<1x1x128xf32> to vector<1x128xf32>
    %19 = vector.shape_cast %16 : vector<1x128xf32> to vector<1x1x128xf32>
    tpu.vector_store %arg8[%c0_13, %c0_14, %c0_15], %19 {strides = array<i32>} : memref<1x1x128xf32, #tpu.memory_space<vmem>>, vector<1x1x128xf32>,
    return
  }
  func.func @transform_0(%arg0: i32, %arg1: i32) -> (i32, i32, i32, i32) {
    %c0_i32 = arith.constant 0 : i32
    %c0_i32_0 = arith.constant 0 : i32
    %c0_i32_1 = arith.constant 0 : i32
    %c0_i32_2 = arith.constant 0 : i32
    return %arg0, %c0_i32, %c0_i32_0, %c0_i32_1 : i32, i32, i32, i32
  }
  func.func @transform_1(%arg0: i32, %arg1: i32) -> (i32, i32) {
    %c0_i32 = arith.constant 0 : i32
    %c0_i32_0 = arith.constant 0 : i32
    return %c0_i32, %arg1 : i32, i32
  }
  func.func @transform_2(%arg0: i32, %arg1: i32) -> (i32, i32) {
    %c0_i32 = arith.constant 0 : i32
    %c0_i32_0 = arith.constant 0 : i32
    %c0_i32_1 = arith.constant 0 : i32
    return %c0_i32, %c0_i32_0 : i32, i32
  }
  func.func @transform_3(%arg0: i32, %arg1: i32) -> (i32, i32) {
    %c0_i32 = arith.constant 0 : i32
    %c0_i32_0 = arith.constant 0 : i32
    %c0_i32_1 = arith.constant 0 : i32
    return %c0_i32, %c0_i32_0 : i32, i32
  }
  func.func @transform_4(%arg0: i32, %arg1: i32) -> (i32, i32, i32, i32) {
    %c0_i32 = arith.constant 0 : i32
    %c0_i32_0 = arith.constant 0 : i32
    %c0_i32_1 = arith.constant 0 : i32
    return %arg0, %c0_i32, %c0_i32_0, %arg1 : i32, i32, i32, i32
  }
  func.func @transform_5(%arg0: i32, %arg1: i32) -> (i32, i32, i32) {
    %c0_i32 = arith.constant 0 : i32
    %c0_i32_0 = arith.constant 0 : i32
    return %arg0, %c0_i32, %arg1 : i32, i32, i32
  }
  func.func @transform_6(%arg0: i32, %arg1: i32) -> (i32, i32, i32) {
    %c0_i32 = arith.constant 0 : i32
    %c0_i32_0 = arith.constant 0 : i32
    return %arg0, %c0_i32, %arg1 : i32, i32, i32
  }
}

module attributes {stable_mosaic.version = 11 : i64} {
  func.func @kernel(%arg0: i32, %arg1: i32, %arg2: memref<1x16x16x128xbf16, #tpu.memory_space<vmem>>, %arg3: memref<128x128xbf16, #tpu.memory_space<vmem>>, %arg4: memref<1x128xf32, #tpu.memory_space<vmem>>, %arg5: memref<1x128xf32, #tpu.memory_space<vmem>>, %arg6: memref<1x16x16x128xbf16, #tpu.memory_space<vmem>>, %arg7: memref<1x1x128xf32, #tpu.memory_space<vmem>>, %arg8: memref<1x1x128xf32, #tpu.memory_space<vmem>>) attributes {dimension_semantics = [#tpu.dimension_semantics<parallel>, #tpu.dimension_semantics<arbitrary>], iteration_bounds = array<i64: 2, 1>, scalar_prefetch = 0 : i64, scratch_operands = 0 : i64, tpu.core_type = #tpu.core_type<tc>, window_params = [{transform_indices = @transform_0, window_bounds = array<i64: 1, 16, 16, 128>}, {transform_indices = @transform_1, window_bounds = array<i64: 128, 128>}, {pipeline_mode = #tpu.pipeline_mode<synchronous>, transform_indices = @transform_2, window_bounds = array<i64: 1, 128>}, {pipeline_mode = #tpu.pipeline_mode<synchronous>, transform_indices = @transform_3, window_bounds = array<i64: 1, 128>}, {transform_indices = @transform_4, window_bounds = array<i64: 1, 16, 16, 128>}, {transform_indices = @transform_5, window_bounds = array<i64: 1, 1, 128>}, {transform_indices = @transform_6, window_bounds = array<i64: 1, 1, 128>}]} {
    %c0 = arith.constant 0 : index
    %c0_0 = arith.constant 0 : index
    %c0_1 = arith.constant 0 : index
    %c0_2 = arith.constant 0 : index
    %0 = vector.load %arg2[%c0, %c0_0, %c0_1, %c0_2] : memref<1x16x16x128xbf16, #tpu.memory_space<vmem>>, vector<1x16x16x128xbf16>
    %1 = vector.shape_cast %0 : vector<1x16x16x128xbf16> to vector<256x128xbf16>
    %c0_3 = arith.constant 0 : index
    %c0_4 = arith.constant 0 : index
    %2 = vector.load %arg3[%c0_3, %c0_4] : memref<128x128xbf16, #tpu.memory_space<vmem>>, vector<128x128xbf16>
    %cst = arith.constant dense<0.000000e+00> : vector<256x128xf32>
    %3 = tpu.matmul %1, %2, %cst {dimension_numbers = #tpu.dot_dimension_numbers<[1], [0], [0], [1], [0, 0, 1, 1], [], []>} : vector<256x128xbf16>, vector<128x128xbf16>, vector<256x128xf32> -> vector<256x128xf32>
    %4 = arith.truncf %3 : vector<256x128xf32> to vector<256x128xbf16>
    %5 = vector.shape_cast %4 : vector<256x128xbf16> to vector<1x16x16x128xbf16>
    %c0_5 = arith.constant 0 : index
    %c0_6 = arith.constant 0 : index
    %c0_7 = arith.constant 0 : index
    %c0_8 = arith.constant 0 : index
    %6 = vector.load %arg6[%c0_5, %c0_6, %c0_7, %c0_8] : memref<1x16x16x128xbf16, #tpu.memory_space<vmem>>, vector<1x16x16x128xbf16>
    tpu.vector_store %arg6[%c0_5, %c0_6, %c0_7, %c0_8], %5 {strides = array<i32>} : memref<1x16x16x128xbf16, #tpu.memory_space<vmem>>, vector<1x16x16x128xbf16>,
    %cst_9 = arith.constant dense<0.000000e+00> : vector<128xf32>
    %7 = vector.multi_reduction <add>, %3, %cst_9 [0] : vector<256x128xf32> to vector<128xf32>
    %8 = vector.shape_cast %7 : vector<128xf32> to vector<1x128xf32>
    %c0_10 = arith.constant 0 : index
    %c0_11 = arith.constant 0 : index
    %c0_12 = arith.constant 0 : index
    %9 = vector.load %arg7[%c0_10, %c0_11, %c0_12] : memref<1x1x128xf32, #tpu.memory_space<vmem>>, vector<1x1x128xf32>
    %10 = vector.shape_cast %9 : vector<1x1x128xf32> to vector<1x128xf32>
    %11 = vector.shape_cast %8 : vector<1x128xf32> to vector<1x1x128xf32>
    tpu.vector_store %arg7[%c0_10, %c0_11, %c0_12], %11 {strides = array<i32>} : memref<1x1x128xf32, #tpu.memory_space<vmem>>, vector<1x1x128xf32>,
    %12 = arith.mulf %3, %3 : vector<256x128xf32>
    %cst_13 = arith.constant dense<0.000000e+00> : vector<128xf32>
    %13 = vector.multi_reduction <add>, %12, %cst_13 [0] : vector<256x128xf32> to vector<128xf32>
    %14 = vector.shape_cast %13 : vector<128xf32> to vector<1x128xf32>
    %c0_14 = arith.constant 0 : index
    %c0_15 = arith.constant 0 : index
    %c0_16 = arith.constant 0 : index
    %15 = vector.load %arg8[%c0_14, %c0_15, %c0_16] : memref<1x1x128xf32, #tpu.memory_space<vmem>>, vector<1x1x128xf32>
    %16 = vector.shape_cast %15 : vector<1x1x128xf32> to vector<1x128xf32>
    %17 = vector.shape_cast %14 : vector<1x128xf32> to vector<1x1x128xf32>
    tpu.vector_store %arg8[%c0_14, %c0_15, %c0_16], %17 {strides = array<i32>} : memref<1x1x128xf32, #tpu.memory_space<vmem>>, vector<1x1x128xf32>,
    return
  }
  func.func @transform_0(%arg0: i32, %arg1: i32) -> (i32, i32, i32, i32) {
    %c0_i32 = arith.constant 0 : i32
    %c0_i32_0 = arith.constant 0 : i32
    %c0_i32_1 = arith.constant 0 : i32
    %c0_i32_2 = arith.constant 0 : i32
    return %arg0, %c0_i32, %c0_i32_0, %c0_i32_1 : i32, i32, i32, i32
  }
  func.func @transform_1(%arg0: i32, %arg1: i32) -> (i32, i32) {
    %c0_i32 = arith.constant 0 : i32
    %c0_i32_0 = arith.constant 0 : i32
    return %c0_i32, %arg1 : i32, i32
  }
  func.func @transform_2(%arg0: i32, %arg1: i32) -> (i32, i32) {
    %c0_i32 = arith.constant 0 : i32
    %c0_i32_0 = arith.constant 0 : i32
    %c0_i32_1 = arith.constant 0 : i32
    return %c0_i32, %c0_i32_0 : i32, i32
  }
  func.func @transform_3(%arg0: i32, %arg1: i32) -> (i32, i32) {
    %c0_i32 = arith.constant 0 : i32
    %c0_i32_0 = arith.constant 0 : i32
    %c0_i32_1 = arith.constant 0 : i32
    return %c0_i32, %c0_i32_0 : i32, i32
  }
  func.func @transform_4(%arg0: i32, %arg1: i32) -> (i32, i32, i32, i32) {
    %c0_i32 = arith.constant 0 : i32
    %c0_i32_0 = arith.constant 0 : i32
    %c0_i32_1 = arith.constant 0 : i32
    return %arg0, %c0_i32, %c0_i32_0, %arg1 : i32, i32, i32, i32
  }
  func.func @transform_5(%arg0: i32, %arg1: i32) -> (i32, i32, i32) {
    %c0_i32 = arith.constant 0 : i32
    %c0_i32_0 = arith.constant 0 : i32
    return %arg0, %c0_i32, %arg1 : i32, i32, i32
  }
  func.func @transform_6(%arg0: i32, %arg1: i32) -> (i32, i32, i32) {
    %c0_i32 = arith.constant 0 : i32
    %c0_i32_0 = arith.constant 0 : i32
    return %arg0, %c0_i32, %arg1 : i32, i32, i32
  }
}

</mosaic_0001>

<bundles_post_ra>
// kernel: _lambda_.5
= control target key start
LH: loop header
LB: loop body
LE: loop exit
PB: predicated region body
PF: predicated region fallthrough
CT: control target
= control target key end

     0   :  { %12 = vsyncpa [#allocation3], 0  ;;  %s2424_s0 = inlined_call_operand.hbm [shape: bf16[2,16,16,128], index: 0, kind: input, shape index: {}]   ;;  %s2425_s1 = inlined_call_operand.hbm [shape: bf16[128,128], index: 1, kind: input, shape index: {}]   ;;  %s2426_s2 = inlined_call_operand.hbm [shape: f32[1,128], index: 2, kind: input, shape index: {}]   ;;  %s2427_s3 = inlined_call_operand.hbm [shape: f32[1,128], index: 3, kind: input, shape index: {}]   ;;  %s2428_s4 = inlined_call_operand.hbm [shape: bf16[2,16,16,128], index: 4, kind: output, shape index: {0}]   ;;  %s2429_s5 = inlined_call_operand.hbm [shape: f32[2,1,128], index: 5, kind: output, shape index: {1}]   ;;  %s2430_s6 = inlined_call_operand.hbm [shape: f32[2,1,128], index: 6, kind: output, shape index: {2}]  }
   0x1   :  { %14 = vsyncpa [#allocation3 + $0x1], 0 }
   0x2   :  { %15 = vsyncpa [#allocation6], 0 }
   0x3   :  { %16 = vsyncpa [#allocation9], 0 }
   0x4   :  { %17 = vsyncpa [#allocation4], 0 }
   0x5   :  { %19 = vsyncpa [#allocation4 + $0x1], 0 }
   0x6   :  { %20 = vsyncpa [#allocation12], 0 }
   0x7   :  { %22 = vsyncpa [#allocation12 + $0x1], 0  ;;  %s1932_s21 = smov 0   ;;  %s1934_s22 = smov 0  }
   0x8   :  { %s1936_s23 = smov 0   ;;  %s1938_s24 = smov 0  }
   0x9   :  { %s1940_s25 = smov 0   ;;  %s1942_s26 = smov 0  }
   0xa LB: > { %2437 = sst [smem:[#allocation19_spill]] %s1864_s21  ;;  %s1963_s27 = sadd.s32 4294967295, %s1884_s26   ;;  %s1884_s26 = sphi %s1942_s26, %s28_s26   ;;  %s1880_s25 = sphi %s1940_s25, %s2462_s25   ;;  %s1876_s24 = sphi %s1938_s24, %s2461_s24   ;;  %s1872_s23 = sphi %s1936_s23, %s2460_s23   ;;  %s1868_s22 = sphi %s1934_s22, %s2459_s22   ;;  %s1864_s21 = sphi %s1932_s21, %s2458_s21  }
   0xb   : > { %s2432_s28 = sadd.s32 4294967294, %s1884_s26   ;;  %p60_p0 = scmp.ne.s32.totalorder %s1868_s22, %s1864_s21 }
   0xc   : > { %p2431_p1 = scmp.eq.s32.totalorder %s1963_s27, 0  ;;  %p160_p3 = scmp.eq.s32.totalorder %s2432_s28, 1 }
   0xd   : > { %p1195_p5 = scmp.ge.s32.totalorder %s1884_s26, 1  ;;  %p223_p7 = scmp.lt.s32.totalorder %s1884_s26, 3 }
   0xe   : > { %p1974_p4 = por %p2431_p1, %p60_p0  ;;  %p1979_p6 = por %p160_p3, %p60_p0 }
   0xf   : > { %p1984_p8 = pnand %p1195_p5, %p223_p7  ;;  %s1886_s8 = smov [#allocation5]  }
  0x10   : > { %s2438_s29 = scalar_select %p1974_p4, 1, 0 }
  0x11   : > { %s2439_s30 = scalar_select %p1979_p6, 1, 0 }
  0x12   : > { %s2441_s7 = scalar_select %p1984_p8, 1, 0 }
  0x13   : > { %2440 = sst [smem:[#allocation20_spill]] %s2439_s30  ;;  %s237_s9 = sshll.u32 %s1886_s8, 4  ;;  %s1988_s9 = int_to_ptr.vmem [resolvable:$true] %s237_s9 }
  0x14   : > { %p1509_p9 = pneg %p1984_p8  ;;  %s1887_s11 = smov [#allocation7]  }
  0x15   : > { %s251_s12 = sshll.u32 %s1887_s11, 4  ;;  %s1888_s13 = smov [#allocation8]   ;;  %s1999_s12 = int_to_ptr.vmem [resolvable:$true] %s251_s12 }
  0x16   : > { %p1995_p11 = pnand %p1509_p9, %p2431_p1  ;;  %s2001_s14 = sshll.u32 %s1888_s13, 4  ;;  %s263_s14 = int_to_ptr.vmem [resolvable:$true] %s2001_s14 }
  0x17   : > { %s1620_s17 = scalar_lea.hbm %s2425_s1, 1024 }
  0x18   : > { %p1621_p12 = scmp.ne.s32.totalorder %s2425_s1, %s1620_s17  ;;  %p2011_p13 = pneg %p1995_p11 }
  0x19   : > { %p1627_p5 = scmp.lt.u32.totalorder %s1620_s17, %s2425_s1 }
  0x1a   : > { %p1623_p0 = pnand %p2011_p13, %p1621_p12 }
  0x1c   : > { %p1624_p3 = pneg %p1623_p0 }
  0x1e   : > { %p1629_p7 = pnand %p1627_p5, %p1624_p3 }
  0x20   : > { %1632 = shalt.err (!%p1629_p7)
}
  0x21   : > { %s1633_s13 = scalar_lea.vmem %s1988_s9, 1024  ;;  %p1641_p2 = scmp.lt.s32.totalorder %s1988_s9, %s1988_s9 }
  0x22   : > { %p1634_p9 = scmp.ne.s32.totalorder %s1988_s9, %s1633_s13  ;;  %p1642_p6 = scmp.lt.s32.totalorder %s1633_s13, %s1633_s13 }
  0x24   : > { %p1636_p10 = pnand %p1634_p9, %p2011_p13  ;;  %p1643_p12 = por %p1642_p6, %p1641_p2 }
  0x26   : > { %p1637_p1 = pneg %p1636_p10 }
  0x28   : > { %p1644_p0 = pnand %p1643_p12, %p1637_p1 }
  0x2a   : > { %1647 = shalt.err (!%p1644_p0)
}
  0x2b   : > { %s1889_s15 = smov 64   ;;  %s1890_s16 = smov 4  }
  0x2c   : > { %1512 = dma.hbm_to_vmem [thread:$0]  (!%p1995_p11), %s2425_s1, 1024, %s1988_s9, [#allocation6], %s1889_s15, %s1889_s15, %s1890_s16  }
  0x2d   : > { %s1648_s11 = scalar_lea.hbm %s2426_s2, 16 }
  0x2e   : > { %p1649_p1 = scmp.ne.s32.totalorder %s2426_s2, %s1648_s11  ;;  %p1655_p10 = scmp.lt.u32.totalorder %s1648_s11, %s2426_s2 }
  0x30   : > { %p1651_p2 = pnand %p1649_p1, %p2011_p13 }
  0x32   : > { %p1652_p6 = pneg %p1651_p2 }
  0x34   : > { %p1657_p3 = pnand %p1655_p10, %p1652_p6 }
  0x36   : > { %1660 = shalt.err (!%p1657_p3)
}
  0x37   : > { %s1661_s9 = scalar_lea.vmem %s1999_s12, 16  ;;  %s1668_s28 = scalar_lea.vmem %s1999_s12, 32 }
  0x38   : > { %p1662_p5 = scmp.ne.s32.totalorder %s1999_s12, %s1661_s9  ;;  %p1669_p12 = scmp.lt.s32.totalorder %s1999_s12, %s1999_s12 }
  0x39   : > { %p1670_p0 = scmp.lt.s32.totalorder %s1668_s28, %s1661_s9 }
  0x3a   : > { %p1664_p7 = pnand %p1662_p5, %p2011_p13 }
  0x3b   : > { %p1671_p1 = por %p1670_p0, %p1669_p12 }
  0x3c   : > { %p1665_p9 = pneg %p1664_p7 }
  0x3e   : > { %p1672_p2 = pnand %p1671_p1, %p1665_p9 }
  0x40   : > { %1675 = shalt.err (!%p1672_p2)
}
  0x41   : > { %1515 = dma.hbm_to_vmem [thread:$0]  (!%p1995_p11), %s2426_s2, 16, %s1999_s12, [#allocation6]  }
  0x42   : > { %s1676_s19 = scalar_lea.hbm %s2427_s3, 16 }
  0x43   : > { %p1677_p6 = scmp.ne.s32.totalorder %s2427_s3, %s1676_s19  ;;  %p1683_p5 = scmp.lt.u32.totalorder %s1676_s19, %s2427_s3 }
  0x45   : > { %p1679_p10 = pnand %p1677_p6, %p2011_p13 }
  0x47   : > { %p1680_p3 = pneg %p1679_p10 }
  0x49   : > { %p1685_p7 = pnand %p1683_p5, %p1680_p3 }
  0x4b   : > { %1688 = shalt.err (!%p1685_p7)
}
  0x4c   : > { %s1689_s28 = scalar_lea.vmem %s263_s14, 16  ;;  %s1696_s12 = scalar_lea.vmem %s263_s14, 32 }
  0x4d   : > { %p1690_p9 = scmp.ne.s32.totalorder %s263_s14, %s1689_s28  ;;  %p1697_p1 = scmp.lt.s32.totalorder %s263_s14, %s263_s14 }
  0x4e   : > { %p1698_p2 = scmp.lt.s32.totalorder %s1696_s12, %s1689_s28 }
  0x4f   : > { %p1692_p12 = pnand %p1690_p9, %p2011_p13 }
  0x50   : > { %p1699_p4 = por %p1698_p2, %p1697_p1 }
  0x51   : > { %p1693_p0 = pneg %p1692_p12 }
  0x53   : > { %p1700_p8 = pnand %p1699_p4, %p1693_p0 }
  0x55   : > { %1703 = shalt.err (!%p1700_p8)
}
  0x56   : > { %1518 = dma.hbm_to_vmem [thread:$0]  (!%p1995_p11), %s2427_s3, 16, %s263_s14, [#allocation9]  }
  0x57   : > { %s47_s20 = sadd.s32 1, %s1872_s23  ;;  %s40_s17 = sadd.s32 1, %s1880_s25 }
  0x58   : > { %p54_p4 = scmp.ne.s32.totalorder %s1872_s23, %s1868_s22  ;;  %p42_p8 = scmp.ge.s32.totalorder %s40_s17, 2 }
  0x59   : > { %p55_p13 = scmp.eq.s32.totalorder %s1884_s26, 0  ;;  %p2444_p6 = scmp.eq.s32.totalorder %s1963_s27, 1 }
  0x5a   : > { %p1536_p3 = scmp.lt.s32.totalorder %s1884_s26, 2  ;;  %s2464_s17 = smov (%p42_p8, %s40_s17), 0 }
  0x5b   : > { %p2085_p10 = por %p2444_p6, %p54_p4  ;;  %p56_p5 = por %p55_p13, %p54_p4 }
  0x5c   : > { %s273_s18 = sand.u32 1, %s1872_s23   ;;  %s44_s19 = ssub.s32 %s1880_s25, %s2464_s17 }
  0x5d   : > { %p45_p7 = scmp.eq.s32.totalorder %s44_s19, 0  ;;  %s1200_s14 = sshll.u32 %s273_s18, 7 }
  0x5e   : > { %s1272_s8 = sshll.u32 %s1880_s25, 11  ;;  %s277_s12 = scalar_lea.vmem [#allocation2], %s1200_s14 }
  0x5f   : > { %s2097_s11 = scalar_select %p45_p7, %s1872_s23, %s47_s20  }
  0x60   : > { %s2102_s28 = scalar_lea.hbm %s2424_s0, %s1272_s8  ;;  %s284_s21 = sshll.u32 %s277_s12, 4  ;;  %s2104_s21 = int_to_ptr.vmem [resolvable:$true] %s284_s21 }
  0x61   : > { %p2108_p11 = pnand %p1536_p3, %p56_p5  ;;  %s2112_s20 = scalar_lea.sflag [#allocation3], %s273_s18 }
  0x62   : > { %s1704_s19 = scalar_lea.hbm %s2102_s28, 2048  ;;  %s1709_s13 = scalar_lea.hbm %s2424_s0, 4096 }
  0x63   : > { %p1705_p9 = scmp.ne.s32.totalorder %s2102_s28, %s1704_s19  ;;  %p1706_p12 = pneg %p2108_p11 }
  0x64   : > { %p1710_p2 = scmp.lt.u32.totalorder %s2102_s28, %s2424_s0  ;;  %p1711_p4 = scmp.lt.u32.totalorder %s1709_s13, %s1704_s19 }
  0x65   : > { %p1707_p0 = pnand %p1706_p12, %p1705_p9  ;;  %p1713_p13 = scmp.lt.u32.totalorder %s1704_s19, %s2102_s28 }
  0x66   : > { %p1712_p8 = por %p1711_p4, %p1710_p2 }
  0x67   : > { %p1708_p1 = pneg %p1707_p0 }
  0x68   : > { %p1714_p6 = por %p1713_p13, %p1712_p8 }
  0x6a   : > { %p1715_p3 = pnand %p1714_p6, %p1708_p1 }
  0x6c   : > { %1718 = shalt.err (!%p1715_p3)
}
  0x6d   : > { %s1719_s18 = scalar_lea.vmem %s2104_s21, 2048  ;;  %s1891_s14 = smov [#allocation2]  }
  0x6e   : > { %p1720_p5 = scmp.ne.s32.totalorder %s2104_s21, %s1719_s18  ;;  %s1724_s8 = sshll.u32 %s1891_s14, 4  ;;  %s1725_s8 = int_to_ptr.vmem [resolvable:$false] %s1724_s8 }
  0x6f   : > { %s1726_s9 = scalar_lea.vmem %s1725_s8, 4096  ;;  %p1727_p0 = scmp.lt.s32.totalorder %s2104_s21, %s1725_s8 }
  0x70   : > { %p1722_p7 = pnand %p1720_p5, %p1706_p12  ;;  %p1728_p2 = scmp.lt.s32.totalorder %s1726_s9, %s1719_s18 }
  0x72   : > { %p1723_p9 = pneg %p1722_p7  ;;  %p1729_p4 = por %p1728_p2, %p1727_p0 }
  0x74   : > { %p1730_p8 = pnand %p1729_p4, %p1723_p9 }
  0x76   : > { %1733 = shalt.err (!%p1730_p8)
}
  0x77   : > { %1522 = dma.hbm_to_vmem [thread:$0]  (!%p2108_p11), %s2102_s28, 2048, %s2104_s21, %s2112_s20, %s1889_s15, %s1889_s15, %s1890_s16  }
  0x78   : > { %p2447_p12 = scmp.ne.s32.totalorder %s2441_s7, 0 }
  0x79   : > { %s2146_s19 = sand.u32 (!%p2447_p12), 1, %s1868_s22   ;;  %p2448_p1 = scmp.ne.s32.totalorder (!%p2447_p12), %s2438_s29, 0 }
  0x7a   : > { %296 = sbr.rel (%p2447_p12) target bundleno = 505 (0x1f9), region = 36  ;;  %s1204_s13 = sshll.u32 (!%p2447_p12), %s2146_s19, 7 }
  0x7b   : > { %s299_s12 = scalar_lea.sflag (!%p2447_p12), [#allocation3], %s2146_s19  ;;  %s2152_s30 = scalar_lea.vmem (!%p2447_p12), [#allocation2], %s1204_s13 }
  0x81   : > { %1843 = dma.done.wait (%p2448_p1), %s299_s12, 2048  }
  0x82   : > { %1845 = vsyncadd (%p2448_p1), %s299_s12, 4294965248  ;;  %p2449_p11 = scmp.eq.s32.totalorder %s1963_s27, 0 }
  0x84   : > { %1847 = dma.done.wait (%p2449_p11), [#allocation6], 1040   ;;  %p2450_p13 = pmov %p2449_p11 }
  0x85   : > { %p2451_p6 = pmov %p2449_p11 }
  0x86   : > { %1849 = vsyncadd (%p2450_p13), [#allocation6], 4294966256 }
  0x87   : > { %1851 = dma.done.wait (%p2451_p6), [#allocation9], 16   ;;  %p2452_p3 = pmov %p2451_p6 }
  0x88   : > { %v1596_v0 = vld [vmem:[#allocation5] sm:$0xff]   ;;  %v1597_v1 = vld [vmem:[#allocation5 + $0x8] sm:$0xff]   ;;  %v1598_v2 = vld [vmem:[#allocation5 + $0x10] sm:$0xff]   ;;  %s2196_s29 = scalar_lea.vmem [#allocation10], %s1204_s13  ;;  %s1305_s7 = sshll.u32 %s1876_s24, 11 }
  0x89   : > { %1853 = vsyncadd (%p2452_p3), [#allocation9], 4294967280  ;;  %1425 = vmatprep.subr.bf16.mxu0 %v1596_v0  ;;  %1473 = vmatprep.subr.bf16.mxu1 %v1596_v0  ;;  %v1599_v3 = vld [vmem:[#allocation5 + $0x18] sm:$0xff]   ;;  %v1604_v4 = vld [vmem:[%s2152_s30] sm:$0xff]   ;;  %s996_s15 = sshll.u32 %s2196_s29, 4  ;;  %s2249_s21 = scalar_lea.hbm %s2428_s4, %s1305_s7  ;;  %s2251_s15 = int_to_ptr.vmem [resolvable:$true] %s996_s15 }
  0x8a   : > { %1426 = vmatpush3.bf16.msra.mxu0 %v1596_v0  ;;  %1481 = vmatpush3.bf16.msra.mxu1 %v1596_v0  ;;  %v1600_v5 = vld [vmem:[#allocation5 + $0x20] sm:$0xff]   ;;  %v1601_v6 = vld [vmem:[#allocation5 + $0x28] sm:$0xff]   ;;  %v1602_v8 = vld [vmem:[#allocation5 + $0x30] sm:$0xff]   ;;  %s974_s20 = scalar_lea.sflag [#allocation4], %s2146_s19  ;;  %s1734_s18 = scalar_lea.vmem %s2251_s15, 2048 }
  0x8b   : > { %1427 = vmatprep.subr.bf16.mxu0 %v1597_v1  ;;  %1474 = vmatprep.subr.bf16.mxu1 %v1597_v1  ;;  %v1612_v7 = vld [vmem:[%s2152_s30 + $0x40] sm:$0xff]   ;;  %v1603_v9 = vld [vmem:[#allocation5 + $0x38] sm:$0xff]   ;;  %v1605_v10 = vld [vmem:[%s2152_s30 + $0x8] sm:$0xff]   ;;  %p1735_p5 = scmp.ne.s32.totalorder %s2251_s15, %s1734_s18  ;;  %s1892_s14 = smov [#allocation10]  }
  0x8c   : > { %1441 = vmatprep.mubr.bf16.mxu0 %v1604_v4  ;;  %1457 = vmatprep.mubr.bf16.mxu1 %v1612_v7  ;;  %v1613_v11 = vld [vmem:[%s2152_s30 + $0x48] sm:$0xff]   ;;  %v1606_v12 = vld [vmem:[%s2152_s30 + $0x10] sm:$0xff]   ;;  %v1607_v14 = vld [vmem:[%s2152_s30 + $0x18] sm:$0xff]   ;;  %s1738_s8 = sshll.u32 %s1892_s14, 4  ;;  %s1739_s8 = int_to_ptr.vmem [resolvable:$false] %s1738_s8 }
  0x8d   : > { %v1614_v13 = vld [vmem:[%s2152_s30 + $0x50] sm:$0xff]   ;;  %v1615_v15 = vld [vmem:[%s2152_s30 + $0x58] sm:$0xff]   ;;  %v1608_v16 = vld [vmem:[%s2152_s30 + $0x20] sm:$0xff]   ;;  %p1736_p7 = pnand %p1735_p5, %p2085_p10  ;;  %s1740_s9 = scalar_lea.vmem %s1739_s8, 4096 }
  0x8e   : > { %1428 = vmatpush3.bf16.msra.mxu0 %v1597_v1  ;;  %1482 = vmatpush3.bf16.msra.mxu1 %v1597_v1  ;;  %v1616_v17 = vld [vmem:[%s2152_s30 + $0x60] sm:$0xff]   ;;  %v1609_v18 = vld [vmem:[%s2152_s30 + $0x28] sm:$0xff]   ;;  %v1610_v20 = vld [vmem:[%s2152_s30 + $0x30] sm:$0xff]   ;;  %p1741_p0 = scmp.lt.s32.totalorder %s2251_s15, %s1739_s8  ;;  %p1742_p2 = scmp.lt.s32.totalorder %s1740_s9, %s1734_s18 }
  0x8f   : > { %1429 = vmatprep.subr.bf16.mxu0 %v1598_v2  ;;  %1475 = vmatprep.subr.bf16.mxu1 %v1598_v2  ;;  %v1617_v19 = vld [vmem:[%s2152_s30 + $0x68] sm:$0xff]   ;;  %v1618_v21 = vld [vmem:[%s2152_s30 + $0x70] sm:$0xff]   ;;  %v1611_v22 = vld [vmem:[%s2152_s30 + $0x38] sm:$0xff]   ;;  %p1737_p9 = pneg %p1736_p7 }
  0x90   : > { %v1619_v23 = vld [vmem:[%s2152_s30 + $0x78] sm:$0xff]   ;;  %p1743_p4 = por %p1742_p2, %p1741_p0 }
  0x92   : > { %1430 = vmatpush3.bf16.msra.mxu0 %v1598_v2  ;;  %1483 = vmatpush3.bf16.msra.mxu1 %v1598_v2  ;;  %p1744_p8 = pnand %p1743_p4, %p1737_p9 }
  0x93   : > { %1431 = vmatprep.subr.bf16.mxu0 %v1599_v3  ;;  %1476 = vmatprep.subr.bf16.mxu1 %v1599_v3 }
  0x96   : > { %1432 = vmatpush3.bf16.msra.mxu0 %v1599_v3  ;;  %1484 = vmatpush3.bf16.msra.mxu1 %v1599_v3 }
  0x97   : > { %1433 = vmatprep.subr.bf16.mxu0 %v1600_v5  ;;  %1477 = vmatprep.subr.bf16.mxu1 %v1600_v5 }
  0x9a   : > { %1434 = vmatpush3.bf16.msra.mxu0 %v1600_v5  ;;  %1485 = vmatpush3.bf16.msra.mxu1 %v1600_v5 }
  0x9b   : > { %1435 = vmatprep.subr.bf16.mxu0 %v1601_v6  ;;  %1478 = vmatprep.subr.bf16.mxu1 %v1601_v6 }
  0x9e   : > { %1436 = vmatpush3.bf16.msra.mxu0 %v1601_v6  ;;  %1486 = vmatpush3.bf16.msra.mxu1 %v1601_v6 }
  0x9f   : > { %1437 = vmatprep.subr.bf16.mxu0 %v1602_v8  ;;  %1479 = vmatprep.subr.bf16.mxu1 %v1602_v8 }
  0xa2   : > { %1438 = vmatpush3.bf16.msra.mxu0 %v1602_v8  ;;  %1487 = vmatpush3.bf16.msra.mxu1 %v1602_v8 }
  0xa3   : > { %1439 = vmatprep.subr.bf16.mxu0 %v1603_v9  ;;  %1480 = vmatprep.subr.bf16.mxu1 %v1603_v9 }
  0xa6   : > { %1440 = vmatpush3.bf16.msra.mxu0 %v1603_v9  ;;  %1488 = vmatpush3.bf16.msra.mxu1 %v1603_v9 }
  0xa9   : > { %1442 = vmatmul.mubr.bf16.vlgmr.msra.gmra.mrb[0].mxu0 %v1605_v10  ;;  %1458 = vmatmul.mubr.bf16.vlgmr.msra.gmra.mrb[0].mxu1 %v1613_v11 }
  0xaa   : > { %1445 = vmatprep.mubr.bf16.mxu0 %v1606_v12  ;;  %1461 = vmatprep.mubr.bf16.mxu1 %v1614_v13 }
  0xb1   : > { %1446 = vmatmul.mubr.bf16.gmra.mrb[4].mxu0 %v1607_v14  ;;  %1462 = vmatmul.mubr.bf16.gmra.mrb[4].mxu1 %v1615_v15 }
  0xb2   : > { %1449 = vmatprep.mubr.bf16.mxu0 %v1608_v16  ;;  %1465 = vmatprep.mubr.bf16.mxu1 %v1616_v17 }
  0xb9   : > { %1450 = vmatmul.mubr.bf16.gmra.mrb[8].mxu0 %v1609_v18  ;;  %1466 = vmatmul.mubr.bf16.gmra.mrb[8].mxu1 %v1617_v19 }
  0xba   : > { %1453 = vmatprep.mubr.bf16.mxu0 %v1610_v20  ;;  %1469 = vmatprep.mubr.bf16.mxu1 %v1618_v21 }
  0xc1   : > { %1454 = vmatmul.mubr.bf16.gmra.mrb[12].mxu0 %v1611_v22  ;;  %1470 = vmatmul.mubr.bf16.gmra.mrb[12].mxu1 %v1619_v23 }
 0x17c   : > { %v1443_v24 = vpop.f32.mrb[0].mxu0  ;;  %v2182_v25 = vpop.f32.mrb[0].mxu1 }
 0x17d   : > { %v578_v26 = vpop.f32.mrb[1].mxu0  ;;  %v2184_v27 = vpop.f32.mrb[1].mxu1  ;;  %v905_v39 = vmul.f32 %v1443_v24, %v1443_v24 }
 0x17e   : > { %v1444_v28 = vpop.f32.mrb[2].mxu0  ;;  %v2186_v29 = vpop.f32.mrb[2].mxu1  ;;  %v903_v30 = vmul.f32 %v578_v26, %v578_v26 }
 0x17f   : > { %v1314_v31 = vpack.c.bf16 %v1444_v28, %v1443_v24  ;;  %v581_v32 = vpop.f32.mrb[3].mxu0  ;;  %v1354_v33 = vpack.c.bf16 %v2186_v29, %v2182_v25  ;;  %v2190_v34 = vpop.f32.mrb[3].mxu1  ;;  %v906_v42 = vmul.f32 %v1444_v28, %v1444_v28 }
 0x180   : > { %v1309_v35 = vpack.c.bf16 %v581_v32, %v578_v26  ;;  %v865_v36 = vadd.f32 %v581_v32, %v578_v26  ;;  %v904_v37 = vmul.f32 %v581_v32, %v581_v32  ;;  %v1349_v38 = vpack.c.bf16 %v2190_v34, %v2184_v27 }
 0x181   : > { %1386 = vst [vmem:[%s2196_s29 + $0x8] sm:$0xff] %v1314_v31   ;;  %1394 = vst [vmem:[%s2196_s29 + $0x48] sm:$0xff] %v1354_v33  }
 0x182   : > { %1310 = vst [vmem:[%s2196_s29] sm:$0xff] %v1309_v35   ;;  %v866_v40 = vadd.f32 %v1443_v24, %v865_v36  ;;  %v935_v41 = vadd.f32 %v904_v37, %v903_v30  ;;  %1393 = vst [vmem:[%s2196_s29 + $0x40] sm:$0xff] %v1349_v38  }
 0x184   : > { %v936_v43 = vadd.f32 %v935_v41, %v905_v39  ;;  %v1447_v44 = vpop.f32.mrb[4].mxu0  ;;  %v867_v45 = vadd.f32 %v1444_v28, %v866_v40  ;;  %v2202_v46 = vpop.f32.mrb[4].mxu1 }
 0x185   : > { %v594_v47 = vpop.f32.mrb[5].mxu0  ;;  %v2204_v48 = vpop.f32.mrb[5].mxu1  ;;  %v909_v63 = vmul.f32 %v1447_v44, %v1447_v44 }
 0x186   : > { %v868_v49 = vadd.f32 %v867_v45, %v594_v47  ;;  %v907_v50 = vmul.f32 %v594_v47, %v594_v47  ;;  %v937_v51 = vadd.f32 %v936_v43, %v906_v42  ;;  %v1448_v52 = vpop.f32.mrb[6].mxu0  ;;  %v2206_v53 = vpop.f32.mrb[6].mxu1 }
 0x187   : > { %v1324_v54 = vpack.c.bf16 %v1448_v52, %v1447_v44  ;;  %v597_v55 = vpop.f32.mrb[7].mxu0  ;;  %v1364_v56 = vpack.c.bf16 %v2206_v53, %v2202_v46  ;;  %v2210_v57 = vpop.f32.mrb[7].mxu1  ;;  %v910_v2 = vmul.f32 %v1448_v52, %v1448_v52 }
 0x188   : > { %v938_v58 = vadd.f32 %v937_v51, %v907_v50  ;;  %v1319_v59 = vpack.c.bf16 %v597_v55, %v594_v47  ;;  %v869_v60 = vadd.f32 %v868_v49, %v597_v55  ;;  %v908_v61 = vmul.f32 %v597_v55, %v597_v55 }
 0x189   : > { %1388 = vst [vmem:[%s2196_s29 + $0x18] sm:$0xff] %v1324_v54   ;;  %1396 = vst [vmem:[%s2196_s29 + $0x58] sm:$0xff] %v1364_v56   ;;  %v1359_v62 = vpack.c.bf16 %v2210_v57, %v2204_v48 }
 0x18a   : > { %1387 = vst [vmem:[%s2196_s29 + $0x10] sm:$0xff] %v1319_v59   ;;  %v870_v0 = vadd.f32 %v1447_v44, %v869_v60  ;;  %v939_v1 = vadd.f32 %v938_v58, %v908_v61  ;;  %v919_v61 = vmul.f32 %v2184_v27, %v2184_v27 }
 0x18b   : > { %1395 = vst [vmem:[%s2196_s29 + $0x50] sm:$0xff] %v1359_v62  }
 0x18c   : > { %v940_v3 = vadd.f32 %v939_v1, %v909_v63  ;;  %v1451_v4 = vpop.f32.mrb[8].mxu0  ;;  %v871_v5 = vadd.f32 %v1448_v52, %v870_v0  ;;  %v2218_v6 = vpop.f32.mrb[8].mxu1 }
 0x18d   : > { %v610_v7 = vpop.f32.mrb[9].mxu0  ;;  %v2220_v8 = vpop.f32.mrb[9].mxu1  ;;  %v913_v23 = vmul.f32 %v1451_v4, %v1451_v4 }
 0x18e   : > { %v872_v9 = vadd.f32 %v871_v5, %v610_v7  ;;  %v911_v10 = vmul.f32 %v610_v7, %v610_v7  ;;  %v941_v11 = vadd.f32 %v940_v3, %v910_v2  ;;  %v1452_v12 = vpop.f32.mrb[10].mxu0  ;;  %v2222_v13 = vpop.f32.mrb[10].mxu1 }
 0x18f   : > { %v1334_v14 = vpack.c.bf16 %v1452_v12, %v1451_v4  ;;  %v613_v15 = vpop.f32.mrb[11].mxu0  ;;  %v1374_v16 = vpack.c.bf16 %v2222_v13, %v2218_v6  ;;  %v2226_v17 = vpop.f32.mrb[11].mxu1  ;;  %v914_v28 = vmul.f32 %v1452_v12, %v1452_v12 }
 0x190   : > { %v942_v18 = vadd.f32 %v941_v11, %v911_v10  ;;  %v1329_v19 = vpack.c.bf16 %v613_v15, %v610_v7  ;;  %v873_v20 = vadd.f32 %v872_v9, %v613_v15  ;;  %v912_v21 = vmul.f32 %v613_v15, %v613_v15 }
 0x191   : > { %1390 = vst [vmem:[%s2196_s29 + $0x28] sm:$0xff] %v1334_v14   ;;  %1398 = vst [vmem:[%s2196_s29 + $0x68] sm:$0xff] %v1374_v16   ;;  %v1369_v22 = vpack.c.bf16 %v2226_v17, %v2220_v8 }
 0x192   : > { %1389 = vst [vmem:[%s2196_s29 + $0x20] sm:$0xff] %v1329_v19   ;;  %v874_v24 = vadd.f32 %v1451_v4, %v873_v20  ;;  %v943_v26 = vadd.f32 %v942_v18, %v912_v21 }
 0x193   : > { %1397 = vst [vmem:[%s2196_s29 + $0x60] sm:$0xff] %v1369_v22  }
 0x194   : > { %v944_v30 = vadd.f32 %v943_v26, %v913_v23  ;;  %v1455_v31 = vpop.f32.mrb[12].mxu0  ;;  %v875_v32 = vadd.f32 %v1452_v12, %v874_v24  ;;  %v2234_v33 = vpop.f32.mrb[12].mxu1 }
 0x195   : > { %v626_v35 = vpop.f32.mrb[13].mxu0  ;;  %v2236_v36 = vpop.f32.mrb[13].mxu1  ;;  %v917_v54 = vmul.f32 %v1455_v31, %v1455_v31 }
 0x196   : > { %v876_v37 = vadd.f32 %v875_v32, %v626_v35  ;;  %v915_v38 = vmul.f32 %v626_v35, %v626_v35  ;;  %v945_v39 = vadd.f32 %v944_v30, %v914_v28  ;;  %v1456_v40 = vpop.f32.mrb[14].mxu0  ;;  %v2240_v41 = vpop.f32.mrb[14].mxu1 }
 0x197   : > { %v1344_v42 = vpack.c.bf16 %v1456_v40, %v1455_v31  ;;  %v629_v43 = vpop.f32.mrb[15].mxu0  ;;  %v1384_v44 = vpack.c.bf16 %v2240_v41, %v2234_v33  ;;  %v2244_v45 = vpop.f32.mrb[15].mxu1  ;;  %v918_v58 = vmul.f32 %v1456_v40, %v1456_v40 }
 0x198   : > { %v946_v47 = vadd.f32 %v945_v39, %v915_v38  ;;  %v1339_v49 = vpack.c.bf16 %v629_v43, %v626_v35  ;;  %v877_v50 = vadd.f32 %v876_v37, %v629_v43  ;;  %v916_v51 = vmul.f32 %v629_v43, %v629_v43 }
 0x199   : > { %1392 = vst [vmem:[%s2196_s29 + $0x38] sm:$0xff] %v1344_v42   ;;  %1400 = vst [vmem:[%s2196_s29 + $0x78] sm:$0xff] %v1384_v44   ;;  %v1379_v52 = vpack.c.bf16 %v2244_v45, %v2236_v36 }
 0x19a   : > { %1391 = vst [vmem:[%s2196_s29 + $0x30] sm:$0xff] %v1339_v49   ;;  %v878_v55 = vadd.f32 %v1455_v31, %v877_v50  ;;  %v947_v56 = vadd.f32 %v946_v47, %v916_v51 }
 0x19b   : > { %1399 = vst [vmem:[%s2196_s29 + $0x70] sm:$0xff] %v1379_v52  }
 0x19c   : > { %v948_v59 = vadd.f32 %v947_v56, %v917_v54  ;;  %v879_v60 = vadd.f32 %v1456_v40, %v878_v55 }
 0x19d   : > { %1747 = shalt.err (!%p1744_p8)
}
 0x19e   : > { %s1748_s13 = scalar_lea.hbm %s2249_s21, 2048  ;;  %s1752_s29 = scalar_lea.hbm %s2428_s4, 4096 }
 0x19f   : > { %p1749_p12 = scmp.ne.s32.totalorder %s2249_s21, %s1748_s13  ;;  %p1753_p13 = scmp.lt.u32.totalorder %s2249_s21, %s2428_s4 }
 0x1a0   : > { %p1754_p6 = scmp.lt.u32.totalorder %s1752_s29, %s1748_s13  ;;  %p1756_p5 = scmp.lt.u32.totalorder %s1748_s13, %s2249_s21 }
 0x1a1   : > { %p1750_p1 = pnand %p1749_p12, %p2085_p10 }
 0x1a2   : > { %p1755_p3 = por %p1754_p6, %p1753_p13 }
 0x1a3   : > { %p1751_p11 = pneg %p1750_p1 }
 0x1a4   : > { %p1757_p7 = por %p1756_p5, %p1755_p3 }
 0x1a6   : > { %p1758_p9 = pnand %p1757_p7, %p1751_p11 }
 0x1a8   : > { %1761 = shalt.err (!%p1758_p9)
}
 0x1a9   : > { %s1893_s28 = smov 64   ;;  %s1894_s18 = smov 4   ;;  %v880_v62 = vadd.f32 %v879_v60, %v2184_v27  ;;  %v949_v63 = vadd.f32 %v948_v59, %v918_v58  ;;  %v920_v2 = vmul.f32 %v2190_v34, %v2190_v34  ;;  %v921_v3 = vmul.f32 %v2182_v25, %v2182_v25 }
 0x1aa   : > { %1503 = dma.vmem_to_hbm [thread:$0]  (%p2085_p10), %s2251_s15, 2048, %s2249_s21, %s974_s20, %s1893_s28, %s1893_s28, %s1894_s18   ;;  %v922_v7 = vmul.f32 %v2186_v29, %v2186_v29  ;;  %v923_v27 = vmul.f32 %v2204_v48, %v2204_v48  ;;  %v924_v15 = vmul.f32 %v2210_v57, %v2210_v57  ;;  %v928_v24 = vmul.f32 %v2226_v17, %v2226_v17 }
 0x1ab   : > { %v950_v0 = vadd.f32 %v949_v63, %v919_v61  ;;  %v881_v1 = vadd.f32 %v880_v62, %v2190_v34  ;;  %v933_v38 = vmul.f32 %v2234_v33, %v2234_v33  ;;  %v934_v40 = vmul.f32 %v2240_v41, %v2240_v41  ;;  %s978_s15 = sand.u32 1, %s1963_s27   ;;  %s1268_s21 = sshll.u32 %s1876_s24, 4 }
 0x1ac   : > { %s344_s20 = scalar_lea.vmem [#allocation11], %s2146_s19  ;;  %s350_s8 = scalar_lea.vmem [#allocation13], %s2146_s19 }
 0x1ad   : > { %v882_v4 = vadd.f32 %v2182_v25, %v881_v1  ;;  %v951_v5 = vadd.f32 %v950_v0, %v920_v2  ;;  %v925_v25 = vmul.f32 %v2202_v46, %v2202_v46  ;;  %s1013_s14 = sshll.u32 %s344_s20, 4  ;;  %s1027_s9 = sshll.u32 %s350_s8, 4  ;;  %s2342_s14 = int_to_ptr.vmem [resolvable:$true] %s1013_s14  ;;  %s2349_s9 = int_to_ptr.vmem [resolvable:$true] %s1027_s9 }
 0x1ae   : > { %s2340_s30 = scalar_lea.hbm %s2429_s5, %s1268_s21  ;;  %s2347_s29 = scalar_lea.hbm %s2430_s6, %s1268_s21 }
 0x1af   : > { %v952_v9 = vadd.f32 %v951_v5, %v921_v3  ;;  %v883_v10 = vadd.f32 %v2186_v29, %v882_v4  ;;  %v926_v29 = vmul.f32 %v2206_v53, %v2206_v53  ;;  %s2351_s7 = scalar_lea.sflag [#allocation12], %s978_s15  ;;  %s1762_s16 = scalar_lea.vmem %s2342_s14, 16 }
 0x1b0   : > { %p1763_p0 = scmp.ne.s32.totalorder %s2342_s14, %s1762_s16  ;;  %s1895_s28 = smov [#allocation11]  }
 0x1b1   : > { %v884_v11 = vadd.f32 %v883_v10, %v2204_v48  ;;  %v953_v12 = vadd.f32 %v952_v9, %v922_v7  ;;  %v927_v48 = vmul.f32 %v2220_v8, %v2220_v8  ;;  %s1766_s18 = sshll.u32 %s1895_s28, 4  ;;  %s1767_s18 = int_to_ptr.vmem [resolvable:$false] %s1766_s18 }
 0x1b2   : > { %p1764_p2 = pnand %p1763_p0, %p2085_p10  ;;  %s1768_s13 = scalar_lea.vmem %s1767_s18, 32 }
 0x1b3   : > { %v954_v14 = vadd.f32 %v953_v12, %v923_v27  ;;  %v885_v34 = vadd.f32 %v884_v11, %v2210_v57  ;;  %p1769_p8 = scmp.lt.s32.totalorder %s2342_s14, %s1767_s18  ;;  %p1770_p12 = scmp.lt.s32.totalorder %s1768_s13, %s1762_s16 }
 0x1b4   : > { %p1765_p4 = pneg %p1764_p2 }
 0x1b5   : > { %v886_v16 = vadd.f32 %v2202_v46, %v885_v34  ;;  %v955_v18 = vadd.f32 %v954_v14, %v924_v15  ;;  %v929_v46 = vmul.f32 %v2218_v6, %v2218_v6  ;;  %p1771_p1 = por %p1770_p12, %p1769_p8 }
 0x1b7   : > { %v956_v19 = vadd.f32 %v955_v18, %v925_v25  ;;  %v887_v20 = vadd.f32 %v2206_v53, %v886_v16  ;;  %v930_v53 = vmul.f32 %v2222_v13, %v2222_v13  ;;  %p1772_p11 = pnand %p1771_p1, %p1765_p4 }
 0x1b9   : > { %v888_v21 = vadd.f32 %v887_v20, %v2220_v8  ;;  %v957_v22 = vadd.f32 %v956_v19, %v926_v29  ;;  %v931_v8 = vmul.f32 %v2236_v36, %v2236_v36 }
 0x1bb   : > { %v958_v23 = vadd.f32 %v957_v22, %v927_v48  ;;  %v889_v57 = vadd.f32 %v888_v21, %v2226_v17 }
 0x1bd   : > { %v890_v26 = vadd.f32 %v2218_v6, %v889_v57  ;;  %v959_v28 = vadd.f32 %v958_v23, %v928_v24  ;;  %v932_v6 = vmul.f32 %v2244_v45, %v2244_v45 }
 0x1bf   : > { %v960_v30 = vadd.f32 %v959_v28, %v929_v46  ;;  %v891_v31 = vadd.f32 %v2222_v13, %v890_v26 }
 0x1c1   : > { %v892_v32 = vadd.f32 %v891_v31, %v2236_v36  ;;  %v961_v35 = vadd.f32 %v960_v30, %v930_v53 }
 0x1c3   : > { %v962_v37 = vadd.f32 %v961_v35, %v931_v8  ;;  %v893_v17 = vadd.f32 %v892_v32, %v2244_v45 }
 0x1c5   : > { %v894_v13 = vadd.f32 %v2234_v33, %v893_v17  ;;  %v963_v39 = vadd.f32 %v962_v37, %v932_v6 }
 0x1c7   : > { %v895_v36 = vadd.f32 %v2240_v41, %v894_v13  ;;  %v964_v42 = vadd.f32 %v963_v39, %v933_v38 }
 0x1c9   : > { %v896_v43 = vrot.slane %v895_v36, 4  ;;  %v965_v44 = vadd.f32 %v964_v42, %v934_v40 }
 0x1cb   : > { %v897_v47 = vadd.f32 %v896_v43, %v895_v36  ;;  %v966_v45 = vrot.slane %v965_v44, 4 }
 0x1cd   : > { %v898_v49 = vrot.slane %v897_v47, 2  ;;  %v967_v50 = vadd.f32 %v966_v45, %v965_v44 }
 0x1cf   : > { %v899_v51 = vadd.f32 %v898_v49, %v897_v47  ;;  %v968_v52 = vrot.slane %v967_v50, 2 }
 0x1d1   : > { %v900_v33 = vrot.slane %v899_v51, 1  ;;  %v969_v54 = vadd.f32 %v968_v52, %v967_v50 }
 0x1d3   : > { %v970_v41 = vrot.slane %v969_v54, 1  ;;  %v901_v55 = vadd.f32 %v900_v33, %v899_v51 }
 0x1d5   : > { %902 = vst [vmem:[%s344_s20] sm:$0x1] %v901_v55  ;;  %v971_v56 = vadd.f32 %v970_v41, %v969_v54 }
 0x1d6   : > { %1775 = shalt.err (!%p1772_p11)
}
 0x1d7   : > { %s1776_s15 = scalar_lea.hbm %s2340_s30, 16  ;;  %s1780_s12 = scalar_lea.hbm %s2429_s5, 32 }
 0x1d8   : > { %p1777_p13 = scmp.ne.s32.totalorder %s2340_s30, %s1776_s15  ;;  %p1781_p5 = scmp.lt.u32.totalorder %s2340_s30, %s2429_s5 }
 0x1d9   : > { %p1782_p7 = scmp.lt.u32.totalorder %s1780_s12, %s1776_s15  ;;  %p1784_p0 = scmp.lt.u32.totalorder %s1776_s15, %s2340_s30 }
 0x1da   : > { %p1778_p6 = pnand %p1777_p13, %p2085_p10 }
 0x1db   : > { %p1783_p9 = por %p1782_p7, %p1781_p5 }
 0x1dc   : > { %p1779_p3 = pneg %p1778_p6 }
 0x1dd   : > { %p1785_p2 = por %p1784_p0, %p1783_p9 }
 0x1df   : > { %p1786_p4 = pnand %p1785_p2, %p1779_p3 }
 0x1e1   : > { %1789 = shalt.err (!%p1786_p4)
}
 0x1e2   : > { %1504 = dma.vmem_to_hbm [thread:$0]  (%p2085_p10), %s2342_s14, 16, %s2340_s30, %s2351_s7   ;;  %972 = vst [vmem:[%s350_s8] sm:$0x1] %v971_v56 }
 0x1e3   : > { %s1790_s16 = scalar_lea.vmem %s2349_s9, 16  ;;  %s1896_s28 = smov [#allocation13]  }
 0x1e4   : > { %p1791_p8 = scmp.ne.s32.totalorder %s2349_s9, %s1790_s16  ;;  %s1794_s18 = sshll.u32 %s1896_s28, 4  ;;  %s1795_s18 = int_to_ptr.vmem [resolvable:$false] %s1794_s18 }
 0x1e5   : > { %s1796_s13 = scalar_lea.vmem %s1795_s18, 32  ;;  %p1797_p11 = scmp.lt.s32.totalorder %s2349_s9, %s1795_s18 }
 0x1e6   : > { %p1792_p12 = pnand %p1791_p8, %p2085_p10  ;;  %p1798_p13 = scmp.lt.s32.totalorder %s1796_s13, %s1790_s16 }
 0x1e8   : > { %p1793_p1 = pneg %p1792_p12  ;;  %p1799_p6 = por %p1798_p13, %p1797_p11 }
 0x1ea   : > { %p1800_p3 = pnand %p1799_p6, %p1793_p1 }
 0x1ec   : > { %1803 = shalt.err (!%p1800_p3)
}
 0x1ed   : > { %s1804_s19 = scalar_lea.hbm %s2347_s29, 16  ;;  %s1808_s30 = scalar_lea.hbm %s2430_s6, 32 }
 0x1ee   : > { %p1805_p5 = scmp.ne.s32.totalorder %s2347_s29, %s1804_s19  ;;  %p1809_p0 = scmp.lt.u32.totalorder %s2347_s29, %s2430_s6 }
 0x1ef   : > { %p1810_p2 = scmp.lt.u32.totalorder %s1808_s30, %s1804_s19  ;;  %p1812_p8 = scmp.lt.u32.totalorder %s1804_s19, %s2347_s29 }
 0x1f0   : > { %p1806_p7 = pnand %p1805_p5, %p2085_p10 }
 0x1f1   : > { %p1811_p4 = por %p1810_p2, %p1809_p0 }
 0x1f2   : > { %p1807_p9 = pneg %p1806_p7 }
 0x1f3   : > { %p1813_p12 = por %p1812_p8, %p1811_p4 }
 0x1f5   : > { %p1814_p1 = pnand %p1813_p12, %p1807_p9 }
 0x1f7   : > { %1817 = shalt.err (!%p1814_p1)
}
 0x1f8   : > { %1505 = dma.vmem_to_hbm [thread:$0]  (%p2085_p10), %s2349_s9, 16, %s2347_s29, %s2351_s7  }
 0x1f9 PF: > { %s2453_s20 = sld [smem:[#allocation19_spill]]  ;;  %s2454_s12 = sld [smem:[#allocation20_spill]] }
 0x1fa   : > { %p2456_p13 = scmp.ge.s32.totalorder %s1884_s26, 2 }
 0x1ff   : > { %s1039_s24 = sand.u32 1, %s2453_s20   ;;  %p2455_p11 = scmp.ne.s32.totalorder %s2454_s12, 0 }
 0x200   : > { %s1040_s27 = scalar_lea.sflag [#allocation4], %s1039_s24 }
 0x201   : > { %p1524_p6 = pnand %p2456_p13, %p2455_p11 }
 0x203   : > { %1855 = dma.done.wait (!%p1524_p6), %s1040_s27, 2048  }
 0x204   : > { %1857 = vsyncadd (!%p1524_p6), %s1040_s27, 4294965248  ;;  %s2457_s16 = sadd.s32 4294967294, %s1884_s26  }
 0x205   : > { %s1048_s28 = sand.u32 1, %s2457_s16  }
 0x206   : > { %s1049_s18 = scalar_lea.sflag [#allocation12], %s1048_s28 }
 0x207   : > { %1859 = dma.done.wait (!%p1524_p6), %s1049_s18, 32  }
 0x208   : > { %1861 = vsyncadd (!%p1524_p6), %s1049_s18, 4294967264  ;;  %s28_s26 = sadd.s32 1, %s1884_s26   ;;  %s2458_s21 = smov %s1868_s22 }
 0x209   : > { %p25_p10 = scmp.ge.s32.totalorder %s28_s26, 4   ;;  %s2459_s22 = smov %s1872_s23 }
 0x20a   : > { %s2460_s23 = smov %s2097_s11  ;;  %s2461_s24 = smov %s1880_s25 }
 0x20b   : > { %s2462_s25 = smov %s2464_s17  ;;  %27 = sbr.rel (!%p25_p10) target bundleno = 10 (0xa), region = 126 }
 0x212   :  { %1061 = vsyncpa [#allocation3], 1 }
 0x213   :  { %1063 = vsyncpa [#allocation3 + $0x1], 1 }
 0x214   :  { %1064 = vsyncpa [#allocation6], 1 }
 0x215   :  { %1065 = vsyncpa [#allocation9], 1 }
 0x216   :  { %1066 = vsyncpa [#allocation4], 1 }
 0x217   :  { %1068 = vsyncpa [#allocation4 + $0x1], 1 }
 0x218   :  { %1069 = vsyncpa [#allocation12], 1 }
 0x219   :  { %1071 = vsyncpa [#allocation12 + $0x1], 1 }

// kernel: _lambda_.7
= control target key start
LH: loop header
LB: loop body
LE: loop exit
PB: predicated region body
PF: predicated region fallthrough
CT: control target
= control target key end

     0   :  { %12 = vsyncpa [#allocation4], 0  ;;  %s2750_s0 = inlined_call_operand.hbm [shape: bf16[2,16,16,128], index: 0, kind: input, shape index: {}]   ;;  %s2751_s1 = inlined_call_operand.hbm [shape: bf16[128,128], index: 1, kind: input, shape index: {}]   ;;  %s2752_s2 = inlined_call_operand.hbm [shape: f32[1,128], index: 2, kind: input, shape index: {}]   ;;  %s2753_s3 = inlined_call_operand.hbm [shape: f32[1,128], index: 3, kind: input, shape index: {}]   ;;  %s2754_s4 = inlined_call_operand.hbm [shape: bf16[2,16,16,128], index: 4, kind: output, shape index: {0}]   ;;  %s2755_s5 = inlined_call_operand.hbm [shape: f32[2,1,128], index: 5, kind: output, shape index: {1}]   ;;  %s2756_s6 = inlined_call_operand.hbm [shape: f32[2,1,128], index: 6, kind: output, shape index: {2}]  }
   0x1   :  { %14 = vsyncpa [#allocation4 + $0x1], 0 }
   0x2   :  { %15 = vsyncpa [#allocation7], 0 }
   0x3   :  { %16 = vsyncpa [#allocation10], 0 }
   0x4   :  { %17 = vsyncpa [#allocation5], 0 }
   0x5   :  { %19 = vsyncpa [#allocation5 + $0x1], 0 }
   0x6   :  { %20 = vsyncpa [#allocation13], 0 }
   0x7   :  { %22 = vsyncpa [#allocation13 + $0x1], 0  ;;  %s2143_s21 = smov 0   ;;  %s2145_s22 = smov 0  }
   0x8   :  { %s2147_s23 = smov 0   ;;  %s2149_s24 = smov 0  }
   0x9   :  { %s2151_s25 = smov 0   ;;  %s2153_s26 = smov 0  }
   0xa LB: > { %2763 = sst [smem:[#allocation20_spill]] %s2075_s21  ;;  %s2174_s27 = sadd.s32 4294967295, %s2095_s26   ;;  %s2095_s26 = sphi %s2153_s26, %s28_s26   ;;  %s2091_s25 = sphi %s2151_s25, %s2788_s25   ;;  %s2087_s24 = sphi %s2149_s24, %s2787_s24   ;;  %s2083_s23 = sphi %s2147_s23, %s2786_s23   ;;  %s2079_s22 = sphi %s2145_s22, %s2785_s22   ;;  %s2075_s21 = sphi %s2143_s21, %s2784_s21  }
   0xb   : > { %s2758_s28 = sadd.s32 4294967294, %s2095_s26   ;;  %p60_p0 = scmp.ne.s32.totalorder %s2079_s22, %s2075_s21 }
   0xc   : > { %p2757_p1 = scmp.eq.s32.totalorder %s2174_s27, 0  ;;  %p160_p3 = scmp.eq.s32.totalorder %s2758_s28, 1 }
   0xd   : > { %p1357_p5 = scmp.ge.s32.totalorder %s2095_s26, 1  ;;  %p223_p7 = scmp.lt.s32.totalorder %s2095_s26, 3 }
   0xe   : > { %p2185_p4 = por %p2757_p1, %p60_p0  ;;  %p2190_p6 = por %p160_p3, %p60_p0 }
   0xf   : > { %p2195_p8 = pnand %p1357_p5, %p223_p7  ;;  %s2097_s8 = smov [#allocation6]  }
  0x10   : > { %s2764_s29 = scalar_select %p2185_p4, 1, 0 }
  0x11   : > { %s2765_s30 = scalar_select %p2190_p6, 1, 0 }
  0x12   : > { %s2767_s7 = scalar_select %p2195_p8, 1, 0 }
  0x13   : > { %2766 = sst [smem:[#allocation21_spill]] %s2765_s30  ;;  %s237_s9 = sshll.u32 %s2097_s8, 4  ;;  %s2199_s9 = int_to_ptr.vmem [resolvable:$true] %s237_s9 }
  0x14   : > { %p1736_p9 = pneg %p2195_p8  ;;  %s2098_s11 = smov [#allocation8]  }
  0x15   : > { %s251_s12 = sshll.u32 %s2098_s11, 4  ;;  %s2099_s13 = smov [#allocation9]   ;;  %s2210_s12 = int_to_ptr.vmem [resolvable:$true] %s251_s12 }
  0x16   : > { %p2206_p11 = pnand %p1736_p9, %p2757_p1  ;;  %s2212_s14 = sshll.u32 %s2099_s13, 4  ;;  %s263_s14 = int_to_ptr.vmem [resolvable:$true] %s2212_s14 }
  0x17   : > { %s1831_s17 = scalar_lea.hbm %s2751_s1, 1024 }
  0x18   : > { %p1832_p12 = scmp.ne.s32.totalorder %s2751_s1, %s1831_s17  ;;  %p2222_p13 = pneg %p2206_p11 }
  0x19   : > { %p1838_p5 = scmp.lt.u32.totalorder %s1831_s17, %s2751_s1 }
  0x1a   : > { %p1834_p0 = pnand %p2222_p13, %p1832_p12 }
  0x1c   : > { %p1835_p3 = pneg %p1834_p0 }
  0x1e   : > { %p1840_p7 = pnand %p1838_p5, %p1835_p3 }
  0x20   : > { %1843 = shalt.err (!%p1840_p7)
}
  0x21   : > { %s1844_s13 = scalar_lea.vmem %s2199_s9, 1024  ;;  %p1852_p2 = scmp.lt.s32.totalorder %s2199_s9, %s2199_s9 }
  0x22   : > { %p1845_p9 = scmp.ne.s32.totalorder %s2199_s9, %s1844_s13  ;;  %p1853_p6 = scmp.lt.s32.totalorder %s1844_s13, %s1844_s13 }
  0x24   : > { %p1847_p10 = pnand %p1845_p9, %p2222_p13  ;;  %p1854_p12 = por %p1853_p6, %p1852_p2 }
  0x26   : > { %p1848_p1 = pneg %p1847_p10 }
  0x28   : > { %p1855_p0 = pnand %p1854_p12, %p1848_p1 }
  0x2a   : > { %1858 = shalt.err (!%p1855_p0)
}
  0x2b   : > { %s2100_s15 = smov 64   ;;  %s2101_s16 = smov 4  }
  0x2c   : > { %1739 = dma.hbm_to_vmem [thread:$0]  (!%p2206_p11), %s2751_s1, 1024, %s2199_s9, [#allocation7], %s2100_s15, %s2100_s15, %s2101_s16  }
  0x2d   : > { %s1859_s11 = scalar_lea.hbm %s2752_s2, 16 }
  0x2e   : > { %p1860_p1 = scmp.ne.s32.totalorder %s2752_s2, %s1859_s11  ;;  %p1866_p10 = scmp.lt.u32.totalorder %s1859_s11, %s2752_s2 }
  0x30   : > { %p1862_p2 = pnand %p1860_p1, %p2222_p13 }
  0x32   : > { %p1863_p6 = pneg %p1862_p2 }
  0x34   : > { %p1868_p3 = pnand %p1866_p10, %p1863_p6 }
  0x36   : > { %1871 = shalt.err (!%p1868_p3)
}
  0x37   : > { %s1872_s9 = scalar_lea.vmem %s2210_s12, 16  ;;  %s1879_s28 = scalar_lea.vmem %s2210_s12, 32 }
  0x38   : > { %p1873_p5 = scmp.ne.s32.totalorder %s2210_s12, %s1872_s9  ;;  %p1880_p12 = scmp.lt.s32.totalorder %s2210_s12, %s2210_s12 }
  0x39   : > { %p1881_p0 = scmp.lt.s32.totalorder %s1879_s28, %s1872_s9 }
  0x3a   : > { %p1875_p7 = pnand %p1873_p5, %p2222_p13 }
  0x3b   : > { %p1882_p1 = por %p1881_p0, %p1880_p12 }
  0x3c   : > { %p1876_p9 = pneg %p1875_p7 }
  0x3e   : > { %p1883_p2 = pnand %p1882_p1, %p1876_p9 }
  0x40   : > { %1886 = shalt.err (!%p1883_p2)
}
  0x41   : > { %1742 = dma.hbm_to_vmem [thread:$0]  (!%p2206_p11), %s2752_s2, 16, %s2210_s12, [#allocation7]  }
  0x42   : > { %s1887_s19 = scalar_lea.hbm %s2753_s3, 16 }
  0x43   : > { %p1888_p6 = scmp.ne.s32.totalorder %s2753_s3, %s1887_s19  ;;  %p1894_p5 = scmp.lt.u32.totalorder %s1887_s19, %s2753_s3 }
  0x45   : > { %p1890_p10 = pnand %p1888_p6, %p2222_p13 }
  0x47   : > { %p1891_p3 = pneg %p1890_p10 }
  0x49   : > { %p1896_p7 = pnand %p1894_p5, %p1891_p3 }
  0x4b   : > { %1899 = shalt.err (!%p1896_p7)
}
  0x4c   : > { %s1900_s28 = scalar_lea.vmem %s263_s14, 16  ;;  %s1907_s12 = scalar_lea.vmem %s263_s14, 32 }
  0x4d   : > { %p1901_p9 = scmp.ne.s32.totalorder %s263_s14, %s1900_s28  ;;  %p1908_p1 = scmp.lt.s32.totalorder %s263_s14, %s263_s14 }
  0x4e   : > { %p1909_p2 = scmp.lt.s32.totalorder %s1907_s12, %s1900_s28 }
  0x4f   : > { %p1903_p12 = pnand %p1901_p9, %p2222_p13 }
  0x50   : > { %p1910_p4 = por %p1909_p2, %p1908_p1 }
  0x51   : > { %p1904_p0 = pneg %p1903_p12 }
  0x53   : > { %p1911_p8 = pnand %p1910_p4, %p1904_p0 }
  0x55   : > { %1914 = shalt.err (!%p1911_p8)
}
  0x56   : > { %1745 = dma.hbm_to_vmem [thread:$0]  (!%p2206_p11), %s2753_s3, 16, %s263_s14, [#allocation10]  }
  0x57   : > { %s47_s20 = sadd.s32 1, %s2083_s23  ;;  %s40_s17 = sadd.s32 1, %s2091_s25 }
  0x58   : > { %p54_p4 = scmp.ne.s32.totalorder %s2083_s23, %s2079_s22  ;;  %p42_p8 = scmp.ge.s32.totalorder %s40_s17, 2 }
  0x59   : > { %p55_p13 = scmp.eq.s32.totalorder %s2095_s26, 0  ;;  %p2770_p6 = scmp.eq.s32.totalorder %s2174_s27, 1 }
  0x5a   : > { %p1763_p3 = scmp.lt.s32.totalorder %s2095_s26, 2  ;;  %s2790_s17 = smov (%p42_p8, %s40_s17), 0 }
  0x5b   : > { %p2296_p10 = por %p2770_p6, %p54_p4  ;;  %p56_p5 = por %p55_p13, %p54_p4 }
  0x5c   : > { %s273_s18 = sand.u32 1, %s2083_s23   ;;  %s44_s19 = ssub.s32 %s2091_s25, %s2790_s17 }
  0x5d   : > { %p45_p7 = scmp.eq.s32.totalorder %s44_s19, 0  ;;  %s1362_s14 = sshll.u32 %s273_s18, 7 }
  0x5e   : > { %s1420_s8 = sshll.u32 %s2091_s25, 11  ;;  %s277_s12 = scalar_lea.vmem [#allocation3], %s1362_s14 }
  0x5f   : > { %s2308_s11 = scalar_select %p45_p7, %s2083_s23, %s47_s20  }
  0x60   : > { %s2313_s28 = scalar_lea.hbm %s2750_s0, %s1420_s8  ;;  %s284_s21 = sshll.u32 %s277_s12, 4  ;;  %s2315_s21 = int_to_ptr.vmem [resolvable:$true] %s284_s21 }
  0x61   : > { %p2319_p11 = pnand %p1763_p3, %p56_p5  ;;  %s2323_s20 = scalar_lea.sflag [#allocation4], %s273_s18 }
  0x62   : > { %s1915_s19 = scalar_lea.hbm %s2313_s28, 2048  ;;  %s1920_s13 = scalar_lea.hbm %s2750_s0, 4096 }
  0x63   : > { %p1916_p9 = scmp.ne.s32.totalorder %s2313_s28, %s1915_s19  ;;  %p1917_p12 = pneg %p2319_p11 }
  0x64   : > { %p1921_p2 = scmp.lt.u32.totalorder %s2313_s28, %s2750_s0  ;;  %p1922_p4 = scmp.lt.u32.totalorder %s1920_s13, %s1915_s19 }
  0x65   : > { %p1918_p0 = pnand %p1917_p12, %p1916_p9  ;;  %p1924_p13 = scmp.lt.u32.totalorder %s1915_s19, %s2313_s28 }
  0x66   : > { %p1923_p8 = por %p1922_p4, %p1921_p2 }
  0x67   : > { %p1919_p1 = pneg %p1918_p0 }
  0x68   : > { %p1925_p6 = por %p1924_p13, %p1923_p8 }
  0x6a   : > { %p1926_p3 = pnand %p1925_p6, %p1919_p1 }
  0x6c   : > { %1929 = shalt.err (!%p1926_p3)
}
  0x6d   : > { %s1930_s18 = scalar_lea.vmem %s2315_s21, 2048  ;;  %s2102_s14 = smov [#allocation3]  }
  0x6e   : > { %p1931_p5 = scmp.ne.s32.totalorder %s2315_s21, %s1930_s18  ;;  %s1935_s8 = sshll.u32 %s2102_s14, 4  ;;  %s1936_s8 = int_to_ptr.vmem [resolvable:$false] %s1935_s8 }
  0x6f   : > { %s1937_s9 = scalar_lea.vmem %s1936_s8, 4096  ;;  %p1938_p0 = scmp.lt.s32.totalorder %s2315_s21, %s1936_s8 }
  0x70   : > { %p1933_p7 = pnand %p1931_p5, %p1917_p12  ;;  %p1939_p2 = scmp.lt.s32.totalorder %s1937_s9, %s1930_s18 }
  0x72   : > { %p1934_p9 = pneg %p1933_p7  ;;  %p1940_p4 = por %p1939_p2, %p1938_p0 }
  0x74   : > { %p1941_p8 = pnand %p1940_p4, %p1934_p9 }
  0x76   : > { %1944 = shalt.err (!%p1941_p8)
}
  0x77   : > { %1749 = dma.hbm_to_vmem [thread:$0]  (!%p2319_p11), %s2313_s28, 2048, %s2315_s21, %s2323_s20, %s2100_s15, %s2100_s15, %s2101_s16  }
  0x78   : > { %p2773_p12 = scmp.ne.s32.totalorder %s2767_s7, 0 }
  0x79   : > { %s2357_s19 = sand.u32 (!%p2773_p12), 1, %s2079_s22   ;;  %p2774_p1 = scmp.ne.s32.totalorder (!%p2773_p12), %s2764_s29, 0 }
  0x7a   : > { %296 = sbr.rel (%p2773_p12) target bundleno = 505 (0x1f9), region = 36  ;;  %s1366_s13 = sshll.u32 (!%p2773_p12), %s2357_s19, 7 }
  0x7b   : > { %s299_s12 = scalar_lea.sflag (!%p2773_p12), [#allocation4], %s2357_s19  ;;  %s2363_s30 = scalar_lea.vmem (!%p2773_p12), [#allocation3], %s1366_s13 }
  0x81   : > { %2054 = dma.done.wait (%p2774_p1), %s299_s12, 2048  }
  0x82   : > { %2056 = vsyncadd (%p2774_p1), %s299_s12, 4294965248  ;;  %p2775_p11 = scmp.eq.s32.totalorder %s2174_s27, 0 }
  0x84   : > { %2058 = dma.done.wait (%p2775_p11), [#allocation7], 1040   ;;  %p2776_p13 = pmov %p2775_p11 }
  0x85   : > { %p2777_p6 = pmov %p2775_p11 }
  0x86   : > { %2060 = vsyncadd (%p2776_p13), [#allocation7], 4294966256 }
  0x87   : > { %2062 = dma.done.wait (%p2777_p6), [#allocation10], 16   ;;  %p2778_p3 = pmov %p2777_p6 }
  0x88   : > { %v1823_v0 = vld [vmem:[#allocation6] sm:$0xff]   ;;  %v1824_v1 = vld [vmem:[#allocation6 + $0x8] sm:$0xff]   ;;  %v1825_v2 = vld [vmem:[#allocation6 + $0x10] sm:$0xff]   ;;  %s2528_s29 = scalar_lea.vmem [#allocation11], %s1366_s13  ;;  %s1453_s7 = sshll.u32 %s2087_s24, 11 }
  0x89   : > { %2064 = vsyncadd (%p2778_p3), [#allocation10], 4294967280  ;;  %1652 = vmatprep.subr.bf16.mxu0 %v1823_v0  ;;  %1700 = vmatprep.subr.bf16.mxu1 %v1823_v0  ;;  %v1826_v3 = vld [vmem:[#allocation6 + $0x18] sm:$0xff]   ;;  %v1455_v4 = vld [vmem:[%s2363_s30] sm:$0xff]   ;;  %s1158_s15 = sshll.u32 %s2528_s29, 4  ;;  %s2599_s21 = scalar_lea.hbm %s2754_s4, %s1453_s7  ;;  %s2601_s15 = int_to_ptr.vmem [resolvable:$true] %s1158_s15 }
  0x8a   : > { %1653 = vmatpush3.bf16.msra.mxu0 %v1823_v0  ;;  %1708 = vmatpush3.bf16.msra.mxu1 %v1823_v0  ;;  %v2378_v5 = vld [vmem:[#allocation8] ss:$0 sm:$0xff]  ;;  %v1456_v6 = vunpack.c.l.bf16 %v1455_v4  ;;  %v1457_v7 = vunpack.c.h.bf16 %v1455_v4  ;;  %v1598_v8 = vld [vmem:[%s2363_s30 + $0x8] sm:$0xff]   ;;  %v1599_v9 = vld [vmem:[%s2363_s30 + $0x10] sm:$0xff]   ;;  %s1136_s20 = scalar_lea.sflag [#allocation5], %s2357_s19  ;;  %s1945_s18 = scalar_lea.vmem %s2601_s15, 2048 }
  0x8b   : > { %1654 = vmatprep.subr.bf16.mxu0 %v1824_v1  ;;  %1701 = vmatprep.subr.bf16.mxu1 %v1824_v1  ;;  %v1600_v10 = vld [vmem:[%s2363_s30 + $0x18] sm:$0xff]   ;;  %v2383_v11 = vld [vmem:[#allocation9] ss:$0 sm:$0xff]  ;;  %v1460_v12 = vunpack.c.l.bf16 %v1598_v8  ;;  %v1461_v13 = vunpack.c.h.bf16 %v1598_v8  ;;  %v1464_v14 = vunpack.c.l.bf16 %v1599_v9  ;;  %v1465_v15 = vunpack.c.h.bf16 %v1599_v9  ;;  %v1828_v29 = vld [vmem:[#allocation6 + $0x28] sm:$0xff]   ;;  %p1946_p5 = scmp.ne.s32.totalorder %s2601_s15, %s1945_s18  ;;  %s2103_s14 = smov [#allocation11]  }
  0x8c   : > { %v427_v16 = vmul.f32 %v1456_v6, %v2378_v5  ;;  %v428_v17 = vmul.f32 %v1457_v7, %v2378_v5  ;;  %v1468_v18 = vunpack.c.l.bf16 %v1600_v10  ;;  %v1469_v19 = vunpack.c.h.bf16 %v1600_v10  ;;  %v1827_v20 = vld [vmem:[#allocation6 + $0x20] sm:$0xff]   ;;  %v1602_v41 = vld [vmem:[%s2363_s30 + $0x28] sm:$0xff]   ;;  %v1829_v50 = vld [vmem:[#allocation6 + $0x30] sm:$0xff]   ;;  %s1949_s8 = sshll.u32 %s2103_s14, 4  ;;  %s1950_s8 = int_to_ptr.vmem [resolvable:$false] %s1949_s8 }
  0x8d   : > { %v429_v21 = vmul.f32 %v1460_v12, %v2378_v5  ;;  %v430_v22 = vmul.f32 %v1461_v13, %v2378_v5  ;;  %v431_v23 = vmul.f32 %v1464_v14, %v2378_v5  ;;  %v432_v24 = vmul.f32 %v1465_v15, %v2378_v5  ;;  %v1601_v40 = vld [vmem:[%s2363_s30 + $0x20] sm:$0xff]   ;;  %v1603_v55 = vld [vmem:[%s2363_s30 + $0x30] sm:$0xff]   ;;  %v1604_v13 = vld [vmem:[%s2363_s30 + $0x38] sm:$0xff]   ;;  %p1947_p7 = pnand %p1946_p5, %p2296_p10  ;;  %s1951_s9 = scalar_lea.vmem %s1950_s8, 4096 }
  0x8e   : > { %1655 = vmatpush3.bf16.msra.mxu0 %v1824_v1  ;;  %1709 = vmatpush3.bf16.msra.mxu1 %v1824_v1  ;;  %v466_v25 = vadd.f32 %v2383_v11, %v427_v16  ;;  %v467_v26 = vadd.f32 %v2383_v11, %v428_v17  ;;  %v433_v27 = vmul.f32 %v1468_v18, %v2378_v5  ;;  %v1472_v52 = vunpack.c.l.bf16 %v1601_v40  ;;  %p1952_p0 = scmp.lt.s32.totalorder %s2601_s15, %s1950_s8  ;;  %p1953_p2 = scmp.lt.s32.totalorder %s1951_s9, %s1945_s18 }
  0x8f   : > { %1656 = vmatprep.subr.bf16.mxu0 %v1825_v2  ;;  %1702 = vmatprep.subr.bf16.mxu1 %v1825_v2  ;;  %v434_v28 = vmul.f32 %v1469_v19, %v2378_v5  ;;  %v468_v30 = vadd.f32 %v2383_v11, %v429_v21  ;;  %v469_v31 = vadd.f32 %v2383_v11, %v430_v22  ;;  %v1473_v53 = vunpack.c.h.bf16 %v1601_v40  ;;  %p1948_p9 = pneg %p1947_p7 }
  0x90   : > { %v470_v32 = vadd.f32 %v2383_v11, %v431_v23  ;;  %v471_v33 = vadd.f32 %v2383_v11, %v432_v24  ;;  %vm498_vm0 = vcmp.gt.f32.partialorder %v466_v25, 0.0  ;;  %vm499_vm1 = vcmp.gt.f32.partialorder %v467_v26, 0.0  ;;  %v1605_v23 = vld [vmem:[%s2363_s30 + $0x40] sm:$0xff]   ;;  %p1954_p4 = por %p1953_p2, %p1952_p0 }
  0x91   : > { %v530_v34 = vmul.f32 0.1, %v466_v25  ;;  %v531_v35 = vmul.f32 0.1, %v467_v26  ;;  %vm500_vm2 = vcmp.gt.f32.partialorder %v468_v30, 0.0  ;;  %vm501_vm3 = vcmp.gt.f32.partialorder %v469_v31, 0.0 }
  0x92   : > { %1657 = vmatpush3.bf16.msra.mxu0 %v1825_v2  ;;  %1710 = vmatpush3.bf16.msra.mxu1 %v1825_v2  ;;  %v532_v36 = vmul.f32 0.1, %v468_v30  ;;  %v533_v37 = vmul.f32 0.1, %v469_v31  ;;  %vm502_vm4 = vcmp.gt.f32.partialorder %v470_v32, 0.0  ;;  %vm503_vm5 = vcmp.gt.f32.partialorder %v471_v33, 0.0  ;;  %p1955_p8 = pnand %p1954_p4, %p1948_p9 }
  0x93   : > { %1658 = vmatprep.subr.bf16.mxu0 %v1826_v3  ;;  %1703 = vmatprep.subr.bf16.mxu1 %v1826_v3  ;;  %v562_v38 = vsel %vm498_vm0, %v466_v25, %v530_v34  ;;  %v563_v39 = vsel %vm499_vm1, %v467_v26, %v531_v35  ;;  %v534_v45 = vmul.f32 0.1, %v470_v32  ;;  %v535_v47 = vmul.f32 0.1, %v471_v33  ;;  %v1830_v2 = vld [vmem:[#allocation6 + $0x38] sm:$0xff]   ;;  %v1606_v34 = vld [vmem:[%s2363_s30 + $0x48] sm:$0xff]  }
  0x94   : > { %v594_v42 = vpack.c.bf16 %v563_v39, %v562_v38  ;;  %v2401_v43 = vsel %vm500_vm2, %v468_v30, %v532_v36  ;;  %v2403_v44 = vsel %vm501_vm3, %v469_v31, %v533_v37  ;;  %v472_v48 = vadd.f32 %v2383_v11, %v433_v27  ;;  %v1607_v35 = vld [vmem:[%s2363_s30 + $0x50] sm:$0xff]  }
  0x95   : > { %v595_v46 = vpack.c.bf16 %v2403_v44, %v2401_v43  ;;  %v473_v49 = vadd.f32 %v2383_v11, %v434_v28  ;;  %v2410_v51 = vsel %vm502_vm4, %v470_v32, %v534_v45  ;;  %v1476_v54 = vunpack.c.l.bf16 %v1602_v41 }
  0x96   : > { %1659 = vmatpush3.bf16.msra.mxu0 %v1826_v3  ;;  %1711 = vmatpush3.bf16.msra.mxu1 %v1826_v3  ;;  %v2414_v56 = vsel %vm503_vm5, %v471_v33, %v535_v47  ;;  %vm504_vm6 = vcmp.gt.f32.partialorder %v472_v48, 0.0  ;;  %v536_v57 = vmul.f32 0.1, %v472_v48  ;;  %v435_v60 = vmul.f32 %v1472_v52, %v2378_v5 }
  0x97   : > { %1660 = vmatprep.subr.bf16.mxu0 %v1827_v20  ;;  %1704 = vmatprep.subr.bf16.mxu1 %v1827_v20  ;;  %vm505_vm7 = vcmp.gt.f32.partialorder %v473_v49, 0.0  ;;  %v596_v58 = vpack.c.bf16 %v2414_v56, %v2410_v51  ;;  %v537_v59 = vmul.f32 0.1, %v473_v49  ;;  %v436_v61 = vmul.f32 %v1473_v53, %v2378_v5 }
  0x98   : > { %1668 = vmatprep.mubr.bf16.mxu0 %v594_v42  ;;  %v2420_v62 = vsel %vm504_vm6, %v472_v48, %v536_v57  ;;  %v1477_v63 = vunpack.c.h.bf16 %v1602_v41  ;;  %v437_v0 = vmul.f32 %v1476_v54, %v2378_v5  ;;  %v1480_v1 = vunpack.c.l.bf16 %v1603_v55 }
  0x99   : > { %v2423_v3 = vsel %vm505_vm7, %v473_v49, %v537_v59  ;;  %v474_v4 = vadd.f32 %v2383_v11, %v435_v60  ;;  %v475_v6 = vadd.f32 %v2383_v11, %v436_v61  ;;  %v1481_v7 = vunpack.c.h.bf16 %v1603_v55 }
  0x9a   : > { %1661 = vmatpush3.bf16.msra.mxu0 %v1827_v20  ;;  %1712 = vmatpush3.bf16.msra.mxu1 %v1827_v20  ;;  %v597_v8 = vpack.c.bf16 %v2423_v3, %v2420_v62  ;;  %v438_v9 = vmul.f32 %v1477_v63, %v2378_v5  ;;  %v476_v10 = vadd.f32 %v2383_v11, %v437_v0  ;;  %v1484_v22 = vunpack.c.l.bf16 %v1604_v13  ;;  %v1608_v0 = vld [vmem:[%s2363_s30 + $0x58] sm:$0xff]  }
  0x9b   : > { %1662 = vmatprep.subr.bf16.mxu0 %v1828_v29  ;;  %1705 = vmatprep.subr.bf16.mxu1 %v1828_v29  ;;  %v439_v12 = vmul.f32 %v1480_v1, %v2378_v5  ;;  %vm506_vm8 = vcmp.gt.f32.partialorder %v474_v4, 0.0  ;;  %vm507_vm9 = vcmp.gt.f32.partialorder %v475_v6, 0.0  ;;  %v538_v14 = vmul.f32 0.1, %v474_v4 }
  0x9c   : > { %v539_v15 = vmul.f32 0.1, %v475_v6  ;;  %v477_v16 = vadd.f32 %v2383_v11, %v438_v9  ;;  %vm508_vm10 = vcmp.gt.f32.partialorder %v476_v10, 0.0  ;;  %v540_v17 = vmul.f32 0.1, %v476_v10 }
  0x9d   : > { %v440_v18 = vmul.f32 %v1481_v7, %v2378_v5  ;;  %v2435_v19 = vsel %vm506_vm8, %v474_v4, %v538_v14  ;;  %v478_v21 = vadd.f32 %v2383_v11, %v439_v12  ;;  %v441_v31 = vmul.f32 %v1484_v22, %v2378_v5  ;;  %v1609_v7 = vld [vmem:[%s2363_s30 + $0x60] sm:$0xff]   ;;  %v1610_v22 = vld [vmem:[%s2363_s30 + $0x68] sm:$0xff]  }
  0x9e   : > { %1663 = vmatpush3.bf16.msra.mxu0 %v1828_v29  ;;  %1713 = vmatpush3.bf16.msra.mxu1 %v1828_v29  ;;  %v2437_v20 = vsel %vm507_vm9, %v475_v6, %v539_v15  ;;  %vm509_vm11 = vcmp.gt.f32.partialorder %v477_v16, 0.0  ;;  %v541_v25 = vmul.f32 0.1, %v477_v16  ;;  %v2443_v26 = vsel %vm508_vm10, %v476_v10, %v540_v17 }
  0x9f   : > { %1664 = vmatprep.subr.bf16.mxu0 %v1829_v50  ;;  %1706 = vmatprep.subr.bf16.mxu1 %v1829_v50  ;;  %v598_v24 = vpack.c.bf16 %v2437_v20, %v2435_v19  ;;  %v479_v27 = vadd.f32 %v2383_v11, %v440_v18  ;;  %vm510_vm12 = vcmp.gt.f32.partialorder %v478_v21, 0.0  ;;  %v542_v28 = vmul.f32 0.1, %v478_v21 }
  0xa0   : > { %v1485_v29 = vunpack.c.h.bf16 %v1604_v13  ;;  %v2446_v30 = vsel %vm509_vm11, %v477_v16, %v541_v25  ;;  %v1488_v32 = vunpack.c.l.bf16 %v1605_v23  ;;  %v1489_v33 = vunpack.c.h.bf16 %v1605_v23 }
  0xa1   : > { %v599_v36 = vpack.c.bf16 %v2446_v30, %v2443_v26  ;;  %vm511_vm13 = vcmp.gt.f32.partialorder %v479_v27, 0.0  ;;  %v543_v37 = vmul.f32 0.1, %v479_v27  ;;  %v2453_v38 = vsel %vm510_vm12, %v478_v21, %v542_v28 }
  0xa2   : > { %1665 = vmatpush3.bf16.msra.mxu0 %v1829_v50  ;;  %1714 = vmatpush3.bf16.msra.mxu1 %v1829_v50  ;;  %v442_v39 = vmul.f32 %v1485_v29, %v2378_v5  ;;  %v480_v40 = vadd.f32 %v2383_v11, %v441_v31  ;;  %v443_v41 = vmul.f32 %v1488_v32, %v2378_v5  ;;  %v1492_v47 = vunpack.c.l.bf16 %v1606_v34 }
  0xa3   : > { %1666 = vmatprep.subr.bf16.mxu0 %v1830_v2  ;;  %1707 = vmatprep.subr.bf16.mxu1 %v1830_v2  ;;  %v444_v42 = vmul.f32 %v1489_v33, %v2378_v5  ;;  %v2462_v45 = vsel %vm511_vm13, %v479_v27, %v543_v37  ;;  %v1493_v48 = vunpack.c.h.bf16 %v1606_v34  ;;  %v1496_v49 = vunpack.c.l.bf16 %v1607_v35 }
  0xa4   : > { %v600_v50 = vpack.c.bf16 %v2462_v45, %v2453_v38  ;;  %v481_v52 = vadd.f32 %v2383_v11, %v442_v39  ;;  %vm512_vm14 = vcmp.gt.f32.partialorder %v480_v40, 0.0  ;;  %v544_v53 = vmul.f32 0.1, %v480_v40 }
  0xa5   : > { %v482_v54 = vadd.f32 %v2383_v11, %v443_v41  ;;  %v483_v43 = vadd.f32 %v2383_v11, %v444_v42  ;;  %v445_v44 = vmul.f32 %v1492_v47, %v2378_v5  ;;  %v1497_v56 = vunpack.c.h.bf16 %v1607_v35 }
  0xa6   : > { %1667 = vmatpush3.bf16.msra.mxu0 %v1830_v2  ;;  %1715 = vmatpush3.bf16.msra.mxu1 %v1830_v2  ;;  %vm513_vm15 = vcmp.gt.f32.partialorder %v481_v52, 0.0  ;;  %v545_v55 = vmul.f32 0.1, %v481_v52  ;;  %v2474_v51 = vsel %vm512_vm14, %v480_v40, %v544_v53  ;;  %v447_v63 = vmul.f32 %v1496_v49, %v2378_v5  ;;  %v1611_v40 = vld [vmem:[%s2363_s30 + $0x70] sm:$0xff]  }
  0xa7   : > { %vm514_vm0 = vcmp.gt.f32.partialorder %v482_v54, 0.0  ;;  %vm515_vm1 = vcmp.gt.f32.partialorder %v483_v43, 0.0  ;;  %v546_v57 = vmul.f32 0.1, %v482_v54  ;;  %v484_v60 = vadd.f32 %v2383_v11, %v445_v44 }
  0xa8   : > { %v2476_v59 = vsel %vm513_vm15, %v481_v52, %v545_v55  ;;  %v448_v6 = vmul.f32 %v1497_v56, %v2378_v5  ;;  %v486_v13 = vadd.f32 %v2383_v11, %v447_v63  ;;  %v1500_v15 = vunpack.c.l.bf16 %v1608_v0 }
  0xa9   : > { %1669 = vmatmul.mubr.bf16.vlgmr.msra.gmra.mrb[0].mxu0 %v595_v46  ;;  %v446_v46 = vmul.f32 %v1493_v48, %v2378_v5  ;;  %v601_v1 = vpack.c.bf16 %v2476_v59, %v2474_v51  ;;  %v578_v2 = vsel %vm514_vm0, %v482_v54, %v546_v57  ;;  %vm516_vm2 = vcmp.gt.f32.partialorder %v484_v60, 0.0 }
  0xaa   : > { %1672 = vmatprep.mubr.bf16.mxu0 %v596_v58  ;;  %v547_v58 = vmul.f32 0.1, %v483_v43  ;;  %v548_v10 = vmul.f32 0.1, %v484_v60  ;;  %v487_v14 = vadd.f32 %v2383_v11, %v448_v6  ;;  %v1501_v17 = vunpack.c.h.bf16 %v1608_v0 }
  0xab   : > { %v485_v61 = vadd.f32 %v2383_v11, %v446_v46  ;;  %v1504_v18 = vunpack.c.l.bf16 %v1609_v7  ;;  %v1505_v21 = vunpack.c.h.bf16 %v1609_v7  ;;  %vm518_vm4 = vcmp.gt.f32.partialorder %v486_v13, 0.0 }
  0xac   : > { %v579_v4 = vsel %vm515_vm1, %v483_v43, %v547_v58  ;;  %v580_v16 = vsel %vm516_vm2, %v484_v60, %v548_v10  ;;  %vm519_vm5 = vcmp.gt.f32.partialorder %v487_v14, 0.0  ;;  %v550_v62 = vmul.f32 0.1, %v486_v13  ;;  %v1612_v43 = vld [vmem:[%s2363_s30 + $0x78] sm:$0xff]  }
  0xad   : > { %v602_v9 = vpack.c.bf16 %v579_v4, %v578_v2  ;;  %vm517_vm3 = vcmp.gt.f32.partialorder %v485_v61, 0.0  ;;  %v549_v12 = vmul.f32 0.1, %v485_v61  ;;  %v449_v25 = vmul.f32 %v1500_v15, %v2378_v5 }
  0xae   : > { %v450_v27 = vmul.f32 %v1501_v17, %v2378_v5  ;;  %v582_v28 = vsel %vm518_vm4, %v486_v13, %v550_v62  ;;  %v451_v19 = vmul.f32 %v1504_v18, %v2378_v5  ;;  %v452_v20 = vmul.f32 %v1505_v21, %v2378_v5 }
  0xaf   : > { %1684 = vmatprep.mubr.bf16.mxu1 %v602_v9  ;;  %v581_v23 = vsel %vm517_vm3, %v485_v61, %v549_v12  ;;  %v488_v31 = vadd.f32 %v2383_v11, %v449_v25  ;;  %v1509_v33 = vunpack.c.h.bf16 %v1610_v22  ;;  %v1512_v30 = vunpack.c.l.bf16 %v1611_v40 }
  0xb0   : > { %v603_v3 = vpack.c.bf16 %v581_v23, %v580_v16  ;;  %v489_v32 = vadd.f32 %v2383_v11, %v450_v27  ;;  %v490_v35 = vadd.f32 %v2383_v11, %v451_v19  ;;  %v491_v37 = vadd.f32 %v2383_v11, %v452_v20 }
  0xb1   : > { %1673 = vmatmul.mubr.bf16.gmra.mrb[4].mxu0 %v597_v8  ;;  %v551_v8 = vmul.f32 0.1, %v487_v14  ;;  %vm520_vm6 = vcmp.gt.f32.partialorder %v488_v31, 0.0  ;;  %v552_v41 = vmul.f32 0.1, %v488_v31  ;;  %v454_v53 = vmul.f32 %v1509_v33, %v2378_v5 }
  0xb2   : > { %1676 = vmatprep.mubr.bf16.mxu0 %v598_v24  ;;  %v1508_v24 = vunpack.c.l.bf16 %v1610_v22  ;;  %1685 = vmatmul.mubr.bf16.vlgmr.msra.gmra.mrb[0].mxu1 %v603_v3  ;;  %vm521_vm7 = vcmp.gt.f32.partialorder %v489_v32, 0.0  ;;  %v553_v42 = vmul.f32 0.1, %v489_v32  ;;  %vm522_vm8 = vcmp.gt.f32.partialorder %v490_v35, 0.0 }
  0xb3   : > { %v583_v29 = vsel %vm519_vm5, %v487_v14, %v551_v8  ;;  %vm523_vm9 = vcmp.gt.f32.partialorder %v491_v37, 0.0  ;;  %v554_v47 = vmul.f32 0.1, %v490_v35  ;;  %v555_v48 = vmul.f32 0.1, %v491_v37 }
  0xb4   : > { %v604_v34 = vpack.c.bf16 %v583_v29, %v582_v28  ;;  %v453_v39 = vmul.f32 %v1508_v24, %v2378_v5  ;;  %v584_v49 = vsel %vm520_vm6, %v488_v31, %v552_v41  ;;  %v585_v52 = vsel %vm521_vm7, %v489_v32, %v553_v42 }
  0xb5   : > { %v605_v44 = vpack.c.bf16 %v585_v52, %v584_v49  ;;  %v586_v46 = vsel %vm522_vm8, %v490_v35, %v554_v47  ;;  %v587_v26 = vsel %vm523_vm9, %v491_v37, %v555_v48  ;;  %v493_v55 = vadd.f32 %v2383_v11, %v454_v53 }
  0xb6   : > { %1688 = vmatprep.mubr.bf16.mxu1 %v604_v34  ;;  %v492_v54 = vadd.f32 %v2383_v11, %v453_v39  ;;  %v1513_v57 = vunpack.c.h.bf16 %v1611_v40  ;;  %v455_v38 = vmul.f32 %v1512_v30, %v2378_v5  ;;  %v1516_v45 = vunpack.c.l.bf16 %v1612_v43 }
  0xb7   : > { %vm525_vm11 = vcmp.gt.f32.partialorder %v493_v55, 0.0  ;;  %v557_v58 = vmul.f32 0.1, %v493_v55 }
  0xb8   : > { %vm524_vm10 = vcmp.gt.f32.partialorder %v492_v54, 0.0  ;;  %v556_v56 = vmul.f32 0.1, %v492_v54  ;;  %v456_v61 = vmul.f32 %v1513_v57, %v2378_v5  ;;  %v494_v63 = vadd.f32 %v2383_v11, %v455_v38 }
  0xb9   : > { %1677 = vmatmul.mubr.bf16.gmra.mrb[8].mxu0 %v599_v36  ;;  %v606_v36 = vpack.c.bf16 %v587_v26, %v586_v46  ;;  %v457_v0 = vmul.f32 %v1516_v45, %v2378_v5  ;;  %v589_v4 = vsel %vm525_vm11, %v493_v55, %v557_v58 }
  0xba   : > { %1680 = vmatprep.mubr.bf16.mxu0 %v600_v50  ;;  %v1517_v50 = vunpack.c.h.bf16 %v1612_v43  ;;  %1689 = vmatmul.mubr.bf16.gmra.mrb[4].mxu1 %v605_v44  ;;  %v588_v60 = vsel %vm524_vm10, %v492_v54, %v556_v56  ;;  %v495_v6 = vadd.f32 %v2383_v11, %v456_v61  ;;  %vm526_vm12 = vcmp.gt.f32.partialorder %v494_v63, 0.0 }
  0xbb   : > { %1692 = vmatprep.mubr.bf16.mxu1 %v606_v36  ;;  %v558_v7 = vmul.f32 0.1, %v494_v63  ;;  %v607_v9 = vpack.c.bf16 %v589_v4, %v588_v60  ;;  %v496_v10 = vadd.f32 %v2383_v11, %v457_v0 }
  0xbc   : > { %v458_v2 = vmul.f32 %v1517_v50, %v2378_v5  ;;  %vm527_vm13 = vcmp.gt.f32.partialorder %v495_v6, 0.0  ;;  %v559_v13 = vmul.f32 0.1, %v495_v6 }
  0xbd   : > { %v590_v14 = vsel %vm526_vm12, %v494_v63, %v558_v7  ;;  %vm528_vm14 = vcmp.gt.f32.partialorder %v496_v10, 0.0  ;;  %v560_v5 = vmul.f32 0.1, %v496_v10 }
  0xbe   : > { %v497_v12 = vadd.f32 %v2383_v11, %v458_v2  ;;  %v591_v16 = vsel %vm527_vm13, %v495_v6, %v559_v13 }
  0xbf   : > { %v608_v51 = vpack.c.bf16 %v591_v16, %v590_v14  ;;  %v592_v59 = vsel %vm528_vm14, %v496_v10, %v560_v5 }
  0xc0   : > { %vm529_vm15 = vcmp.gt.f32.partialorder %v497_v12, 0.0  ;;  %v561_v15 = vmul.f32 0.1, %v497_v12 }
  0xc1   : > { %1681 = vmatmul.mubr.bf16.gmra.mrb[12].mxu0 %v601_v1 }
  0xc2   : > { %1693 = vmatmul.mubr.bf16.gmra.mrb[8].mxu1 %v607_v9  ;;  %v593_v1 = vsel %vm529_vm15, %v497_v12, %v561_v15 }
  0xc3   : > { %1696 = vmatprep.mubr.bf16.mxu1 %v608_v51  ;;  %v609_v17 = vpack.c.bf16 %v593_v1, %v592_v59 }
  0xca   : > { %1697 = vmatmul.mubr.bf16.gmra.mrb[12].mxu1 %v609_v17 }
 0x17c   : > { %v1670_v18 = vpop.f32.mrb[0].mxu0 }
 0x17d   : > { %v740_v21 = vpop.f32.mrb[1].mxu0  ;;  %v1067_v27 = vmul.f32 %v1670_v18, %v1670_v18 }
 0x17e   : > { %v1671_v22 = vpop.f32.mrb[2].mxu0  ;;  %v1065_v62 = vmul.f32 %v740_v21, %v740_v21 }
 0x17f   : > { %v1526_v11 = vpack.c.bf16 %v1671_v22, %v1670_v18  ;;  %v743_v23 = vpop.f32.mrb[3].mxu0  ;;  %v1068_v20 = vmul.f32 %v1671_v22, %v1671_v22 }
 0x180   : > { %v1521_v3 = vpack.c.bf16 %v743_v23, %v740_v21  ;;  %v1027_v8 = vadd.f32 %v743_v23, %v740_v21  ;;  %v1066_v25 = vmul.f32 %v743_v23, %v743_v23 }
 0x181   : > { %1613 = vst [vmem:[%s2528_s29 + $0x8] sm:$0xff] %v1526_v11  }
 0x182   : > { %1522 = vst [vmem:[%s2528_s29] sm:$0xff] %v1521_v3   ;;  %v1028_v28 = vadd.f32 %v1670_v18, %v1027_v8  ;;  %v1097_v19 = vadd.f32 %v1066_v25, %v1065_v62 }
 0x184   : > { %v1098_v24 = vadd.f32 %v1097_v19, %v1067_v27  ;;  %v1674_v29 = vpop.f32.mrb[4].mxu0  ;;  %v1029_v31 = vadd.f32 %v1671_v22, %v1028_v28 }
 0x185   : > { %v756_v32 = vpop.f32.mrb[5].mxu0  ;;  %v2533_v49 = vpop.f32.mrb[0].mxu1  ;;  %v1071_v52 = vmul.f32 %v1674_v29, %v1674_v29 }
 0x186   : > { %v1030_v33 = vadd.f32 %v1029_v31, %v756_v32  ;;  %v1069_v34 = vmul.f32 %v756_v32, %v756_v32  ;;  %v1099_v35 = vadd.f32 %v1098_v24, %v1068_v20  ;;  %v1675_v37 = vpop.f32.mrb[6].mxu0  ;;  %v2536_v43 = vpop.f32.mrb[1].mxu1 }
 0x187   : > { %v1536_v39 = vpack.c.bf16 %v1675_v37, %v1674_v29  ;;  %v759_v40 = vpop.f32.mrb[7].mxu0  ;;  %v2538_v44 = vpop.f32.mrb[2].mxu1  ;;  %v1072_v46 = vmul.f32 %v1675_v37, %v1675_v37 }
 0x188   : > { %v1100_v41 = vadd.f32 %v1099_v35, %v1069_v34  ;;  %v1531_v42 = vpack.c.bf16 %v759_v40, %v756_v32  ;;  %v1031_v47 = vadd.f32 %v1030_v33, %v759_v40  ;;  %v1070_v48 = vmul.f32 %v759_v40, %v759_v40  ;;  %v2542_v56 = vpop.f32.mrb[3].mxu1 }
 0x189   : > { %1615 = vst [vmem:[%s2528_s29 + $0x18] sm:$0xff] %v1536_v39   ;;  %v1566_v55 = vpack.c.bf16 %v2538_v44, %v2533_v49  ;;  %v1561_v38 = vpack.c.bf16 %v2542_v56, %v2536_v43  ;;  %v1081_v32 = vmul.f32 %v2536_v43, %v2536_v43 }
 0x18a   : > { %1614 = vst [vmem:[%s2528_s29 + $0x10] sm:$0xff] %v1531_v42   ;;  %v1032_v53 = vadd.f32 %v1674_v29, %v1031_v47  ;;  %v1101_v54 = vadd.f32 %v1100_v41, %v1070_v48 }
 0x18b   : > { %1621 = vst [vmem:[%s2528_s29 + $0x48] sm:$0xff] %v1566_v55   ;;  %1620 = vst [vmem:[%s2528_s29 + $0x40] sm:$0xff] %v1561_v38  }
 0x18c   : > { %v1102_v26 = vadd.f32 %v1101_v54, %v1071_v52  ;;  %v1678_v30 = vpop.f32.mrb[8].mxu0  ;;  %v1033_v36 = vadd.f32 %v1675_v37, %v1032_v53  ;;  %v1082_v53 = vmul.f32 %v2542_v56, %v2542_v56 }
 0x18d   : > { %v772_v57 = vpop.f32.mrb[9].mxu0  ;;  %v2549_v7 = vpop.f32.mrb[4].mxu1  ;;  %v1075_v9 = vmul.f32 %v1678_v30, %v1678_v30 }
 0x18e   : > { %v1034_v45 = vadd.f32 %v1033_v36, %v772_v57  ;;  %v1073_v50 = vmul.f32 %v772_v57, %v772_v57  ;;  %v1103_v58 = vadd.f32 %v1102_v26, %v1072_v46  ;;  %v1679_v60 = vpop.f32.mrb[10].mxu0  ;;  %v820_v13 = vpop.f32.mrb[5].mxu1  ;;  %v1083_v46 = vmul.f32 %v2533_v49, %v2533_v49 }
 0x18f   : > { %v1546_v61 = vpack.c.bf16 %v1679_v60, %v1678_v30  ;;  %v775_v63 = vpop.f32.mrb[11].mxu0  ;;  %v2552_v14 = vpop.f32.mrb[6].mxu1  ;;  %v1076_v5 = vmul.f32 %v1679_v60, %v1679_v60  ;;  %v1084_v36 = vmul.f32 %v2538_v44, %v2538_v44  ;;  %v1085_v38 = vmul.f32 %v820_v13, %v820_v13 }
 0x190   : > { %v1104_v0 = vadd.f32 %v1103_v58, %v1073_v50  ;;  %v1541_v2 = vpack.c.bf16 %v775_v63, %v772_v57  ;;  %v1035_v4 = vadd.f32 %v1034_v45, %v775_v63  ;;  %v1074_v6 = vmul.f32 %v775_v63, %v775_v63  ;;  %v823_v1 = vpop.f32.mrb[7].mxu1 }
 0x191   : > { %1617 = vst [vmem:[%s2528_s29 + $0x28] sm:$0xff] %v1546_v61   ;;  %v1576_v59 = vpack.c.bf16 %v2552_v14, %v2549_v7  ;;  %v1571_v18 = vpack.c.bf16 %v823_v1, %v820_v13  ;;  %v1086_v63 = vmul.f32 %v823_v1, %v823_v1 }
 0x192   : > { %1616 = vst [vmem:[%s2528_s29 + $0x20] sm:$0xff] %v1541_v2   ;;  %v1036_v10 = vadd.f32 %v1678_v30, %v1035_v4  ;;  %v1105_v12 = vadd.f32 %v1104_v0, %v1074_v6 }
 0x193   : > { %1623 = vst [vmem:[%s2528_s29 + $0x58] sm:$0xff] %v1576_v59   ;;  %1622 = vst [vmem:[%s2528_s29 + $0x50] sm:$0xff] %v1571_v18  }
 0x194   : > { %v1106_v15 = vadd.f32 %v1105_v12, %v1075_v9  ;;  %v1682_v16 = vpop.f32.mrb[12].mxu0  ;;  %v1037_v51 = vadd.f32 %v1679_v60, %v1036_v10 }
 0x195   : > { %v788_v17 = vpop.f32.mrb[13].mxu0  ;;  %v2559_v19 = vpop.f32.mrb[8].mxu1  ;;  %v1079_v20 = vmul.f32 %v1682_v16, %v1682_v16 }
 0x196   : > { %v1038_v21 = vadd.f32 %v1037_v51, %v788_v17  ;;  %v1077_v22 = vmul.f32 %v788_v17, %v788_v17  ;;  %v1107_v11 = vadd.f32 %v1106_v15, %v1076_v5  ;;  %v1683_v23 = vpop.f32.mrb[14].mxu0  ;;  %v2562_v31 = vpop.f32.mrb[9].mxu1 }
 0x197   : > { %v1556_v62 = vpack.c.bf16 %v1683_v23, %v1682_v16  ;;  %v791_v3 = vpop.f32.mrb[15].mxu0  ;;  %v2566_v33 = vpop.f32.mrb[10].mxu1  ;;  %v1080_v34 = vmul.f32 %v1683_v23, %v1683_v23 }
 0x198   : > { %v1108_v8 = vadd.f32 %v1107_v11, %v1077_v22  ;;  %v1551_v25 = vpack.c.bf16 %v791_v3, %v788_v17  ;;  %v1039_v27 = vadd.f32 %v1038_v21, %v791_v3  ;;  %v1078_v28 = vmul.f32 %v791_v3, %v791_v3  ;;  %v2570_v40 = vpop.f32.mrb[11].mxu1 }
 0x199   : > { %1619 = vst [vmem:[%s2528_s29 + $0x38] sm:$0xff] %v1556_v62   ;;  %v1586_v39 = vpack.c.bf16 %v2566_v33, %v2559_v19  ;;  %v1581_v41 = vpack.c.bf16 %v2570_v40, %v2562_v31 }
 0x19a   : > { %1618 = vst [vmem:[%s2528_s29 + $0x30] sm:$0xff] %v1551_v25   ;;  %v1040_v24 = vadd.f32 %v1682_v16, %v1039_v27  ;;  %v1109_v29 = vadd.f32 %v1108_v8, %v1078_v28 }
 0x19b   : > { %1625 = vst [vmem:[%s2528_s29 + $0x68] sm:$0xff] %v1586_v39   ;;  %1624 = vst [vmem:[%s2528_s29 + $0x60] sm:$0xff] %v1581_v41  }
 0x19c   : > { %v1110_v35 = vadd.f32 %v1109_v29, %v1079_v20  ;;  %v1041_v37 = vadd.f32 %v1683_v23, %v1040_v24 }
 0x19d   : > { %v2580_v54 = vpop.f32.mrb[12].mxu1 }
 0x19e   : > { %v1042_v42 = vadd.f32 %v1041_v37, %v2536_v43  ;;  %v1111_v47 = vadd.f32 %v1110_v35, %v1080_v34  ;;  %v2587_v30 = vpop.f32.mrb[13].mxu1 }
 0x19f   : > { %v2591_v55 = vpop.f32.mrb[14].mxu1 }
 0x1a0   : > { %v1112_v48 = vadd.f32 %v1111_v47, %v1081_v32  ;;  %v1043_v52 = vadd.f32 %v1042_v42, %v2542_v56  ;;  %v1596_v45 = vpack.c.bf16 %v2591_v55, %v2580_v54  ;;  %v855_v50 = vpop.f32.mrb[15].mxu1 }
 0x1a2   : > { %v1044_v26 = vadd.f32 %v2533_v49, %v1043_v52  ;;  %v1113_v43 = vadd.f32 %v1112_v48, %v1082_v53  ;;  %v1591_v49 = vpack.c.bf16 %v855_v50, %v2587_v30  ;;  %1627 = vst [vmem:[%s2528_s29 + $0x78] sm:$0xff] %v1596_v45  }
 0x1a4   : > { %v1114_v56 = vadd.f32 %v1113_v43, %v1083_v46  ;;  %v1045_v57 = vadd.f32 %v2538_v44, %v1044_v26  ;;  %1626 = vst [vmem:[%s2528_s29 + $0x70] sm:$0xff] %v1591_v49  }
 0x1a6   : > { %v1046_v58 = vadd.f32 %v1045_v57, %v820_v13  ;;  %v1115_v44 = vadd.f32 %v1114_v56, %v1084_v36 }
 0x1a8   : > { %v1116_v60 = vadd.f32 %v1115_v44, %v1085_v38  ;;  %v1047_v61 = vadd.f32 %v1046_v58, %v823_v1 }
 0x1a9   : > { %1958 = shalt.err (!%p1955_p8)
}
 0x1aa   : > { %s1959_s13 = scalar_lea.hbm %s2599_s21, 2048  ;;  %s1963_s29 = scalar_lea.hbm %s2754_s4, 4096 }
 0x1ab   : > { %p1960_p12 = scmp.ne.s32.totalorder %s2599_s21, %s1959_s13  ;;  %p1964_p13 = scmp.lt.u32.totalorder %s2599_s21, %s2754_s4 }
 0x1ac   : > { %p1965_p6 = scmp.lt.u32.totalorder %s1963_s29, %s1959_s13  ;;  %p1967_p5 = scmp.lt.u32.totalorder %s1959_s13, %s2599_s21 }
 0x1ad   : > { %p1961_p1 = pnand %p1960_p12, %p2296_p10 }
 0x1ae   : > { %p1966_p3 = por %p1965_p6, %p1964_p13 }
 0x1af   : > { %p1962_p11 = pneg %p1961_p1 }
 0x1b0   : > { %p1968_p7 = por %p1967_p5, %p1966_p3 }
 0x1b2   : > { %p1969_p9 = pnand %p1968_p7, %p1962_p11 }
 0x1b4   : > { %1972 = shalt.err (!%p1969_p9)
}
 0x1b5   : > { %s2104_s28 = smov 64   ;;  %s2105_s18 = smov 4   ;;  %v1087_v0 = vmul.f32 %v2549_v7, %v2549_v7  ;;  %v1048_v2 = vadd.f32 %v2549_v7, %v1047_v61  ;;  %v1117_v4 = vadd.f32 %v1116_v60, %v1086_v63  ;;  %v1088_v6 = vmul.f32 %v2552_v14, %v2552_v14 }
 0x1b6   : > { %1730 = dma.vmem_to_hbm [thread:$0]  (%p2296_p10), %s2601_s15, 2048, %s2599_s21, %s1136_s20, %s2104_s28, %s2104_s28, %s2105_s18   ;;  %v1089_v12 = vmul.f32 %v2562_v31, %v2562_v31  ;;  %v1090_v51 = vmul.f32 %v2570_v40, %v2570_v40  ;;  %v1091_v7 = vmul.f32 %v2559_v19, %v2559_v19  ;;  %v1093_v21 = vmul.f32 %v2587_v30, %v2587_v30 }
 0x1b7   : > { %v1118_v9 = vadd.f32 %v1117_v4, %v1087_v0  ;;  %v1049_v10 = vadd.f32 %v2552_v14, %v1048_v2  ;;  %v1092_v14 = vmul.f32 %v2566_v33, %v2566_v33  ;;  %v1094_v3 = vmul.f32 %v855_v50, %v855_v50  ;;  %s1140_s15 = sand.u32 1, %s2174_s27   ;;  %s1416_s21 = sshll.u32 %s2087_s24, 4 }
 0x1b8   : > { %v1095_v8 = vmul.f32 %v2580_v54, %v2580_v54  ;;  %v1096_v28 = vmul.f32 %v2591_v55, %v2591_v55  ;;  %s344_s20 = scalar_lea.vmem [#allocation12], %s2357_s19  ;;  %s350_s8 = scalar_lea.vmem [#allocation14], %s2357_s19 }
 0x1b9   : > { %v1050_v13 = vadd.f32 %v1049_v10, %v2562_v31  ;;  %v1119_v5 = vadd.f32 %v1118_v9, %v1088_v6  ;;  %s1175_s14 = sshll.u32 %s344_s20, 4  ;;  %s1189_s9 = sshll.u32 %s350_s8, 4  ;;  %s2668_s14 = int_to_ptr.vmem [resolvable:$true] %s1175_s14  ;;  %s2675_s9 = int_to_ptr.vmem [resolvable:$true] %s1189_s9 }
 0x1ba   : > { %s2666_s30 = scalar_lea.hbm %s2755_s5, %s1416_s21  ;;  %s2673_s29 = scalar_lea.hbm %s2756_s6, %s1416_s21 }
 0x1bb   : > { %v1120_v15 = vadd.f32 %v1119_v5, %v1089_v12  ;;  %v1051_v16 = vadd.f32 %v1050_v13, %v2570_v40  ;;  %s2677_s7 = scalar_lea.sflag [#allocation13], %s1140_s15  ;;  %s1973_s16 = scalar_lea.vmem %s2668_s14, 16 }
 0x1bc   : > { %p1974_p0 = scmp.ne.s32.totalorder %s2668_s14, %s1973_s16  ;;  %s2106_s28 = smov [#allocation12]  }
 0x1bd   : > { %v1052_v59 = vadd.f32 %v2559_v19, %v1051_v16  ;;  %v1121_v1 = vadd.f32 %v1120_v15, %v1090_v51  ;;  %s1977_s18 = sshll.u32 %s2106_s28, 4  ;;  %s1978_s18 = int_to_ptr.vmem [resolvable:$false] %s1977_s18 }
 0x1be   : > { %p1975_p2 = pnand %p1974_p0, %p2296_p10  ;;  %s1979_s13 = scalar_lea.vmem %s1978_s18, 32 }
 0x1bf   : > { %v1122_v17 = vadd.f32 %v1121_v1, %v1091_v7  ;;  %v1053_v18 = vadd.f32 %v2566_v33, %v1052_v59  ;;  %p1980_p8 = scmp.lt.s32.totalorder %s2668_s14, %s1978_s18  ;;  %p1981_p12 = scmp.lt.s32.totalorder %s1979_s13, %s1973_s16 }
 0x1c0   : > { %p1976_p4 = pneg %p1975_p2 }
 0x1c1   : > { %v1054_v22 = vadd.f32 %v1053_v18, %v2587_v30  ;;  %v1123_v11 = vadd.f32 %v1122_v17, %v1092_v14  ;;  %p1982_p1 = por %p1981_p12, %p1980_p8 }
 0x1c3   : > { %v1124_v23 = vadd.f32 %v1123_v11, %v1093_v21  ;;  %v1055_v62 = vadd.f32 %v1054_v22, %v855_v50  ;;  %p1983_p11 = pnand %p1982_p1, %p1976_p4 }
 0x1c5   : > { %v1056_v25 = vadd.f32 %v2580_v54, %v1055_v62  ;;  %v1125_v27 = vadd.f32 %v1124_v23, %v1094_v3 }
 0x1c7   : > { %v1057_v19 = vadd.f32 %v2591_v55, %v1056_v25  ;;  %v1126_v20 = vadd.f32 %v1125_v27, %v1095_v8 }
 0x1c9   : > { %v1058_v24 = vrot.slane %v1057_v19, 4  ;;  %v1127_v29 = vadd.f32 %v1126_v20, %v1096_v28 }
 0x1cb   : > { %v1059_v31 = vadd.f32 %v1058_v24, %v1057_v19  ;;  %v1128_v32 = vrot.slane %v1127_v29, 4 }
 0x1cd   : > { %v1060_v33 = vrot.slane %v1059_v31, 2  ;;  %v1129_v34 = vadd.f32 %v1128_v32, %v1127_v29 }
 0x1cf   : > { %v1061_v35 = vadd.f32 %v1060_v33, %v1059_v31  ;;  %v1130_v37 = vrot.slane %v1129_v34, 2 }
 0x1d1   : > { %v1062_v39 = vrot.slane %v1061_v35, 1  ;;  %v1131_v40 = vadd.f32 %v1130_v37, %v1129_v34 }
 0x1d3   : > { %v1132_v41 = vrot.slane %v1131_v40, 1  ;;  %v1063_v42 = vadd.f32 %v1062_v39, %v1061_v35 }
 0x1d5   : > { %1064 = vst [vmem:[%s344_s20] sm:$0x1] %v1063_v42  ;;  %v1133_v47 = vadd.f32 %v1132_v41, %v1131_v40 }
 0x1d6   : > { %1986 = shalt.err (!%p1983_p11)
}
 0x1d7   : > { %s1987_s15 = scalar_lea.hbm %s2666_s30, 16  ;;  %s1991_s12 = scalar_lea.hbm %s2755_s5, 32 }
 0x1d8   : > { %p1988_p13 = scmp.ne.s32.totalorder %s2666_s30, %s1987_s15  ;;  %p1992_p5 = scmp.lt.u32.totalorder %s2666_s30, %s2755_s5 }
 0x1d9   : > { %p1993_p7 = scmp.lt.u32.totalorder %s1991_s12, %s1987_s15  ;;  %p1995_p0 = scmp.lt.u32.totalorder %s1987_s15, %s2666_s30 }
 0x1da   : > { %p1989_p6 = pnand %p1988_p13, %p2296_p10 }
 0x1db   : > { %p1994_p9 = por %p1993_p7, %p1992_p5 }
 0x1dc   : > { %p1990_p3 = pneg %p1989_p6 }
 0x1dd   : > { %p1996_p2 = por %p1995_p0, %p1994_p9 }
 0x1df   : > { %p1997_p4 = pnand %p1996_p2, %p1990_p3 }
 0x1e1   : > { %2000 = shalt.err (!%p1997_p4)
}
 0x1e2   : > { %1731 = dma.vmem_to_hbm [thread:$0]  (%p2296_p10), %s2668_s14, 16, %s2666_s30, %s2677_s7   ;;  %1134 = vst [vmem:[%s350_s8] sm:$0x1] %v1133_v47 }
 0x1e3   : > { %s2001_s16 = scalar_lea.vmem %s2675_s9, 16  ;;  %s2107_s28 = smov [#allocation14]  }
 0x1e4   : > { %p2002_p8 = scmp.ne.s32.totalorder %s2675_s9, %s2001_s16  ;;  %s2005_s18 = sshll.u32 %s2107_s28, 4  ;;  %s2006_s18 = int_to_ptr.vmem [resolvable:$false] %s2005_s18 }
 0x1e5   : > { %s2007_s13 = scalar_lea.vmem %s2006_s18, 32  ;;  %p2008_p11 = scmp.lt.s32.totalorder %s2675_s9, %s2006_s18 }
 0x1e6   : > { %p2003_p12 = pnand %p2002_p8, %p2296_p10  ;;  %p2009_p13 = scmp.lt.s32.totalorder %s2007_s13, %s2001_s16 }
 0x1e8   : > { %p2004_p1 = pneg %p2003_p12  ;;  %p2010_p6 = por %p2009_p13, %p2008_p11 }
 0x1ea   : > { %p2011_p3 = pnand %p2010_p6, %p2004_p1 }
 0x1ec   : > { %2014 = shalt.err (!%p2011_p3)
}
 0x1ed   : > { %s2015_s19 = scalar_lea.hbm %s2673_s29, 16  ;;  %s2019_s30 = scalar_lea.hbm %s2756_s6, 32 }
 0x1ee   : > { %p2016_p5 = scmp.ne.s32.totalorder %s2673_s29, %s2015_s19  ;;  %p2020_p0 = scmp.lt.u32.totalorder %s2673_s29, %s2756_s6 }
 0x1ef   : > { %p2021_p2 = scmp.lt.u32.totalorder %s2019_s30, %s2015_s19  ;;  %p2023_p8 = scmp.lt.u32.totalorder %s2015_s19, %s2673_s29 }
 0x1f0   : > { %p2017_p7 = pnand %p2016_p5, %p2296_p10 }
 0x1f1   : > { %p2022_p4 = por %p2021_p2, %p2020_p0 }
 0x1f2   : > { %p2018_p9 = pneg %p2017_p7 }
 0x1f3   : > { %p2024_p12 = por %p2023_p8, %p2022_p4 }
 0x1f5   : > { %p2025_p1 = pnand %p2024_p12, %p2018_p9 }
 0x1f7   : > { %2028 = shalt.err (!%p2025_p1)
}
 0x1f8   : > { %1732 = dma.vmem_to_hbm [thread:$0]  (%p2296_p10), %s2675_s9, 16, %s2673_s29, %s2677_s7  }
 0x1f9 PF: > { %s2779_s20 = sld [smem:[#allocation20_spill]]  ;;  %s2780_s12 = sld [smem:[#allocation21_spill]] }
 0x1fa   : > { %p2782_p13 = scmp.ge.s32.totalorder %s2095_s26, 2 }
 0x1ff   : > { %s1201_s24 = sand.u32 1, %s2779_s20   ;;  %p2781_p11 = scmp.ne.s32.totalorder %s2780_s12, 0 }
 0x200   : > { %s1202_s27 = scalar_lea.sflag [#allocation5], %s1201_s24 }
 0x201   : > { %p1751_p6 = pnand %p2782_p13, %p2781_p11 }
 0x203   : > { %2066 = dma.done.wait (!%p1751_p6), %s1202_s27, 2048  }
 0x204   : > { %2068 = vsyncadd (!%p1751_p6), %s1202_s27, 4294965248  ;;  %s2783_s16 = sadd.s32 4294967294, %s2095_s26  }
 0x205   : > { %s1210_s28 = sand.u32 1, %s2783_s16  }
 0x206   : > { %s1211_s18 = scalar_lea.sflag [#allocation13], %s1210_s28 }
 0x207   : > { %2070 = dma.done.wait (!%p1751_p6), %s1211_s18, 32  }
 0x208   : > { %2072 = vsyncadd (!%p1751_p6), %s1211_s18, 4294967264  ;;  %s28_s26 = sadd.s32 1, %s2095_s26   ;;  %s2784_s21 = smov %s2079_s22 }
 0x209   : > { %p25_p10 = scmp.ge.s32.totalorder %s28_s26, 4   ;;  %s2785_s22 = smov %s2083_s23 }
 0x20a   : > { %s2786_s23 = smov %s2308_s11  ;;  %s2787_s24 = smov %s2091_s25 }
 0x20b   : > { %s2788_s25 = smov %s2790_s17  ;;  %27 = sbr.rel (!%p25_p10) target bundleno = 10 (0xa), region = 130 }
 0x212   :  { %1223 = vsyncpa [#allocation4], 1 }
 0x213   :  { %1225 = vsyncpa [#allocation4 + $0x1], 1 }
 0x214   :  { %1226 = vsyncpa [#allocation7], 1 }
 0x215   :  { %1227 = vsyncpa [#allocation10], 1 }
 0x216   :  { %1228 = vsyncpa [#allocation5], 1 }
 0x217   :  { %1230 = vsyncpa [#allocation5 + $0x1], 1 }
 0x218   :  { %1231 = vsyncpa [#allocation13], 1 }
 0x219   :  { %1233 = vsyncpa [#allocation13 + $0x1], 1 }

// kernel: _lambda_.6
= control target key start
LH: loop header
LB: loop body
LE: loop exit
PB: predicated region body
PF: predicated region fallthrough
CT: control target
= control target key end

     0   :  { %12 = vsyncpa [#allocation5], 0  ;;  %s9757_s0 = inlined_call_operand.hbm [shape: bf16[2,16,16,128], index: 0, kind: input, shape index: {}]   ;;  %s9758_s1 = inlined_call_operand.hbm [shape: bf16[1152,128], index: 1, kind: input, shape index: {}]   ;;  %s9759_s2 = inlined_call_operand.hbm [shape: f32[1,128], index: 2, kind: input, shape index: {}]   ;;  %s9760_s3 = inlined_call_operand.hbm [shape: f32[1,128], index: 3, kind: input, shape index: {}]   ;;  %s9761_s4 = inlined_call_operand.hbm [shape: bf16[2,16,16,128], index: 4, kind: output, shape index: {0}]   ;;  %s9762_s5 = inlined_call_operand.hbm [shape: f32[2,1,128], index: 5, kind: output, shape index: {1}]   ;;  %s9763_s6 = inlined_call_operand.hbm [shape: f32[2,1,128], index: 6, kind: output, shape index: {2}]  }
   0x1   :  { %14 = vsyncpa [#allocation5 + $0x1], 0 }
   0x2   :  { %15 = vsyncpa [#allocation8], 0 }
   0x3   :  { %16 = vsyncpa [#allocation11], 0 }
   0x4   :  { %17 = vsyncpa [#allocation6], 0 }
   0x5   :  { %19 = vsyncpa [#allocation6 + $0x1], 0 }
   0x6   :  { %20 = vsyncpa [#allocation14], 0 }
   0x7   :  { %22 = vsyncpa [#allocation14 + $0x1], 0  ;;  %s7763_s21 = smov 0   ;;  %s7765_s22 = smov 0  }
   0x8   :  { %s7767_s23 = smov 0   ;;  %s7769_s24 = smov 0  }
   0x9   :  { %s7771_s25 = smov 0   ;;  %s7773_s26 = smov 0  }
   0xa LB: > { %9770 = sst [smem:[#allocation21_spill]] %s7694_s21  ;;  %s7794_s27 = sadd.s32 4294967295, %s7714_s26   ;;  %s7714_s26 = sphi %s7773_s26, %s28_s26   ;;  %s7710_s25 = sphi %s7771_s25, %s9861_s25   ;;  %s7706_s24 = sphi %s7769_s24, %s9860_s24   ;;  %s7702_s23 = sphi %s7767_s23, %s9859_s23   ;;  %s7698_s22 = sphi %s7765_s22, %s9858_s22   ;;  %s7694_s21 = sphi %s7763_s21, %s9857_s21  }
   0xb   : > { %s9765_s28 = sadd.s32 4294967294, %s7714_s26   ;;  %p60_p0 = scmp.ne.s32.totalorder %s7698_s22, %s7694_s21 }
   0xc   : > { %p9764_p1 = scmp.eq.s32.totalorder %s7794_s27, 0  ;;  %p160_p3 = scmp.eq.s32.totalorder %s9765_s28, 1 }
   0xd   : > { %p6089_p5 = scmp.ge.s32.totalorder %s7714_s26, 1  ;;  %p223_p7 = scmp.lt.s32.totalorder %s7714_s26, 3 }
   0xe   : > { %p7805_p4 = por %p9764_p1, %p60_p0  ;;  %p7810_p6 = por %p160_p3, %p60_p0 }
   0xf   : > { %p7815_p8 = pnand %p6089_p5, %p223_p7  ;;  %s7716_s8 = smov [#allocation7]  }
  0x10   : > { %s9771_s29 = scalar_select %p7805_p4, 1, 0 }
  0x11   : > { %s9772_s30 = scalar_select %p7810_p6, 1, 0 }
  0x12   : > { %s9774_s7 = scalar_select %p7815_p8, 1, 0 }
  0x13   : > { %9773 = sst [smem:[#allocation22_spill]] %s9772_s30  ;;  %s237_s9 = sshll.u32 %s7716_s8, 4  ;;  %s7819_s9 = int_to_ptr.vmem [resolvable:$true] %s237_s9 }
  0x14   : > { %p7236_p9 = pneg %p7815_p8  ;;  %s7717_s11 = smov [#allocation9]  }
  0x15   : > { %s251_s12 = sshll.u32 %s7717_s11, 4  ;;  %s7718_s13 = smov [#allocation10]   ;;  %s7830_s12 = int_to_ptr.vmem [resolvable:$true] %s251_s12 }
  0x16   : > { %p7826_p11 = pnand %p7236_p9, %p9764_p1  ;;  %s7832_s14 = sshll.u32 %s7718_s13, 4  ;;  %s263_s14 = int_to_ptr.vmem [resolvable:$true] %s7832_s14 }
  0x17   : > { %s7450_s17 = scalar_lea.hbm %s9758_s1, 9216 }
  0x18   : > { %p7451_p12 = scmp.ne.s32.totalorder %s9758_s1, %s7450_s17  ;;  %p7842_p13 = pneg %p7826_p11 }
  0x19   : > { %p7457_p5 = scmp.lt.u32.totalorder %s7450_s17, %s9758_s1 }
  0x1a   : > { %p7453_p0 = pnand %p7842_p13, %p7451_p12 }
  0x1c   : > { %p7454_p3 = pneg %p7453_p0 }
  0x1e   : > { %p7459_p7 = pnand %p7457_p5, %p7454_p3 }
  0x20   : > { %7462 = shalt.err (!%p7459_p7)
}
  0x21   : > { %s7463_s13 = scalar_lea.vmem %s7819_s9, 9216  ;;  %p7471_p2 = scmp.lt.s32.totalorder %s7819_s9, %s7819_s9 }
  0x22   : > { %p7464_p9 = scmp.ne.s32.totalorder %s7819_s9, %s7463_s13  ;;  %p7472_p6 = scmp.lt.s32.totalorder %s7463_s13, %s7463_s13 }
  0x24   : > { %p7466_p10 = pnand %p7464_p9, %p7842_p13  ;;  %p7473_p12 = por %p7472_p6, %p7471_p2 }
  0x26   : > { %p7467_p1 = pneg %p7466_p10 }
  0x28   : > { %p7474_p0 = pnand %p7473_p12, %p7467_p1 }
  0x2a   : > { %7477 = shalt.err (!%p7474_p0)
}
  0x2b   : > { %s7719_s15 = smov 64   ;;  %s7720_s16 = smov 4  }
  0x2c   : > { %7239 = dma.hbm_to_vmem [thread:$0]  (!%p7826_p11), %s9758_s1, 9216, %s7819_s9, [#allocation8], %s7719_s15, %s7719_s15, %s7720_s16  }
  0x2d   : > { %s7478_s11 = scalar_lea.hbm %s9759_s2, 16 }
  0x2e   : > { %p7479_p1 = scmp.ne.s32.totalorder %s9759_s2, %s7478_s11  ;;  %p7485_p10 = scmp.lt.u32.totalorder %s7478_s11, %s9759_s2 }
  0x30   : > { %p7481_p2 = pnand %p7479_p1, %p7842_p13 }
  0x32   : > { %p7482_p6 = pneg %p7481_p2 }
  0x34   : > { %p7487_p3 = pnand %p7485_p10, %p7482_p6 }
  0x36   : > { %7490 = shalt.err (!%p7487_p3)
}
  0x37   : > { %s7491_s9 = scalar_lea.vmem %s7830_s12, 16  ;;  %s7498_s28 = scalar_lea.vmem %s7830_s12, 32 }
  0x38   : > { %p7492_p5 = scmp.ne.s32.totalorder %s7830_s12, %s7491_s9  ;;  %p7499_p12 = scmp.lt.s32.totalorder %s7830_s12, %s7830_s12 }
  0x39   : > { %p7500_p0 = scmp.lt.s32.totalorder %s7498_s28, %s7491_s9 }
  0x3a   : > { %p7494_p7 = pnand %p7492_p5, %p7842_p13 }
  0x3b   : > { %p7501_p1 = por %p7500_p0, %p7499_p12 }
  0x3c   : > { %p7495_p9 = pneg %p7494_p7 }
  0x3e   : > { %p7502_p2 = pnand %p7501_p1, %p7495_p9 }
  0x40   : > { %7505 = shalt.err (!%p7502_p2)
}
  0x41   : > { %7242 = dma.hbm_to_vmem [thread:$0]  (!%p7826_p11), %s9759_s2, 16, %s7830_s12, [#allocation8]  }
  0x42   : > { %s7506_s19 = scalar_lea.hbm %s9760_s3, 16 }
  0x43   : > { %p7507_p6 = scmp.ne.s32.totalorder %s9760_s3, %s7506_s19  ;;  %p7513_p5 = scmp.lt.u32.totalorder %s7506_s19, %s9760_s3 }
  0x45   : > { %p7509_p10 = pnand %p7507_p6, %p7842_p13 }
  0x47   : > { %p7510_p3 = pneg %p7509_p10 }
  0x49   : > { %p7515_p7 = pnand %p7513_p5, %p7510_p3 }
  0x4b   : > { %7518 = shalt.err (!%p7515_p7)
}
  0x4c   : > { %s7519_s28 = scalar_lea.vmem %s263_s14, 16  ;;  %s7526_s12 = scalar_lea.vmem %s263_s14, 32 }
  0x4d   : > { %p7520_p9 = scmp.ne.s32.totalorder %s263_s14, %s7519_s28  ;;  %p7527_p1 = scmp.lt.s32.totalorder %s263_s14, %s263_s14 }
  0x4e   : > { %p7528_p2 = scmp.lt.s32.totalorder %s7526_s12, %s7519_s28 }
  0x4f   : > { %p7522_p12 = pnand %p7520_p9, %p7842_p13 }
  0x50   : > { %p7529_p4 = por %p7528_p2, %p7527_p1 }
  0x51   : > { %p7523_p0 = pneg %p7522_p12 }
  0x53   : > { %p7530_p8 = pnand %p7529_p4, %p7523_p0 }
  0x55   : > { %7533 = shalt.err (!%p7530_p8)
}
  0x56   : > { %7245 = dma.hbm_to_vmem [thread:$0]  (!%p7826_p11), %s9760_s3, 16, %s263_s14, [#allocation11]  }
  0x57   : > { %s47_s20 = sadd.s32 1, %s7702_s23  ;;  %s40_s17 = sadd.s32 1, %s7710_s25 }
  0x58   : > { %p54_p4 = scmp.ne.s32.totalorder %s7702_s23, %s7698_s22  ;;  %p42_p8 = scmp.ge.s32.totalorder %s40_s17, 2 }
  0x59   : > { %p55_p13 = scmp.eq.s32.totalorder %s7714_s26, 0  ;;  %p9777_p6 = scmp.eq.s32.totalorder %s7794_s27, 1 }
  0x5a   : > { %p7263_p3 = scmp.lt.s32.totalorder %s7714_s26, 2  ;;  %s9863_s17 = smov (%p42_p8, %s40_s17), 0 }
  0x5b   : > { %p7916_p10 = por %p9777_p6, %p54_p4  ;;  %p56_p5 = por %p55_p13, %p54_p4 }
  0x5c   : > { %s273_s18 = sand.u32 1, %s7702_s23   ;;  %s44_s19 = ssub.s32 %s7710_s25, %s9863_s17 }
  0x5d   : > { %p45_p7 = scmp.eq.s32.totalorder %s44_s19, 0  ;;  %s6094_s14 = sshll.u32 %s273_s18, 7 }
  0x5e   : > { %s6440_s8 = sshll.u32 %s7710_s25, 11  ;;  %s277_s12 = scalar_lea.vmem [#allocation4], %s6094_s14 }
  0x5f   : > { %s7928_s11 = scalar_select %p45_p7, %s7702_s23, %s47_s20  }
  0x60   : > { %s7933_s28 = scalar_lea.hbm %s9757_s0, %s6440_s8  ;;  %s284_s21 = sshll.u32 %s277_s12, 4  ;;  %s7935_s21 = int_to_ptr.vmem [resolvable:$true] %s284_s21 }
  0x61   : > { %p7939_p11 = pnand %p7263_p3, %p56_p5  ;;  %s7943_s20 = scalar_lea.sflag [#allocation5], %s273_s18 }
  0x62   : > { %s7534_s19 = scalar_lea.hbm %s7933_s28, 2048  ;;  %s7539_s13 = scalar_lea.hbm %s9757_s0, 4096 }
  0x63   : > { %p7535_p9 = scmp.ne.s32.totalorder %s7933_s28, %s7534_s19  ;;  %p7536_p12 = pneg %p7939_p11 }
  0x64   : > { %p7540_p2 = scmp.lt.u32.totalorder %s7933_s28, %s9757_s0  ;;  %p7541_p4 = scmp.lt.u32.totalorder %s7539_s13, %s7534_s19 }
  0x65   : > { %p7537_p0 = pnand %p7536_p12, %p7535_p9  ;;  %p7543_p13 = scmp.lt.u32.totalorder %s7534_s19, %s7933_s28 }
  0x66   : > { %p7542_p8 = por %p7541_p4, %p7540_p2 }
  0x67   : > { %p7538_p1 = pneg %p7537_p0 }
  0x68   : > { %p7544_p6 = por %p7543_p13, %p7542_p8 }
  0x6a   : > { %p7545_p3 = pnand %p7544_p6, %p7538_p1 }
  0x6c   : > { %7548 = shalt.err (!%p7545_p3)
}
  0x6d   : > { %s7549_s18 = scalar_lea.vmem %s7935_s21, 2048  ;;  %s7721_s14 = smov [#allocation4]  }
  0x6e   : > { %p7550_p5 = scmp.ne.s32.totalorder %s7935_s21, %s7549_s18  ;;  %s7554_s8 = sshll.u32 %s7721_s14, 4  ;;  %s7555_s8 = int_to_ptr.vmem [resolvable:$false] %s7554_s8 }
  0x6f   : > { %s7556_s9 = scalar_lea.vmem %s7555_s8, 4096  ;;  %p7557_p0 = scmp.lt.s32.totalorder %s7935_s21, %s7555_s8 }
  0x70   : > { %p7552_p7 = pnand %p7550_p5, %p7536_p12  ;;  %p7558_p2 = scmp.lt.s32.totalorder %s7556_s9, %s7549_s18 }
  0x72   : > { %p7553_p9 = pneg %p7552_p7  ;;  %p7559_p4 = por %p7558_p2, %p7557_p0 }
  0x74   : > { %p7560_p8 = pnand %p7559_p4, %p7553_p9 }
  0x76   : > { %7563 = shalt.err (!%p7560_p8)
}
  0x77   : > { %7249 = dma.hbm_to_vmem [thread:$0]  (!%p7939_p11), %s7933_s28, 2048, %s7935_s21, %s7943_s20, %s7719_s15, %s7719_s15, %s7720_s16  }
  0x78   : > { %p9780_p12 = scmp.ne.s32.totalorder %s9774_s7, 0 }
  0x7a   : > { %296 = sbr.rel (%p9780_p12) target bundleno = 865 (0x361), region = 36 }
  0x81   : > { %s7977_s19 = sand.u32 1, %s7698_s22   ;;  %p9781_p1 = scmp.ne.s32.totalorder %s9771_s29, 0 }
  0x82   : > { %s6098_s13 = sshll.u32 %s7977_s19, 7  ;;  %s299_s12 = scalar_lea.sflag [#allocation5], %s7977_s19 }
  0x83   : > { %s7983_s30 = scalar_lea.vmem [#allocation4], %s6098_s13 }
  0x84   : > { %7673 = dma.done.wait (%p9781_p1), %s299_s12, 2048  }
  0x85   : > { %7675 = vsyncadd (%p9781_p1), %s299_s12, 4294965248  ;;  %p9782_p11 = scmp.eq.s32.totalorder %s7794_s27, 0 }
  0x87   : > { %7677 = dma.done.wait (%p9782_p11), [#allocation8], 9232   ;;  %p9783_p13 = pmov %p9782_p11 }
  0x88   : > { %p9784_p6 = pmov %p9782_p11 }
  0x89   : > { %7679 = vsyncadd (%p9783_p13), [#allocation8], 4294958064 }
  0x8a   : > { %7681 = dma.done.wait (%p9784_p6), [#allocation11], 16   ;;  %p9785_p3 = pmov %p9784_p6 }
  0x8b   : > { %v7722_v0 = vmov 0   ;;  %v7324_v1 = vld [vmem:[#allocation7 + $0x40] sm:$0xff]   ;;  %v7326_v3 = vld [vmem:[#allocation7 + $0x48] sm:$0xff]   ;;  %v7328_v5 = vld [vmem:[#allocation7 + $0x50] sm:$0xff]   ;;  %vm364_vm0 = vcmask 1040384   ;;  %vm1121_vm11 = vcmask 1043456  }
  0x8c   : > { %7683 = vsyncadd (%p9785_p3), [#allocation11], 4294967280  ;;  %356 = vst [vmem:[#allocation2] sm:$0xf] %v7722_v0  ;;  %v7325_v2 = vld [vmem:[#allocation7] sm:$0xff]   ;;  %6680 = vmatprep.subr.bf16.mxu0 %v7324_v1  ;;  %7200 = vmatprep.subr.bf16.mxu1 %v7324_v1  ;;  %v7327_v4 = vld [vmem:[#allocation7 + $0x8] sm:$0xff]  }
  0x8d   : > { %357 = vst [vmem:[#allocation2 + $0x4] sm:$0xf] %v7722_v0  ;;  %358 = vst [vmem:[#allocation2 + $0x8] sm:$0x1] %v7722_v0  ;;  %6681 = vmatpush3.bf16.msra.mxu0 %v7325_v2  ;;  %7208 = vmatpush3.bf16.msra.mxu1 %v7325_v2  ;;  %v7329_v6 = vld [vmem:[#allocation7 + $0x10] sm:$0xff]   ;;  %v7330_v7 = vld [vmem:[#allocation7 + $0x58] sm:$0xff]  }
  0x8e   : > { %360 = vst [vmem:[#allocation2 + $0xcc] sm:$0xf] %v7722_v0  ;;  %361 = vst [vmem:[#allocation2 + $0xd0] sm:$0xf] %v7722_v0  ;;  %6682 = vmatprep.subr.bf16.mxu0 %v7326_v3  ;;  %7201 = vmatprep.subr.bf16.mxu1 %v7326_v3  ;;  %vm1427_vm1 = vsmask.f32 3328 }
  0x8f   : > { %362 = vst [vmem:[#allocation2 + $0xd4] sm:$0x1] %v7722_v0  ;;  %vm1428_vm2 = vsmask.f32 7440  ;;  %vm365_vm3 = vsmask.f32 256 }
  0x90   : > { %v7331_v8 = vld [vmem:[#allocation7 + $0x18] sm:$0xff]   ;;  %v7332_v9 = vld [vmem:[#allocation7 + $0x60] sm:$0xff]   ;;  %vm7999_vm4 = vmand %vm364_vm0, %vm365_vm3  ;;  %vm415_vm5 = vsmask.f32 7938  ;;  %vm799_vm10 = vsmask.f32 4368 }
  0x91   : > { %6683 = vmatpush3.bf16.msra.mxu0 %v7327_v4  ;;  %7209 = vmatpush3.bf16.msra.mxu1 %v7327_v4  ;;  %v7333_v11 = vld [vmem:[#allocation7 + $0x20] sm:$0xff]   ;;  %v7334_v12 = vld [vmem:[#allocation7 + $0x68] sm:$0xff]   ;;  %vm8005_vm6 = vmand %vm364_vm0, %vm415_vm5  ;;  %s9573_s29 = scalar_lea.vmem [#allocation12], %s6098_s13  ;;  %s6505_s7 = sshll.u32 %s7706_s24, 11 }
  0x92   : > { %6684 = vmatprep.subr.bf16.mxu0 %v7328_v5  ;;  %7202 = vmatprep.subr.bf16.mxu1 %v7328_v5  ;;  %v7335_v16 = vld [vmem:[#allocation7 + $0x28] sm:$0xff]   ;;  %v7336_v22 = vld [vmem:[#allocation7 + $0x70] sm:$0xff]   ;;  %v400_v24 = vld [vmem:[#allocation2 + $0x90] sm:$0x1]  ;;  %s5890_s15 = sshll.u32 %s9573_s29, 4  ;;  %s9635_s21 = scalar_lea.hbm %s9761_s4, %s6505_s7  ;;  %s9637_s15 = int_to_ptr.vmem [resolvable:$true] %s5890_s15 }
  0x93   : > { %v1379_v13 = vld [vmem:[#allocation2] sm:$0xf]  ;;  %v450_v29 = vld [vmem:[#allocation2 + $0x98] sm:$0x1]  ;;  %v401_v31 = vsel %vm7999_vm4, 0, %v400_v24  ;;  %v6660_v33 = vld [vmem:[%s7983_s30 + $0x58] sm:$0xff]  }
  0x94   : > { %v1380_v14 = vld [vmem:[#allocation2 + $0x4] sm:$0xf]  ;;  %v1381_v15 = vld [vmem:[#allocation2 + $0x8] sm:$0x1]  ;;  %v1431_v17 = vshrl.u32 %v1379_v13, 16  ;;  %v1434_v18 = vshll.u32 %v1379_v13, 16  ;;  %vm8018_vm7 = vmor %vm1427_vm1, %vm1428_vm2  ;;  %v6552_v38 = vunpack.c.l.bf16 %v6660_v33  ;;  %v6553_v39 = vunpack.c.h.bf16 %v6660_v33 }
  0x95   : > { %6685 = vmatpush3.bf16.msra.mxu0 %v7329_v6  ;;  %7210 = vmatpush3.bf16.msra.mxu1 %v7329_v6  ;;  %v1440_v19 = vshll.u32 %v1380_v14, 16  ;;  %v1444_v20 = vshrl.u32 %v1380_v14, 16  ;;  %v1450_v23 = vshll.u32 %v1381_v15, 16  ;;  %v451_v32 = vsel %vm8005_vm6, 0, %v450_v29  ;;  %v8014_v34 = vld [vmem:[#allocation9] ss:$0 sm:$0xff]  ;;  %vm8050_vm12 = vmor %vm365_vm3, %vm799_vm10 }
  0x96   : > { %6686 = vmatprep.subr.bf16.mxu0 %v7330_v7  ;;  %7203 = vmatprep.subr.bf16.mxu1 %v7330_v7  ;;  %v1433_v25 = vrot.slane %v1431_v17, 4  ;;  %v1436_v26 = vrot.slane %v1434_v18, 5  ;;  %402 = vst [vmem:[#allocation2 + $0x90] sm:$0x1] %v401_v31  ;;  %452 = vst [vmem:[#allocation2 + $0x98] sm:$0x1] %v451_v32  ;;  %v558_v45 = vmul.f32 %v6552_v38, %v8014_v34 }
  0x97   : > { %v1442_v27 = vrot.slane %v1440_v19, 5  ;;  %v1446_v28 = vrot.slane %v1444_v20, 4  ;;  %v1452_v30 = vrot.slane %v1450_v23, 5  ;;  %v8022_v40 = vld [vmem:[#allocation10] ss:$0 sm:$0xff]  ;;  %v7337_v41 = vld [vmem:[#allocation7 + $0x30] sm:$0xff]   ;;  %v559_v46 = vmul.f32 %v6553_v39, %v8014_v34  ;;  %vm8056_vm13 = vmand %vm1121_vm11, %vm415_vm5 }
  0x98   : > { %v1437_v36 = vor.u32 %v1436_v26, %v1433_v25  ;;  %v7338_v42 = vld [vmem:[#allocation7 + $0x78] sm:$0xff]   ;;  %v597_v49 = vadd.f32 %v8022_v40, %v558_v45  ;;  %v367_v51 = vld [vmem:[#allocation2 + $0xc] sm:$0x1]  ;;  %v6507_v57 = vld [vmem:[%s7983_s30] sm:$0xff]   ;;  %s5868_s20 = scalar_lea.sflag [#allocation6], %s7977_s19  ;;  %s7564_s18 = scalar_lea.vmem %s9637_s15, 2048 }
  0x99   : > { %6687 = vmatpush3.bf16.msra.mxu0 %v7331_v8  ;;  %7211 = vmatpush3.bf16.msra.mxu1 %v7331_v8  ;;  %v1447_v37 = vor.u32 %v1446_v28, %v1442_v27  ;;  %v598_v50 = vadd.f32 %v8022_v40, %v559_v46  ;;  %v417_v52 = vld [vmem:[#allocation2 + $0x14] sm:$0x1]  ;;  %v368_v55 = vsel %vm7999_vm4, 0, %v367_v51  ;;  %v7340_v60 = vld [vmem:[#allocation2] sm:$0xff]   ;;  %v7341_v61 = vld [vmem:[#allocation7 + $0xc0] sm:$0xff]   ;;  %v6508_v63 = vunpack.c.l.bf16 %v6507_v57  ;;  %p7565_p5 = scmp.ne.s32.totalorder %s9637_s15, %s7564_s18  ;;  %s7723_s14 = smov [#allocation12]  }
  0x9a   : > { %6688 = vmatprep.subr.bf16.mxu0 %v7332_v9  ;;  %7204 = vmatprep.subr.bf16.mxu1 %v7332_v9  ;;  %v1438_v43 = vrot.slane %v1437_v36, 4  ;;  %v7339_v53 = vld [vmem:[#allocation7 + $0x38] sm:$0xff]   ;;  %v418_v56 = vsel %vm8005_vm6, 0, %v417_v52  ;;  %vm629_vm8 = vcmp.gt.f32.partialorder %v597_v49, 0.0  ;;  %v661_v58 = vmul.f32 0.1, %v597_v49 }
  0x9b   : > { %v1448_v44 = vrot.slane %v1447_v37, 4  ;;  %vm630_vm9 = vcmp.gt.f32.partialorder %v598_v50, 0.0  ;;  %v662_v59 = vmul.f32 0.1, %v598_v50  ;;  %369 = vst [vmem:[#allocation2 + $0xc] sm:$0x1] %v368_v55  ;;  %v6509_v0 = vunpack.c.h.bf16 %v6507_v57  ;;  %p7566_p7 = pnand %p7565_p5, %p7916_p10 }
  0x9c   : > { %v1443_v47 = vsel %vm8018_vm7, %v1438_v43, %v1442_v27  ;;  %419 = vst [vmem:[#allocation2 + $0x14] sm:$0x1] %v418_v56  ;;  %v7342_v62 = vld [vmem:[#allocation7 + $0x140] sm:$0xff]   ;;  %v693_v1 = vsel %vm629_vm8, %v597_v49, %v661_v58  ;;  %v536_v6 = vmul.f32 %v6508_v63, %v8014_v34  ;;  %v453_v9 = vld [vmem:[#allocation2 + $0xa4] sm:$0x1]  ;;  %s7568_s8 = sshll.u32 %s7723_s14, 4  ;;  %s7569_s8 = int_to_ptr.vmem [resolvable:$false] %s7568_s8 }
  0x9d   : > { %6689 = vmatpush3.bf16.msra.mxu0 %v7333_v11  ;;  %7212 = vmatpush3.bf16.msra.mxu1 %v7333_v11  ;;  %v1453_v48 = vsel %vm8018_vm7, %v1448_v44, %v1452_v30  ;;  %v694_v2 = vsel %vm630_vm9, %v598_v50, %v662_v59  ;;  %v7345_v3 = vld [vmem:[#allocation7 + $0x100] sm:$0xff]   ;;  %v6463_v4 = vpack.c.bf16 %v693_v1, %v693_v1  ;;  %v454_v13 = vsel %vm8005_vm6, 0, %v453_v9  ;;  %v1200_v28 = vld [vmem:[#allocation2 + $0x90] sm:$0xf]  ;;  %v7353_v50 = vld [vmem:[#allocation7 + $0x148] sm:$0xff]   ;;  %p7567_p9 = pneg %p7566_p7  ;;  %s7570_s9 = scalar_lea.vmem %s7569_s8, 4096 }
  0x9e   : > { %6690 = vmatprep.subr.bf16.mxu0 %v7334_v12  ;;  %7205 = vmatprep.subr.bf16.mxu1 %v7334_v12  ;;  %v6153_v54 = vcombine.low %v1443_v47, %v1453_v48  ;;  %v6464_v5 = vpack.c.bf16 %v694_v2, %v694_v2  ;;  %v537_v7 = vmul.f32 %v6509_v0, %v8014_v34  ;;  %v403_v8 = vld [vmem:[#allocation2 + $0x9c] sm:$0x1]  ;;  %v1204_v29 = vld [vmem:[#allocation2 + $0x98] sm:$0x1]  ;;  %p7571_p0 = scmp.lt.s32.totalorder %s9637_s15, %s7569_s8  ;;  %p7572_p2 = scmp.lt.s32.totalorder %s7570_s9, %s7564_s18 }
  0x9f   : > { %v6661_v11 = vld [vmem:[%s7983_s30 + $0x60] sm:$0xff]   ;;  %v404_v12 = vsel %vm7999_vm4, 0, %v403_v8  ;;  %v992_v17 = vshll.u32 %v6463_v4, 16  ;;  %455 = vst [vmem:[#allocation2 + $0xa4] sm:$0x1] %v454_v13  ;;  %v575_v20 = vadd.f32 %v8022_v40, %v536_v6  ;;  %v7356_v8 = vld [vmem:[#allocation7 + $0x108] sm:$0xff]  }
  0xa0   : > { %4826 = vmatprep.mubr.bf16.mxu0 %v6153_v54  ;;  %v6556_v14 = vunpack.c.l.bf16 %v6661_v11  ;;  %v6557_v15 = vunpack.c.h.bf16 %v6661_v11  ;;  %v997_v18 = vshrl.u32 %v6464_v5, 16  ;;  %v1000_v19 = vshll.u32 %v6464_v5, 16  ;;  %405 = vst [vmem:[#allocation2 + $0x9c] sm:$0x1] %v404_v12  ;;  %v370_v39 = vld [vmem:[#allocation2 + $0x18] sm:$0x1]  ;;  %p7573_p4 = por %p7572_p2, %p7571_p0 }
  0xa1   : > { %6691 = vmatpush3.bf16.msra.mxu0 %v7335_v16  ;;  %7213 = vmatpush3.bf16.msra.mxu1 %v7335_v16  ;;  %v989_v16 = vshrl.u32 %v6463_v4, 16  ;;  %vm607_vm14 = vcmp.gt.f32.partialorder %v575_v20, 0.0  ;;  %v639_v31 = vmul.f32 0.1, %v575_v20 }
  0xa2   : > { %6692 = vmatprep.subr.bf16.mxu0 %v7336_v22  ;;  %7206 = vmatprep.subr.bf16.mxu1 %v7336_v22  ;;  %v576_v22 = vadd.f32 %v8022_v40, %v537_v7  ;;  %v560_v23 = vmul.f32 %v6556_v14, %v8014_v34  ;;  %v561_v24 = vmul.f32 %v6557_v15, %v8014_v34  ;;  %v999_v27 = vrot.slane %v997_v18, 7  ;;  %v8075_v14 = vld [vmem:[%s7983_s30 + $0x68] sm:$0xff]   ;;  %p7574_p8 = pnand %p7573_p4, %p7567_p9 }
  0xa3   : > { %v991_v26 = vrot.slane %v989_v16, 7  ;;  %v1127_v4 = vld [vmem:[#allocation2 + $0x14] sm:$0x1] }
  0xa4   : > { %vm608_vm15 = vcmp.gt.f32.partialorder %v576_v22, 0.0  ;;  %v640_v32 = vmul.f32 0.1, %v576_v22  ;;  %v1002_v37 = vor.u32 %v1000_v19, %v999_v27  ;;  %v1004_v38 = vrot.slane %v999_v27, 4 }
  0xa5   : > { %6693 = vmatpush3.bf16.msra.mxu0 %v7337_v41  ;;  %7214 = vmatpush3.bf16.msra.mxu1 %v7337_v41  ;;  %v994_v33 = vor.u32 %v992_v17, %v991_v26  ;;  %v995_v36 = vrot.slane %v991_v26, 4  ;;  %v6650_v41 = vld [vmem:[%s7983_s30 + $0x8] sm:$0xff]   ;;  %v599_v44 = vadd.f32 %v8022_v40, %v560_v23  ;;  %v600_v45 = vadd.f32 %v8022_v40, %v561_v24 }
  0xa6   : > { %6694 = vmatprep.subr.bf16.mxu0 %v7338_v42  ;;  %7207 = vmatprep.subr.bf16.mxu1 %v7338_v42  ;;  %v671_v42 = vsel %vm607_vm14, %v575_v20, %v639_v31  ;;  %v672_v43 = vsel %vm608_vm15, %v576_v22, %v640_v32  ;;  %v1205_v48 = vsel %vm7999_vm4, %v1004_v38, %v1204_v29  ;;  %v6512_v57 = vunpack.c.l.bf16 %v6650_v41 }
  0xa7   : > { %v1003_v46 = vsel %vm8050_vm12, %v995_v36, %v1002_v37  ;;  %v1201_v47 = vsel %vm8056_vm13, %v994_v33, %v1200_v28  ;;  %v6441_v49 = vpack.c.bf16 %v671_v42, %v671_v42  ;;  %1206 = vst [vmem:[#allocation2 + $0x98] sm:$0x1] %v1205_v48  ;;  %v6442_v51 = vpack.c.bf16 %v672_v43, %v672_v43 }
  0xa8   : > { %1202 = vst [vmem:[#allocation2 + $0x90] sm:$0xf] %v1201_v47  ;;  %1203 = vst [vmem:[#allocation2 + $0x94] sm:$0xf] %v1003_v46  ;;  %vm631_vm0 = vcmp.gt.f32.partialorder %v599_v44, 0.0  ;;  %vm632_vm1 = vcmp.gt.f32.partialorder %v600_v45, 0.0  ;;  %v6513_v6 = vunpack.c.h.bf16 %v6650_v41  ;;  %v538_v7 = vmul.f32 %v6512_v57, %v8014_v34 }
  0xa9   : > { %6695 = vmatpush3.bf16.msra.mxu0 %v7339_v53  ;;  %7215 = vmatpush3.bf16.msra.mxu1 %v7339_v53  ;;  %v663_v52 = vmul.f32 0.1, %v599_v44  ;;  %v420_v53 = vld [vmem:[#allocation2 + $0x20] sm:$0x1]  ;;  %v802_v54 = vshrl.u32 %v6441_v49, 16  ;;  %v805_v55 = vshll.u32 %v6441_v49, 16  ;;  %v6560_v27 = vunpack.c.l.bf16 %v8075_v14 }
  0xaa   : > { %6792 = vmatprep.subr.bf16.mxu1 %v7341_v61  ;;  %6904 = vmatprep.subr.bf16.mxu0 %v7342_v62  ;;  %v664_v56 = vmul.f32 0.1, %v600_v45  ;;  %v810_v58 = vshrl.u32 %v6442_v51, 16  ;;  %v813_v59 = vshll.u32 %v6442_v51, 16  ;;  %v371_v61 = vsel %vm7999_vm4, 0, %v370_v39 }
  0xab   : > { %v804_v62 = vrot.slane %v802_v54, 7  ;;  %372 = vst [vmem:[#allocation2 + $0x18] sm:$0x1] %v371_v61  ;;  %v421_v1 = vsel %vm8005_vm6, 0, %v420_v53  ;;  %v539_v24 = vmul.f32 %v6513_v6, %v8014_v34  ;;  %v577_v26 = vadd.f32 %v8022_v40, %v538_v7  ;;  %v1207_v39 = vld [vmem:[#allocation2 + $0x9c] sm:$0xf] }
  0xac   : > { %4827 = vmatmul.mubr.bf16.vlgmr.msra.gmra.mrb[0].mxu0 %v7340_v60  ;;  %v695_v60 = vsel %vm631_vm0, %v599_v44, %v663_v52  ;;  %v696_v63 = vsel %vm632_vm1, %v600_v45, %v664_v56  ;;  %v812_v2 = vrot.slane %v810_v58, 7  ;;  %422 = vst [vmem:[#allocation2 + $0x20] sm:$0x1] %v421_v1  ;;  %v1211_v45 = vld [vmem:[#allocation2 + $0xa4] sm:$0x1]  ;;  %v7344_v6 = vld [vmem:[#allocation7 + $0x80] sm:$0xff]  }
  0xad   : > { %6905 = vmatpush3.bf16.msra.mxu0 %v7345_v3  ;;  %v6465_v0 = vpack.c.bf16 %v695_v60, %v695_v60  ;;  %v1123_v3 = vld [vmem:[#allocation2 + $0xc] sm:$0xf]  ;;  %v6466_v5 = vpack.c.bf16 %v696_v63, %v696_v63  ;;  %v807_v9 = vor.u32 %v805_v55, %v804_v62  ;;  %v808_v11 = vrot.slane %v804_v62, 4 }
  0xae   : > { %6906 = vmatprep.subr.bf16.mxu0 %v7353_v50  ;;  %v815_v15 = vor.u32 %v813_v59, %v812_v2  ;;  %v817_v16 = vrot.slane %v812_v2, 4  ;;  %v1417_v22 = vld [vmem:[#allocation2 + $0x98] sm:$0x1]  ;;  %v406_v50 = vld [vmem:[#allocation2 + $0xa8] sm:$0x1]  ;;  %v578_v53 = vadd.f32 %v8022_v40, %v539_v24  ;;  %vm609_vm2 = vcmp.gt.f32.partialorder %v577_v26, 0.0 }
  0xaf   : > { %v1006_v12 = vshrl.u32 %v6465_v0, 16  ;;  %v1009_v13 = vshll.u32 %v6465_v0, 16  ;;  %v1014_v17 = vshrl.u32 %v6466_v5, 16  ;;  %v1017_v18 = vshll.u32 %v6466_v5, 16  ;;  %v1415_v19 = vld [vmem:[#allocation2 + $0x90] sm:$0xf] }
  0xb0   : > { %v1416_v20 = vld [vmem:[#allocation2 + $0x94] sm:$0xf]  ;;  %v1124_v23 = vsel %vm8056_vm13, %v807_v9, %v1123_v3  ;;  %v1719_v28 = vshrl.u32 %v1415_v19, 16  ;;  %v1722_v29 = vshll.u32 %v1415_v19, 16  ;;  %v1738_v33 = vshll.u32 %v1417_v22, 16  ;;  %v7346_v22 = vld [vmem:[#allocation7 + $0xc8] sm:$0xff]  }
  0xb1   : > { %6907 = vmatpush3.bf16.msra.mxu0 %v7356_v8  ;;  %v1728_v31 = vshll.u32 %v1416_v20, 16  ;;  %v1732_v32 = vshrl.u32 %v1416_v20, 16  ;;  %1125 = vst [vmem:[#allocation2 + $0xc] sm:$0xf] %v1124_v23  ;;  %v816_v36 = vsel %vm8050_vm12, %v808_v11, %v815_v15  ;;  %v1128_v37 = vsel %vm7999_vm4, %v817_v16, %v1127_v4  ;;  %v456_v2 = vld [vmem:[#allocation2 + $0xb0] sm:$0x1] }
  0xb2   : > { %v1008_v38 = vrot.slane %v1006_v12, 7  ;;  %v1721_v41 = vrot.slane %v1719_v28, 4  ;;  %v1724_v42 = vrot.slane %v1722_v29, 5  ;;  %1126 = vst [vmem:[#allocation2 + $0x10] sm:$0xf] %v816_v36  ;;  %v1740_v46 = vrot.slane %v1738_v33, 5 }
  0xb3   : > { %v1730_v43 = vrot.slane %v1728_v31, 5  ;;  %v1734_v44 = vrot.slane %v1732_v32, 4  ;;  %1129 = vst [vmem:[#allocation2 + $0x14] sm:$0x1] %v1128_v37  ;;  %v1016_v49 = vrot.slane %v1014_v17, 7  ;;  %vm610_vm3 = vcmp.gt.f32.partialorder %v578_v53, 0.0 }
  0xb4   : > { %v1011_v47 = vor.u32 %v1009_v13, %v1008_v38  ;;  %v1012_v48 = vrot.slane %v1008_v38, 4  ;;  %v1725_v51 = vor.u32 %v1724_v42, %v1721_v41  ;;  %v641_v57 = vmul.f32 0.1, %v577_v26  ;;  %v7343_v5 = vld [vmem:[#allocation2 + $0x90] sm:$0xff]   ;;  %v7364_v23 = vld [vmem:[#allocation7 + $0x150] sm:$0xff]  }
  0xb5   : > { %v1735_v52 = vor.u32 %v1734_v44, %v1730_v43  ;;  %v1019_v54 = vor.u32 %v1017_v18, %v1016_v49  ;;  %v1021_v55 = vrot.slane %v1016_v49, 4  ;;  %v642_v60 = vmul.f32 0.1, %v578_v53  ;;  %v8104_v32 = vld [vmem:[%s7983_s30 + $0x10] sm:$0xff]   ;;  %6908 = vmatprep.subr.bf16.mxu0 %v7364_v23 }
  0xb6   : > { %v1208_v56 = vsel %vm8056_vm13, %v1011_v47, %v1207_v39  ;;  %v1726_v58 = vrot.slane %v1725_v51, 4  ;;  %v673_v0 = vsel %vm609_vm2, %v577_v26, %v641_v57  ;;  %v407_v1 = vsel %vm7999_vm4, 0, %v406_v50  ;;  %v7348_v26 = vld [vmem:[#allocation7 + $0x88] sm:$0xff]   ;;  %v7367_v39 = vld [vmem:[#allocation7 + $0x110] sm:$0xff]  }
  0xb7   : > { %v1736_v59 = vrot.slane %v1735_v52, 4  ;;  %1209 = vst [vmem:[#allocation2 + $0x9c] sm:$0xf] %v1208_v56  ;;  %v1020_v62 = vsel %vm8050_vm12, %v1012_v48, %v1019_v54  ;;  %v1212_v63 = vsel %vm7999_vm4, %v1021_v55, %v1211_v45  ;;  %408 = vst [vmem:[#allocation2 + $0xa8] sm:$0x1] %v407_v1  ;;  %v674_v13 = vsel %vm610_vm3, %v578_v53, %v642_v60  ;;  %v7349_v50 = vld [vmem:[#allocation7 + $0xd0] sm:$0xff]  }
  0xb8   : > { %v1382_v61 = vld [vmem:[#allocation2 + $0xc] sm:$0xf]  ;;  %v1731_v3 = vsel %vm8018_vm7, %v1726_v58, %v1730_v43  ;;  %1210 = vst [vmem:[#allocation2 + $0xa0] sm:$0xf] %v1020_v62  ;;  %1213 = vst [vmem:[#allocation2 + $0xa4] sm:$0x1] %v1212_v63  ;;  %v6443_v15 = vpack.c.bf16 %v673_v0, %v673_v0  ;;  %v6561_v16 = vunpack.c.h.bf16 %v8075_v14  ;;  %v8101_v28 = vpack.c.bf16 %v674_v13, %v674_v13 }
  0xb9   : > { %v1741_v4 = vsel %vm8018_vm7, %v1736_v59, %v1740_v46  ;;  %v1455_v7 = vshrl.u32 %v1382_v61, 16  ;;  %v1458_v8 = vshll.u32 %v1382_v61, 16  ;;  %v1383_v11 = vld [vmem:[#allocation2 + $0x10] sm:$0xf]  ;;  %v457_v38 = vsel %vm8005_vm6, 0, %v456_v2  ;;  %6909 = vmatpush3.bf16.msra.mxu0 %v7367_v39  ;;  %v7351_v59 = vld [vmem:[#allocation7 + $0x90] sm:$0xff]  }
  0xba   : > { %v6165_v9 = vcombine.low %v1731_v3, %v1741_v4  ;;  %v1384_v12 = vld [vmem:[#allocation2 + $0x14] sm:$0x1]  ;;  %v1464_v19 = vshll.u32 %v1383_v11, 16  ;;  %v1468_v20 = vshrl.u32 %v1383_v11, 16  ;;  %v819_v29 = vshrl.u32 %v6443_v15, 16  ;;  %v7347_v3 = vld [vmem:[#allocation2 + $0xc] sm:$0xff]  }
  0xbb   : > { %v1457_v17 = vrot.slane %v1455_v7, 4  ;;  %v1460_v18 = vrot.slane %v1458_v8, 5  ;;  %v1474_v24 = vshll.u32 %v1384_v12, 16  ;;  %v822_v31 = vshll.u32 %v6443_v15, 16  ;;  %458 = vst [vmem:[#allocation2 + $0xb0] sm:$0x1] %v457_v38 }
  0xbc   : > { %4922 = vmatprep.mubr.bf16.mxu1 %v6165_v9  ;;  %v1466_v36 = vrot.slane %v1464_v19, 5  ;;  %v1470_v37 = vrot.slane %v1468_v20, 4  ;;  %v8108_v43 = vrot.slane %v819_v29, 7  ;;  %v562_v44 = vmul.f32 %v6560_v27, %v8014_v34  ;;  %v1130_v60 = vld [vmem:[#allocation2 + $0x18] sm:$0xf]  ;;  %v7352_v7 = vld [vmem:[#allocation7 + $0xd8] sm:$0xff]  }
  0xbd   : > { %4923 = vmatmul.mubr.bf16.vlgmr.msra.gmra.mrb[0].mxu1 %v7343_v5  ;;  %v1461_v33 = vor.u32 %v1460_v18, %v1457_v17  ;;  %v1476_v41 = vrot.slane %v1474_v24, 5  ;;  %v563_v45 = vmul.f32 %v6561_v16, %v8014_v34  ;;  %v6516_v14 = vunpack.c.l.bf16 %v8104_v32  ;;  %v373_v1 = vld [vmem:[#allocation2 + $0x24] sm:$0x1]  ;;  %v423_v8 = vld [vmem:[#allocation2 + $0x2c] sm:$0x1]  ;;  %v7355_v19 = vld [vmem:[#allocation7 + $0x98] sm:$0xff]  }
  0xbe   : > { %6793 = vmatpush3.bf16.msra.mxu1 %v7344_v6  ;;  %v1418_v42 = vld [vmem:[#allocation2 + $0x9c] sm:$0xf]  ;;  %v1471_v47 = vor.u32 %v1470_v37, %v1466_v36  ;;  %v824_v53 = vor.u32 %v822_v31, %v8108_v43  ;;  %v601_v54 = vadd.f32 %v8022_v40, %v562_v44  ;;  %v825_v0 = vrot.slane %v8108_v43, 4  ;;  %v1134_v15 = vld [vmem:[#allocation2 + $0x20] sm:$0x1] }
  0xbf   : > { %v1462_v46 = vrot.slane %v1461_v33, 4  ;;  %6794 = vmatprep.subr.bf16.mxu1 %v7346_v22  ;;  %v1743_v48 = vshrl.u32 %v1418_v42, 16  ;;  %v1746_v49 = vshll.u32 %v1418_v42, 16  ;;  %v1419_v51 = vld [vmem:[#allocation2 + $0xa0] sm:$0xf]  ;;  %v602_v55 = vadd.f32 %v8022_v40, %v563_v45  ;;  %v7359_v45 = vld [vmem:[#allocation7 + $0xa0] sm:$0xff]  }
  0xc0   : > { %v1420_v52 = vld [vmem:[#allocation2 + $0xa4] sm:$0x1]  ;;  %v1472_v56 = vrot.slane %v1471_v47, 4  ;;  %v1752_v61 = vshll.u32 %v1419_v51, 16  ;;  %v1756_v62 = vshrl.u32 %v1419_v51, 16  ;;  %v827_v5 = vshrl.u32 %v8101_v28, 16 }
  0xc1   : > { %v1467_v27 = vsel %vm8018_vm7, %v1462_v46, %v1466_v36  ;;  %v1745_v57 = vrot.slane %v1743_v48, 4  ;;  %v1748_v58 = vrot.slane %v1746_v49, 5  ;;  %v1762_v63 = vshll.u32 %v1420_v52, 16  ;;  %v409_v20 = vld [vmem:[#allocation2 + $0xb4] sm:$0x1]  ;;  %v7350_v48 = vld [vmem:[#allocation2 + $0x9c] sm:$0xff]  }
  0xc2   : > { %6795 = vmatpush3.bf16.msra.mxu1 %v7348_v26  ;;  %v1477_v2 = vsel %vm8018_vm7, %v1472_v56, %v1476_v41  ;;  %v830_v6 = vshll.u32 %v8101_v28, 16  ;;  %v1754_v11 = vrot.slane %v1752_v61, 5  ;;  %v1758_v12 = vrot.slane %v1756_v62, 4  ;;  %v7357_v26 = vld [vmem:[#allocation7 + $0xe0] sm:$0xff]   ;;  %v6663_v52 = vld [vmem:[%s7983_s30 + $0x70] sm:$0xff]   ;;  %v7360_v56 = vld [vmem:[#allocation7 + $0xe8] sm:$0xff]  }
  0xc3   : > { %v1749_v4 = vor.u32 %v1748_v58, %v1745_v57  ;;  %6796 = vmatprep.subr.bf16.mxu1 %v7349_v50  ;;  %v6154_v9 = vcombine.low %v1467_v27, %v1477_v2  ;;  %v1764_v13 = vrot.slane %v1762_v63, 5  ;;  %v829_v17 = vrot.slane %v827_v5, 7  ;;  %v459_v46 = vld [vmem:[#allocation2 + $0xbc] sm:$0x1]  ;;  %v1214_v58 = vld [vmem:[#allocation2 + $0xa8] sm:$0xf] }
  0xc4   : > { %v1131_v18 = vsel %vm8056_vm13, %v824_v53, %v1130_v60  ;;  %vm633_vm5 = vcmp.gt.f32.partialorder %v601_v54, 0.0  ;;  %v1759_v22 = vor.u32 %v1758_v12, %v1754_v11  ;;  %vm634_vm8 = vcmp.gt.f32.partialorder %v602_v55, 0.0 }
  0xc5   : > { %v1750_v16 = vrot.slane %v1749_v4, 4  ;;  %4834 = vmatprep.mubr.bf16.mxu0 %v6154_v9  ;;  %1132 = vst [vmem:[#allocation2 + $0x18] sm:$0xf] %v1131_v18  ;;  %v665_v23 = vmul.f32 0.1, %v601_v54  ;;  %v832_v29 = vor.u32 %v830_v6, %v829_v17  ;;  %v834_v31 = vrot.slane %v829_v17, 4 }
  0xc6   : > { %6797 = vmatpush3.bf16.msra.mxu1 %v7351_v59  ;;  %v666_v24 = vmul.f32 0.1, %v602_v55  ;;  %4835 = vmatmul.mubr.bf16.gmra.mrb[4].mxu0 %v7347_v3  ;;  %v374_v33 = vsel %vm7999_vm4, 0, %v373_v1  ;;  %v1760_v36 = vrot.slane %v1759_v22, 4  ;;  %v424_v39 = vsel %vm8005_vm6, 0, %v423_v8  ;;  %v7362_v9 = vld [vmem:[#allocation7 + $0xa8] sm:$0xff]  }
  0xc7   : > { %v1755_v28 = vsel %vm8018_vm7, %v1750_v16, %v1754_v11  ;;  %6798 = vmatprep.subr.bf16.mxu1 %v7352_v7  ;;  %v697_v37 = vsel %vm633_vm5, %v601_v54, %v665_v23  ;;  %375 = vst [vmem:[#allocation2 + $0x24] sm:$0x1] %v374_v33  ;;  %v833_v41 = vsel %vm8050_vm12, %v825_v0, %v832_v29  ;;  %425 = vst [vmem:[#allocation2 + $0x2c] sm:$0x1] %v424_v39  ;;  %v1218_v59 = vld [vmem:[#allocation2 + $0xb0] sm:$0x1] }
  0xc8   : > { %v698_v38 = vsel %vm634_vm8, %v602_v55, %v666_v24  ;;  %v1135_v42 = vsel %vm7999_vm4, %v834_v31, %v1134_v15  ;;  %v6467_v43 = vpack.c.bf16 %v697_v37, %v697_v37  ;;  %v1765_v47 = vsel %vm8018_vm7, %v1760_v36, %v1764_v13  ;;  %1133 = vst [vmem:[#allocation2 + $0x1c] sm:$0xf] %v833_v41  ;;  %v7363_v11 = vld [vmem:[#allocation7 + $0xf0] sm:$0xff]   ;;  %v7374_v16 = vld [vmem:[#allocation7 + $0x158] sm:$0xff]  }
  0xc9   : > { %v6468_v44 = vpack.c.bf16 %v698_v38, %v698_v38  ;;  %1136 = vst [vmem:[#allocation2 + $0x20] sm:$0x1] %v1135_v42  ;;  %v6517_v49 = vunpack.c.h.bf16 %v8104_v32  ;;  %v540_v50 = vmul.f32 %v6516_v14, %v8014_v34  ;;  %v410_v51 = vsel %vm7999_vm4, 0, %v409_v20  ;;  %6910 = vmatprep.subr.bf16.mxu0 %v7374_v16  ;;  %v7366_v38 = vld [vmem:[#allocation7 + $0xb0] sm:$0xff]  }
  0xca   : > { %6799 = vmatpush3.bf16.msra.mxu1 %v7355_v19  ;;  %v6166_v53 = vcombine.low %v1755_v28, %v1765_v47  ;;  %v1023_v54 = vshrl.u32 %v6467_v43, 16  ;;  %v1026_v55 = vshll.u32 %v6467_v43, 16  ;;  %411 = vst [vmem:[#allocation2 + $0xb4] sm:$0x1] %v410_v51  ;;  %v460_v32 = vsel %vm8005_vm6, 0, %v459_v46 }
  0xcb   : > { %v1031_v27 = vshrl.u32 %v6468_v44, 16  ;;  %6800 = vmatprep.subr.bf16.mxu1 %v7357_v26  ;;  %v1034_v57 = vshll.u32 %v6468_v44, 16  ;;  %v541_v60 = vmul.f32 %v6517_v49, %v8014_v34  ;;  %v579_v61 = vadd.f32 %v8022_v40, %v540_v50  ;;  %461 = vst [vmem:[#allocation2 + $0xbc] sm:$0x1] %v460_v32  ;;  %v7368_v44 = vld [vmem:[#allocation7 + $0xf8] sm:$0xff]  }
  0xcc   : > { %4930 = vmatprep.mubr.bf16.mxu1 %v6166_v53  ;;  %v1385_v14 = vld [vmem:[#allocation2 + $0x18] sm:$0xf]  ;;  %v1025_v62 = vrot.slane %v1023_v54, 7  ;;  %v6564_v0 = vunpack.c.l.bf16 %v6663_v52  ;;  %v6565_v1 = vunpack.c.h.bf16 %v6663_v52  ;;  %v8167_v52 = vld [vmem:[%s7983_s30 + $0x18] sm:$0xff]   ;;  %vm1990_vm15 = vcmask 1042432  }
  0xcd   : > { %v1033_v63 = vrot.slane %v1031_v27, 7  ;;  %4931 = vmatmul.mubr.bf16.gmra.mrb[4].mxu1 %v7350_v48  ;;  %v1479_v2 = vshrl.u32 %v1385_v14, 16  ;;  %v1482_v3 = vshll.u32 %v1385_v14, 16  ;;  %v580_v4 = vadd.f32 %v8022_v40, %v541_v60  ;;  %v7376_v48 = vld [vmem:[#allocation7 + $0x118] sm:$0xff]  }
  0xce   : > { %vm611_vm9 = vcmp.gt.f32.partialorder %v579_v61, 0.0  ;;  %v1028_v5 = vor.u32 %v1026_v55, %v1025_v62  ;;  %v1029_v6 = vrot.slane %v1025_v62, 4  ;;  %6801 = vmatpush3.bf16.msra.mxu1 %v7359_v45  ;;  %v643_v15 = vmul.f32 0.1, %v579_v61  ;;  %v7370_v27 = vld [vmem:[#allocation7 + $0xb8] sm:$0xff]   ;;  %6911 = vmatpush3.bf16.msra.mxu0 %v7376_v48 }
  0xcf   : > { %v1036_v7 = vor.u32 %v1034_v57, %v1033_v63  ;;  %v1038_v8 = vrot.slane %v1033_v63, 4  ;;  %v1481_v12 = vrot.slane %v1479_v2, 4  ;;  %v1484_v13 = vrot.slane %v1482_v3, 5  ;;  %6802 = vmatprep.subr.bf16.mxu1 %v7360_v56  ;;  %v1386_v17 = vld [vmem:[#allocation2 + $0x1c] sm:$0xf] }
  0xd0   : > { %vm612_vm10 = vcmp.gt.f32.partialorder %v580_v4, 0.0  ;;  %v1387_v18 = vld [vmem:[#allocation2 + $0x20] sm:$0x1]  ;;  %v1215_v20 = vsel %vm8056_vm13, %v1028_v5, %v1214_v58  ;;  %v564_v23 = vmul.f32 %v6564_v0, %v8014_v34  ;;  %v1488_v26 = vshll.u32 %v1386_v17, 16  ;;  %v7354_v2 = vld [vmem:[#allocation2 + $0x18] sm:$0xff]  }
  0xd1   : > { %v1037_v19 = vsel %vm8050_vm12, %v1029_v6, %v1036_v7  ;;  %v1219_v22 = vsel %vm7999_vm4, %v1038_v8, %v1218_v59  ;;  %v1485_v24 = vor.u32 %v1484_v13, %v1481_v12  ;;  %v1492_v28 = vshrl.u32 %v1386_v17, 16  ;;  %1216 = vst [vmem:[#allocation2 + $0xa8] sm:$0xf] %v1215_v20  ;;  %v7372_v59 = vld [vmem:[#allocation7 + $0x1c0] sm:$0xff]   ;;  %v1137_v6 = vld [vmem:[#allocation2 + $0x24] sm:$0xf] }
  0xd2   : > { %v1498_v29 = vshll.u32 %v1387_v18, 16  ;;  %1217 = vst [vmem:[#allocation2 + $0xac] sm:$0xf] %v1037_v19  ;;  %1220 = vst [vmem:[#allocation2 + $0xb0] sm:$0x1] %v1219_v22  ;;  %v675_v33 = vsel %vm611_vm9, %v579_v61, %v643_v15  ;;  %6803 = vmatpush3.bf16.msra.mxu1 %v7362_v9  ;;  %v565_v36 = vmul.f32 %v6565_v1, %v8014_v34  ;;  %v1490_v41 = vrot.slane %v1488_v26, 5 }
  0xd3   : > { %v644_v31 = vmul.f32 0.1, %v580_v4  ;;  %v603_v37 = vadd.f32 %v8022_v40, %v564_v23  ;;  %v1486_v39 = vrot.slane %v1485_v24, 4  ;;  %v1494_v42 = vrot.slane %v1492_v28, 4  ;;  %6804 = vmatprep.subr.bf16.mxu1 %v7363_v11  ;;  %v7380_v12 = vld [vmem:[#allocation7 + $0x160] sm:$0xff]  }
  0xd4   : > { %v1500_v43 = vrot.slane %v1498_v29, 5  ;;  %v6445_v46 = vpack.c.bf16 %v675_v33, %v675_v33  ;;  %v604_v47 = vadd.f32 %v8022_v40, %v565_v36  ;;  %v6520_v63 = vunpack.c.l.bf16 %v8167_v52  ;;  %v376_v18 = vld [vmem:[#allocation2 + $0x30] sm:$0x1]  ;;  %v1141_v24 = vld [vmem:[#allocation2 + $0x2c] sm:$0x1]  ;;  %6912 = vmatprep.subr.bf16.mxu0 %v7380_v12  ;;  %v7382_v36 = vld [vmem:[#allocation7 + $0x120] sm:$0xff]  }
  0xd5   : > { %v676_v45 = vsel %vm612_vm10, %v580_v4, %v644_v31  ;;  %vm635_vm11 = vcmp.gt.f32.partialorder %v603_v37, 0.0  ;;  %v1491_v34 = vsel %vm8018_vm7, %v1486_v39, %v1490_v41  ;;  %v1495_v49 = vor.u32 %v1494_v42, %v1490_v41  ;;  %v426_v33 = vld [vmem:[#allocation2 + $0x38] sm:$0x1]  ;;  %6913 = vmatpush3.bf16.msra.mxu0 %v7382_v36  ;;  %v379_v36 = vld [vmem:[#allocation2 + $0x3c] sm:$0x1] }
  0xd6   : > { %v6446_v50 = vpack.c.bf16 %v676_v45, %v676_v45  ;;  %v667_v51 = vmul.f32 0.1, %v603_v37  ;;  %v836_v53 = vshrl.u32 %v6445_v46, 16  ;;  %v839_v54 = vshll.u32 %v6445_v46, 16  ;;  %6805 = vmatpush3.bf16.msra.mxu1 %v7366_v38  ;;  %v1221_v46 = vld [vmem:[#allocation2 + $0xb4] sm:$0xf] }
  0xd7   : > { %vm636_vm14 = vcmp.gt.f32.partialorder %v604_v47, 0.0  ;;  %v668_v55 = vmul.f32 0.1, %v604_v47  ;;  %v1496_v56 = vrot.slane %v1495_v49, 4  ;;  %6806 = vmatprep.subr.bf16.mxu1 %v7368_v44  ;;  %v6521_v0 = vunpack.c.h.bf16 %v8167_v52 }
  0xd8   : > { %v844_v57 = vshrl.u32 %v6446_v50, 16  ;;  %v847_v40 = vshll.u32 %v6446_v50, 16  ;;  %v699_v58 = vsel %vm635_vm11, %v603_v37, %v667_v51  ;;  %v1421_v60 = vld [vmem:[#allocation2 + $0xa8] sm:$0xf]  ;;  %vm1991_vm0 = vcmask 1046532  }
  0xd9   : > { %v1422_v61 = vld [vmem:[#allocation2 + $0xac] sm:$0xf]  ;;  %v1423_v32 = vld [vmem:[#allocation2 + $0xb0] sm:$0x1]  ;;  %v700_v14 = vsel %vm636_vm14, %v604_v47, %v668_v55  ;;  %v8170_v62 = vpack.c.bf16 %v699_v58, %v699_v58  ;;  %v1501_v1 = vsel %vm8018_vm7, %v1496_v56, %v1500_v43  ;;  %v1767_v3 = vshrl.u32 %v1421_v60, 16  ;;  %vm8203_vm1 = vmor %vm1990_vm15, %vm1991_vm0 }
  0xda   : > { %v1770_v4 = vshll.u32 %v1421_v60, 16  ;;  %v1776_v5 = vshll.u32 %v1422_v61, 16  ;;  %v6155_v7 = vcombine.low %v1491_v34, %v1501_v1  ;;  %v1780_v8 = vshrl.u32 %v1422_v61, 16  ;;  %6807 = vmatpush3.bf16.msra.mxu1 %v7370_v27  ;;  %v1894_v27 = vld [vmem:[#allocation2] sm:$0xe] }
  0xdb   : > { %v1786_v9 = vshll.u32 %v1423_v32, 16  ;;  %v838_v11 = vrot.slane %v836_v53, 7  ;;  %v1769_v13 = vrot.slane %v1767_v3, 4  ;;  %v846_v17 = vrot.slane %v844_v57, 7  ;;  %7016 = vmatprep.subr.bf16.mxu1 %v7372_v59  ;;  %v1895_v56 = vld [vmem:[#allocation2 + $0x4] sm:$0xf] }
  0xdc   : > { %v1772_v15 = vrot.slane %v1770_v4, 5  ;;  %v1778_v16 = vrot.slane %v1776_v5, 5  ;;  %4842 = vmatprep.mubr.bf16.mxu0 %v6155_v7  ;;  %v1782_v19 = vrot.slane %v1780_v8, 4  ;;  %v6470_v31 = vpack.c.bf16 %v700_v14, %v700_v14  ;;  %v1225_v60 = vld [vmem:[#allocation2 + $0xbc] sm:$0x1] }
  0xdd   : > { %v1788_v20 = vrot.slane %v1786_v9, 5  ;;  %v841_v22 = vor.u32 %v839_v54, %v838_v11  ;;  %v842_v23 = vrot.slane %v838_v11, 4  ;;  %4843 = vmatmul.mubr.bf16.gmra.mrb[8].mxu0 %v7354_v2  ;;  %v849_v28 = vor.u32 %v847_v40, %v846_v17  ;;  %v8190_v54 = vld [vmem:[#allocation9] ss:$0 sm:$0xff]  ;;  %v7358_v40 = vld [vmem:[#allocation2 + $0xa8] sm:$0xff]  }
  0xde   : > { %v1773_v26 = vor.u32 %v1772_v15, %v1769_v13  ;;  %v851_v29 = vrot.slane %v846_v17, 4  ;;  %v1783_v37 = vor.u32 %v1782_v19, %v1778_v16  ;;  %v1040_v39 = vshrl.u32 %v8170_v62, 16  ;;  %v8198_v1 = vld [vmem:[#allocation10] ss:$0 sm:$0xff]  ;;  %v1896_v11 = vld [vmem:[#allocation2 + $0x8] sm:$0x1] }
  0xdf   : > { %v1138_v38 = vsel %vm8056_vm13, %v841_v22, %v1137_v6  ;;  %v1043_v41 = vshll.u32 %v8170_v62, 16  ;;  %v850_v43 = vsel %vm8050_vm12, %v842_v23, %v849_v28  ;;  %v1048_v45 = vshrl.u32 %v6470_v31, 16  ;;  %v6653_v3 = vld [vmem:[%s7983_s30 + $0x20] sm:$0xff]  }
  0xe0   : > { %v1774_v42 = vrot.slane %v1773_v26, 4  ;;  %1139 = vst [vmem:[#allocation2 + $0x24] sm:$0xf] %v1138_v38  ;;  %v1142_v44 = vsel %vm7999_vm4, %v851_v29, %v1141_v24  ;;  %v1784_v47 = vrot.slane %v1783_v37, 4  ;;  %1140 = vst [vmem:[#allocation2 + $0x28] sm:$0xf] %v850_v43  ;;  %v542_v55 = vmul.f32 %v8190_v54, %v6520_v63 }
  0xe1   : > { %1143 = vst [vmem:[#allocation2 + $0x2c] sm:$0x1] %v1142_v44  ;;  %v1042_v48 = vrot.slane %v1040_v39, 7  ;;  %v1051_v34 = vshll.u32 %v6470_v31, 16  ;;  %v377_v49 = vsel %vm7999_vm4, 0, %v376_v18  ;;  %v1050_v51 = vrot.slane %v1048_v45, 7 }
  0xe2   : > { %v1779_v50 = vsel %vm8018_vm7, %v1774_v42, %v1778_v16  ;;  %378 = vst [vmem:[#allocation2 + $0x30] sm:$0x1] %v377_v49  ;;  %v427_v53 = vsel %vm8005_vm6, 0, %v426_v33  ;;  %v1789_v57 = vsel %vm8018_vm7, %v1784_v47, %v1788_v20  ;;  %v543_v61 = vmul.f32 %v8190_v54, %v6521_v0 }
  0xe3   : > { %v1045_v58 = vor.u32 %v1043_v41, %v1042_v48  ;;  %v1046_v59 = vrot.slane %v1042_v48, 4  ;;  %428 = vst [vmem:[#allocation2 + $0x38] sm:$0x1] %v427_v53  ;;  %v6167_v32 = vcombine.low %v1779_v50, %v1789_v57  ;;  %v1053_v14 = vor.u32 %v1051_v34, %v1050_v51 }
  0xe4   : > { %v1055_v62 = vrot.slane %v1050_v51, 4  ;;  %v581_v63 = vadd.f32 %v8198_v1, %v542_v55  ;;  %v582_v52 = vadd.f32 %v8198_v1, %v543_v61  ;;  %v6169_v0 = vrot.slane %v1894_v27, 9 }
  0xe5   : > { %v1222_v4 = vsel %vm8056_vm13, %v1045_v58, %v1221_v46  ;;  %v1995_v5 = vrot.slane %v1895_v56, 5  ;;  %4938 = vmatprep.mubr.bf16.mxu1 %v6167_v32  ;;  %v1054_v6 = vsel %vm8050_vm12, %v1046_v59, %v1053_v14  ;;  %v6524_v15 = vunpack.c.l.bf16 %v6653_v3 }
  0xe6   : > { %1223 = vst [vmem:[#allocation2 + $0xb4] sm:$0xf] %v1222_v4  ;;  %v1226_v7 = vsel %vm7999_vm4, %v1055_v62, %v1225_v60  ;;  %vm613_vm2 = vcmp.gt.f32.partialorder %v581_v63, 0.0  ;;  %v645_v8 = vmul.f32 0.1, %v581_v63  ;;  %4939 = vmatmul.mubr.bf16.gmra.mrb[8].mxu1 %v7358_v40  ;;  %vm614_vm3 = vcmp.gt.f32.partialorder %v582_v52, 0.0 }
  0xe7   : > { %v1388_v9 = vld [vmem:[#allocation2 + $0x24] sm:$0xf]  ;;  %1224 = vst [vmem:[#allocation2 + $0xb8] sm:$0xf] %v1054_v6  ;;  %1227 = vst [vmem:[#allocation2 + $0xbc] sm:$0x1] %v1226_v7  ;;  %v8217_v12 = vsel %vm8203_vm1, %v6169_v0, %v1995_v5  ;;  %v6525_v22 = vunpack.c.h.bf16 %v6653_v3  ;;  %v544_v37 = vmul.f32 %v8190_v54, %v6524_v15 }
  0xe8   : > { %v1997_v13 = vrot.slane %v1995_v5, 4  ;;  %v1389_v16 = vld [vmem:[#allocation2 + $0x28] sm:$0xf]  ;;  %v1390_v17 = vld [vmem:[#allocation2 + $0x2c] sm:$0x1]  ;;  %v1503_v18 = vshrl.u32 %v1388_v9, 16  ;;  %v677_v20 = vsel %vm613_vm2, %v581_v63, %v645_v8 }
  0xe9   : > { %v1506_v19 = vshll.u32 %v1388_v9, 16  ;;  %v1512_v23 = vshll.u32 %v1389_v16, 16  ;;  %v1516_v24 = vshrl.u32 %v1389_v16, 16  ;;  %v1522_v26 = vshll.u32 %v1390_v17, 16  ;;  %v1144_v63 = vld [vmem:[#allocation2 + $0x30] sm:$0xf] }
  0xea   : > { %v6447_v28 = vpack.c.bf16 %v677_v20, %v677_v20  ;;  %v1505_v29 = vrot.slane %v1503_v18, 4  ;;  %v646_v33 = vmul.f32 0.1, %v582_v52  ;;  %v1998_v46 = vrot.slane %v1896_v11, 5  ;;  %v429_v3 = vld [vmem:[#allocation2 + $0x44] sm:$0x1] }
  0xeb   : > { %v1508_v31 = vrot.slane %v1506_v19, 5  ;;  %v1514_v38 = vrot.slane %v1512_v23, 5  ;;  %v1518_v39 = vrot.slane %v1516_v24, 4  ;;  %v1524_v41 = vrot.slane %v1522_v26, 5  ;;  %v7386_v7 = vld [vmem:[#allocation7 + $0x168] sm:$0xff]  }
  0xec   : > { %v853_v42 = vshrl.u32 %v6447_v28, 16  ;;  %v678_v44 = vsel %vm614_vm3, %v582_v52, %v646_v33  ;;  %v856_v45 = vshll.u32 %v6447_v28, 16  ;;  %v380_v50 = vsel %vm7999_vm4, 0, %v379_v36  ;;  %v7361_v52 = vld [vmem:[#allocation2 + $0x24] sm:$0xff]   ;;  %v1897_v15 = vld [vmem:[#allocation2 + $0xc] sm:$0xe]  ;;  %6914 = vmatprep.subr.bf16.mxu0 %v7386_v7 }
  0xed   : > { %v1509_v43 = vor.u32 %v1508_v31, %v1505_v29  ;;  %v1519_v47 = vor.u32 %v1518_v39, %v1514_v38  ;;  %v1424_v48 = vld [vmem:[#allocation2 + $0xb4] sm:$0xf]  ;;  %v6448_v34 = vpack.c.bf16 %v678_v44, %v678_v44  ;;  %v8227_v56 = vsel %vm8203_vm1, %v1997_v13, %v1998_v46  ;;  %381 = vst [vmem:[#allocation2 + $0x3c] sm:$0x1] %v380_v50  ;;  %v7388_v16 = vld [vmem:[#allocation7 + $0x128] sm:$0xff]  }
  0xee   : > { %v8221_v49 = vrot.slane %v853_v42, 7  ;;  %v1425_v53 = vld [vmem:[#allocation2 + $0xb8] sm:$0xf]  ;;  %v1426_v55 = vld [vmem:[#allocation2 + $0xbc] sm:$0x1]  ;;  %v1791_v27 = vshrl.u32 %v1424_v48, 16  ;;  %v545_v57 = vmul.f32 %v8190_v54, %v6525_v22  ;;  %v6185_v23 = vcombine.low %v8217_v12, %v8227_v56  ;;  %6915 = vmatpush3.bf16.msra.mxu0 %v7388_v16 }
  0xef   : > { %v1510_v51 = vrot.slane %v1509_v43, 4  ;;  %v1520_v40 = vrot.slane %v1519_v47, 4  ;;  %v1794_v58 = vshll.u32 %v1424_v48, 16  ;;  %v1800_v59 = vshll.u32 %v1425_v53, 16  ;;  %v1898_v28 = vld [vmem:[#allocation2 + $0x10] sm:$0xf] }
  0xf0   : > { %v1804_v60 = vshrl.u32 %v1425_v53, 16  ;;  %v1793_v32 = vrot.slane %v1791_v27, 4  ;;  %v1810_v14 = vshll.u32 %v1426_v55, 16  ;;  %v858_v62 = vor.u32 %v856_v45, %v8221_v49  ;;  %v8243_v29 = vld [vmem:[#allocation2 + $0x14] sm:$0x1]  ;;  %v7371_v53 = vld [vmem:[#allocation2 + $0xc] sm:$0xff]  }
  0xf1   : > { %v1515_v61 = vsel %vm8018_vm7, %v1510_v51, %v1514_v38  ;;  %v1525_v4 = vsel %vm8018_vm7, %v1520_v40, %v1524_v41  ;;  %v1796_v0 = vrot.slane %v1794_v58, 5  ;;  %v1802_v5 = vrot.slane %v1800_v59, 5  ;;  %v1148_v36 = vld [vmem:[#allocation2 + $0x38] sm:$0x1]  ;;  %v6654_v41 = vld [vmem:[%s7983_s30 + $0x28] sm:$0xff]  }
  0xf2   : > { %v1806_v6 = vrot.slane %v1804_v60, 4  ;;  %v6156_v8 = vcombine.low %v1515_v61, %v1525_v4  ;;  %v1812_v9 = vrot.slane %v1810_v14, 5  ;;  %v859_v11 = vrot.slane %v8221_v49, 4  ;;  %v382_v45 = vld [vmem:[#allocation2 + $0x48] sm:$0x1]  ;;  %v7365_v47 = vld [vmem:[#allocation2 + $0xb4] sm:$0xff]  }
  0xf3   : > { %v861_v13 = vshrl.u32 %v6448_v34, 16  ;;  %v1797_v17 = vor.u32 %v1796_v0, %v1793_v32  ;;  %v864_v19 = vshll.u32 %v6448_v34, 16  ;;  %v1145_v20 = vsel %vm8056_vm13, %v858_v62, %v1144_v63  ;;  %v432_v34 = vld [vmem:[#allocation2 + $0x50] sm:$0x1]  ;;  %v8256_v59 = vld [vmem:[#allocation2 + $0x18] sm:$0xe] }
  0xf4   : > { %v1807_v18 = vor.u32 %v1806_v6, %v1802_v5  ;;  %4850 = vmatprep.mubr.bf16.mxu0 %v6156_v8  ;;  %1146 = vst [vmem:[#allocation2 + $0x30] sm:$0xf] %v1145_v20  ;;  %v430_v24 = vsel %vm8005_vm6, 0, %v429_v3  ;;  %v583_v26 = vadd.f32 %v8198_v1, %v544_v37  ;;  %v584_v38 = vadd.f32 %v8198_v1, %v545_v57 }
  0xf5   : > { %v863_v22 = vrot.slane %v861_v13, 7  ;;  %4851 = vmatmul.mubr.bf16.gmra.mrb[12].mxu0 %v7361_v52  ;;  %v1798_v31 = vrot.slane %v1797_v17, 4  ;;  %431 = vst [vmem:[#allocation2 + $0x44] sm:$0x1] %v430_v24  ;;  %v6170_v39 = vrot.slane %v1897_v15, 9  ;;  %v2002_v40 = vrot.slane %v1898_v28, 5 }
  0xf6   : > { %v1808_v33 = vrot.slane %v1807_v18, 4  ;;  %vm615_vm5 = vcmp.gt.f32.partialorder %v583_v26, 0.0  ;;  %v647_v44 = vmul.f32 0.1, %v583_v26  ;;  %vm616_vm8 = vcmp.gt.f32.partialorder %v584_v38, 0.0  ;;  %v7373_v18 = vld [vmem:[#allocation7 + $0x180] sm:$0xff]  }
  0xf7   : > { %v866_v42 = vor.u32 %v864_v19, %v863_v22  ;;  %v868_v43 = vrot.slane %v863_v22, 4  ;;  %v1803_v37 = vsel %vm8018_vm7, %v1798_v31, %v1802_v5  ;;  %v648_v48 = vmul.f32 0.1, %v584_v38  ;;  %v7377_v22 = vld [vmem:[#allocation2 + $0x18] sm:$0xff]  }
  0xf8   : > { %v1813_v46 = vsel %vm8018_vm7, %v1808_v33, %v1812_v9  ;;  %v679_v55 = vsel %vm615_vm5, %v583_v26, %v647_v44  ;;  %v2005_v58 = vrot.slane %v8243_v29, 5  ;;  %v383_v61 = vsel %vm7999_vm4, 0, %v382_v45  ;;  %v1151_v9 = vld [vmem:[#allocation2 + $0x3c] sm:$0xf]  ;;  %v7381_v33 = vld [vmem:[#allocation7 + $0x1c8] sm:$0xff]  }
  0xf9   : > { %v6168_v49 = vcombine.low %v1803_v37, %v1813_v46  ;;  %v867_v50 = vsel %vm8050_vm12, %v859_v11, %v866_v42  ;;  %v1149_v51 = vsel %vm7999_vm4, %v868_v43, %v1148_v36  ;;  %v680_v27 = vsel %vm616_vm8, %v584_v38, %v648_v48  ;;  %384 = vst [vmem:[#allocation2 + $0x48] sm:$0x1] %v383_v61  ;;  %v1901_v36 = vld [vmem:[#allocation2 + $0x1c] sm:$0xf]  ;;  %v7394_v38 = vld [vmem:[#allocation7 + $0x170] sm:$0xff]  }
  0xfa   : > { %1147 = vst [vmem:[#allocation2 + $0x34] sm:$0xf] %v867_v50  ;;  %1150 = vst [vmem:[#allocation2 + $0x38] sm:$0x1] %v1149_v51  ;;  %v6449_v57 = vpack.c.bf16 %v679_v55, %v679_v55  ;;  %v6450_v60 = vpack.c.bf16 %v680_v27, %v680_v27  ;;  %v433_v32 = vsel %vm8005_vm6, 0, %v432_v34  ;;  %v6528_v14 = vunpack.c.l.bf16 %v6654_v41  ;;  %6916 = vmatprep.subr.bf16.mxu0 %v7394_v38 }
  0xfb   : > { %4946 = vmatprep.mubr.bf16.mxu1 %v6168_v49  ;;  %v1391_v62 = vld [vmem:[#allocation2 + $0x30] sm:$0xf]  ;;  %v8264_v4 = vsel %vm8203_vm1, %v6170_v39, %v2002_v40  ;;  %434 = vst [vmem:[#allocation2 + $0x50] sm:$0x1] %v433_v32  ;;  %v6529_v52 = vunpack.c.h.bf16 %v6654_v41  ;;  %v2004_v11 = vrot.slane %v2002_v40, 4  ;;  %v6171_v24 = vrot.slane %v8256_v59, 9 }
  0xfc   : > { %4947 = vmatmul.mubr.bf16.gmra.mrb[12].mxu1 %v7365_v47  ;;  %v870_v63 = vshrl.u32 %v6449_v57, 16  ;;  %v873_v3 = vshll.u32 %v6449_v57, 16  ;;  %v1527_v0 = vshrl.u32 %v1391_v62, 16  ;;  %v1530_v5 = vshll.u32 %v1391_v62, 16  ;;  %v1155_v20 = vld [vmem:[#allocation2 + $0x44] sm:$0x1] }
  0xfd   : > { %4987 = vmatprep.mubr.bf16.mxu1 %v7371_v53  ;;  %v878_v6 = vshrl.u32 %v6450_v60, 16  ;;  %v881_v7 = vshll.u32 %v6450_v60, 16  ;;  %v546_v13 = vmul.f32 %v8190_v54, %v6528_v14  ;;  %v547_v15 = vmul.f32 %v8190_v54, %v6529_v52  ;;  %v1902_v34 = vld [vmem:[#allocation2 + $0x20] sm:$0x1]  ;;  %v385_v55 = vld [vmem:[#allocation2 + $0x54] sm:$0x1] }
  0xfe   : > { %v872_v8 = vrot.slane %v870_v63, 7  ;;  %v1529_v16 = vrot.slane %v1527_v0, 4  ;;  %v1532_v17 = vrot.slane %v1530_v5, 5  ;;  %v8271_v29 = vsel %vm8203_vm1, %v2004_v11, %v2005_v58  ;;  %v7383_v53 = vld [vmem:[#allocation7 + $0x188] sm:$0xff]   ;;  %v435_v27 = vld [vmem:[#allocation2 + $0x5c] sm:$0x1] }
  0xff   : > { %v880_v19 = vrot.slane %v878_v6, 7  ;;  %v585_v31 = vadd.f32 %v8198_v1, %v546_v13  ;;  %v6186_v44 = vcombine.low %v8264_v4, %v8271_v29  ;;  %v586_v45 = vadd.f32 %v8198_v1, %v547_v15  ;;  %v7395_v60 = vld [vmem:[#allocation7 + $0x130] sm:$0xff]  }
 0x100   : > { %v875_v26 = vor.u32 %v873_v3, %v872_v8  ;;  %v876_v28 = vrot.slane %v872_v8, 4  ;;  %v1533_v42 = vor.u32 %v1532_v17, %v1529_v16  ;;  %v2009_v14 = vrot.slane %v1901_v36, 5  ;;  %v8291_v3 = vld [vmem:[#allocation2 + $0x24] sm:$0xe]  ;;  %v7390_v52 = vld [vmem:[#allocation7 + $0x1d0] sm:$0xff]   ;;  %6917 = vmatpush3.bf16.msra.mxu0 %v7395_v60  ;;  %v7399_v60 = vld [vmem:[#allocation7 + $0x198] sm:$0xff]  }
 0x101   : > { %v1392_v39 = vld [vmem:[#allocation2 + $0x34] sm:$0xf]  ;;  %v1393_v41 = vld [vmem:[#allocation2 + $0x38] sm:$0x1]  ;;  %v883_v43 = vor.u32 %v881_v7, %v880_v19  ;;  %v885_v48 = vrot.slane %v880_v19, 4  ;;  %vm617_vm9 = vcmp.gt.f32.partialorder %v585_v31, 0.0 }
 0x102   : > { %v1536_v37 = vshll.u32 %v1392_v39, 16  ;;  %v1540_v46 = vshrl.u32 %v1392_v39, 16  ;;  %v1546_v47 = vshll.u32 %v1393_v41, 16  ;;  %v1534_v49 = vrot.slane %v1533_v42, 4  ;;  %v7379_v13 = vld [vmem:[#allocation2 + $0x24] sm:$0xff]   ;;  %v7369_v16 = vld [vmem:[#allocation2 + $0x30] sm:$0xff]  }
 0x103   : > { %v884_v50 = vsel %vm8050_vm12, %v876_v28, %v883_v43  ;;  %v1152_v51 = vsel %vm8056_vm13, %v875_v26, %v1151_v9  ;;  %v1156_v59 = vsel %vm7999_vm4, %v885_v48, %v1155_v20  ;;  %vm618_vm10 = vcmp.gt.f32.partialorder %v586_v45, 0.0 }
 0x104   : > { %v1538_v57 = vrot.slane %v1536_v37, 5  ;;  %v1542_v40 = vrot.slane %v1540_v46, 4  ;;  %v1548_v58 = vrot.slane %v1546_v47, 5  ;;  %4988 = vmatmul.mubr.bf16.vlgmr.msra.gmra.mrb[16].mxu1 %v6185_v23  ;;  %1153 = vst [vmem:[#allocation2 + $0x3c] sm:$0xf] %v1152_v51  ;;  %v2012_v12 = vrot.slane %v1902_v34, 5 }
 0x105   : > { %1154 = vst [vmem:[#allocation2 + $0x40] sm:$0xf] %v884_v50  ;;  %7017 = vmatpush3.bf16.msra.mxu1 %v7373_v18  ;;  %1157 = vst [vmem:[#allocation2 + $0x44] sm:$0x1] %v1156_v59  ;;  %4995 = vmatprep.mubr.bf16.mxu1 %v7377_v22  ;;  %v649_v61 = vmul.f32 0.1, %v585_v31  ;;  %v8296_v6 = vsel %vm8203_vm1, %v6171_v24, %v2009_v14 }
 0x106   : > { %v650_v32 = vmul.f32 0.1, %v586_v45  ;;  %v1539_v62 = vsel %vm8018_vm7, %v1534_v49, %v1538_v57  ;;  %v1543_v63 = vor.u32 %v1542_v40, %v1538_v57  ;;  %7018 = vmatprep.subr.bf16.mxu1 %v7381_v33  ;;  %v386_v56 = vsel %vm7999_vm4, 0, %v385_v55  ;;  %v6655_v23 = vld [vmem:[%s7983_s30 + $0x30] sm:$0xff]   ;;  %v7398_v33 = vld [vmem:[#allocation7 + $0x1d8] sm:$0xff]  }
 0x107   : > { %v681_v0 = vsel %vm617_vm9, %v585_v31, %v649_v61  ;;  %v2011_v7 = vrot.slane %v2009_v14, 4  ;;  %387 = vst [vmem:[#allocation2 + $0x54] sm:$0x1] %v386_v56  ;;  %v436_v15 = vsel %vm8005_vm6, 0, %v435_v27  ;;  %v6532_v18 = vunpack.c.l.bf16 %v6655_v23  ;;  %v7391_v22 = vld [vmem:[#allocation7 + $0x190] sm:$0xff]  }
 0x108   : > { %v682_v5 = vsel %vm618_vm10, %v586_v45, %v650_v32  ;;  %v1544_v8 = vrot.slane %v1543_v63, 4  ;;  %v6451_v9 = vpack.c.bf16 %v681_v0, %v681_v0  ;;  %437 = vst [vmem:[#allocation2 + $0x5c] sm:$0x1] %v436_v15  ;;  %v6533_v19 = vunpack.c.h.bf16 %v6655_v23  ;;  %v1158_v34 = vld [vmem:[#allocation2 + $0x48] sm:$0xf]  ;;  %v7385_v0 = vld [vmem:[#allocation2 + $0x30] sm:$0xff]  }
 0x109   : > { %v6452_v11 = vpack.c.bf16 %v682_v5, %v682_v5  ;;  %v8302_v17 = vsel %vm8203_vm1, %v2011_v7, %v2012_v12  ;;  %7019 = vmatpush3.bf16.msra.mxu1 %v7383_v53  ;;  %v6172_v20 = vrot.slane %v8291_v3, 9  ;;  %v548_v42 = vmul.f32 %v8190_v54, %v6532_v18  ;;  %v1162_v53 = vld [vmem:[#allocation2 + $0x50] sm:$0x1]  ;;  %v1904_v59 = vld [vmem:[#allocation2 + $0x28] sm:$0xf] }
 0x10a   : > { %v1549_v24 = vsel %vm8018_vm7, %v1544_v8, %v1548_v58  ;;  %v887_v26 = vshrl.u32 %v6451_v9, 16  ;;  %v890_v28 = vshll.u32 %v6451_v9, 16  ;;  %7020 = vmatprep.subr.bf16.mxu1 %v7390_v52  ;;  %v6187_v41 = vcombine.low %v8296_v6, %v8302_v17  ;;  %v1905_v12 = vld [vmem:[#allocation2 + $0x2c] sm:$0x1]  ;;  %v388_v5 = vld [vmem:[#allocation2 + $0x60] sm:$0x1] }
 0x10b   : > { %v895_v31 = vshrl.u32 %v6452_v11, 16  ;;  %v6157_v36 = vcombine.low %v1539_v62, %v1549_v24  ;;  %v1394_v38 = vld [vmem:[#allocation2 + $0x3c] sm:$0xf]  ;;  %v549_v43 = vmul.f32 %v8190_v54, %v6533_v19  ;;  %v587_v55 = vadd.f32 %v8198_v1, %v548_v42  ;;  %v7400_v6 = vld [vmem:[#allocation7 + $0x178] sm:$0xff]  }
 0x10c   : > { %v1395_v39 = vld [vmem:[#allocation2 + $0x40] sm:$0xf]  ;;  %v1396_v45 = vld [vmem:[#allocation2 + $0x44] sm:$0x1]  ;;  %v1551_v37 = vshrl.u32 %v1394_v38, 16  ;;  %v1554_v46 = vshll.u32 %v1394_v38, 16  ;;  %4996 = vmatmul.mubr.bf16.gmra.mrb[20].mxu1 %v6186_v44  ;;  %6918 = vmatprep.subr.bf16.mxu0 %v7400_v6 }
 0x10d   : > { %v1560_v47 = vshll.u32 %v1395_v39, 16  ;;  %v1564_v48 = vshrl.u32 %v1395_v39, 16  ;;  %4858 = vmatprep.mubr.bf16.mxu0 %v6157_v36  ;;  %v1570_v49 = vshll.u32 %v1396_v45, 16  ;;  %v889_v50 = vrot.slane %v887_v26, 7  ;;  %5003 = vmatprep.mubr.bf16.mxu1 %v7379_v13  ;;  %v7402_v13 = vld [vmem:[#allocation7 + $0x138] sm:$0xff]   ;;  %v7375_v15 = vld [vmem:[#allocation2 + $0x3c] sm:$0xff]  }
 0x10e   : > { %v897_v51 = vrot.slane %v895_v31, 7  ;;  %4859 = vmatmul.mubr.bf16.gmra.mrb[16].mxu0 %v7369_v16  ;;  %v1553_v27 = vrot.slane %v1551_v37, 4  ;;  %v1556_v57 = vrot.slane %v1554_v46, 5  ;;  %7021 = vmatpush3.bf16.msra.mxu1 %v7391_v22  ;;  %v898_v44 = vshll.u32 %v6452_v11, 16  ;;  %v438_v11 = vld [vmem:[#allocation2 + $0x68] sm:$0x1] }
 0x10f   : > { %v1562_v40 = vrot.slane %v1560_v47, 5  ;;  %v1566_v58 = vrot.slane %v1564_v48, 4  ;;  %v1572_v61 = vrot.slane %v1570_v49, 5  ;;  %v892_v4 = vor.u32 %v890_v28, %v889_v50  ;;  %7022 = vmatprep.subr.bf16.mxu1 %v7398_v33  ;;  %v6656_v22 = vld [vmem:[%s7983_s30 + $0x38] sm:$0xff]   ;;  %v7405_v24 = vld [vmem:[#allocation7 + $0x1e0] sm:$0xff]   ;;  %6919 = vmatpush3.bf16.msra.mxu0 %v7402_v13  ;;  %v7410_v49 = vld [vmem:[#allocation7 + $0x1e8] sm:$0xff]  }
 0x110   : > { %v893_v29 = vrot.slane %v889_v50, 4  ;;  %v1557_v32 = vor.u32 %v1556_v57, %v1553_v27  ;;  %v902_v62 = vrot.slane %v897_v51, 4  ;;  %v588_v63 = vadd.f32 %v8198_v1, %v549_v43  ;;  %v7406_v36 = vld [vmem:[#allocation7 + $0x200] sm:$0xff]   ;;  %v1906_v45 = vld [vmem:[#allocation2 + $0x30] sm:$0xe] }
 0x111   : > { %v1567_v14 = vor.u32 %v1566_v58, %v1562_v40  ;;  %v900_v56 = vor.u32 %v898_v44, %v897_v51  ;;  %v1159_v23 = vsel %vm8056_vm13, %v892_v4, %v1158_v34  ;;  %vm619_vm11 = vcmp.gt.f32.partialorder %v587_v55, 0.0  ;;  %v8333_v37 = vld [vmem:[#allocation2 + $0x34] sm:$0xf]  ;;  %v7407_v46 = vld [vmem:[#allocation7 + $0x1a0] sm:$0xff]   ;;  %7152 = vmatprep.subr.bf16.mxu0 %v7406_v36  ;;  %v7415_v36 = vld [vmem:[#allocation7 + $0x1f0] sm:$0xff]  }
 0x112   : > { %v651_v52 = vmul.f32 0.1, %v587_v55  ;;  %v1558_v7 = vrot.slane %v1557_v32, 4  ;;  %1160 = vst [vmem:[#allocation2 + $0x48] sm:$0xf] %v1159_v23  ;;  %v1163_v9 = vsel %vm7999_vm4, %v902_v62, %v1162_v53  ;;  %vm620_vm14 = vcmp.gt.f32.partialorder %v588_v63, 0.0  ;;  %7023 = vmatpush3.bf16.msra.mxu1 %v7399_v60 }
 0x113   : > { %v1568_v8 = vrot.slane %v1567_v14, 4  ;;  %v901_v16 = vsel %vm8050_vm12, %v893_v29, %v900_v56  ;;  %1164 = vst [vmem:[#allocation2 + $0x50] sm:$0x1] %v1163_v9  ;;  %v652_v17 = vmul.f32 0.1, %v588_v63  ;;  %v2016_v19 = vrot.slane %v1904_v59, 5  ;;  %7024 = vmatprep.subr.bf16.mxu1 %v7405_v24 }
 0x114   : > { %v683_v18 = vsel %vm619_vm11, %v587_v55, %v651_v52  ;;  %v1563_v26 = vsel %vm8018_vm7, %v1558_v7, %v1562_v40  ;;  %1161 = vst [vmem:[#allocation2 + $0x4c] sm:$0xf] %v901_v16  ;;  %5004 = vmatmul.mubr.bf16.gmra.mrb[24].mxu1 %v6187_v41  ;;  %v2019_v33 = vrot.slane %v1905_v12, 5  ;;  %v389_v34 = vsel %vm7999_vm4, 0, %v388_v5  ;;  %v7389_v53 = vld [vmem:[#allocation2 + $0x3c] sm:$0xff]  }
 0x115   : > { %v1573_v28 = vsel %vm8018_vm7, %v1568_v8, %v1572_v61  ;;  %v6453_v31 = vpack.c.bf16 %v683_v18, %v683_v18  ;;  %v684_v39 = vsel %vm620_vm14, %v588_v63, %v652_v17  ;;  %5011 = vmatprep.mubr.bf16.mxu1 %v7385_v0  ;;  %v2017_v42 = vsel %vm8203_vm1, %v6172_v20, %v2016_v19  ;;  %v1165_v40 = vld [vmem:[#allocation2 + $0x54] sm:$0xf]  ;;  %v7412_v59 = vld [vmem:[#allocation7 + $0x1a8] sm:$0xff]   ;;  %v1908_v5 = vld [vmem:[#allocation2 + $0x38] sm:$0x1] }
 0x116   : > { %v6158_v38 = vcombine.low %v1563_v26, %v1573_v28  ;;  %v2018_v43 = vrot.slane %v2016_v19, 4  ;;  %v6454_v41 = vpack.c.bf16 %v684_v39, %v684_v39  ;;  %390 = vst [vmem:[#allocation2 + $0x60] sm:$0x1] %v389_v34  ;;  %v439_v20 = vsel %vm8005_vm6, 0, %v438_v11  ;;  %7025 = vmatpush3.bf16.msra.mxu1 %v7407_v46  ;;  %v391_v24 = vld [vmem:[#allocation2 + $0x6c] sm:$0x1] }
 0x117   : > { %v904_v47 = vshrl.u32 %v6453_v31, 16  ;;  %v907_v48 = vshll.u32 %v6453_v31, 16  ;;  %v6536_v50 = vunpack.c.l.bf16 %v6656_v22  ;;  %v6537_v51 = vunpack.c.h.bf16 %v6656_v22  ;;  %440 = vst [vmem:[#allocation2 + $0x68] sm:$0x1] %v439_v20  ;;  %7026 = vmatprep.subr.bf16.mxu1 %v7410_v49  ;;  %v1169_v22 = vld [vmem:[#allocation2 + $0x5c] sm:$0x1] }
 0x118   : > { %4866 = vmatprep.mubr.bf16.mxu0 %v6158_v38  ;;  %v2020_v3 = vsel %vm8203_vm1, %v2018_v43, %v2019_v33  ;;  %v912_v27 = vshrl.u32 %v6454_v41, 16  ;;  %v915_v57 = vshll.u32 %v6454_v41, 16  ;;  %v6173_v29 = vrot.slane %v1906_v45, 9  ;;  %v441_v45 = vld [vmem:[#allocation2 + $0x74] sm:$0x1] }
 0x119   : > { %4867 = vmatmul.mubr.bf16.gmra.mrb[20].mxu0 %v7375_v15  ;;  %v906_v55 = vrot.slane %v904_v47, 7  ;;  %v6188_v58 = vcombine.low %v2017_v42, %v2020_v3  ;;  %v1397_v60 = vld [vmem:[#allocation2 + $0x48] sm:$0xf]  ;;  %v550_v61 = vmul.f32 %v8190_v54, %v6536_v50  ;;  %v551_v4 = vmul.f32 %v8190_v54, %v6537_v51  ;;  %v1909_v51 = vld [vmem:[#allocation2 + $0x3c] sm:$0xe] }
 0x11a   : > { %v2023_v44 = vrot.slane %v8333_v37, 5  ;;  %v1399_v32 = vld [vmem:[#allocation2 + $0x50] sm:$0x1]  ;;  %v1575_v14 = vshrl.u32 %v1397_v60, 16  ;;  %v1578_v62 = vshll.u32 %v1397_v60, 16  ;;  %7027 = vmatpush3.bf16.msra.mxu1 %v7412_v59  ;;  %v914_v15 = vrot.slane %v912_v27, 7 }
 0x11b   : > { %v909_v63 = vor.u32 %v907_v48, %v906_v55  ;;  %v910_v12 = vrot.slane %v906_v55, 4  ;;  %v1398_v56 = vld [vmem:[#allocation2 + $0x4c] sm:$0xf]  ;;  %v1594_v23 = vshll.u32 %v1399_v32, 16  ;;  %v589_v52 = vadd.f32 %v8198_v1, %v550_v61  ;;  %v6657_v37 = vld [vmem:[%s7983_s30 + $0x40] sm:$0xff]   ;;  %7028 = vmatprep.subr.bf16.mxu1 %v7415_v36 }
 0x11c   : > { %v590_v0 = vadd.f32 %v8198_v1, %v551_v4  ;;  %v8348_v6 = vsel %vm8203_vm1, %v6173_v29, %v2023_v44  ;;  %v1577_v7 = vrot.slane %v1575_v14, 4  ;;  %v1580_v8 = vrot.slane %v1578_v62, 5  ;;  %5012 = vmatmul.mubr.bf16.gmra.mrb[28].mxu1 %v6188_v58  ;;  %v7378_v3 = vld [vmem:[#allocation2 + $0x48] sm:$0xff]  }
 0x11d   : > { %v1584_v9 = vshll.u32 %v1398_v56, 16  ;;  %v1588_v11 = vshrl.u32 %v1398_v56, 16  ;;  %v1596_v13 = vrot.slane %v1594_v23, 5  ;;  %v1166_v16 = vsel %vm8056_vm13, %v909_v63, %v1165_v40  ;;  %5019 = vmatprep.mubr.bf16.mxu1 %v7389_v53  ;;  %v8361_v53 = vld [vmem:[#allocation2 + $0x40] sm:$0xf]  ;;  %v7417_v55 = vld [vmem:[#allocation7 + $0x1b0] sm:$0xff]  }
 0x11e   : > { %vm621_vm15 = vcmp.gt.f32.partialorder %v589_v52, 0.0  ;;  %v1581_v17 = vor.u32 %v1580_v8, %v1577_v7  ;;  %1167 = vst [vmem:[#allocation2 + $0x54] sm:$0xf] %v1166_v16  ;;  %vm622_vm0 = vcmp.gt.f32.partialorder %v590_v0, 0.0  ;;  %v917_v26 = vor.u32 %v915_v57, %v914_v15  ;;  %v7393_v29 = vld [vmem:[#allocation2 + $0x48] sm:$0xff]   ;;  %7029 = vmatpush3.bf16.msra.mxu1 %v7417_v55  ;;  %v6658_v55 = vld [vmem:[%s7983_s30 + $0x48] sm:$0xff]  }
 0x11f   : > { %v1586_v18 = vrot.slane %v1584_v9, 5  ;;  %v1590_v19 = vrot.slane %v1588_v11, 4  ;;  %v919_v28 = vrot.slane %v914_v15, 4  ;;  %v653_v31 = vmul.f32 0.1, %v589_v52 }
 0x120   : > { %v654_v33 = vmul.f32 0.1, %v590_v0  ;;  %v1582_v38 = vrot.slane %v1581_v17, 4  ;;  %v2025_v42 = vrot.slane %v2023_v44, 4  ;;  %v2026_v43 = vrot.slane %v1908_v5, 5  ;;  %v7420_v17 = vld [vmem:[#allocation7 + $0x1f8] sm:$0xff]  }
 0x121   : > { %v1591_v39 = vor.u32 %v1590_v19, %v1586_v18  ;;  %v918_v46 = vsel %vm8050_vm12, %v910_v12, %v917_v26  ;;  %v1170_v41 = vsel %vm7999_vm4, %v919_v28, %v1169_v22  ;;  %v685_v47 = vsel %vm621_vm15, %v589_v52, %v653_v31  ;;  %v1176_v16 = vld [vmem:[#allocation2 + $0x68] sm:$0x1]  ;;  %7030 = vmatprep.subr.bf16.mxu1 %v7420_v17 }
 0x122   : > { %v686_v48 = vsel %vm622_vm0, %v590_v0, %v654_v33  ;;  %v1587_v34 = vsel %vm8018_vm7, %v1582_v38, %v1586_v18  ;;  %1168 = vst [vmem:[#allocation2 + $0x58] sm:$0xf] %v918_v46  ;;  %1171 = vst [vmem:[#allocation2 + $0x5c] sm:$0x1] %v1170_v41  ;;  %v6455_v20 = vpack.c.bf16 %v685_v47, %v685_v47  ;;  %v392_v57 = vsel %vm7999_vm4, 0, %v391_v24 }
 0x123   : > { %v1592_v49 = vrot.slane %v1591_v39, 4  ;;  %v6456_v50 = vpack.c.bf16 %v686_v48, %v686_v48  ;;  %v2027_v27 = vsel %vm8203_vm1, %v2025_v42, %v2026_v43  ;;  %v442_v40 = vsel %vm8005_vm6, 0, %v441_v45  ;;  %393 = vst [vmem:[#allocation2 + $0x6c] sm:$0x1] %v392_v57  ;;  %v1172_v0 = vld [vmem:[#allocation2 + $0x60] sm:$0xf] }
 0x124   : > { %v6540_v58 = vunpack.c.l.bf16 %v6657_v37  ;;  %v921_v60 = vshrl.u32 %v6455_v20, 16  ;;  %v924_v61 = vshll.u32 %v6455_v20, 16  ;;  %443 = vst [vmem:[#allocation2 + $0x74] sm:$0x1] %v442_v40  ;;  %v6189_v62 = vcombine.low %v8348_v6, %v2027_v27  ;;  %v1911_v43 = vld [vmem:[#allocation2 + $0x44] sm:$0x1] }
 0x125   : > { %v1597_v59 = vsel %vm8018_vm7, %v1592_v49, %v1596_v13  ;;  %v929_v4 = vshrl.u32 %v6456_v50, 16  ;;  %v1400_v32 = vld [vmem:[#allocation2 + $0x54] sm:$0xf]  ;;  %v932_v14 = vshll.u32 %v6456_v50, 16  ;;  %v6541_v63 = vunpack.c.h.bf16 %v6657_v37  ;;  %v394_v45 = vld [vmem:[#allocation2 + $0x78] sm:$0x1] }
 0x126   : > { %v6159_v44 = vcombine.low %v1587_v34, %v1597_v59  ;;  %v1599_v12 = vshrl.u32 %v1400_v32, 16  ;;  %v1602_v56 = vshll.u32 %v1400_v32, 16  ;;  %v923_v23 = vrot.slane %v921_v60, 7  ;;  %5020 = vmatmul.mubr.bf16.gmra.mrb[32].mxu1 %v6189_v62  ;;  %v444_v47 = vld [vmem:[#allocation2 + $0x80] sm:$0x1]  ;;  %v8398_v32 = vld [vmem:[%s7983_s30 + $0x50] sm:$0xff]  }
 0x127   : > { %v931_v52 = vrot.slane %v929_v4, 7  ;;  %v552_v5 = vmul.f32 %v8190_v54, %v6540_v58  ;;  %v553_v7 = vmul.f32 %v8190_v54, %v6541_v63  ;;  %v6174_v8 = vrot.slane %v1909_v51, 9  ;;  %5027 = vmatprep.mubr.bf16.mxu1 %v7393_v29  ;;  %v8388_v27 = vld [vmem:[#allocation2 + $0x48] sm:$0xe] }
 0x128   : > { %4874 = vmatprep.mubr.bf16.mxu0 %v6159_v44  ;;  %v2030_v9 = vrot.slane %v8361_v53, 5  ;;  %v1601_v11 = vrot.slane %v1599_v12, 4  ;;  %v1604_v13 = vrot.slane %v1602_v56, 5  ;;  %v926_v15 = vor.u32 %v924_v61, %v923_v23 }
 0x129   : > { %4875 = vmatmul.mubr.bf16.gmra.mrb[24].mxu0 %v7378_v3  ;;  %v927_v6 = vrot.slane %v923_v23, 4  ;;  %v1401_v18 = vld [vmem:[#allocation2 + $0x58] sm:$0xf]  ;;  %v1402_v19 = vld [vmem:[#allocation2 + $0x5c] sm:$0x1]  ;;  %v934_v22 = vor.u32 %v932_v14, %v931_v52  ;;  %v591_v24 = vadd.f32 %v8198_v1, %v552_v5  ;;  %v592_v26 = vadd.f32 %v8198_v1, %v553_v7  ;;  %v7422_v3 = vld [vmem:[#allocation7 + $0x1b8] sm:$0xff]  }
 0x12a   : > { %v2031_v54 = vsel %vm8203_vm1, %v6174_v8, %v2030_v9  ;;  %v1605_v28 = vor.u32 %v1604_v13, %v1601_v11  ;;  %v1608_v31 = vshll.u32 %v1401_v18, 16  ;;  %v1612_v33 = vshrl.u32 %v1401_v18, 16  ;;  %7031 = vmatpush3.bf16.msra.mxu1 %v7422_v3  ;;  %v7397_v44 = vld [vmem:[#allocation2 + $0x54] sm:$0xff]  }
 0x12b   : > { %v1618_v36 = vshll.u32 %v1402_v19, 16  ;;  %v935_v38 = vsel %vm8050_vm12, %v927_v6, %v934_v22  ;;  %v936_v39 = vrot.slane %v931_v52, 4  ;;  %v1173_v42 = vsel %vm8056_vm13, %v926_v15, %v1172_v0  ;;  %v7384_v23 = vld [vmem:[#allocation2 + $0x54] sm:$0xff]   ;;  %v1179_v22 = vld [vmem:[#allocation2 + $0x6c] sm:$0xf] }
 0x12c   : > { %vm623_vm2 = vcmp.gt.f32.partialorder %v591_v24, 0.0  ;;  %v1606_v37 = vrot.slane %v1605_v28, 4  ;;  %v1610_v1 = vrot.slane %v1608_v31, 5  ;;  %v1614_v46 = vrot.slane %v1612_v33, 4  ;;  %1174 = vst [vmem:[#allocation2 + $0x60] sm:$0xf] %v1173_v42 }
 0x12d   : > { %v1620_v41 = vrot.slane %v1618_v36, 5  ;;  %1175 = vst [vmem:[#allocation2 + $0x64] sm:$0xf] %v935_v38  ;;  %v1177_v48 = vsel %vm7999_vm4, %v936_v39, %v1176_v16  ;;  %vm624_vm3 = vcmp.gt.f32.partialorder %v592_v26, 0.0  ;;  %v655_v34 = vmul.f32 0.1, %v591_v24 }
 0x12e   : > { %v656_v49 = vmul.f32 0.1, %v592_v26  ;;  %v1611_v20 = vsel %vm8018_vm7, %v1606_v37, %v1610_v1  ;;  %v1615_v50 = vor.u32 %v1614_v46, %v1610_v1  ;;  %1178 = vst [vmem:[#allocation2 + $0x68] sm:$0x1] %v1177_v48  ;;  %v2032_v51 = vrot.slane %v2030_v9, 4 }
 0x12f   : > { %v2033_v53 = vrot.slane %v1911_v43, 5  ;;  %v687_v57 = vsel %vm623_vm2, %v591_v24, %v655_v34  ;;  %v395_v58 = vsel %vm7999_vm4, 0, %v394_v45  ;;  %v445_v59 = vsel %vm8005_vm6, 0, %v444_v47  ;;  %v8403_v11 = vld [vmem:[#allocation9] ss:$0 sm:$0xff] }
 0x130   : > { %v688_v40 = vsel %vm624_vm3, %v592_v26, %v656_v49  ;;  %v1616_v60 = vrot.slane %v1615_v50, 4  ;;  %v6457_v61 = vpack.c.bf16 %v687_v57, %v687_v57  ;;  %396 = vst [vmem:[#allocation2 + $0x78] sm:$0x1] %v395_v58  ;;  %446 = vst [vmem:[#allocation2 + $0x80] sm:$0x1] %v445_v59  ;;  %v6544_v62 = vunpack.c.l.bf16 %v6658_v55 }
 0x131   : > { %v6458_v4 = vpack.c.bf16 %v688_v40, %v688_v40  ;;  %v2034_v29 = vsel %vm8203_vm1, %v2032_v51, %v2033_v53  ;;  %v6545_v63 = vunpack.c.h.bf16 %v6658_v55  ;;  %v6175_v12 = vrot.slane %v8388_v27, 9  ;;  %v8408_v31 = vld [vmem:[#allocation10] ss:$0 sm:$0xff]  ;;  %v1913_v43 = vld [vmem:[#allocation2 + $0x4c] sm:$0xf] }
 0x132   : > { %v6190_v14 = vcombine.low %v2031_v54, %v2034_v29  ;;  %v1621_v56 = vsel %vm8018_vm7, %v1616_v60, %v1620_v41  ;;  %v938_v52 = vshrl.u32 %v6457_v61, 16  ;;  %v941_v0 = vshll.u32 %v6457_v61, 16  ;;  %v1914_v45 = vld [vmem:[#allocation2 + $0x50] sm:$0x1]  ;;  %v1183_v47 = vld [vmem:[#allocation2 + $0x74] sm:$0x1] }
 0x133   : > { %v946_v5 = vshrl.u32 %v6458_v4, 16  ;;  %v6160_v7 = vcombine.low %v1611_v20, %v1621_v56  ;;  %v1403_v8 = vld [vmem:[#allocation2 + $0x60] sm:$0xf]  ;;  %v554_v13 = vmul.f32 %v8403_v11, %v6544_v62  ;;  %v555_v15 = vmul.f32 %v8403_v11, %v6545_v63  ;;  %v397_v48 = vld [vmem:[#allocation2 + $0x84] sm:$0x1] }
 0x134   : > { %v1404_v9 = vld [vmem:[#allocation2 + $0x64] sm:$0xf]  ;;  %5028 = vmatmul.mubr.bf16.gmra.mrb[36].mxu1 %v6190_v14  ;;  %v6548_v6 = vunpack.c.l.bf16 %v8398_v32  ;;  %v1623_v16 = vshrl.u32 %v1403_v8, 16  ;;  %v1626_v17 = vshll.u32 %v1403_v8, 16  ;;  %v940_v26 = vrot.slane %v938_v52, 7 }
 0x135   : > { %v1632_v18 = vshll.u32 %v1404_v9, 16  ;;  %v1636_v19 = vshrl.u32 %v1404_v9, 16  ;;  %5035 = vmatprep.mubr.bf16.mxu1 %v7397_v44  ;;  %4882 = vmatprep.mubr.bf16.mxu0 %v6160_v7  ;;  %v1405_v24 = vld [vmem:[#allocation2 + $0x68] sm:$0x1]  ;;  %v948_v54 = vrot.slane %v946_v5, 7  ;;  %v949_v28 = vshll.u32 %v6458_v4, 16 }
 0x136   : > { %v593_v33 = vadd.f32 %v8408_v31, %v554_v13  ;;  %4883 = vmatmul.mubr.bf16.gmra.mrb[28].mxu0 %v7384_v23  ;;  %v1625_v36 = vrot.slane %v1623_v16, 4  ;;  %v1628_v38 = vrot.slane %v1626_v17, 5  ;;  %v1642_v37 = vshll.u32 %v1405_v24, 16  ;;  %v447_v55 = vld [vmem:[#allocation2 + $0x8c] sm:$0x1]  ;;  %v7387_v56 = vld [vmem:[#allocation2 + $0x60] sm:$0xff]  }
 0x137   : > { %v1634_v39 = vrot.slane %v1632_v18, 5  ;;  %v1638_v42 = vrot.slane %v1636_v19, 4  ;;  %v943_v1 = vor.u32 %v941_v0, %v940_v26  ;;  %v944_v46 = vrot.slane %v940_v26, 4  ;;  %v1915_v59 = vld [vmem:[#allocation2 + $0x54] sm:$0xe] }
 0x138   : > { %v951_v41 = vor.u32 %v949_v28, %v948_v54  ;;  %v1629_v34 = vor.u32 %v1628_v38, %v1625_v36  ;;  %v953_v3 = vrot.slane %v948_v54, 4  ;;  %v594_v20 = vadd.f32 %v8408_v31, %v555_v15  ;;  %v8418_v60 = vld [vmem:[#allocation2 + $0x58] sm:$0xf]  ;;  %v8420_v61 = vld [vmem:[#allocation2 + $0x5c] sm:$0x1]  ;;  %v7403_v54 = vld [vmem:[#allocation2 + $0x60] sm:$0xff]  }
 0x139   : > { %v1639_v49 = vor.u32 %v1638_v42, %v1634_v39  ;;  %v1644_v50 = vrot.slane %v1642_v37, 5  ;;  %v1180_v53 = vsel %vm8056_vm13, %v943_v1, %v1179_v22  ;;  %vm625_vm5 = vcmp.gt.f32.partialorder %v593_v33, 0.0 }
 0x13a   : > { %v952_v51 = vsel %vm8050_vm12, %v944_v46, %v951_v41  ;;  %v1630_v57 = vrot.slane %v1629_v34, 4  ;;  %1181 = vst [vmem:[#allocation2 + $0x6c] sm:$0xf] %v1180_v53  ;;  %v1184_v58 = vsel %vm7999_vm4, %v953_v3, %v1183_v47  ;;  %vm626_vm8 = vcmp.gt.f32.partialorder %v594_v20, 0.0 }
 0x13b   : > { %v1640_v40 = vrot.slane %v1639_v49, 4  ;;  %1182 = vst [vmem:[#allocation2 + $0x70] sm:$0xf] %v952_v51  ;;  %1185 = vst [vmem:[#allocation2 + $0x74] sm:$0x1] %v1184_v58  ;;  %v2037_v44 = vrot.slane %v1913_v43, 5  ;;  %v6549_v16 = vunpack.c.h.bf16 %v8398_v32  ;;  %v556_v17 = vmul.f32 %v8403_v11, %v6548_v6 }
 0x13c   : > { %v657_v4 = vmul.f32 0.1, %v593_v33  ;;  %v658_v29 = vmul.f32 0.1, %v594_v20  ;;  %v2040_v14 = vrot.slane %v1914_v45, 5  ;;  %v1635_v62 = vsel %vm8018_vm7, %v1630_v57, %v1634_v39 }
 0x13d   : > { %v1645_v63 = vsel %vm8018_vm7, %v1640_v40, %v1644_v50  ;;  %v398_v23 = vsel %vm7999_vm4, 0, %v397_v48  ;;  %v448_v52 = vsel %vm8005_vm6, 0, %v447_v55  ;;  %v2038_v8 = vsel %vm8203_vm1, %v6175_v12, %v2037_v44  ;;  %v1190_v57 = vld [vmem:[#allocation2 + $0x80] sm:$0x1] }
 0x13e   : > { %v6161_v0 = vcombine.low %v1635_v62, %v1645_v63  ;;  %v689_v5 = vsel %vm625_vm5, %v593_v33, %v657_v4  ;;  %v690_v7 = vsel %vm626_vm8, %v594_v20, %v658_v29  ;;  %399 = vst [vmem:[#allocation2 + $0x84] sm:$0x1] %v398_v23  ;;  %449 = vst [vmem:[#allocation2 + $0x8c] sm:$0x1] %v448_v52  ;;  %v2039_v15 = vrot.slane %v2037_v44, 4 }
 0x13f   : > { %v6459_v9 = vpack.c.bf16 %v689_v5, %v689_v5  ;;  %v6460_v13 = vpack.c.bf16 %v690_v7, %v690_v7  ;;  %v6176_v18 = vrot.slane %v1915_v59, 9  ;;  %v2044_v19 = vrot.slane %v8418_v60, 5  ;;  %v1186_v20 = vld [vmem:[#allocation2 + $0x78] sm:$0xf]  ;;  %v2841_v4 = vld [vmem:[#allocation2 + $0xc] sm:$0xe] }
 0x140   : > { %4890 = vmatprep.mubr.bf16.mxu0 %v6161_v0  ;;  %v2047_v27 = vrot.slane %v8420_v61, 5  ;;  %v2041_v36 = vsel %vm8203_vm1, %v2039_v15, %v2040_v14  ;;  %v557_v32 = vmul.f32 %v8403_v11, %v6549_v16  ;;  %v595_v6 = vadd.f32 %v8408_v31, %v556_v17  ;;  %v2842_v62 = vld [vmem:[#allocation2 + $0x10] sm:$0xf]  ;;  %v2329_v17 = vld [vmem:[#allocation2 + $0xc] sm:$0xf] }
 0x141   : > { %4891 = vmatmul.mubr.bf16.gmra.mrb[32].mxu0 %v7387_v56  ;;  %v955_v22 = vshrl.u32 %v6459_v9, 16  ;;  %v958_v12 = vshll.u32 %v6459_v9, 16  ;;  %v963_v24 = vshrl.u32 %v6460_v13, 16  ;;  %v966_v26 = vshll.u32 %v6460_v13, 16  ;;  %v1406_v28 = vld [vmem:[#allocation2 + $0x6c] sm:$0xf] }
 0x142   : > { %v1407_v33 = vld [vmem:[#allocation2 + $0x70] sm:$0xf]  ;;  %v8448_v38 = vsel %vm8203_vm1, %v6176_v18, %v2044_v19  ;;  %v1408_v39 = vld [vmem:[#allocation2 + $0x74] sm:$0x1]  ;;  %v1647_v42 = vshrl.u32 %v1406_v28, 16  ;;  %v1650_v43 = vshll.u32 %v1406_v28, 16  ;;  %v6191_v47 = vcombine.low %v2038_v8, %v2041_v36 }
 0x143   : > { %v1656_v45 = vshll.u32 %v1407_v33, 16  ;;  %v1660_v37 = vshrl.u32 %v1407_v33, 16  ;;  %v1666_v1 = vshll.u32 %v1408_v39, 16  ;;  %v957_v46 = vrot.slane %v955_v22, 7  ;;  %v7392_v13 = vld [vmem:[#allocation2 + $0x6c] sm:$0xff]  }
 0x144   : > { %v965_v41 = vrot.slane %v963_v24, 7  ;;  %v1649_v48 = vrot.slane %v1647_v42, 4  ;;  %v1652_v34 = vrot.slane %v1650_v43, 5  ;;  %5036 = vmatmul.mubr.bf16.gmra.mrb[40].mxu1 %v6191_v47  ;;  %v596_v60 = vadd.f32 %v8408_v31, %v557_v32  ;;  %v2843_v31 = vld [vmem:[#allocation2 + $0x14] sm:$0x1] }
 0x145   : > { %v1658_v49 = vrot.slane %v1656_v45, 5  ;;  %v1662_v3 = vrot.slane %v1660_v37, 4  ;;  %v1668_v50 = vrot.slane %v1666_v1, 5  ;;  %v960_v51 = vor.u32 %v958_v12, %v957_v46  ;;  %5043 = vmatprep.mubr.bf16.mxu1 %v7403_v54  ;;  %v8465_v24 = vld [vmem:[#allocation2 + $0x10] sm:$0xf] }
 0x146   : > { %v961_v53 = vrot.slane %v957_v46, 4  ;;  %v968_v55 = vor.u32 %v966_v26, %v965_v41  ;;  %v1653_v40 = vor.u32 %v1652_v34, %v1649_v48  ;;  %v970_v59 = vrot.slane %v965_v41, 4  ;;  %v7404_v26 = vld [vmem:[#allocation2 + $0x6c] sm:$0xff]  }
 0x147   : > { %v1663_v58 = vor.u32 %v1662_v3, %v1658_v49  ;;  %v1187_v44 = vsel %vm8056_vm13, %v960_v51, %v1186_v20  ;;  %vm627_vm9 = vcmp.gt.f32.partialorder %v595_v6, 0.0  ;;  %v659_v14 = vmul.f32 0.1, %v595_v6  ;;  %v8469_v36 = vld [vmem:[%s7983_s30 + $0x78] sm:$0xff]  }
 0x148   : > { %v969_v29 = vsel %vm8050_vm12, %v961_v53, %v968_v55  ;;  %v1654_v63 = vrot.slane %v1653_v40, 4  ;;  %1188 = vst [vmem:[#allocation2 + $0x78] sm:$0xf] %v1187_v44  ;;  %v1191_v23 = vsel %vm7999_vm4, %v970_v59, %v1190_v57  ;;  %vm628_vm10 = vcmp.gt.f32.partialorder %v596_v60, 0.0  ;;  %v2331_v40 = vld [vmem:[#allocation2 + $0x14] sm:$0x1] }
 0x149   : > { %v1664_v56 = vrot.slane %v1663_v58, 4  ;;  %1189 = vst [vmem:[#allocation2 + $0x7c] sm:$0xf] %v969_v29  ;;  %1192 = vst [vmem:[#allocation2 + $0x80] sm:$0x1] %v1191_v23  ;;  %v691_v0 = vsel %vm627_vm9, %v595_v6, %v659_v14  ;;  %v2046_v5 = vrot.slane %v2044_v19, 4  ;;  %v6568_v47 = vunpack.c.l.bf16 %v8469_v36 }
 0x14a   : > { %v660_v52 = vmul.f32 0.1, %v596_v60  ;;  %v6233_v7 = vrot.slane %v2841_v4, 9  ;;  %v1659_v8 = vsel %vm8018_vm7, %v1654_v63, %v1658_v49  ;;  %v6461_v15 = vpack.c.bf16 %v691_v0, %v691_v0  ;;  %v1918_v29 = vld [vmem:[#allocation2 + $0x60] sm:$0xe] }
 0x14b   : > { %v1669_v9 = vsel %vm8018_vm7, %v1664_v56, %v1668_v50  ;;  %v2939_v16 = vrot.slane %v2842_v62, 5  ;;  %v2048_v12 = vsel %vm8203_vm1, %v2046_v5, %v2047_v27  ;;  %v2942_v19 = vrot.slane %v2843_v31, 5  ;;  %v1193_v27 = vld [vmem:[#allocation2 + $0x84] sm:$0xf]  ;;  %v1197_v50 = vld [vmem:[#allocation2 + $0x8c] sm:$0x1] }
 0x14c   : > { %v6162_v18 = vcombine.low %v1659_v8, %v1669_v9  ;;  %v692_v22 = vsel %vm628_vm10, %v596_v60, %v660_v52  ;;  %v972_v28 = vshrl.u32 %v6461_v15, 16  ;;  %v6192_v33 = vcombine.low %v8448_v38, %v2048_v12  ;;  %v1919_v63 = vld [vmem:[#allocation2 + $0x64] sm:$0xf]  ;;  %v1920_v5 = vld [vmem:[#allocation2 + $0x68] sm:$0x1] }
 0x14d   : > { %v6462_v54 = vpack.c.bf16 %v692_v22, %v692_v22  ;;  %v975_v32 = vshll.u32 %v6461_v15, 16  ;;  %v2941_v6 = vrot.slane %v2939_v16, 4  ;;  %v2378_v39 = vshrl.u32 %v2329_v17, 16  ;;  %v2844_v15 = vld [vmem:[#allocation2 + $0x18] sm:$0xe] }
 0x14e   : > { %4898 = vmatprep.mubr.bf16.mxu0 %v6162_v18  ;;  %v2381_v42 = vshll.u32 %v2329_v17, 16  ;;  %v974_v61 = vrot.slane %v972_v28, 7  ;;  %5044 = vmatmul.mubr.bf16.gmra.mrb[44].mxu1 %v6192_v33  ;;  %v2387_v37 = vshll.u32 %v8465_v24, 16  ;;  %v8474_v38 = vsel %vm8203_vm1, %v6233_v7, %v2939_v16  ;;  %v2845_v16 = vld [vmem:[#allocation2 + $0x1c] sm:$0xf] }
 0x14f   : > { %4899 = vmatmul.mubr.bf16.gmra.mrb[36].mxu0 %v7392_v13  ;;  %v980_v43 = vshrl.u32 %v6462_v54, 16  ;;  %v983_v45 = vshll.u32 %v6462_v54, 16  ;;  %v1409_v1 = vld [vmem:[#allocation2 + $0x78] sm:$0xf]  ;;  %v8478_v41 = vsel %vm8203_vm1, %v2941_v6, %v2942_v19  ;;  %5051 = vmatprep.mubr.bf16.mxu1 %v7404_v26  ;;  %v6569_v56 = vunpack.c.h.bf16 %v8469_v36  ;;  %v8490_v17 = vld [vmem:[#allocation2 + $0x20] sm:$0x1] }
 0x150   : > { %v1410_v46 = vld [vmem:[#allocation2 + $0x7c] sm:$0xf]  ;;  %v1411_v48 = vld [vmem:[#allocation2 + $0x80] sm:$0x1]  ;;  %v1671_v34 = vshrl.u32 %v1409_v1, 16  ;;  %v1674_v49 = vshll.u32 %v1409_v1, 16  ;;  %v977_v53 = vor.u32 %v975_v32, %v974_v61 }
 0x151   : > { %v1680_v3 = vshll.u32 %v1410_v46, 16  ;;  %v1684_v20 = vshrl.u32 %v1410_v46, 16  ;;  %v1690_v51 = vshll.u32 %v1411_v48, 16  ;;  %v978_v55 = vrot.slane %v974_v61, 4 }
 0x152   : > { %v982_v57 = vrot.slane %v980_v43, 7  ;;  %v1673_v58 = vrot.slane %v1671_v34, 4  ;;  %v1676_v59 = vrot.slane %v1674_v49, 5  ;;  %v1194_v62 = vsel %vm8056_vm13, %v977_v53, %v1193_v27  ;;  %v2332_v43 = vld [vmem:[#allocation2 + $0x18] sm:$0xf] }
 0x153   : > { %v1682_v60 = vrot.slane %v1680_v3, 5  ;;  %v1686_v4 = vrot.slane %v1684_v20, 4  ;;  %v1692_v52 = vrot.slane %v1690_v51, 5  ;;  %1195 = vst [vmem:[#allocation2 + $0x84] sm:$0xf] %v1194_v62  ;;  %v2380_v0 = vrot.slane %v2378_v39, 4 }
 0x154   : > { %v985_v44 = vor.u32 %v983_v45, %v982_v57  ;;  %v987_v14 = vrot.slane %v982_v57, 4  ;;  %v1677_v23 = vor.u32 %v1676_v59, %v1673_v58  ;;  %v2383_v9 = vrot.slane %v2381_v42, 5  ;;  %v7396_v39 = vld [vmem:[#allocation2 + $0x78] sm:$0xff]  }
 0x155   : > { %v1687_v31 = vor.u32 %v1686_v4, %v1682_v60  ;;  %v8488_v13 = vrot.slane %v2387_v37, 5  ;;  %v2391_v12 = vshrl.u32 %v8465_v24, 16  ;;  %v2397_v19 = vshll.u32 %v2331_v40, 16  ;;  %v7408_v49 = vld [vmem:[#allocation2 + $0x78] sm:$0xff]  }
 0x156   : > { %v986_v7 = vsel %vm8050_vm12, %v978_v55, %v985_v44  ;;  %v1198_v8 = vsel %vm7999_vm4, %v987_v14, %v1197_v50  ;;  %v1678_v18 = vrot.slane %v1677_v23, 4  ;;  %v2384_v26 = vor.u32 %v2383_v9, %v2380_v0  ;;  %v2333_v59 = vld [vmem:[#allocation2 + $0x1c] sm:$0xf]  ;;  %v2334_v0 = vld [vmem:[#allocation2 + $0x20] sm:$0x1] }
 0x157   : > { %v1688_v22 = vrot.slane %v1687_v31, 4  ;;  %1196 = vst [vmem:[#allocation2 + $0x88] sm:$0xf] %v986_v7  ;;  %1199 = vst [vmem:[#allocation2 + $0x8c] sm:$0x1] %v1198_v8  ;;  %v6177_v54 = vrot.slane %v1918_v29, 9  ;;  %v6249_v20 = vcombine.low %v8474_v38, %v8478_v41  ;;  %v8515_v14 = vmul.f32 %v8403_v11, %v6568_v47 }
 0x158   : > { %v2051_v28 = vrot.slane %v1919_v63, 5  ;;  %v2054_v33 = vrot.slane %v1920_v5, 5  ;;  %v1683_v32 = vsel %vm8018_vm7, %v1678_v18, %v1682_v60  ;;  %v2393_v42 = vrot.slane %v2391_v12, 4  ;;  %v1921_v5 = vld [vmem:[#allocation2 + $0x6c] sm:$0xe] }
 0x159   : > { %v1693_v6 = vsel %vm8018_vm7, %v1688_v22, %v1692_v52  ;;  %v2399_v61 = vrot.slane %v2397_v19, 5  ;;  %v2385_v27 = vrot.slane %v2384_v26, 4  ;;  %v6234_v46 = vrot.slane %v2844_v15, 9 }
 0x15a   : > { %v6163_v45 = vcombine.low %v1683_v32, %v1693_v6  ;;  %v2052_v24 = vsel %vm8203_vm1, %v6177_v54, %v2051_v28  ;;  %v2053_v37 = vrot.slane %v2051_v28, 4  ;;  %v2394_v1 = vor.u32 %v2393_v42, %v8488_v13  ;;  %v1412_v3 = vld [vmem:[#allocation2 + $0x84] sm:$0xf]  ;;  %v1923_v28 = vld [vmem:[#allocation2 + $0x74] sm:$0x1] }
 0x15b   : > { %v2946_v48 = vrot.slane %v2845_v16, 5  ;;  %v2949_v34 = vrot.slane %v8490_v17, 5  ;;  %v2402_v51 = vshrl.u32 %v2332_v43, 16  ;;  %v2405_v53 = vshll.u32 %v2332_v43, 16 }
 0x15c   : > { %4906 = vmatprep.mubr.bf16.mxu0 %v6163_v45  ;;  %v2055_v50 = vsel %vm8203_vm1, %v2053_v37, %v2054_v33  ;;  %v1695_v55 = vshrl.u32 %v1412_v3, 16  ;;  %v1698_v57 = vshll.u32 %v1412_v3, 16  ;;  %v2395_v40 = vrot.slane %v2394_v1, 4  ;;  %v2847_v33 = vld [vmem:[#allocation2 + $0x24] sm:$0xe] }
 0x15d   : > { %4907 = vmatmul.mubr.bf16.gmra.mrb[40].mxu0 %v7396_v39  ;;  %v6193_v58 = vcombine.low %v2052_v24, %v2055_v50  ;;  %v2390_v29 = vsel %vm8018_vm7, %v2385_v27, %v8488_v13  ;;  %v8510_v44 = vsel %vm8203_vm1, %v6234_v46, %v2946_v48  ;;  %v8518_v62 = vmul.f32 %v8403_v11, %v6569_v56  ;;  %v1922_v11 = vld [vmem:[#allocation2 + $0x70] sm:$0xf]  ;;  %v2849_v37 = vld [vmem:[#allocation2 + $0x2c] sm:$0x1] }
 0x15e   : > { %v1413_v60 = vld [vmem:[#allocation2 + $0x88] sm:$0xf]  ;;  %v1414_v4 = vld [vmem:[#allocation2 + $0x8c] sm:$0x1]  ;;  %v1697_v63 = vrot.slane %v1695_v55, 4  ;;  %v1700_v23 = vrot.slane %v1698_v57, 5  ;;  %v2400_v8 = vsel %vm8018_vm7, %v2395_v40, %v2399_v61 }
 0x15f   : > { %v1704_v31 = vshll.u32 %v1413_v60, 16  ;;  %v1708_v52 = vshrl.u32 %v1413_v60, 16  ;;  %5052 = vmatmul.mubr.bf16.gmra.mrb[48].mxu1 %v6193_v58  ;;  %v1714_v7 = vshll.u32 %v1414_v4, 16  ;;  %v2948_v9 = vrot.slane %v2946_v48, 4  ;;  %v2848_v61 = vld [vmem:[#allocation2 + $0x28] sm:$0xf] }
 0x160   : > { %v2404_v13 = vrot.slane %v2402_v51, 4  ;;  %5059 = vmatprep.mubr.bf16.mxu1 %v7408_v49  ;;  %v1701_v36 = vor.u32 %v1700_v23, %v1697_v63  ;;  %v8522_v16 = vcombine.low %v2390_v29, %v2400_v8  ;;  %v2407_v18 = vrot.slane %v2405_v53, 5  ;;  %v2335_v49 = vld [vmem:[#allocation2 + $0x24] sm:$0xf]  ;;  %v2336_v57 = vld [vmem:[#allocation2 + $0x28] sm:$0xf] }
 0x161   : > { %v1706_v47 = vrot.slane %v1704_v31, 5  ;;  %v1710_v15 = vrot.slane %v1708_v52, 4  ;;  %v1716_v56 = vrot.slane %v1714_v7, 5  ;;  %v8526_v17 = vsel %vm8203_vm1, %v2948_v9, %v2949_v34  ;;  %v7401_v50 = vld [vmem:[#allocation2 + $0x84] sm:$0xff]   ;;  %v2337_v4 = vld [vmem:[#allocation2 + $0x2c] sm:$0x1] }
 0x162   : > { %v2411_v22 = vshll.u32 %v2333_v59, 16  ;;  %v1702_v12 = vrot.slane %v1701_v36, 4  ;;  %v6250_v26 = vcombine.low %v8510_v44, %v8526_v17  ;;  %v2415_v54 = vshrl.u32 %v2333_v59, 16  ;;  %v1924_v29 = vld [vmem:[#allocation2 + $0x78] sm:$0xe] }
 0x163   : > { %v1711_v19 = vor.u32 %v1710_v15, %v1706_v47  ;;  %v2408_v32 = vor.u32 %v2407_v18, %v2404_v13  ;;  %v2421_v39 = vshll.u32 %v2334_v0, 16  ;;  %v6178_v42 = vrot.slane %v1921_v5, 9  ;;  %v7409_v0 = vld [vmem:[#allocation2 + $0x84] sm:$0xff]   ;;  %v1925_v5 = vld [vmem:[#allocation2 + $0x7c] sm:$0xf] }
 0x164   : > { %v2413_v6 = vrot.slane %v2411_v22, 5  ;;  %v1707_v43 = vsel %vm8018_vm7, %v1702_v12, %v1706_v47  ;;  %v2417_v27 = vrot.slane %v2415_v54, 4  ;;  %v2058_v24 = vrot.slane %v1922_v11, 5  ;;  %v1926_v7 = vld [vmem:[#allocation2 + $0x80] sm:$0x1] }
 0x165   : > { %v1712_v45 = vrot.slane %v1711_v19, 4  ;;  %v2409_v1 = vrot.slane %v2408_v32, 4  ;;  %v2423_v46 = vrot.slane %v2421_v39, 5  ;;  %v2061_v48 = vrot.slane %v1923_v28, 5  ;;  %v2850_v8 = vld [vmem:[#allocation2 + $0x30] sm:$0xe] }
 0x166   : > { %v6235_v34 = vrot.slane %v2847_v33, 9  ;;  %v2418_v51 = vor.u32 %v2417_v27, %v2413_v6  ;;  %v2059_v53 = vsel %vm8203_vm1, %v6178_v42, %v2058_v24  ;;  %v2060_v55 = vrot.slane %v2058_v24, 4  ;;  %v2851_v15 = vld [vmem:[#allocation2 + $0x34] sm:$0xf]  ;;  %v2852_v11 = vld [vmem:[#allocation2 + $0x38] sm:$0x1] }
 0x167   : > { %v1717_v3 = vsel %vm8018_vm7, %v1712_v45, %v1716_v56  ;;  %v2414_v58 = vsel %vm8018_vm7, %v2409_v1, %v2413_v6  ;;  %v2953_v59 = vrot.slane %v2848_v61, 5  ;;  %v2956_v60 = vrot.slane %v2849_v37, 5  ;;  %v2338_v61 = vld [vmem:[#allocation2 + $0x30] sm:$0xf]  ;;  %v2339_v45 = vld [vmem:[#allocation2 + $0x34] sm:$0xf] }
 0x168   : > { %v6164_v40 = vcombine.low %v1707_v43, %v1717_v3  ;;  %v2419_v63 = vrot.slane %v2418_v51, 4  ;;  %v2062_v23 = vsel %vm8203_vm1, %v2060_v55, %v2061_v48  ;;  %v2426_v31 = vshrl.u32 %v2335_v49, 16 }
 0x169   : > { %v2429_v52 = vshll.u32 %v2335_v49, 16  ;;  %v6194_v9 = vcombine.low %v2059_v53, %v2062_v23  ;;  %v8542_v13 = vsel %vm8203_vm1, %v6235_v34, %v2953_v59  ;;  %v2955_v36 = vrot.slane %v2953_v59, 4  ;;  %v2340_v49 = vld [vmem:[#allocation2 + $0x38] sm:$0x1]  ;;  %v1929_v23 = vld [vmem:[#allocation2 + $0x8c] sm:$0x1] }
 0x16a   : > { %4914 = vmatprep.mubr.bf16.mxu0 %v6164_v40  ;;  %v2435_v47 = vshll.u32 %v2336_v57, 16  ;;  %v2424_v56 = vsel %vm8018_vm7, %v2419_v63, %v2423_v46  ;;  %v2428_v18 = vrot.slane %v2426_v31, 4  ;;  %v2439_v12 = vshrl.u32 %v2336_v57, 16  ;;  %v7411_v46 = vld [vmem:[#allocation7 + $0x208] sm:$0xff]   ;;  %v7413_v63 = vld [vmem:[#allocation2 + $0x90] sm:$0xff]  }
 0x16b   : > { %4915 = vmatmul.mubr.bf16.gmra.mrb[44].mxu0 %v7401_v50  ;;  %v2431_v22 = vrot.slane %v2429_v52, 5  ;;  %v8549_v19 = vcombine.low %v2414_v58, %v2424_v56  ;;  %5060 = vmatmul.mubr.bf16.gmra.mrb[52].mxu1 %v6194_v9  ;;  %v8553_v54 = vsel %vm8203_vm1, %v2955_v36, %v2956_v60  ;;  %v2445_v33 = vshll.u32 %v2337_v4, 16  ;;  %v1927_v40 = vld [vmem:[#allocation2 + $0x84] sm:$0xe]  ;;  %v1928_v58 = vld [vmem:[#allocation2 + $0x88] sm:$0xf] }
 0x16c   : > { %5148 = vmatprep.mubr.bf16.mxu0 %v6249_v20  ;;  %v2437_v28 = vrot.slane %v2435_v47, 5  ;;  %v6251_v32 = vcombine.low %v8542_v13, %v8553_v54  ;;  %v2441_v39 = vrot.slane %v2439_v12, 4  ;;  %5067 = vmatprep.mubr.bf16.mxu1 %v7409_v0  ;;  %v6179_v42 = vrot.slane %v1924_v29, 9  ;;  %v7448_v9 = vld [vmem:[#allocation7 + $0x200] sm:$0xff]   ;;  %v7416_v56 = vld [vmem:[#allocation7 + $0x210] sm:$0xff]  }
 0x16d   : > { %v2432_v6 = vor.u32 %v2431_v22, %v2428_v18  ;;  %v2447_v43 = vrot.slane %v2445_v33, 5  ;;  %v2065_v38 = vrot.slane %v1925_v5, 5  ;;  %v2068_v41 = vrot.slane %v1926_v7, 5  ;;  %v2853_v7 = vld [vmem:[#allocation2 + $0x3c] sm:$0xe] }
 0x16e   : > { %v6236_v20 = vrot.slane %v2850_v8, 9  ;;  %v2442_v24 = vor.u32 %v2441_v39, %v2437_v28  ;;  %v2960_v37 = vrot.slane %v2851_v15, 5  ;;  %v2963_v1 = vrot.slane %v2852_v11, 5  ;;  %v2854_v8 = vld [vmem:[#allocation2 + $0x40] sm:$0xf] }
 0x16f   : > { %v2433_v27 = vrot.slane %v2432_v6, 4  ;;  %v2066_v48 = vsel %vm8203_vm1, %v6179_v42, %v2065_v38  ;;  %v2067_v34 = vrot.slane %v2065_v38, 4  ;;  %v2450_v3 = vshrl.u32 %v2338_v61, 16  ;;  %v2855_v11 = vld [vmem:[#allocation2 + $0x44] sm:$0x1] }
 0x170   : > { %v2453_v50 = vshll.u32 %v2338_v61, 16  ;;  %v2443_v53 = vrot.slane %v2442_v24, 4  ;;  %v8563_v55 = vsel %vm8203_vm1, %v6236_v20, %v2960_v37  ;;  %v2962_v57 = vrot.slane %v2960_v37, 4  ;;  %v2342_v38 = vld [vmem:[#allocation2 + $0x40] sm:$0xf]  ;;  %v7421_v20 = vld [vmem:[#allocation7 + $0x218] sm:$0xff]  }
 0x171   : > { %v2438_v51 = vsel %vm8018_vm7, %v2433_v27, %v2437_v28  ;;  %v2069_v59 = vsel %vm8203_vm1, %v2067_v34, %v2068_v41  ;;  %v2452_v60 = vrot.slane %v2450_v3, 4  ;;  %v2459_v29 = vshll.u32 %v2339_v45, 16  ;;  %v2343_v41 = vld [vmem:[#allocation2 + $0x44] sm:$0x1]  ;;  %v1931_v34 = vld [vmem:[#allocation2 + $0x94] sm:$0xf] }
 0x172   : > { %v2455_v4 = vrot.slane %v2453_v50, 5  ;;  %v2448_v31 = vsel %vm8018_vm7, %v2443_v53, %v2447_v43  ;;  %v6195_v52 = vcombine.low %v2066_v48, %v2069_v59  ;;  %v8572_v0 = vsel %vm8203_vm1, %v2962_v57, %v2963_v1  ;;  %v7414_v1 = vld [vmem:[#allocation2 + $0x9c] sm:$0xff]   ;;  %v1930_v48 = vld [vmem:[#allocation2 + $0x90] sm:$0xe] }
 0x173   : > { %5149 = vmatmul.mubr.bf16.vlgmr.msra.gmra.mrb[48].mxu0 %v8522_v16  ;;  %v2463_v5 = vshrl.u32 %v2339_v45, 16  ;;  %v8577_v36 = vcombine.low %v2438_v51, %v2448_v31  ;;  %v6252_v16 = vcombine.low %v8563_v55, %v8572_v0  ;;  %v2461_v15 = vrot.slane %v2459_v29, 5  ;;  %v2858_v29 = vld [vmem:[#allocation2 + $0x50] sm:$0x1] }
 0x174   : > { %7153 = vmatpush3.bf16.msra.mxu0 %v7448_v9  ;;  %5156 = vmatprep.mubr.bf16.mxu0 %v6250_v26  ;;  %v2456_v47 = vor.u32 %v2455_v4, %v2452_v60  ;;  %v2469_v22 = vshll.u32 %v2340_v49, 16  ;;  %v6180_v12 = vrot.slane %v1927_v40, 9  ;;  %v2072_v28 = vrot.slane %v1928_v58, 5  ;;  %v2341_v26 = vld [vmem:[#allocation2 + $0x3c] sm:$0xf] }
 0x175   : > { %7154 = vmatprep.subr.bf16.mxu0 %v7411_v46  ;;  %5068 = vmatmul.mubr.bf16.gmra.mrb[56].mxu1 %v6195_v52  ;;  %v2465_v18 = vrot.slane %v2463_v5, 4  ;;  %v2075_v6 = vrot.slane %v1929_v23, 5  ;;  %v6237_v44 = vrot.slane %v2853_v7, 9  ;;  %v2967_v17 = vrot.slane %v2854_v8, 5  ;;  %v1932_v49 = vld [vmem:[#allocation2 + $0x98] sm:$0x1] }
 0x176   : > { %v2457_v33 = vrot.slane %v2456_v47, 4  ;;  %5075 = vmatprep.mubr.bf16.mxu1 %v7413_v63  ;;  %v2471_v42 = vrot.slane %v2469_v22, 5  ;;  %v2073_v61 = vsel %vm8203_vm1, %v6180_v12, %v2072_v28  ;;  %v2074_v43 = vrot.slane %v2072_v28, 4  ;;  %v2857_v4 = vld [vmem:[#allocation2 + $0x4c] sm:$0xf]  ;;  %v7424_v7 = vld [vmem:[#allocation7 + $0x220] sm:$0xff]  }
 0x177   : > { %v2466_v39 = vor.u32 %v2465_v18, %v2461_v15  ;;  %v8587_v27 = vsel %vm8203_vm1, %v6237_v44, %v2967_v17  ;;  %v2969_v24 = vrot.slane %v2967_v17, 4  ;;  %v2970_v37 = vrot.slane %v2855_v11, 5  ;;  %v2344_v5 = vld [vmem:[#allocation2 + $0x48] sm:$0xf] }
 0x178   : > { %7155 = vmatpush3.bf16.msra.mxu0 %v7411_v46  ;;  %v2462_v45 = vsel %vm8018_vm7, %v2457_v33, %v2461_v15  ;;  %v2076_v50 = vsel %vm8203_vm1, %v2074_v43, %v2075_v6  ;;  %v2474_v51 = vshrl.u32 %v2341_v26, 16  ;;  %v2477_v53 = vshll.u32 %v2341_v26, 16  ;;  %v2856_v46 = vld [vmem:[#allocation2 + $0x48] sm:$0xe]  ;;  %v1934_v43 = vld [vmem:[#allocation2 + $0xa0] sm:$0xf] }
 0x179   : > { %v2467_v3 = vrot.slane %v2466_v39, 4  ;;  %7156 = vmatprep.subr.bf16.mxu0 %v7416_v56  ;;  %v6196_v40 = vcombine.low %v2073_v61, %v2076_v50  ;;  %v8595_v58 = vsel %vm8203_vm1, %v2969_v24, %v2970_v37  ;;  %v2483_v59 = vshll.u32 %v2342_v38, 16  ;;  %v1933_v61 = vld [vmem:[#allocation2 + $0x9c] sm:$0xe]  ;;  %v7427_v37 = vld [vmem:[#allocation7 + $0x228] sm:$0xff]  }
 0x17a   : > { %v2487_v60 = vshrl.u32 %v2342_v38, 16  ;;  %v6253_v23 = vcombine.low %v8587_v27, %v8595_v58  ;;  %v2476_v31 = vrot.slane %v2474_v51, 4  ;;  %v2479_v52 = vrot.slane %v2477_v53, 5  ;;  %v2859_v50 = vld [vmem:[#allocation2 + $0x54] sm:$0xe] }
 0x17b   : > { %5157 = vmatmul.mubr.bf16.gmra.mrb[52].mxu0 %v8549_v19  ;;  %v2472_v63 = vsel %vm8018_vm7, %v2467_v3, %v2471_v42  ;;  %v2485_v9 = vrot.slane %v2483_v59, 5  ;;  %v2493_v15 = vshll.u32 %v2343_v41, 16  ;;  %v2345_v19 = vld [vmem:[#allocation2 + $0x4c] sm:$0xf]  ;;  %v6181_v22 = vrot.slane %v1930_v48, 9 }
 0x17c   : > { %5164 = vmatprep.mubr.bf16.mxu0 %v6251_v32  ;;  %v8605_v8 = vcombine.low %v2462_v45, %v2472_v63  ;;  %v2489_v47 = vrot.slane %v2487_v60, 4  ;;  %7157 = vmatpush3.bf16.msra.mxu0 %v7416_v56  ;;  %v2480_v18 = vor.u32 %v2479_v52, %v2476_v31  ;;  %v2079_v12 = vrot.slane %v1931_v34, 5  ;;  %v2346_v42 = vld [vmem:[#allocation2 + $0x50] sm:$0x1]  ;;  %v1935_v3 = vld [vmem:[#allocation2 + $0xa4] sm:$0x1] }
 0x17d   : > { %5076 = vmatmul.mubr.bf16.gmra.mrb[60].mxu1 %v6196_v40  ;;  %v2082_v28 = vrot.slane %v1932_v49, 5  ;;  %7158 = vmatprep.subr.bf16.mxu0 %v7421_v20  ;;  %v2495_v13 = vrot.slane %v2493_v15, 5  ;;  %v6238_v54 = vrot.slane %v2856_v46, 9  ;;  %v2974_v32 = vrot.slane %v2857_v4, 5  ;;  %v7418_v40 = vld [vmem:[#allocation2 + $0xa8] sm:$0xff]  }
 0x17e   : > { %v2490_v6 = vor.u32 %v2489_v47, %v2485_v9  ;;  %5083 = vmatprep.mubr.bf16.mxu1 %v7414_v1  ;;  %v2481_v17 = vrot.slane %v2480_v18, 4  ;;  %v2080_v56 = vsel %vm8203_vm1, %v6181_v22, %v2079_v12  ;;  %v2081_v26 = vrot.slane %v2079_v12, 4  ;;  %v2860_v59 = vld [vmem:[#allocation2 + $0x58] sm:$0xf]  ;;  %v2861_v47 = vld [vmem:[#allocation2 + $0x5c] sm:$0x1] }
 0x17f   : > { %v8591_v57 = vpop.f32.mrb[0].mxu0  ;;  %v2977_v39 = vrot.slane %v2858_v29, 5  ;;  %v8617_v41 = vsel %vm8203_vm1, %v6238_v54, %v2974_v32  ;;  %v2976_v45 = vrot.slane %v2974_v32, 4  ;;  %v2498_v24 = vshrl.u32 %v2344_v5, 16  ;;  %v2347_v12 = vld [vmem:[#allocation2 + $0x54] sm:$0xf] }
 0x180   : > { %v8607_v11 = vpop.f32.mrb[1].mxu0  ;;  %v2491_v38 = vrot.slane %v2490_v6, 4  ;;  %7159 = vmatpush3.bf16.msra.mxu0 %v7421_v20  ;;  %v2486_v1 = vsel %vm8018_vm7, %v2481_v17, %v2485_v9  ;;  %v2083_v48 = vsel %vm8203_vm1, %v2081_v26, %v2082_v28  ;;  %v2501_v34 = vshll.u32 %v2344_v5, 16  ;;  %v7430_v28 = vld [vmem:[#allocation7 + $0x230] sm:$0xff]   ;;  %v2349_v26 = vld [vmem:[#allocation2 + $0x5c] sm:$0x1] }
 0x181   : > { %v8609_v33 = vpop.f32.mrb[2].mxu0  ;;  %v2507_v49 = vshll.u32 %v2345_v19, 16  ;;  %7160 = vmatprep.subr.bf16.mxu0 %v7424_v7  ;;  %v6197_v53 = vcombine.low %v2080_v56, %v2083_v48  ;;  %v8627_v46 = vsel %vm8203_vm1, %v2976_v45, %v2977_v39  ;;  %v2500_v20 = vrot.slane %v2498_v24, 4  ;;  %v1938_v48 = vld [vmem:[#allocation2 + $0xb0] sm:$0x1] }
 0x182   : > { %v8611_v44 = vpop.f32.mrb[3].mxu0  ;;  %v2496_v51 = vsel %vm8018_vm7, %v2491_v38, %v2495_v13  ;;  %v6254_v4 = vcombine.low %v8617_v41, %v8627_v46  ;;  %v2503_v29 = vrot.slane %v2501_v34, 5  ;;  %v2511_v31 = vshrl.u32 %v2345_v19, 16  ;;  %v7433_v34 = vld [vmem:[#allocation7 + $0x238] sm:$0xff]  }
 0x183   : > { %5165 = vmatmul.mubr.bf16.gmra.mrb[56].mxu0 %v8577_v36  ;;  %v8630_v60 = vcombine.low %v2486_v1, %v2496_v51  ;;  %v2509_v63 = vrot.slane %v2507_v49, 5  ;;  %v2517_v52 = vshll.u32 %v2346_v42, 16  ;;  %v6182_v5 = vrot.slane %v1933_v61, 9  ;;  %v1936_v61 = vld [vmem:[#allocation2 + $0xa8] sm:$0xe] }
 0x184   : > { %5172 = vmatprep.mubr.bf16.mxu0 %v6252_v16  ;;  %v2086_v9 = vrot.slane %v1934_v43, 5  ;;  %7161 = vmatpush3.bf16.msra.mxu0 %v7424_v7  ;;  %v2504_v15 = vor.u32 %v2503_v29, %v2500_v20  ;;  %v2089_v36 = vrot.slane %v1935_v3, 5  ;;  %v6239_v18 = vrot.slane %v2859_v50, 9  ;;  %v2348_v16 = vld [vmem:[#allocation2 + $0x58] sm:$0xf] }
 0x185   : > { %5084 = vmatmul.mubr.bf16.gmra.mrb[64].mxu1 %v6197_v53  ;;  %v2981_v22 = vrot.slane %v2860_v59, 5  ;;  %7162 = vmatprep.subr.bf16.mxu0 %v7427_v37  ;;  %v2513_v6 = vrot.slane %v2511_v31, 4  ;;  %v2519_v13 = vrot.slane %v2517_v52, 5  ;;  %v2984_v32 = vrot.slane %v2861_v47, 5  ;;  %v1937_v1 = vld [vmem:[#allocation2 + $0xac] sm:$0xf] }
 0x186   : > { %5091 = vmatprep.mubr.bf16.mxu1 %v7418_v40  ;;  %v2087_v55 = vsel %vm8203_vm1, %v6182_v5, %v2086_v9  ;;  %v2088_v0 = vrot.slane %v2086_v9, 4  ;;  %v2505_v19 = vrot.slane %v2504_v15, 4  ;;  %v2522_v39 = vshrl.u32 %v2347_v12, 16  ;;  %v2862_v53 = vld [vmem:[#allocation2 + $0x60] sm:$0xe] }
 0x187   : > { %v8641_v7 = vsel %vm8203_vm1, %v6239_v18, %v2981_v22  ;;  %v2983_v54 = vrot.slane %v2981_v22, 4  ;;  %v2514_v17 = vor.u32 %v2513_v6, %v2509_v63  ;;  %v2525_v42 = vshll.u32 %v2347_v12, 16  ;;  %v2864_v47 = vld [vmem:[#allocation2 + $0x68] sm:$0x1]  ;;  %v2350_v15 = vld [vmem:[#allocation2 + $0x60] sm:$0xf] }
 0x188   : > { %v2090_v56 = vsel %vm8203_vm1, %v2088_v0, %v2089_v36  ;;  %7163 = vmatpush3.bf16.msra.mxu0 %v7427_v37  ;;  %v2510_v43 = vsel %vm8018_vm7, %v2505_v19, %v2509_v63  ;;  %v2531_v24 = vshll.u32 %v2348_v16, 16  ;;  %v2524_v50 = vrot.slane %v2522_v39, 4  ;;  %v7419_v37 = vld [vmem:[#allocation2 + $0xb4] sm:$0xff]   ;;  %v2863_v63 = vld [vmem:[#allocation2 + $0x64] sm:$0xf] }
 0x189   : > { %v6198_v38 = vcombine.low %v2087_v55, %v2090_v56  ;;  %v8649_v45 = vsel %vm8203_vm1, %v2983_v54, %v2984_v32  ;;  %7164 = vmatprep.subr.bf16.mxu0 %v7430_v28  ;;  %v2515_v49 = vrot.slane %v2514_v17, 4  ;;  %v2527_v51 = vrot.slane %v2525_v42, 5  ;;  %v2351_v6 = vld [vmem:[#allocation2 + $0x64] sm:$0xf]  ;;  %v2352_v0 = vld [vmem:[#allocation2 + $0x68] sm:$0x1] }
 0x18a   : > { %v6255_v3 = vcombine.low %v8641_v7, %v8649_v45  ;;  %v2533_v20 = vrot.slane %v2531_v24, 5  ;;  %v2535_v40 = vshrl.u32 %v2348_v16, 16  ;;  %v2541_v59 = vshll.u32 %v2349_v26, 16  ;;  %v412_v56 = vld [vmem:[#allocation2 + $0xc0] sm:$0x1] }
 0x18b   : > { %5173 = vmatmul.mubr.bf16.gmra.mrb[60].mxu0 %v8605_v8  ;;  %v6183_v29 = vrot.slane %v1936_v61, 9  ;;  %v2520_v31 = vsel %vm8018_vm7, %v2515_v49, %v2519_v13  ;;  %v2528_v52 = vor.u32 %v2527_v51, %v2524_v50  ;;  %v2093_v5 = vrot.slane %v1937_v1, 5  ;;  %v1939_v26 = vld [vmem:[#allocation2 + $0xb4] sm:$0xe]  ;;  %v1941_v24 = vld [vmem:[#allocation2 + $0xbc] sm:$0x1] }
 0x18c   : > { %5180 = vmatprep.mubr.bf16.mxu0 %v6253_v23  ;;  %v2096_v9 = vrot.slane %v1938_v48, 5  ;;  %7165 = vmatpush3.bf16.msra.mxu0 %v7430_v28  ;;  %v8659_v36 = vcombine.low %v2510_v43, %v2520_v31  ;;  %v2537_v8 = vrot.slane %v2535_v40, 4  ;;  %v2543_v18 = vrot.slane %v2541_v59, 5  ;;  %v2865_v1 = vld [vmem:[#allocation2 + $0x6c] sm:$0xe] }
 0x18d   : > { %5092 = vmatmul.mubr.bf16.gmra.mrb[68].mxu1 %v6198_v38  ;;  %v6240_v22 = vrot.slane %v2862_v53, 9  ;;  %7166 = vmatprep.subr.bf16.mxu0 %v7433_v34  ;;  %v2529_v12 = vrot.slane %v2528_v52, 4  ;;  %v2094_v27 = vsel %vm8203_vm1, %v6183_v29, %v2093_v5  ;;  %v2095_v58 = vrot.slane %v2093_v5, 4  ;;  %v1940_v38 = vld [vmem:[#allocation2 + $0xb8] sm:$0xf] }
 0x18e   : > { %5099 = vmatprep.mubr.bf16.mxu1 %v7419_v37  ;;  %v2988_v23 = vrot.slane %v2863_v63, 5  ;;  %v2538_v13 = vor.u32 %v2537_v8, %v2533_v20  ;;  %v2991_v55 = vrot.slane %v2864_v47, 5  ;;  %v2546_v16 = vshrl.u32 %v2350_v15, 16 }
 0x18f   : > { %v2549_v28 = vshll.u32 %v2350_v15, 16  ;;  %v2534_v19 = vsel %vm8018_vm7, %v2529_v12, %v2533_v20  ;;  %v2097_v54 = vsel %vm8203_vm1, %v2095_v58, %v2096_v9  ;;  %v2555_v49 = vshll.u32 %v2351_v6, 16  ;;  %v7449_v9 = vld [vmem:[#allocation10] ss:$0 sm:$0xff] }
 0x190   : > { %v8669_v32 = vsel %vm8203_vm1, %v6240_v22, %v2988_v23  ;;  %v2990_v17 = vrot.slane %v2988_v23, 4  ;;  %7167 = vmatpush3.bf16.msra.mxu0 %v7433_v34  ;;  %v2539_v39 = vrot.slane %v2538_v13, 4  ;;  %v6199_v42 = vcombine.low %v2094_v27, %v2097_v54  ;;  %v8675_v37 = vpop.f32.mrb[0].mxu1  ;;  %v2867_v22 = vld [vmem:[#allocation2 + $0x74] sm:$0x1] }
 0x191   : > { %v2548_v61 = vrot.slane %v2546_v16, 4  ;;  %v2551_v43 = vrot.slane %v2549_v28, 5  ;;  %v2559_v50 = vshrl.u32 %v2351_v6, 16  ;;  %v2565_v51 = vshll.u32 %v2352_v0, 16  ;;  %v8684_v59 = vpop.f32.mrb[1].mxu1 }
 0x192   : > { %v8673_v48 = vsel %vm8203_vm1, %v2990_v17, %v2991_v55  ;;  %v2544_v34 = vsel %vm8018_vm7, %v2539_v39, %v2543_v18  ;;  %v413_v40 = vsel %vm7999_vm4, 0, %v412_v56  ;;  %v2557_v63 = vrot.slane %v2555_v49, 5  ;;  %v8691_v52 = vpop.f32.mrb[2].mxu1  ;;  %v2866_v18 = vld [vmem:[#allocation2 + $0x70] sm:$0xf] }
 0x193   : > { %5181 = vmatmul.mubr.bf16.gmra.mrb[64].mxu0 %v8630_v60  ;;  %v6256_v53 = vcombine.low %v8669_v32, %v8673_v48  ;;  %v2552_v20 = vor.u32 %v2551_v43, %v2548_v61  ;;  %v8689_v29 = vcombine.low %v2534_v19, %v2544_v34  ;;  %v2561_v60 = vrot.slane %v2559_v50, 4  ;;  %414 = vst [vmem:[#allocation2 + $0xc0] sm:$0x1] %v413_v40  ;;  %v2353_v27 = vld [vmem:[#allocation2 + $0x6c] sm:$0xf]  ;;  %v8695_v58 = vpop.f32.mrb[3].mxu1 }
 0x194   : > { %5188 = vmatprep.mubr.bf16.mxu0 %v6254_v4  ;;  %v2567_v31 = vrot.slane %v2565_v51, 5  ;;  %v605_v47 = vadd.f32 %v7449_v9, %v8515_v14  ;;  %v606_v15 = vadd.f32 %v7449_v9, %v8518_v62  ;;  %v6184_v8 = vrot.slane %v1939_v26, 9  ;;  %v2354_v39 = vld [vmem:[#allocation2 + $0x70] sm:$0xf]  ;;  %v2358_v48 = vld [vmem:[#allocation2 + $0x80] sm:$0x1] }
 0x195   : > { %5100 = vmatmul.mubr.bf16.gmra.mrb[72].mxu1 %v6199_v42  ;;  %v2553_v5 = vrot.slane %v2552_v20, 4  ;;  %v2562_v41 = vor.u32 %v2561_v60, %v2557_v63  ;;  %v2100_v46 = vrot.slane %v1940_v38, 5  ;;  %v2103_v4 = vrot.slane %v1941_v24, 5  ;;  %v2355_v24 = vld [vmem:[#allocation2 + $0x74] sm:$0x1] }
 0x196   : > { %v6241_v12 = vrot.slane %v2865_v1, 9  ;;  %vm637_vm11 = vcmp.gt.f32.partialorder %v605_v47, 0.0  ;;  %vm638_vm14 = vcmp.gt.f32.partialorder %v606_v15, 0.0  ;;  %v669_v6 = vmul.f32 0.1, %v605_v47 }
 0x197   : > { %v2558_v23 = vsel %vm8018_vm7, %v2553_v5, %v2557_v63  ;;  %v2563_v13 = vrot.slane %v2562_v41, 4  ;;  %v670_v14 = vmul.f32 0.1, %v606_v15  ;;  %v8701_v62 = vsel %vm8203_vm1, %v6184_v8, %v2100_v46  ;;  %v3274_v63 = vld [vmem:[#allocation2 + $0x18] sm:$0xf] }
 0x198   : > { %v2102_v55 = vrot.slane %v2100_v46, 4  ;;  %v701_v0 = vsel %vm637_vm11, %v605_v47, %v669_v6  ;;  %v2995_v16 = vrot.slane %v2866_v18, 5  ;;  %v2998_v28 = vrot.slane %v2867_v22, 5  ;;  %v3275_v47 = vld [vmem:[#allocation2 + $0x1c] sm:$0xf] }
 0x199   : > { %v2570_v19 = vshrl.u32 %v2353_v27, 16  ;;  %v2568_v54 = vsel %vm8018_vm7, %v2563_v13, %v2567_v31  ;;  %v702_v17 = vsel %vm638_vm14, %v606_v15, %v670_v14  ;;  %v6471_v56 = vpack.c.bf16 %v701_v0, %v701_v0  ;;  %v8725_v15 = vpop.f32.mrb[4].mxu0  ;;  %v3276_v14 = vld [vmem:[#allocation2 + $0x20] sm:$0x1]  ;;  %v2868_v0 = vld [vmem:[#allocation2 + $0x78] sm:$0xe] }
 0x19a   : > { %v8707_v26 = vsel %vm8203_vm1, %v2102_v55, %v2103_v4  ;;  %v8710_v42 = vcombine.low %v2558_v23, %v2568_v54  ;;  %v6472_v61 = vpack.c.bf16 %v702_v17, %v702_v17  ;;  %v8716_v38 = vsel %vm8203_vm1, %v6241_v12, %v2995_v16  ;;  %v1228_v45 = vld [vmem:[#allocation2 + $0xc0] sm:$0xf]  ;;  %v8731_v22 = vpop.f32.mrb[5].mxu0  ;;  %v2869_v17 = vld [vmem:[#allocation2 + $0x7c] sm:$0xf] }
 0x19b   : > { %5189 = vmatmul.mubr.bf16.gmra.mrb[68].mxu0 %v8659_v36  ;;  %v6200_v43 = vcombine.low %v8701_v62, %v8707_v26  ;;  %v1057_v1 = vshrl.u32 %v6471_v56, 16  ;;  %v1060_v49 = vshll.u32 %v6471_v56, 16  ;;  %v2997_v50 = vrot.slane %v2995_v16, 4  ;;  %v2870_v56 = vld [vmem:[#allocation2 + $0x80] sm:$0x1] }
 0x19c   : > { %5196 = vmatprep.mubr.bf16.mxu0 %v6255_v3  ;;  %v2572_v51 = vrot.slane %v2570_v19, 4  ;;  %v1065_v36 = vshrl.u32 %v6472_v61, 16  ;;  %v1068_v34 = vshll.u32 %v6472_v61, 16  ;;  %v2573_v20 = vshll.u32 %v2353_v27, 16  ;;  %v8733_v27 = vpop.f32.mrb[6].mxu0 }
 0x19d   : > { %v2579_v40 = vshll.u32 %v2354_v39, 16  ;;  %v1059_v60 = vrot.slane %v1057_v1, 7  ;;  %v8723_v31 = vsel %vm8203_vm1, %v2997_v50, %v2998_v28  ;;  %v2583_v5 = vshrl.u32 %v2354_v39, 16  ;;  %v2357_v50 = vld [vmem:[#allocation2 + $0x7c] sm:$0xf] }
 0x19e   : > { %v2589_v9 = vshll.u32 %v2355_v24, 16  ;;  %v8727_v7 = vrot.slane %v1065_v36, 7  ;;  %v6257_v3 = vcombine.low %v8716_v38, %v8723_v31  ;;  %v2575_v8 = vrot.slane %v2573_v20, 5 }
 0x19f   : > { %v2581_v18 = vrot.slane %v2579_v40, 5  ;;  %v1062_v41 = vor.u32 %v1060_v49, %v1059_v60  ;;  %v1063_v46 = vrot.slane %v1059_v60, 4  ;;  %v2585_v4 = vrot.slane %v2583_v5, 4  ;;  %v2356_v49 = vld [vmem:[#allocation2 + $0x78] sm:$0xf] }
 0x1a0   : > { %v2591_v12 = vrot.slane %v2589_v9, 5  ;;  %v1070_v23 = vor.u32 %v1068_v34, %v8727_v7  ;;  %v2576_v13 = vor.u32 %v2575_v8, %v2572_v51  ;;  %v3323_v55 = vshrl.u32 %v3274_v63, 16  ;;  %v8742_v51 = vpop.f32.mrb[7].mxu0  ;;  %v8749_v60 = vpop.f32.mrb[4].mxu1 }
 0x1a1   : > { %v1229_v16 = vsel %vm8056_vm13, %v1062_v41, %v1228_v45  ;;  %v2586_v28 = vor.u32 %v2585_v4, %v2581_v18  ;;  %v3326_v19 = vshll.u32 %v3274_v63, 16  ;;  %v3332_v54 = vshll.u32 %v3275_v47, 16  ;;  %v3277_v41 = vld [vmem:[#allocation2 + $0x24] sm:$0xf] }
 0x1a2   : > { %v1071_v39 = vsel %vm8050_vm12, %v1063_v46, %v1070_v23  ;;  %1230 = vst [vmem:[#allocation2 + $0xc0] sm:$0xf] %v1229_v16  ;;  %v2577_v61 = vrot.slane %v2576_v13, 4  ;;  %v3325_v24 = vrot.slane %v3323_v55, 4  ;;  %v3336_v1 = vshrl.u32 %v3275_v47, 16  ;;  %v8759_v46 = vpop.f32.mrb[5].mxu1 }
 0x1a3   : > { %5197 = vmatmul.mubr.bf16.gmra.mrb[72].mxu0 %v8689_v29  ;;  %1231 = vst [vmem:[#allocation2 + $0xc4] sm:$0xf] %v1071_v39  ;;  %v2587_v30 = vrot.slane %v2586_v28, 4  ;;  %v3328_v36 = vrot.slane %v3326_v19, 5  ;;  %v3334_v34 = vrot.slane %v3332_v54, 5  ;;  %v3342_v29 = vshll.u32 %v3276_v14, 16 }
 0x1a4   : > { %5204 = vmatprep.mubr.bf16.mxu0 %v6256_v53  ;;  %v2582_v25 = vsel %vm8018_vm7, %v2577_v61, %v2581_v18  ;;  %v3338_v20 = vrot.slane %v3336_v1, 4  ;;  %v6242_v40 = vrot.slane %v2868_v0, 9  ;;  %v3002_v63 = vrot.slane %v2869_v17, 5  ;;  %v3279_v19 = vld [vmem:[#allocation2 + $0x2c] sm:$0x1]  ;;  %v8763_v54 = vpop.f32.mrb[6].mxu1 }
 0x1a5   : > { %v2592_v5 = vsel %vm8018_vm7, %v2587_v30, %v2591_v12  ;;  %v3329_v9 = vor.u32 %v3328_v36, %v3325_v24  ;;  %v3344_v47 = vrot.slane %v3342_v29, 5  ;;  %v3005_v32 = vrot.slane %v2870_v56, 5  ;;  %v3278_v12 = vld [vmem:[#allocation2 + $0x28] sm:$0xf]  ;;  %v2871_v24 = vld [vmem:[#allocation2 + $0x84] sm:$0xe] }
 0x1a6   : > { %v8753_v53 = vcombine.low %v2582_v25, %v2592_v5  ;;  %v3339_v45 = vor.u32 %v3338_v20, %v3334_v34  ;;  %v8757_v8 = vsel %vm8203_vm1, %v6242_v40, %v3002_v63  ;;  %v3004_v18 = vrot.slane %v3002_v63, 4  ;;  %v2872_v40 = vld [vmem:[#allocation2 + $0x88] sm:$0xf]  ;;  %v2873_v63 = vld [vmem:[#allocation2 + $0x8c] sm:$0x1] }
 0x1a7   : > { %v3330_v4 = vrot.slane %v3329_v9, 4  ;;  %v2594_v23 = vshrl.u32 %v2356_v49, 16  ;;  %v2597_v13 = vshll.u32 %v2356_v49, 16  ;;  %v2603_v14 = vshll.u32 %v2357_v50, 16 }
 0x1a8   : > { %v3340_v55 = vrot.slane %v3339_v45, 4  ;;  %v3006_v0 = vsel %vm8203_vm1, %v3004_v18, %v3005_v32  ;;  %v2607_v16 = vshrl.u32 %v2357_v50, 16  ;;  %v2613_v28 = vshll.u32 %v2358_v48, 16  ;;  %v2359_v48 = vld [vmem:[#allocation2 + $0x84] sm:$0xf] }
 0x1a9   : > { %v3335_v17 = vsel %vm8018_vm7, %v3330_v4, %v3334_v34  ;;  %v6258_v56 = vcombine.low %v8757_v8, %v3006_v0  ;;  %v2596_v39 = vrot.slane %v2594_v23, 4  ;;  %v2599_v61 = vrot.slane %v2597_v13, 5 }
 0x1aa   : > { %v7423_v1 = vld [vmem:[#allocation2 + $0xc0] sm:$0xff]   ;;  %v3345_v49 = vsel %vm8018_vm7, %v3340_v55, %v3344_v47  ;;  %v2605_v30 = vrot.slane %v2603_v14, 5  ;;  %v2609_v50 = vrot.slane %v2607_v16, 4  ;;  %v2615_v36 = vrot.slane %v2613_v28, 5  ;;  %v8774_v47 = vpop.f32.mrb[7].mxu1  ;;  %v7425_v28 = vld [vmem:[#allocation2 + $0x18] sm:$0xff]  }
 0x1ab   : > { %5205 = vmatmul.mubr.bf16.gmra.mrb[76].mxu0 %v8710_v42  ;;  %v6281_v29 = vcombine.low %v3335_v17, %v3345_v49  ;;  %v2600_v34 = vor.u32 %v2599_v61, %v2596_v39  ;;  %v3347_v25 = vshrl.u32 %v3277_v41, 16  ;;  %v3350_v20 = vshll.u32 %v3277_v41, 16  ;;  %5107 = vmatprep.mubr.bf16.mxu1 %v7423_v1  ;;  %v2360_v55 = vld [vmem:[#allocation2 + $0x88] sm:$0xf] }
 0x1ac   : > { %5212 = vmatprep.mubr.bf16.mxu0 %v6257_v3  ;;  %v2610_v5 = vor.u32 %v2609_v50, %v2605_v30  ;;  %v3356_v42 = vshll.u32 %v3278_v12, 16  ;;  %v3360_v9 = vshrl.u32 %v3278_v12, 16  ;;  %v3366_v32 = vshll.u32 %v3279_v19, 16  ;;  %5108 = vmatmul.mubr.bf16.gmra.mrb[76].mxu1 %v6200_v43  ;;  %v2361_v43 = vld [vmem:[#allocation2 + $0x8c] sm:$0x1] }
 0x1ad   : > { %v2601_v38 = vrot.slane %v2600_v34, 4  ;;  %v3349_v31 = vrot.slane %v3347_v25, 4  ;;  %v3352_v3 = vrot.slane %v3350_v20, 5  ;;  %v6243_v45 = vrot.slane %v2871_v24, 9  ;;  %5309 = vmatprep.mubr.bf16.mxu1 %v6281_v29  ;;  %v3280_v24 = vld [vmem:[#allocation2 + $0x30] sm:$0xf] }
 0x1ae   : > { %v2611_v8 = vrot.slane %v2610_v5, 4  ;;  %v3358_v18 = vrot.slane %v3356_v42, 5  ;;  %v3362_v41 = vrot.slane %v3360_v9, 4  ;;  %v3368_v4 = vrot.slane %v3366_v32, 5  ;;  %v3281_v29 = vld [vmem:[#allocation2 + $0x34] sm:$0xf] }
 0x1af   : > { %v2606_v23 = vsel %vm8018_vm7, %v2601_v38, %v2605_v30  ;;  %v3353_v13 = vor.u32 %v3352_v3, %v3349_v31  ;;  %v3009_v14 = vrot.slane %v2872_v40, 5  ;;  %v3012_v12 = vrot.slane %v2873_v63, 5  ;;  %v3282_v40 = vld [vmem:[#allocation2 + $0x38] sm:$0x1]  ;;  %v2874_v63 = vld [vmem:[#allocation2 + $0x90] sm:$0xe] }
 0x1b0   : > { %v2616_v62 = vsel %vm8018_vm7, %v2611_v8, %v2615_v36  ;;  %v3363_v26 = vor.u32 %v3362_v41, %v3358_v18  ;;  %v2618_v0 = vshrl.u32 %v2359_v48, 16  ;;  %v2621_v16 = vshll.u32 %v2359_v48, 16  ;;  %v2875_v32 = vld [vmem:[#allocation2 + $0x94] sm:$0xf]  ;;  %v2876_v48 = vld [vmem:[#allocation2 + $0x98] sm:$0x1] }
 0x1b1   : > { %v6226_v19 = vcombine.low %v2606_v23, %v2616_v62  ;;  %v3354_v17 = vrot.slane %v3353_v13, 4  ;;  %v3010_v39 = vsel %vm8203_vm1, %v6243_v45, %v3009_v14  ;;  %v3011_v61 = vrot.slane %v3009_v14, 4  ;;  %v8792_v38 = vpop.f32.mrb[8].mxu0  ;;  %v2362_v62 = vld [vmem:[#allocation2 + $0x90] sm:$0xf] }
 0x1b2   : > { %v3364_v1 = vrot.slane %v3363_v26, 4  ;;  %v2620_v49 = vrot.slane %v2618_v0, 4  ;;  %v2623_v30 = vrot.slane %v2621_v16, 5  ;;  %v2627_v50 = vshll.u32 %v2360_v55, 16  ;;  %v8794_v8 = vpop.f32.mrb[9].mxu0 }
 0x1b3   : > { %5213 = vmatmul.mubr.bf16.gmra.mrb[80].mxu0 %v8753_v53  ;;  %v3359_v36 = vsel %vm8018_vm7, %v3354_v17, %v3358_v18  ;;  %v3013_v34 = vsel %vm8203_vm1, %v3011_v61, %v3012_v12  ;;  %v2631_v25 = vshrl.u32 %v2360_v55, 16  ;;  %v2637_v20 = vshll.u32 %v2361_v43, 16  ;;  %v8796_v26 = vpop.f32.mrb[10].mxu0  ;;  %v2363_v17 = vld [vmem:[#allocation2 + $0x94] sm:$0xf]  ;;  %v7426_v61 = vld [vmem:[#allocation2 + $0x24] sm:$0xff]  }
 0x1b4   : > { %5220 = vmatprep.mubr.bf16.mxu0 %v6258_v56  ;;  %v3369_v5 = vsel %vm8018_vm7, %v3364_v1, %v3368_v4  ;;  %v6259_v53 = vcombine.low %v3010_v39, %v3013_v34  ;;  %v2624_v42 = vor.u32 %v2623_v30, %v2620_v49  ;;  %v2629_v9 = vrot.slane %v2627_v50, 5  ;;  %5310 = vmatmul.mubr.bf16.vlgmr.msra.gmra.mrb[80].mxu1 %v7425_v28  ;;  %v8800_v39 = vpop.f32.mrb[11].mxu0 }
 0x1b5   : > { %v6282_v56 = vcombine.low %v3359_v36, %v3369_v5  ;;  %v2633_v31 = vrot.slane %v2631_v25, 4  ;;  %v2639_v3 = vrot.slane %v2637_v20, 5  ;;  %v3371_v45 = vshrl.u32 %v3280_v24, 16 }
 0x1b6   : > { %v2625_v18 = vrot.slane %v2624_v42, 4  ;;  %v3374_v41 = vshll.u32 %v3280_v24, 16  ;;  %v3380_v23 = vshll.u32 %v3281_v29, 16  ;;  %v3384_v13 = vshrl.u32 %v3281_v29, 16  ;;  %v3283_v42 = vld [vmem:[#allocation2 + $0x3c] sm:$0xf] }
 0x1b7   : > { %5317 = vmatprep.mubr.bf16.mxu1 %v6282_v56  ;;  %v2634_v4 = vor.u32 %v2633_v31, %v2629_v9  ;;  %v3373_v14 = vrot.slane %v3371_v45, 4  ;;  %v3390_v12 = vshll.u32 %v3282_v40, 16  ;;  %v6244_v55 = vrot.slane %v2874_v63, 9  ;;  %v2364_v63 = vld [vmem:[#allocation2 + $0x98] sm:$0x1] }
 0x1b8   : > { %v2630_v43 = vsel %vm8018_vm7, %v2625_v18, %v2629_v9  ;;  %v3376_v0 = vrot.slane %v3374_v41, 5  ;;  %v3382_v16 = vrot.slane %v3380_v23, 5  ;;  %v3386_v28 = vrot.slane %v3384_v13, 4  ;;  %v3285_v41 = vld [vmem:[#allocation2 + $0x44] sm:$0x1] }
 0x1b9   : > { %v2635_v24 = vrot.slane %v2634_v4, 4  ;;  %v3392_v1 = vrot.slane %v3390_v12, 5  ;;  %v3016_v49 = vrot.slane %v2875_v32, 5  ;;  %v3019_v30 = vrot.slane %v2876_v48, 5  ;;  %v8806_v31 = vpop.f32.mrb[8].mxu1 }
 0x1ba   : > { %v3377_v50 = vor.u32 %v3376_v0, %v3373_v14  ;;  %v3387_v29 = vor.u32 %v3386_v28, %v3382_v16  ;;  %v2642_v36 = vshrl.u32 %v2362_v62, 16  ;;  %v2645_v34 = vshll.u32 %v2362_v62, 16  ;;  %v8810_v23 = vpop.f32.mrb[9].mxu1 }
 0x1bb   : > { %5221 = vmatmul.mubr.bf16.gmra.mrb[84].mxu0 %v6226_v19  ;;  %v2640_v25 = vsel %vm8018_vm7, %v2635_v24, %v2639_v3  ;;  %v3017_v20 = vsel %vm8203_vm1, %v6244_v55, %v3016_v49  ;;  %v3018_v40 = vrot.slane %v3016_v49, 4  ;;  %v2651_v5 = vshll.u32 %v2363_v17, 16  ;;  %v3284_v19 = vld [vmem:[#allocation2 + $0x40] sm:$0xf]  ;;  %v8816_v55 = vpop.f32.mrb[10].mxu1 }
 0x1bc   : > { %5228 = vmatprep.mubr.bf16.mxu0 %v6259_v53  ;;  %v6227_v9 = vcombine.low %v2630_v43, %v2640_v25  ;;  %v3378_v56 = vrot.slane %v3377_v50, 4  ;;  %v3388_v32 = vrot.slane %v3387_v29, 4  ;;  %v2644_v48 = vrot.slane %v2642_v36, 4  ;;  %5318 = vmatmul.mubr.bf16.gmra.mrb[84].mxu1 %v7426_v61  ;;  %v7428_v43 = vld [vmem:[#allocation2 + $0x30] sm:$0xff]   ;;  %v2877_v24 = vld [vmem:[#allocation2 + $0x9c] sm:$0xe] }
 0x1bd   : > { %v3020_v53 = vsel %vm8203_vm1, %v3018_v40, %v3019_v30  ;;  %v2647_v45 = vrot.slane %v2645_v34, 5  ;;  %v2653_v3 = vrot.slane %v2651_v5, 5  ;;  %v2655_v18 = vshrl.u32 %v2363_v17, 16  ;;  %v2878_v17 = vld [vmem:[#allocation2 + $0xa0] sm:$0xf]  ;;  %v8818_v40 = vpop.f32.mrb[11].mxu1 }
 0x1be   : > { %v3383_v13 = vsel %vm8018_vm7, %v3378_v56, %v3382_v16  ;;  %v3393_v4 = vsel %vm8018_vm7, %v3388_v32, %v3392_v1  ;;  %v6260_v14 = vcombine.low %v3017_v20, %v3020_v53  ;;  %v2661_v12 = vshll.u32 %v2364_v63, 16  ;;  %v2879_v36 = vld [vmem:[#allocation2 + $0xa4] sm:$0x1]  ;;  %v2365_v20 = vld [vmem:[#allocation2 + $0x9c] sm:$0xf] }
 0x1bf   : > { %v6283_v62 = vcombine.low %v3383_v13, %v3393_v4  ;;  %v2648_v0 = vor.u32 %v2647_v45, %v2644_v48  ;;  %v2657_v28 = vrot.slane %v2655_v18, 4  ;;  %v3395_v61 = vshrl.u32 %v3283_v42, 16  ;;  %v2366_v4 = vld [vmem:[#allocation2 + $0xa0] sm:$0xf] }
 0x1c0   : > { %v2663_v49 = vrot.slane %v2661_v12, 5  ;;  %v3398_v30 = vshll.u32 %v3283_v42, 16  ;;  %v3404_v50 = vshll.u32 %v3284_v19, 16  ;;  %v3408_v29 = vshrl.u32 %v3284_v19, 16 }
 0x1c1   : > { %5325 = vmatprep.mubr.bf16.mxu1 %v6283_v62  ;;  %v2649_v16 = vrot.slane %v2648_v0, 4  ;;  %v2658_v34 = vor.u32 %v2657_v28, %v2653_v3  ;;  %v3397_v1 = vrot.slane %v3395_v61, 4  ;;  %v3414_v25 = vshll.u32 %v3285_v41, 16  ;;  %v2367_v41 = vld [vmem:[#allocation2 + $0xa4] sm:$0x1] }
 0x1c2   : > { %v3400_v63 = vrot.slane %v3398_v30, 5  ;;  %v3406_v5 = vrot.slane %v3404_v50, 5  ;;  %v3410_v56 = vrot.slane %v3408_v29, 4  ;;  %v6245_v32 = vrot.slane %v2877_v24, 9  ;;  %v3286_v28 = vld [vmem:[#allocation2 + $0x48] sm:$0xf] }
 0x1c3   : > { %5229 = vmatmul.mubr.bf16.gmra.mrb[88].mxu0 %v6227_v9  ;;  %v2654_v42 = vsel %vm8018_vm7, %v2649_v16, %v2653_v3  ;;  %v2659_v48 = vrot.slane %v2658_v34, 4  ;;  %v3416_v19 = vrot.slane %v3414_v25, 5  ;;  %v3023_v53 = vrot.slane %v2878_v17, 5  ;;  %v3287_v3 = vld [vmem:[#allocation2 + $0x4c] sm:$0xf]  ;;  %v7429_v34 = vld [vmem:[#allocation2 + $0x3c] sm:$0xff]  }
 0x1c4   : > { %5236 = vmatprep.mubr.bf16.mxu0 %v6260_v14  ;;  %v3401_v45 = vor.u32 %v3400_v63, %v3397_v1  ;;  %v3411_v18 = vor.u32 %v3410_v56, %v3406_v5  ;;  %v3026_v13 = vrot.slane %v2879_v36, 5  ;;  %v2666_v12 = vshrl.u32 %v2365_v20, 16  ;;  %5326 = vmatmul.mubr.bf16.gmra.mrb[88].mxu1 %v7428_v43 }
 0x1c5   : > { %v2664_v9 = vsel %vm8018_vm7, %v2659_v48, %v2663_v49  ;;  %v3024_v62 = vsel %vm8203_vm1, %v6245_v32, %v3023_v53  ;;  %v3025_v14 = vrot.slane %v3023_v53, 4  ;;  %v2669_v0 = vshll.u32 %v2365_v20, 16  ;;  %v3288_v20 = vld [vmem:[#allocation2 + $0x50] sm:$0x1]  ;;  %v2880_v48 = vld [vmem:[#allocation2 + $0xa8] sm:$0xe] }
 0x1c6   : > { %v6228_v61 = vcombine.low %v2654_v42, %v2664_v9  ;;  %v3402_v24 = vrot.slane %v3401_v45, 4  ;;  %v3412_v17 = vrot.slane %v3411_v18, 4  ;;  %v2668_v30 = vrot.slane %v2666_v12, 4  ;;  %v2881_v53 = vld [vmem:[#allocation2 + $0xac] sm:$0xf] }
 0x1c7   : > { %v3027_v50 = vsel %vm8203_vm1, %v3025_v14, %v3026_v13  ;;  %v2671_v29 = vrot.slane %v2669_v0, 5  ;;  %v2675_v36 = vshll.u32 %v2366_v4, 16  ;;  %v2679_v43 = vshrl.u32 %v2366_v4, 16  ;;  %v2882_v12 = vld [vmem:[#allocation2 + $0xb0] sm:$0x1] }
 0x1c8   : > { %v3407_v49 = vsel %vm8018_vm7, %v3402_v24, %v3406_v5  ;;  %v3417_v16 = vsel %vm8018_vm7, %v3412_v17, %v3416_v19  ;;  %v6261_v1 = vcombine.low %v3024_v62, %v3027_v50  ;;  %v2685_v25 = vshll.u32 %v2367_v41, 16  ;;  %v2368_v41 = vld [vmem:[#allocation2 + $0xa8] sm:$0xf]  ;;  %v8832_v14 = vpop.f32.mrb[12].mxu0  ;;  %v2369_v50 = vld [vmem:[#allocation2 + $0xac] sm:$0xf] }
 0x1c9   : > { %v6284_v63 = vcombine.low %v3407_v49, %v3417_v16  ;;  %v2672_v56 = vor.u32 %v2671_v29, %v2668_v30  ;;  %v2677_v32 = vrot.slane %v2675_v36, 5  ;;  %v2681_v42 = vrot.slane %v2679_v43, 4  ;;  %v8836_v43 = vpop.f32.mrb[13].mxu0 }
 0x1ca   : > { %v2687_v45 = vrot.slane %v2685_v25, 5  ;;  %v3419_v18 = vshrl.u32 %v3286_v28, 16  ;;  %v3422_v13 = vshll.u32 %v3286_v28, 16  ;;  %v3428_v4 = vshll.u32 %v3287_v3, 16 }
 0x1cb   : > { %5237 = vmatmul.mubr.bf16.gmra.mrb[92].mxu0 %v6228_v61  ;;  %5333 = vmatprep.mubr.bf16.mxu1 %v6284_v63  ;;  %v2673_v5 = vrot.slane %v2672_v56, 4  ;;  %v2682_v19 = vor.u32 %v2681_v42, %v2677_v32  ;;  %v3432_v9 = vshrl.u32 %v3287_v3, 16  ;;  %v3438_v62 = vshll.u32 %v3288_v20, 16  ;;  %v8838_v20 = vpop.f32.mrb[14].mxu0 }
 0x1cc   : > { %5244 = vmatprep.mubr.bf16.mxu0 %v6261_v1  ;;  %v3421_v0 = vrot.slane %v3419_v18, 4  ;;  %v3424_v24 = vrot.slane %v3422_v13, 5  ;;  %v3430_v17 = vrot.slane %v3428_v4, 5  ;;  %v6246_v30 = vrot.slane %v2880_v48, 9  ;;  %5334 = vmatmul.mubr.bf16.gmra.mrb[92].mxu1 %v7429_v34  ;;  %v2370_v1 = vld [vmem:[#allocation2 + $0xb0] sm:$0x1] }
 0x1cd   : > { %v2678_v28 = vsel %vm8018_vm7, %v2673_v5, %v2677_v32  ;;  %v2683_v61 = vrot.slane %v2682_v19, 4  ;;  %v3434_v29 = vrot.slane %v3432_v9, 4  ;;  %v3440_v36 = vrot.slane %v3438_v62, 5  ;;  %v3289_v4 = vld [vmem:[#allocation2 + $0x54] sm:$0xf] }
 0x1ce   : > { %v3425_v49 = vor.u32 %v3424_v24, %v3421_v0  ;;  %v3030_v3 = vrot.slane %v2881_v53, 5  ;;  %v3033_v16 = vrot.slane %v2882_v12, 5  ;;  %v2690_v25 = vshrl.u32 %v2368_v41, 16  ;;  %v7431_v53 = vld [vmem:[#allocation2 + $0x48] sm:$0xff]   ;;  %v3290_v62 = vld [vmem:[#allocation2 + $0x58] sm:$0xf] }
 0x1cf   : > { %v2688_v63 = vsel %vm8018_vm7, %v2683_v61, %v2687_v45  ;;  %v3435_v56 = vor.u32 %v3434_v29, %v3430_v17  ;;  %v2693_v34 = vshll.u32 %v2368_v41, 16  ;;  %v2699_v42 = vshll.u32 %v2369_v50, 16  ;;  %v2883_v61 = vld [vmem:[#allocation2 + $0xb4] sm:$0xe] }
 0x1d0   : > { %v6229_v48 = vcombine.low %v2678_v28, %v2688_v63  ;;  %v3426_v32 = vrot.slane %v3425_v49, 4  ;;  %v3031_v18 = vsel %vm8203_vm1, %v6246_v30, %v3030_v3  ;;  %v3032_v13 = vrot.slane %v3030_v3, 4  ;;  %v3291_v28 = vld [vmem:[#allocation2 + $0x5c] sm:$0x1] }
 0x1d1   : > { %v3436_v5 = vrot.slane %v3435_v56, 4  ;;  %v2692_v12 = vrot.slane %v2690_v25, 4  ;;  %v2695_v19 = vrot.slane %v2693_v34, 5  ;;  %v2701_v9 = vrot.slane %v2699_v42, 5  ;;  %v2884_v25 = vld [vmem:[#allocation2 + $0xb8] sm:$0xf] }
 0x1d2   : > { %v3431_v45 = vsel %vm8018_vm7, %v3426_v32, %v3430_v17  ;;  %v3034_v41 = vsel %vm8203_vm1, %v3032_v13, %v3033_v16  ;;  %v2703_v0 = vshrl.u32 %v2369_v50, 16  ;;  %v2709_v24 = vshll.u32 %v2370_v1, 16  ;;  %v2885_v63 = vld [vmem:[#allocation2 + $0xbc] sm:$0x1]  ;;  %v8850_v56 = vpop.f32.mrb[15].mxu0  ;;  %v8852_v16 = vpop.f32.mrb[12].mxu1 }
 0x1d3   : > { %5245 = vmatmul.mubr.bf16.gmra.mrb[96].mxu0 %v6229_v48  ;;  %v3441_v30 = vsel %vm8018_vm7, %v3436_v5, %v3440_v36  ;;  %v6262_v29 = vcombine.low %v3031_v18, %v3034_v41  ;;  %v2696_v49 = vor.u32 %v2695_v19, %v2692_v12  ;;  %v3443_v3 = vshrl.u32 %v3289_v4, 16  ;;  %v2371_v32 = vld [vmem:[#allocation2 + $0xb4] sm:$0xf]  ;;  %9798 = vst [vmem:[#allocation23_spill] sm:$0xff] %v8852_v16  ;;  %v2372_v36 = vld [vmem:[#allocation2 + $0xb8] sm:$0xf] }
 0x1d4   : > { %v6285_v34 = vcombine.low %v3431_v45, %v3441_v30  ;;  %v2705_v42 = vrot.slane %v2703_v0, 4  ;;  %v2711_v17 = vrot.slane %v2709_v24, 5  ;;  %v3446_v48 = vshll.u32 %v3289_v4, 16  ;;  %v8854_v41 = vpop.f32.mrb[13].mxu1 }
 0x1d5   : > { %5252 = vmatprep.mubr.bf16.mxu0 %v6262_v29  ;;  %v2697_v50 = vrot.slane %v2696_v49, 4  ;;  %v3445_v1 = vrot.slane %v3443_v3, 4  ;;  %v3452_v13 = vshll.u32 %v3290_v62, 16  ;;  %v3456_v6 = vshrl.u32 %v3290_v62, 16  ;;  %9799 = vst [vmem:[#allocation24_spill] sm:$0xff] %v8854_v41  ;;  %v8858_v30 = vpop.f32.mrb[14].mxu1 }
 0x1d6   : > { %5341 = vmatprep.mubr.bf16.mxu1 %v6285_v34  ;;  %v2706_v18 = vor.u32 %v2705_v42, %v2701_v9  ;;  %v3448_v5 = vrot.slane %v3446_v48, 5  ;;  %v3462_v12 = vshll.u32 %v3291_v28, 16  ;;  %v6247_v19 = vrot.slane %v2883_v61, 9  ;;  %9800 = vst [vmem:[#allocation25_spill] sm:$0xff] %v8858_v30  ;;  %v8860_v34 = vpop.f32.mrb[15].mxu1 }
 0x1d7   : > { %5342 = vmatmul.mubr.bf16.gmra.mrb[96].mxu1 %v7431_v53  ;;  %v2702_v4 = vsel %vm8018_vm7, %v2697_v50, %v2701_v9  ;;  %v3454_v45 = vrot.slane %v3452_v13, 5  ;;  %v3458_v0 = vrot.slane %v3456_v6, 4  ;;  %v3037_v24 = vrot.slane %v2884_v25, 5  ;;  %9801 = vst [vmem:[#allocation26_spill] sm:$0xff] %v8860_v34  ;;  %v2373_v53 = vld [vmem:[#allocation2 + $0xbc] sm:$0x1] }
 0x1d8   : > { %v2707_v29 = vrot.slane %v2706_v18, 4  ;;  %v3449_v49 = vor.u32 %v3448_v5, %v3445_v1  ;;  %v3464_v62 = vrot.slane %v3462_v12, 5  ;;  %v3040_v3 = vrot.slane %v2885_v63, 5  ;;  %v3292_v13 = vld [vmem:[#allocation2 + $0x60] sm:$0xf]  ;;  %v8866_v18 = vpop.f32.mrb[16].mxu1 }
 0x1d9   : > { %v3459_v42 = vor.u32 %v3458_v0, %v3454_v45  ;;  %v3038_v28 = vsel %vm8203_vm1, %v6247_v19, %v3037_v24  ;;  %v3039_v61 = vrot.slane %v3037_v24, 4  ;;  %v2714_v48 = vshrl.u32 %v2371_v32, 16  ;;  %9802 = vst [vmem:[#allocation27_spill] sm:$0xff] %v8866_v18  ;;  %v3293_v0 = vld [vmem:[#allocation2 + $0x64] sm:$0xf]  ;;  %v7432_v24 = vld [vmem:[#allocation2 + $0x54] sm:$0xff]  }
 0x1da   : > { %v2712_v9 = vsel %vm8018_vm7, %v2707_v29, %v2711_v17  ;;  %v3450_v6 = vrot.slane %v3449_v49, 4  ;;  %v2717_v25 = vshll.u32 %v2371_v32, 16  ;;  %v2723_v50 = vshll.u32 %v2372_v36, 16  ;;  %v3294_v29 = vld [vmem:[#allocation2 + $0x68] sm:$0x1]  ;;  %v8874_v18 = vpop.f32.mrb[17].mxu1 }
 0x1db   : > { %v6230_v1 = vcombine.low %v2702_v4, %v2712_v9  ;;  %v3460_v63 = vrot.slane %v3459_v42, 4  ;;  %v3041_v5 = vsel %vm8203_vm1, %v3039_v61, %v3040_v3  ;;  %v2716_v12 = vrot.slane %v2714_v48, 4  ;;  %v462_v9 = vld [vmem:[#allocation2 + $0xc8] sm:$0x1] }
 0x1dc   : > { %v3455_v19 = vsel %vm8018_vm7, %v3450_v6, %v3454_v45  ;;  %v6263_v34 = vcombine.low %v3038_v28, %v3041_v5  ;;  %v2719_v30 = vrot.slane %v2717_v25, 5  ;;  %v2725_v17 = vrot.slane %v2723_v50, 5  ;;  %v2886_v5 = vld [vmem:[#allocation2 + $0xc0] sm:$0xe] }
 0x1dd   : > { %5253 = vmatmul.mubr.bf16.gmra.mrb[100].mxu0 %v6230_v1  ;;  %v3465_v32 = vsel %vm8018_vm7, %v3460_v63, %v3464_v62  ;;  %v2727_v49 = vshrl.u32 %v2372_v36, 16  ;;  %v2733_v4 = vshll.u32 %v2373_v53, 16  ;;  %v3467_v42 = vshrl.u32 %v3292_v13, 16  ;;  %v2887_v53 = vld [vmem:[#allocation2 + $0xc4] sm:$0xf] }
 0x1de   : > { %v6286_v3 = vcombine.low %v3455_v19, %v3465_v32  ;;  %5260 = vmatprep.mubr.bf16.mxu0 %v6263_v34  ;;  %v2720_v61 = vor.u32 %v2719_v30, %v2716_v12  ;;  %v3470_v48 = vshll.u32 %v3292_v13, 16  ;;  %v3476_v45 = vshll.u32 %v3293_v0, 16  ;;  %v2374_v13 = vld [vmem:[#allocation2 + $0xc0] sm:$0xf] }
 0x1df   : > { %v2729_v6 = vrot.slane %v2727_v49, 4  ;;  %v2735_v28 = vrot.slane %v2733_v4, 5  ;;  %v3469_v25 = vrot.slane %v3467_v42, 4  ;;  %v3480_v50 = vshrl.u32 %v3293_v0, 16  ;;  %v2375_v4 = vld [vmem:[#allocation2 + $0xc4] sm:$0xf] }
 0x1e0   : > { %5349 = vmatprep.mubr.bf16.mxu1 %v6286_v3  ;;  %v2721_v1 = vrot.slane %v2720_v61, 4  ;;  %v3472_v41 = vrot.slane %v3470_v48, 5  ;;  %v3478_v62 = vrot.slane %v3476_v45, 5  ;;  %v3486_v36 = vshll.u32 %v3294_v29, 16  ;;  %v3296_v45 = vld [vmem:[#allocation2 + $0x70] sm:$0xf] }
 0x1e1   : > { %5350 = vmatmul.mubr.bf16.gmra.mrb[100].mxu1 %v7432_v24  ;;  %v2730_v63 = vor.u32 %v2729_v6, %v2725_v17  ;;  %v3482_v16 = vrot.slane %v3480_v50, 4  ;;  %v8878_v34 = vadd.f32 %v8607_v11, %v8591_v57  ;;  %v8882_v30 = vadd.f32 %v8611_v44, %v8609_v33  ;;  %v8884_v12 = vpop.f32.mrb[16].mxu0 }
 0x1e2   : > { %v2726_v0 = vsel %vm8018_vm7, %v2721_v1, %v2725_v17  ;;  %v3473_v19 = vor.u32 %v3472_v41, %v3469_v25  ;;  %v3488_v29 = vrot.slane %v3486_v36, 5  ;;  %v463_v24 = vsel %vm8005_vm6, 0, %v462_v9  ;;  %v8890_v42 = vpop.f32.mrb[17].mxu0  ;;  %v3295_v41 = vld [vmem:[#allocation2 + $0x6c] sm:$0xf]  ;;  %v7434_v1 = vld [vmem:[#allocation2 + $0x60] sm:$0xff]  }
 0x1e3   : > { %v2731_v32 = vrot.slane %v2730_v63, 4  ;;  %v3483_v49 = vor.u32 %v3482_v16, %v3478_v62  ;;  %464 = vst [vmem:[#allocation2 + $0xc8] sm:$0x1] %v463_v24  ;;  %v6248_v57 = vrot.slane %v2886_v5, 9  ;;  %v3044_v11 = vrot.slane %v2887_v53, 5  ;;  %v8896_v61 = vpop.f32.mrb[18].mxu0 }
 0x1e4   : > { %v3474_v33 = vrot.slane %v3473_v19, 4  ;;  %v8894_v44 = vadd.f32 %v8684_v59, %v8675_v37  ;;  %v2738_v3 = vshrl.u32 %v2374_v13, 16  ;;  %v2741_v17 = vshll.u32 %v2374_v13, 16  ;;  %v8908_v50 = vpop.f32.mrb[19].mxu0  ;;  %v8910_v5 = vpop.f32.mrb[18].mxu1 }
 0x1e5   : > { %v2736_v21 = vsel %vm8018_vm7, %v2731_v32, %v2735_v28  ;;  %v3484_v16 = vrot.slane %v3483_v49, 4  ;;  %v8902_v9 = vsel %vm8203_vm1, %v6248_v57, %v3044_v11  ;;  %v8904_v48 = vrot.slane %v3044_v11, 4  ;;  %v3297_v13 = vld [vmem:[#allocation2 + $0x74] sm:$0x1]  ;;  %v3786_v32 = vld [vmem:[#allocation2 + $0x18] sm:$0xe] }
 0x1e6   : > { %9803 = vst [vmem:[#allocation28_spill] sm:$0xff] %v8894_v44  ;;  %v6231_v6 = vcombine.low %v2726_v0, %v2736_v21  ;;  %v3479_v37 = vsel %vm8018_vm7, %v3474_v33, %v3478_v62  ;;  %v2740_v59 = vrot.slane %v2738_v3, 4  ;;  %v2743_v25 = vrot.slane %v2741_v17, 5  ;;  %v3788_v3 = vld [vmem:[#allocation2 + $0x20] sm:$0x1] }
 0x1e7   : > { %v3489_v28 = vsel %vm8018_vm7, %v3484_v16, %v3488_v29  ;;  %v2747_v36 = vshll.u32 %v2375_v4, 16  ;;  %v2751_v53 = vshrl.u32 %v2375_v4, 16  ;;  %v8916_v63 = vadd.f32 %v8695_v58, %v8691_v52  ;;  %v3787_v29 = vld [vmem:[#allocation2 + $0x1c] sm:$0xf]  ;;  %v3789_v16 = vld [vmem:[#allocation2 + $0x24] sm:$0xe] }
 0x1e8   : > { %5261 = vmatmul.mubr.bf16.gmra.mrb[104].mxu0 %v6231_v6  ;;  %v6287_v0 = vcombine.low %v3479_v37, %v3489_v28  ;;  %v2744_v62 = vor.u32 %v2743_v25, %v2740_v59  ;;  %v3491_v19 = vshrl.u32 %v3295_v41, 16  ;;  %v3494_v24 = vshll.u32 %v3295_v41, 16  ;;  %v3790_v25 = vld [vmem:[#allocation2 + $0x28] sm:$0xf]  ;;  %v8927_v28 = vpop.f32.mrb[19].mxu1  ;;  %v9813_v44 = vld [vmem:[#allocation23_spill] sm:$0xff] }
 0x1e9   : > { %9804 = vst [vmem:[#allocation29_spill] sm:$0xff] %v8916_v63  ;;  %v8918_v49 = vrot.slane %v2747_v36, 5  ;;  %v2753_v57 = vrot.slane %v2751_v53, 4  ;;  %v3500_v11 = vshll.u32 %v3296_v45, 16  ;;  %v3504_v33 = vshrl.u32 %v3296_v45, 16 }
 0x1ea   : > { %5357 = vmatprep.mubr.bf16.mxu1 %v6287_v0  ;;  %v1232_v4 = vld [vmem:[#allocation2 + $0xc8] sm:$0x1]  ;;  %v8920_v17 = vrot.slane %v2744_v62, 4  ;;  %v3493_v52 = vrot.slane %v3491_v19, 4  ;;  %v3496_v58 = vrot.slane %v3494_v24, 5  ;;  %v3510_v21 = vshll.u32 %v3297_v13, 16 }
 0x1eb   : > { %5358 = vmatmul.mubr.bf16.gmra.mrb[104].mxu1 %v7434_v1  ;;  %v9805_v6 = vrot.slane %v8727_v7, 4  ;;  %v2754_v37 = vor.u32 %v2753_v57, %v8918_v49  ;;  %v3502_v59 = vrot.slane %v3500_v11, 5  ;;  %v3506_v45 = vrot.slane %v3504_v33, 4  ;;  %v3791_v13 = vld [vmem:[#allocation2 + $0x2c] sm:$0x1]  ;;  %v8955_v1 = vpop.f32.mrb[20].mxu1 }
 0x1ec   : > { %v8929_v36 = vpop.f32.mrb[20].mxu0  ;;  %v3497_v53 = vor.u32 %v3496_v58, %v3493_v52  ;;  %v3512_v7 = vrot.slane %v3510_v21, 5  ;;  %v8937_v10 = vadd.f32 %v8731_v22, %v8725_v15  ;;  %v3298_v0 = vld [vmem:[#allocation2 + $0x78] sm:$0xf]  ;;  %v8945_v57 = vadd.f32 %v8742_v51, %v8733_v27  ;;  %v3299_v33 = vld [vmem:[#allocation2 + $0x7c] sm:$0xf] }
 0x1ed   : > { %v1233_v41 = vsel %vm7999_vm4, %v9805_v6, %v1232_v4  ;;  %v8939_v62 = vpop.f32.mrb[21].mxu0  ;;  %v8941_v19 = vrot.slane %v2754_v37, 4  ;;  %v3507_v24 = vor.u32 %v3506_v45, %v3502_v59  ;;  %v6297_v11 = vrot.slane %v3786_v32, 9 }
 0x1ee   : > { %1234 = vst [vmem:[#allocation2 + $0xc8] sm:$0x1] %v1233_v41  ;;  %v3498_v4 = vrot.slane %v3497_v53, 4  ;;  %v3884_v52 = vrot.slane %v3787_v29, 5  ;;  %v3887_v58 = vrot.slane %v3788_v3, 5  ;;  %v8949_v15 = vadd.f32 %v8759_v46, %v8749_v60  ;;  %v8951_v22 = vpop.f32.mrb[22].mxu0 }
 0x1ef   : > { %v3508_v21 = vrot.slane %v3507_v24, 4  ;;  %v6298_v6 = vrot.slane %v3789_v16, 9  ;;  %v3891_v41 = vrot.slane %v3790_v25, 5  ;;  %v3894_v37 = vrot.slane %v3791_v13, 5  ;;  %v8953_v45 = vpop.f32.mrb[23].mxu0  ;;  %v8967_v46 = vpop.f32.mrb[21].mxu1 }
 0x1f0   : > { %9806 = vst [vmem:[#allocation30_spill] sm:$0xff] %v8949_v15  ;;  %v3503_v27 = vsel %vm8018_vm7, %v3498_v4, %v3502_v59  ;;  %v8961_v51 = vsel %vm8203_vm1, %v6297_v11, %v3884_v52  ;;  %v3886_v32 = vrot.slane %v3884_v52, 4  ;;  %v8965_v60 = vadd.f32 %v8774_v47, %v8763_v54  ;;  %v7435_v3 = vld [vmem:[#allocation2 + $0x6c] sm:$0xff]   ;;  %v3300_v24 = vld [vmem:[#allocation2 + $0x80] sm:$0x1]  ;;  %v8987_v15 = vpop.f32.mrb[22].mxu1 }
 0x1f1   : > { %v3513_v29 = vsel %vm8018_vm7, %v3508_v21, %v3512_v7  ;;  %v8973_v16 = vsel %vm8203_vm1, %v6298_v6, %v3891_v41  ;;  %v3893_v59 = vrot.slane %v3891_v41, 4  ;;  %v3515_v25 = vshrl.u32 %v3298_v0, 16  ;;  %v3792_v11 = vld [vmem:[#allocation2 + $0x30] sm:$0xe] }
 0x1f2   : > { %9807 = vst [vmem:[#allocation31_spill] sm:$0xff] %v8965_v60  ;;  %v6288_v53 = vcombine.low %v3503_v27, %v3513_v29  ;;  %v8977_v13 = vsel %vm8203_vm1, %v3886_v32, %v3887_v58  ;;  %v3518_v54 = vshll.u32 %v3298_v0, 16  ;;  %v3524_v47 = vshll.u32 %v3299_v33, 16  ;;  %v3793_v27 = vld [vmem:[#allocation2 + $0x34] sm:$0xf] }
 0x1f3   : > { %v6313_v7 = vcombine.low %v8961_v51, %v8977_v13  ;;  %v8983_v21 = vsel %vm8203_vm1, %v3893_v59, %v3894_v37  ;;  %v3517_v6 = vrot.slane %v3515_v25, 4  ;;  %v3528_v41 = vshrl.u32 %v3299_v33, 16  ;;  %v3794_v32 = vld [vmem:[#allocation2 + $0x38] sm:$0x1]  ;;  %v3795_v33 = vld [vmem:[#allocation2 + $0x3c] sm:$0xe] }
 0x1f4   : > { %5365 = vmatprep.mubr.bf16.mxu1 %v6288_v53  ;;  %v3520_v58 = vrot.slane %v3518_v54, 5  ;;  %v3526_v63 = vrot.slane %v3524_v47, 5  ;;  %v3534_v13 = vshll.u32 %v3300_v24, 16  ;;  %v8991_v37 = vadd.f32 %v8794_v8, %v8792_v38  ;;  %v8993_v59 = vpop.f32.mrb[23].mxu1 }
 0x1f5   : > { %v2888_v4 = vld [vmem:[#allocation2 + $0xc8] sm:$0x1]  ;;  %5366 = vmatmul.mubr.bf16.gmra.mrb[108].mxu1 %v7435_v3  ;;  %v3530_v51 = vrot.slane %v3528_v41, 4  ;;  %v3796_v3 = vld [vmem:[#allocation2 + $0x40] sm:$0xf]  ;;  %v9002_v47 = vpop.f32.mrb[24].mxu1 }
 0x1f6   : > { %v2376_v52 = vld [vmem:[#allocation2 + $0xc8] sm:$0x1]  ;;  %v3047_v29 = vrot.slane %v2888_v4, 5  ;;  %v3521_v54 = vor.u32 %v3520_v58, %v3517_v6  ;;  %v9000_v4 = vadd.f32 %v8800_v39, %v8796_v26  ;;  %v3536_v8 = vrot.slane %v3534_v13, 5  ;;  %v3797_v41 = vld [vmem:[#allocation2 + $0x44] sm:$0x1] }
 0x1f7   : > { %v2757_v60 = vshll.u32 %v2376_v52, 16  ;;  %v3531_v38 = vor.u32 %v3530_v51, %v3526_v63  ;;  %v6299_v52 = vrot.slane %v3792_v11, 9  ;;  %v3901_v6 = vrot.slane %v3794_v32, 5  ;;  %v9008_v58 = vpop.f32.mrb[25].mxu1  ;;  %v7436_v11 = vld [vmem:[#allocation2 + $0x78] sm:$0xff]  }
 0x1f8   : > { %v3048_v25 = vsel %vm8203_vm1, %v8904_v48, %v3047_v29  ;;  %v3522_v48 = vrot.slane %v3521_v54, 4  ;;  %v3301_v29 = vld [vmem:[#allocation2 + $0x84] sm:$0xf]  ;;  %v9808_v26 = vsel %vm8018_vm7, %v8920_v17, %v8918_v49  ;;  %v9017_v51 = vadd.f32 %v8810_v23, %v8806_v31  ;;  %v3303_v54 = vld [vmem:[#allocation2 + $0x8c] sm:$0x1] }
 0x1f9   : > { %v2759_v53 = vrot.slane %v2757_v60, 5  ;;  %v6264_v24 = vcombine.low %v8902_v9, %v3048_v25  ;;  %v3898_v60 = vrot.slane %v3793_v27, 5  ;;  %v3532_v9 = vrot.slane %v3531_v38, 4 }
 0x1fa   : > { %9809 = vst [vmem:[#allocation32_spill] sm:$0xff] %v9017_v51  ;;  %v3527_v27 = vsel %vm8018_vm7, %v3522_v48, %v3526_v63  ;;  %v3905_v25 = vrot.slane %v3796_v3, 5  ;;  %v3908_v17 = vrot.slane %v3797_v41, 5  ;;  %v9029_v31 = vadd.f32 %v8818_v40, %v8816_v55  ;;  %v3799_v63 = vld [vmem:[#allocation2 + $0x4c] sm:$0xf] }
 0x1fb   : > { %v2760_v0 = vsel %vm8018_vm7, %v8941_v19, %v2759_v53  ;;  %5268 = vmatprep.mubr.bf16.mxu0 %v6264_v24  ;;  %v6300_v19 = vrot.slane %v3795_v33, 9  ;;  %v9023_v32 = vsel %vm8203_vm1, %v6299_v52, %v3898_v60  ;;  %v3900_v13 = vrot.slane %v3898_v60, 4  ;;  %v3302_v53 = vld [vmem:[#allocation2 + $0x88] sm:$0xf]  ;;  %v9033_v24 = vpop.f32.mrb[26].mxu1 }
 0x1fc   : > { %v6232_v39 = vcombine.low %v9808_v26, %v2760_v0  ;;  %v3537_v49 = vsel %vm8018_vm7, %v3532_v9, %v3536_v8  ;;  %9810 = vst [vmem:[#allocation33_spill] sm:$0xff] %v9029_v31  ;;  %v3539_v23 = vshrl.u32 %v3301_v29, 16  ;;  %v3798_v0 = vld [vmem:[#allocation2 + $0x48] sm:$0xe]  ;;  %v9031_v33 = vpop.f32.mrb[24].mxu0  ;;  %v3907_v52 = vrot.slane %v3905_v25, 4 }
 0x1fd   : > { %v6289_v3 = vcombine.low %v3527_v27, %v3537_v49  ;;  %v3902_v38 = vsel %vm8203_vm1, %v3900_v13, %v3901_v6  ;;  %v9039_v8 = vsel %vm8203_vm1, %v6300_v19, %v3905_v25  ;;  %v3800_v41 = vld [vmem:[#allocation2 + $0x50] sm:$0x1]  ;;  %v3801_v55 = vld [vmem:[#allocation2 + $0x54] sm:$0xe]  ;;  %v9041_v40 = vpop.f32.mrb[25].mxu0  ;;  %v9043_v48 = vpop.f32.mrb[27].mxu1  ;;  %v9054_v25 = vadd.f32 %v8836_v43, %v8832_v14 }
 0x1fe   : > { %5269 = vmatmul.mubr.bf16.gmra.mrb[108].mxu0 %v6232_v39  ;;  %v6315_v60 = vcombine.low %v9023_v32, %v3902_v38  ;;  %v3541_v26 = vrot.slane %v3539_v23, 4  ;;  %v3542_v39 = vshll.u32 %v3301_v29, 16  ;;  %v3802_v9 = vld [vmem:[#allocation2 + $0x58] sm:$0xf]  ;;  %v9046_v27 = vpop.f32.mrb[26].mxu0  ;;  %v9050_v6 = vsel %vm8203_vm1, %v3907_v52, %v3908_v17  ;;  %v9058_v32 = vpop.f32.mrb[28].mxu1 }
 0x1ff   : > { %7168 = vmatprep.mubr.bf16.mxu0 %v6313_v7  ;;  %v3548_v7 = vshll.u32 %v3302_v53, 16  ;;  %5373 = vmatprep.mubr.bf16.mxu1 %v6289_v3  ;;  %v3552_v19 = vshrl.u32 %v3302_v53, 16  ;;  %v3558_v13 = vshll.u32 %v3303_v54, 16  ;;  %9811 = vst [vmem:[#allocation34_spill] sm:$0xff] %v9054_v25  ;;  %v9056_v49 = vpop.f32.mrb[27].mxu0  ;;  %9812 = vst [vmem:[#allocation35_spill] sm:$0xff] %v9058_v32  ;;  %v9064_v17 = vadd.f32 %v8850_v56, %v8838_v20 }
 0x200   : > { %5374 = vmatmul.mubr.bf16.gmra.mrb[112].mxu1 %v7436_v11  ;;  %v3544_v23 = vrot.slane %v3542_v39, 5  ;;  %v3803_v53 = vld [vmem:[#allocation2 + $0x5c] sm:$0x1]  ;;  %v6301_v52 = vrot.slane %v3798_v0, 9  ;;  %v3912_v14 = vrot.slane %v3799_v63, 5  ;;  %v3915_v51 = vrot.slane %v3800_v41, 5 }
 0x201   : > { %v3550_v3 = vrot.slane %v3548_v7, 5  ;;  %v3554_v54 = vrot.slane %v3552_v19, 4  ;;  %v3560_v38 = vrot.slane %v3558_v13, 5  ;;  %v3304_v43 = vld [vmem:[#allocation2 + $0x90] sm:$0xf]  ;;  %v9814_v25 = vld [vmem:[#allocation24_spill] sm:$0xff]  ;;  %v9816_v0 = vcombine.low %v8973_v16, %v8983_v21 }
 0x202   : > { %v3545_v31 = vor.u32 %v3544_v23, %v3541_v26  ;;  %v9068_v11 = vadd.f32 %v9814_v25, %v9813_v44  ;;  %v6302_v32 = vrot.slane %v3801_v55, 9  ;;  %v9070_v29 = vpop.f32.mrb[29].mxu1  ;;  %v9074_v20 = vsel %vm8203_vm1, %v6301_v52, %v3912_v14  ;;  %v3305_v19 = vld [vmem:[#allocation2 + $0x94] sm:$0xf]  ;;  %v9818_v44 = vld [vmem:[#allocation26_spill] sm:$0xff]  ;;  %v7437_v52 = vld [vmem:[#allocation2 + $0x84] sm:$0xff]  }
 0x203   : > { %v3555_v39 = vor.u32 %v3554_v54, %v3550_v3  ;;  %v3914_v56 = vrot.slane %v3912_v14, 4  ;;  %v3919_v7 = vrot.slane %v3802_v9, 5  ;;  %v3922_v41 = vrot.slane %v3803_v53, 5  ;;  %v9817_v26 = vld [vmem:[#allocation25_spill] sm:$0xff]  ;;  %v3306_v55 = vld [vmem:[#allocation2 + $0x98] sm:$0x1] }
 0x204   : > { %9815 = vst [vmem:[#allocation23_spill] sm:$0xff] %v9068_v11  ;;  %v3546_v63 = vrot.slane %v3545_v31, 4  ;;  %v9081_v13 = vadd.f32 %v9818_v44, %v9817_v26  ;;  %v3563_v25 = vshrl.u32 %v3304_v43, 16  ;;  %v9083_v23 = vpop.f32.mrb[30].mxu1  ;;  %v3804_v31 = vld [vmem:[#allocation2 + $0x60] sm:$0xe] }
 0x205   : > { %v3556_v54 = vrot.slane %v3555_v39, 4  ;;  %v3916_v9 = vsel %vm8203_vm1, %v3914_v56, %v3915_v51  ;;  %v9089_v16 = vsel %vm8203_vm1, %v6302_v32, %v3919_v7  ;;  %v3921_v21 = vrot.slane %v3919_v7, 4  ;;  %v9091_v53 = vpop.f32.mrb[31].mxu1  ;;  %v3805_v39 = vld [vmem:[#allocation2 + $0x64] sm:$0xf] }
 0x206   : > { %7169 = vmatmul.mubr.bf16.vlgmr.msra.gmra.mrb[112].mxu0 %v9816_v0  ;;  %9819 = vst [vmem:[#allocation24_spill] sm:$0xff] %v9081_v13  ;;  %v3551_v14 = vsel %vm8018_vm7, %v3546_v63, %v3550_v3  ;;  %v6317_v0 = vcombine.low %v9074_v20, %v3916_v9  ;;  %v3565_v26 = vrot.slane %v3563_v25, 4  ;;  %v3806_v44 = vld [vmem:[#allocation2 + $0x68] sm:$0x1]  ;;  %v3572_v56 = vshll.u32 %v3305_v19, 16  ;;  %v9104_v25 = vpop.f32.mrb[32].mxu1 }
 0x207   : > { %7172 = vmatprep.mubr.bf16.mxu0 %v6315_v60  ;;  %v3566_v60 = vshll.u32 %v3304_v43, 16  ;;  %v3561_v51 = vsel %vm8018_vm7, %v3556_v54, %v3560_v38  ;;  %v9100_v32 = vsel %vm8203_vm1, %v3921_v21, %v3922_v41  ;;  %v3576_v7 = vshrl.u32 %v3305_v19, 16  ;;  %v3807_v20 = vld [vmem:[#allocation2 + $0x6c] sm:$0xe]  ;;  %v3808_v19 = vld [vmem:[#allocation2 + $0x70] sm:$0xf] }
 0x208   : > { %v6290_v13 = vcombine.low %v3551_v14, %v3561_v51  ;;  %v3582_v63 = vshll.u32 %v3306_v55, 16  ;;  %v3574_v43 = vrot.slane %v3572_v56, 5  ;;  %v9108_v38 = vadd.f32 %v8890_v42, %v8884_v12  ;;  %v3809_v54 = vld [vmem:[#allocation2 + $0x74] sm:$0x1]  ;;  %v9116_v11 = vpop.f32.mrb[33].mxu1  ;;  %v9822_v12 = vld [vmem:[#allocation27_spill] sm:$0xff] }
 0x209   : > { %v3568_v3 = vrot.slane %v3566_v60, 5  ;;  %v3578_v9 = vrot.slane %v3576_v7, 4  ;;  %v9112_v41 = vadd.f32 %v8908_v50, %v8896_v61  ;;  %v6303_v60 = vrot.slane %v3804_v31, 9  ;;  %v9114_v51 = vpop.f32.mrb[28].mxu0  ;;  %v3307_v61 = vld [vmem:[#allocation2 + $0x9c] sm:$0xf] }
 0x20a   : > { %9820 = vst [vmem:[#allocation25_spill] sm:$0xff] %v9108_v38  ;;  %5381 = vmatprep.mubr.bf16.mxu1 %v6290_v13  ;;  %v3584_v14 = vrot.slane %v3582_v63, 5  ;;  %v3926_v55 = vrot.slane %v3805_v39, 5  ;;  %v3929_v7 = vrot.slane %v3806_v44, 5  ;;  %v6810_v42 = vadd.f32 %v8874_v18, %v9822_v12  ;;  %v9120_v50 = vpop.f32.mrb[29].mxu0  ;;  %v7438_v63 = vld [vmem:[#allocation2 + $0x90] sm:$0xff]  }
 0x20b   : > { %9821 = vst [vmem:[#allocation26_spill] sm:$0xff] %v9112_v41  ;;  %v3569_v21 = vor.u32 %v3568_v3, %v3565_v26  ;;  %5382 = vmatmul.mubr.bf16.gmra.mrb[116].mxu1 %v7437_v52  ;;  %v3579_v56 = vor.u32 %v3578_v9, %v3574_v43  ;;  %v6304_v38 = vrot.slane %v3807_v20, 9  ;;  %v9122_v41 = vpop.f32.mrb[34].mxu1  ;;  %v9823_v13 = vcombine.low %v9039_v8, %v9050_v6  ;;  %v3308_v44 = vld [vmem:[#allocation2 + $0xa0] sm:$0xf]  ;;  %v9129_v3 = vpop.f32.mrb[30].mxu0 }
 0x20c   : > { %v3927_v26 = vsel %vm8203_vm1, %v6303_v60, %v3926_v55  ;;  %v3928_v52 = vrot.slane %v3926_v55, 4  ;;  %v3933_v39 = vrot.slane %v3808_v19, 5  ;;  %v9132_v20 = vadd.f32 %v6810_v42, %v8878_v34  ;;  %v3309_v6 = vld [vmem:[#allocation2 + $0xa4] sm:$0x1]  ;;  %v9138_v12 = vpop.f32.mrb[35].mxu1 }
 0x20d   : > { %v3570_v31 = vrot.slane %v3569_v21, 4  ;;  %v3580_v18 = vrot.slane %v3579_v56, 4  ;;  %v3936_v9 = vrot.slane %v3809_v54, 5  ;;  %v6813_v8 = vadd.f32 %v8927_v28, %v8910_v5  ;;  %v9136_v21 = vpop.f32.mrb[31].mxu0  ;;  %v3810_v54 = vld [vmem:[#allocation2 + $0x78] sm:$0xe] }
 0x20e   : > { %7173 = vmatmul.mubr.bf16.gmra.mrb[116].mxu0 %v9823_v13  ;;  %9824 = vst [vmem:[#allocation27_spill] sm:$0xff] %v9132_v20  ;;  %v9146_v60 = vsel %vm8203_vm1, %v6304_v38, %v3933_v39  ;;  %v3935_v34 = vrot.slane %v3933_v39, 4  ;;  %v3811_v55 = vld [vmem:[#allocation2 + $0x7c] sm:$0xf]  ;;  %v9148_v56 = vpop.f32.mrb[36].mxu1  ;;  %v3596_v39 = vshll.u32 %v3308_v44, 16 }
 0x20f   : > { %7176 = vmatprep.mubr.bf16.mxu0 %v6317_v0  ;;  %v3575_v19 = vsel %vm8018_vm7, %v3570_v31, %v3574_v43  ;;  %v3930_v0 = vsel %vm8203_vm1, %v3928_v52, %v3929_v7  ;;  %v3585_v5 = vsel %vm8018_vm7, %v3580_v18, %v3584_v14  ;;  %v9153_v42 = vadd.f32 %v6813_v8, %v8882_v30  ;;  %v3812_v13 = vld [vmem:[#allocation2 + $0x80] sm:$0x1]  ;;  %v9155_v31 = vpop.f32.mrb[37].mxu1  ;;  %v3813_v8 = vld [vmem:[#allocation2 + $0x84] sm:$0xe] }
 0x210   : > { %v6319_v28 = vcombine.low %v3927_v26, %v3930_v0  ;;  %v3587_v43 = vshrl.u32 %v3307_v61, 16  ;;  %v6291_v7 = vcombine.low %v3575_v19, %v3585_v5  ;;  %v9159_v38 = vsel %vm8203_vm1, %v3935_v34, %v3936_v9  ;;  %v9161_v20 = vpop.f32.mrb[38].mxu1  ;;  %v3814_v34 = vld [vmem:[#allocation2 + $0x88] sm:$0xf]  ;;  %v3815_v14 = vld [vmem:[#allocation2 + $0x8c] sm:$0x1] }
 0x211   : > { %9825 = vst [vmem:[#allocation36_spill] sm:$0xff] %v9153_v42  ;;  %v3590_v52 = vshll.u32 %v3307_v61, 16  ;;  %v3600_v18 = vshrl.u32 %v3308_v44, 16  ;;  %v3606_v30 = vshll.u32 %v3309_v6, 16  ;;  %v9165_v0 = vpop.f32.mrb[39].mxu1  ;;  %v3598_v19 = vrot.slane %v3596_v39, 5 }
 0x212   : > { %v3589_v26 = vrot.slane %v3587_v43, 4  ;;  %5389 = vmatprep.mubr.bf16.mxu1 %v6291_v7  ;;  %v9169_v9 = vadd.f32 %v8939_v62, %v8929_v36  ;;  %v9173_v61 = vadd.f32 %v8953_v45, %v8951_v22  ;;  %v6305_v44 = vrot.slane %v3810_v54, 9 }
 0x213   : > { %v3592_v42 = vrot.slane %v3590_v52, 5  ;;  %5390 = vmatmul.mubr.bf16.gmra.mrb[120].mxu1 %v7438_v63  ;;  %v3602_v5 = vrot.slane %v3600_v18, 4  ;;  %v3608_v43 = vrot.slane %v3606_v30, 5  ;;  %v3940_v6 = vrot.slane %v3811_v55, 5  ;;  %v3310_v55 = vld [vmem:[#allocation2 + $0xa8] sm:$0xf] }
 0x214   : > { %9826 = vst [vmem:[#allocation37_spill] sm:$0xff] %v9169_v9  ;;  %v9827_v7 = vcombine.low %v9089_v16, %v9100_v32  ;;  %v3943_v39 = vrot.slane %v3812_v13, 5  ;;  %v6816_v36 = vadd.f32 %v8967_v46, %v8955_v1  ;;  %v6306_v62 = vrot.slane %v3813_v8, 9  ;;  %v9180_v9 = vpop.f32.mrb[32].mxu0  ;;  %v3311_v46 = vld [vmem:[#allocation2 + $0xac] sm:$0xf] }
 0x215   : > { %v3593_v52 = vor.u32 %v3592_v42, %v3589_v26  ;;  %v3603_v22 = vor.u32 %v3602_v5, %v3598_v19  ;;  %v3941_v45 = vsel %vm8203_vm1, %v6305_v44, %v3940_v6  ;;  %v3942_v63 = vrot.slane %v3940_v6, 4  ;;  %v9184_v18 = vpop.f32.mrb[33].mxu0  ;;  %v3816_v44 = vld [vmem:[#allocation2 + $0x90] sm:$0xe]  ;;  %v3817_v6 = vld [vmem:[#allocation2 + $0x94] sm:$0xf] }
 0x216   : > { %7177 = vmatmul.mubr.bf16.gmra.mrb[120].mxu0 %v9827_v7  ;;  %v3947_v54 = vrot.slane %v3814_v34, 5  ;;  %v9187_v32 = vadd.f32 %v6816_v36, %v8937_v10  ;;  %v3950_v42 = vrot.slane %v3815_v14, 5  ;;  %v6819_v1 = vadd.f32 %v8993_v59, %v8987_v15  ;;  %v9191_v13 = vpop.f32.mrb[34].mxu0  ;;  %v3312_v34 = vld [vmem:[#allocation2 + $0xb0] sm:$0x1] }
 0x217   : > { %7180 = vmatprep.mubr.bf16.mxu0 %v6319_v28  ;;  %v3594_v16 = vrot.slane %v3593_v52, 4  ;;  %v3604_v28 = vrot.slane %v3603_v22, 4  ;;  %v3944_v26 = vsel %vm8203_vm1, %v3942_v63, %v3943_v39  ;;  %v9199_v5 = vpop.f32.mrb[35].mxu0  ;;  %v3611_v59 = vshrl.u32 %v3310_v55, 16  ;;  %v7439_v52 = vld [vmem:[#allocation2 + $0x9c] sm:$0xff]   ;;  %v9212_v63 = vpop.f32.mrb[40].mxu1 }
 0x218   : > { %9828 = vst [vmem:[#allocation38_spill] sm:$0xff] %v9187_v32  ;;  %v9197_v30 = vsel %vm8203_vm1, %v6306_v62, %v3947_v54  ;;  %v3949_v8 = vrot.slane %v3947_v54, 4  ;;  %v6321_v14 = vcombine.low %v3941_v45, %v3944_v26  ;;  %v9204_v15 = vadd.f32 %v6819_v1, %v8945_v57  ;;  %v3818_v22 = vld [vmem:[#allocation2 + $0x98] sm:$0x1]  ;;  %v9216_v1 = vpop.f32.mrb[41].mxu1 }
 0x219   : > { %v3599_v10 = vsel %vm8018_vm7, %v3594_v16, %v3598_v19  ;;  %v3609_v7 = vsel %vm8018_vm7, %v3604_v28, %v3608_v43  ;;  %v3614_v36 = vshll.u32 %v3310_v55, 16  ;;  %v3620_v62 = vshll.u32 %v3311_v46, 16  ;;  %v3819_v16 = vld [vmem:[#allocation2 + $0x9c] sm:$0xe]  ;;  %v3820_v55 = vld [vmem:[#allocation2 + $0xa0] sm:$0xf] }
 0x21a   : > { %9829 = vst [vmem:[#allocation39_spill] sm:$0xff] %v9204_v15  ;;  %v9210_v39 = vsel %vm8203_vm1, %v3949_v8, %v3950_v42  ;;  %v6292_v19 = vcombine.low %v3599_v10, %v3609_v7  ;;  %v3613_v45 = vrot.slane %v3611_v59, 4  ;;  %v3624_v54 = vshrl.u32 %v3311_v46, 16  ;;  %v9222_v8 = vpop.f32.mrb[42].mxu1  ;;  %v9834_v32 = vld [vmem:[#allocation34_spill] sm:$0xff] }
 0x21b   : > { %v6322_v57 = vcombine.low %v9197_v30, %v9210_v39  ;;  %v3616_v43 = vrot.slane %v3614_v36, 5  ;;  %v3622_v28 = vrot.slane %v3620_v62, 5  ;;  %v3630_v26 = vshll.u32 %v3312_v34, 16  ;;  %v3821_v34 = vld [vmem:[#allocation2 + $0xa4] sm:$0x1]  ;;  %v9231_v39 = vpop.f32.mrb[43].mxu1 }
 0x21c   : > { %v9220_v42 = vadd.f32 %v9041_v40, %v9031_v33  ;;  %v9830_v10 = vcombine.low %v9146_v60, %v9159_v38  ;;  %5397 = vmatprep.mubr.bf16.mxu1 %v6292_v19  ;;  %v3626_v30 = vrot.slane %v3624_v54, 4  ;;  %v9229_v46 = vadd.f32 %v9056_v49, %v9046_v27  ;;  %v3313_v38 = vld [vmem:[#allocation2 + $0xb4] sm:$0xf] }
 0x21d   : > { %v6307_v59 = vrot.slane %v3816_v44, 9  ;;  %v3954_v7 = vrot.slane %v3817_v6, 5  ;;  %5398 = vmatmul.mubr.bf16.gmra.mrb[124].mxu1 %v7439_v52  ;;  %v3617_v33 = vor.u32 %v3616_v43, %v3613_v45  ;;  %v3632_v40 = vrot.slane %v3630_v26, 5  ;;  %v3822_v26 = vld [vmem:[#allocation2 + $0xa8] sm:$0xe] }
 0x21e   : > { %7181 = vmatmul.mubr.bf16.gmra.mrb[124].mxu0 %v9830_v10  ;;  %v3957_v36 = vrot.slane %v3818_v22, 5  ;;  %v6822_v60 = vadd.f32 %v9008_v58, %v9002_v47  ;;  %v3627_v62 = vor.u32 %v3626_v30, %v3622_v28  ;;  %v6308_v49 = vrot.slane %v3819_v16, 9  ;;  %v3315_v58 = vld [vmem:[#allocation2 + $0xbc] sm:$0x1]  ;;  %v7440_v10 = vld [vmem:[#allocation2 + $0xa8] sm:$0xff]  }
 0x21f   : > { %7184 = vmatprep.mubr.bf16.mxu0 %v6321_v14  ;;  %v3955_v19 = vsel %vm8203_vm1, %v6307_v59, %v3954_v7  ;;  %v3956_v27 = vrot.slane %v3954_v7, 4  ;;  %v3618_v44 = vrot.slane %v3617_v33, 4  ;;  %v3961_v54 = vrot.slane %v3820_v55, 5  ;;  %v3314_v14 = vld [vmem:[#allocation2 + $0xb8] sm:$0xf] }
 0x220   : > { %v9238_v6 = vadd.f32 %v6822_v60, %v8991_v37  ;;  %v3964_v52 = vrot.slane %v3821_v34, 5  ;;  %v3628_v45 = vrot.slane %v3627_v62, 4  ;;  %v6825_v47 = vadd.f32 %v9043_v48, %v9033_v24  ;;  %v3823_v59 = vld [vmem:[#allocation2 + $0xac] sm:$0xf]  ;;  %v3824_v7 = vld [vmem:[#allocation2 + $0xb0] sm:$0x1] }
 0x221   : > { %v3958_v22 = vsel %vm8203_vm1, %v3956_v27, %v3957_v36  ;;  %v3635_v43 = vshrl.u32 %v3313_v38, 16  ;;  %v3623_v16 = vsel %vm8018_vm7, %v3618_v44, %v3622_v28  ;;  %v9248_v37 = vsel %vm8203_vm1, %v6308_v49, %v3961_v54  ;;  %v3825_v36 = vld [vmem:[#allocation2 + $0xb4] sm:$0xe]  ;;  %v9257_v28 = vpop.f32.mrb[44].mxu1  ;;  %v3826_v44 = vld [vmem:[#allocation2 + $0xb8] sm:$0xf] }
 0x222   : > { %9831 = vst [vmem:[#allocation40_spill] sm:$0xff] %v9238_v6  ;;  %v6323_v30 = vcombine.low %v3955_v19, %v3958_v22  ;;  %v3963_v55 = vrot.slane %v3961_v54, 4  ;;  %v3633_v34 = vsel %vm8018_vm7, %v3628_v45, %v3632_v40  ;;  %v9253_v24 = vadd.f32 %v6825_v47, %v9000_v4  ;;  %v9255_v60 = vpop.f32.mrb[36].mxu0  ;;  %v9263_v40 = vpop.f32.mrb[45].mxu1  ;;  %v3827_v47 = vld [vmem:[#allocation2 + $0xbc] sm:$0x1] }
 0x223   : > { %v3637_v48 = vrot.slane %v3635_v43, 4  ;;  %v3638_v33 = vshll.u32 %v3313_v38, 16  ;;  %v6293_v62 = vcombine.low %v3623_v16, %v3633_v34  ;;  %v3644_v27 = vshll.u32 %v3314_v14, 16  ;;  %v9261_v54 = vpop.f32.mrb[37].mxu0 }
 0x224   : > { %9832 = vst [vmem:[#allocation41_spill] sm:$0xff] %v9253_v24  ;;  %v3965_v19 = vsel %vm8203_vm1, %v3963_v55, %v3964_v52  ;;  %v3648_v49 = vshrl.u32 %v3314_v14, 16  ;;  %v3654_v45 = vshll.u32 %v3315_v58, 16  ;;  %v9268_v22 = vadd.f32 %v9120_v50, %v9114_v51  ;;  %v9270_v43 = vpop.f32.mrb[38].mxu0  ;;  %v9272_v52 = vpop.f32.mrb[46].mxu1  ;;  %v9833_v24 = vld [vmem:[#allocation35_spill] sm:$0xff] }
 0x225   : > { %v6324_v4 = vcombine.low %v9248_v37, %v3965_v19  ;;  %v3640_v38 = vrot.slane %v3638_v33, 5  ;;  %5405 = vmatprep.mubr.bf16.mxu1 %v6293_v62  ;;  %v3646_v14 = vrot.slane %v3644_v27, 5  ;;  %v6309_v37 = vrot.slane %v3822_v26, 9  ;;  %v9278_v55 = vpop.f32.mrb[39].mxu0  ;;  %v9280_v58 = vpop.f32.mrb[47].mxu1 }
 0x226   : > { %7185 = vmatmul.mubr.bf16.gmra.mrb[128].mxu0 %v6322_v57  ;;  %v3650_v16 = vrot.slane %v3648_v49, 4  ;;  %v9276_v57 = vadd.f32 %v9136_v21, %v9129_v3  ;;  %5406 = vmatmul.mubr.bf16.gmra.mrb[128].mxu1 %v7440_v10  ;;  %v3656_v50 = vrot.slane %v3654_v45, 5  ;;  %v3968_v34 = vrot.slane %v3823_v59, 5  ;;  %v3316_v49 = vld [vmem:[#allocation2 + $0xc0] sm:$0xf]  ;;  %v7441_v45 = vld [vmem:[#allocation2 + $0xb4] sm:$0xff]  }
 0x227   : > { %7188 = vmatprep.mubr.bf16.mxu0 %v6323_v30  ;;  %v3641_v51 = vor.u32 %v3640_v38, %v3637_v48  ;;  %v3971_v33 = vrot.slane %v3824_v7, 5  ;;  %v6828_v30 = vadd.f32 %v9070_v29, %v9833_v24  ;;  %v6310_v62 = vrot.slane %v3825_v36, 9  ;;  %v3317_v36 = vld [vmem:[#allocation2 + $0xc4] sm:$0xf] }
 0x228   : > { %v3651_v19 = vor.u32 %v3650_v16, %v3646_v14  ;;  %v3975_v27 = vrot.slane %v3826_v44, 5  ;;  %v3969_v3 = vsel %vm8203_vm1, %v6309_v37, %v3968_v34  ;;  %v3970_v21 = vrot.slane %v3968_v34, 4  ;;  %v3318_v44 = vld [vmem:[#allocation2 + $0xc8] sm:$0x1] }
 0x229   : > { %v3642_v6 = vrot.slane %v3641_v51, 4  ;;  %v3978_v26 = vrot.slane %v3827_v47, 5  ;;  %v9287_v10 = vadd.f32 %v6828_v30, %v9834_v32  ;;  %v6831_v48 = vadd.f32 %v9091_v53, %v9083_v23  ;;  %v3828_v51 = vld [vmem:[#allocation2 + $0xc0] sm:$0xe]  ;;  %v3830_v30 = vld [vmem:[#allocation2 + $0xc8] sm:$0x1] }
 0x22a   : > { %v3652_v15 = vrot.slane %v3651_v19, 4  ;;  %v9291_v59 = vsel %vm8203_vm1, %v6310_v62, %v3975_v27  ;;  %v3977_v7 = vrot.slane %v3975_v27, 4  ;;  %v3972_v24 = vsel %vm8203_vm1, %v3970_v21, %v3971_v33 }
 0x22b   : > { %v3647_v29 = vsel %vm8018_vm7, %v3642_v6, %v3646_v14  ;;  %v3659_v38 = vshrl.u32 %v3316_v49, 16  ;;  %v6325_v47 = vcombine.low %v3969_v3, %v3972_v24  ;;  %v3662_v37 = vshll.u32 %v3316_v49, 16  ;;  %v3829_v6 = vld [vmem:[#allocation2 + $0xc4] sm:$0xf]  ;;  %v3832_v3 = vld [vmem:[#allocation2 + $0xd0] sm:$0xf] }
 0x22c   : > { %v3657_v32 = vsel %vm8018_vm7, %v3652_v15, %v3656_v50  ;;  %v3979_v16 = vsel %vm8203_vm1, %v3977_v7, %v3978_v26  ;;  %v9305_v23 = vadd.f32 %v6831_v48, %v9064_v17  ;;  %v3668_v19 = vshll.u32 %v3317_v36, 16  ;;  %v3831_v17 = vld [vmem:[#allocation2 + $0xcc] sm:$0xe] }
 0x22d   : > { %v6294_v14 = vcombine.low %v3647_v29, %v3657_v32  ;;  %v6326_v34 = vcombine.low %v9291_v59, %v3979_v16  ;;  %v3661_v53 = vrot.slane %v3659_v38, 4  ;;  %v3664_v33 = vrot.slane %v3662_v37, 5  ;;  %v3833_v29 = vld [vmem:[#allocation2 + $0xd4] sm:$0x1] }
 0x22e   : > { %7189 = vmatmul.mubr.bf16.gmra.mrb[132].mxu0 %v6324_v4  ;;  %v3672_v15 = vshrl.u32 %v3317_v36, 16  ;;  %v3678_v50 = vshll.u32 %v3318_v44, 16  ;;  %v9309_v62 = vadd.f32 %v9184_v18, %v9180_v9  ;;  %v9313_v4 = vadd.f32 %v9199_v5, %v9191_v13  ;;  %v3319_v13 = vld [vmem:[#allocation2 + $0xcc] sm:$0xf]  ;;  %v9835_v37 = vld [vmem:[#allocation25_spill] sm:$0xff] }
 0x22f   : > { %7192 = vmatprep.mubr.bf16.mxu0 %v6325_v47  ;;  %5413 = vmatprep.mubr.bf16.mxu1 %v6294_v14  ;;  %v6311_v27 = vrot.slane %v3828_v51, 9  ;;  %v3982_v49 = vrot.slane %v3829_v6, 5  ;;  %v3665_v21 = vor.u32 %v3664_v33, %v3661_v53  ;;  %v3670_v26 = vrot.slane %v3668_v19, 5  ;;  %v3321_v53 = vld [vmem:[#allocation2 + $0xd4] sm:$0x1] }
 0x230   : > { %5414 = vmatmul.mubr.bf16.gmra.mrb[132].mxu1 %v7441_v45  ;;  %v3674_v59 = vrot.slane %v3672_v15, 4  ;;  %v3680_v7 = vrot.slane %v3678_v50, 5  ;;  %v3985_v9 = vrot.slane %v3830_v30, 5  ;;  %v6834_v18 = vadd.f32 %v9116_v11, %v9104_v25  ;;  %v6756_v5 = vpop.f32.mrb[40].mxu0  ;;  %v3320_v45 = vld [vmem:[#allocation2 + $0xd0] sm:$0xf] }
 0x231   : > { %v3983_v24 = vsel %vm8203_vm1, %v6311_v27, %v3982_v49  ;;  %v3984_v48 = vrot.slane %v3982_v49, 4  ;;  %v3666_v36 = vrot.slane %v3665_v21, 4  ;;  %v6312_v38 = vrot.slane %v3831_v17, 9  ;;  %v6757_v47 = vpop.f32.mrb[41].mxu0  ;;  %v9836_v17 = vld [vmem:[#allocation26_spill] sm:$0xff] }
 0x232   : > { %v3675_v44 = vor.u32 %v3674_v59, %v3670_v26  ;;  %v3989_v32 = vrot.slane %v3832_v3, 5  ;;  %v9322_v51 = vadd.f32 %v6834_v18, %v9835_v37  ;;  %v3992_v6 = vrot.slane %v3833_v29, 5  ;;  %v6759_v11 = vpop.f32.mrb[42].mxu0  ;;  %v6856_v25 = vpop.f32.mrb[48].mxu1  ;;  %v7442_v29 = vld [vmem:[#allocation2 + $0xc0] sm:$0xff]  }
 0x233   : > { %v3986_v16 = vsel %vm8203_vm1, %v3984_v48, %v3985_v9  ;;  %v6837_v14 = vadd.f32 %v9138_v12, %v9122_v41  ;;  %v3671_v33 = vsel %vm8018_vm7, %v3666_v36, %v3670_v26  ;;  %v6760_v30 = vpop.f32.mrb[43].mxu0  ;;  %v6857_v27 = vpop.f32.mrb[49].mxu1  ;;  %v3683_v21 = vshrl.u32 %v3319_v13, 16 }
 0x234   : > { %v3676_v19 = vrot.slane %v3675_v44, 4  ;;  %v6327_v15 = vcombine.low %v3983_v24, %v3986_v16  ;;  %v3990_v50 = vsel %vm8203_vm1, %v6312_v38, %v3989_v32  ;;  %v3991_v49 = vrot.slane %v3989_v32, 4  ;;  %v6859_v12 = vpop.f32.mrb[50].mxu1 }
 0x235   : > { %v9331_v3 = vadd.f32 %v6837_v14, %v9836_v17  ;;  %v3686_v41 = vshll.u32 %v3319_v13, 16  ;;  %v3692_v26 = vshll.u32 %v3320_v45, 16  ;;  %v3696_v24 = vshrl.u32 %v3320_v45, 16  ;;  %v6860_v9 = vpop.f32.mrb[51].mxu1 }
 0x236   : > { %7193 = vmatmul.mubr.bf16.gmra.mrb[136].mxu0 %v6326_v34  ;;  %v3681_v59 = vsel %vm8018_vm7, %v3676_v19, %v3680_v7  ;;  %v3702_v48 = vshll.u32 %v3321_v53, 16  ;;  %v3993_v34 = vsel %vm8203_vm1, %v3991_v49, %v3992_v6  ;;  %v3685_v36 = vrot.slane %v3683_v21, 4 }
 0x237   : > { %7196 = vmatprep.mubr.bf16.mxu0 %v6327_v15  ;;  %v6295_v18 = vcombine.low %v3671_v33, %v3681_v59  ;;  %v3688_v44 = vrot.slane %v3686_v41, 5  ;;  %v6328_v38 = vcombine.low %v3990_v50, %v3993_v34  ;;  %v3694_v32 = vrot.slane %v3692_v26, 5  ;;  %v9837_v15 = vld [vmem:[#allocation37_spill] sm:$0xff] }
 0x238   : > { %v3698_v16 = vrot.slane %v3696_v24, 4  ;;  %v3704_v13 = vrot.slane %v3702_v48, 5  ;;  %v6752_v7 = vadd.f32 %v9261_v54, %v9255_v60  ;;  %v6755_v45 = vadd.f32 %v9278_v55, %v9270_v43  ;;  %v9838_v48 = vld [vmem:[#allocation27_spill] sm:$0xff] }
 0x239   : > { %5421 = vmatprep.mubr.bf16.mxu1 %v6295_v18  ;;  %v3689_v37 = vor.u32 %v3688_v44, %v3685_v36  ;;  %v6840_v14 = vadd.f32 %v9155_v31, %v9148_v56  ;;  %v6843_v6 = vadd.f32 %v9165_v0, %v9161_v20  ;;  %v6758_v53 = vadd.f32 %v6757_v47, %v6756_v5 }
 0x23a   : > { %5422 = vmatmul.mubr.bf16.gmra.mrb[136].mxu1 %v7442_v29  ;;  %v3699_v2 = vor.u32 %v3698_v16, %v3694_v32  ;;  %v6761_v33 = vadd.f32 %v6760_v30, %v6759_v11  ;;  %v6846_v60 = vadd.f32 %v9216_v1, %v9212_v63  ;;  %v6849_v54 = vadd.f32 %v9231_v39, %v9222_v8  ;;  %v7443_v8 = vld [vmem:[#allocation2 + $0xcc] sm:$0xff]  }
 0x23b   : > { %v3690_v19 = vrot.slane %v3689_v37, 4  ;;  %v9346_v50 = vadd.f32 %v6840_v14, %v9837_v15  ;;  %v9353_v56 = vadd.f32 %v6843_v6, %v9173_v61  ;;  %v6852_v31 = vadd.f32 %v9263_v40, %v9257_v28 }
 0x23c   : > { %v3700_v43 = vrot.slane %v3699_v2, 4  ;;  %v6855_v20 = vadd.f32 %v9280_v58, %v9272_v52  ;;  %v9362_v55 = vadd.f32 %v6846_v60, %v9220_v42  ;;  %v9365_v63 = vadd.f32 %v6849_v54, %v9229_v46  ;;  %v9840_v60 = vld [vmem:[#allocation38_spill] sm:$0xff] }
 0x23d   : > { %v3695_v0 = vsel %vm8018_vm7, %v3690_v19, %v3694_v32  ;;  %v6858_v1 = vadd.f32 %v6857_v27, %v6856_v25  ;;  %v9370_v39 = vadd.f32 %v6852_v31, %v9268_v22  ;;  %v6861_v40 = vadd.f32 %v6860_v9, %v6859_v12 }
 0x23e   : > { %7197 = vmatmul.mubr.bf16.gmra.mrb[140].mxu0 %v6328_v38  ;;  %v3705_v61 = vsel %vm8018_vm7, %v3700_v43, %v3704_v13  ;;  %v9373_v28 = vadd.f32 %v6855_v20, %v9276_v57  ;;  %v6762_v58 = vpop.f32.mrb[44].mxu0  ;;  %v6862_v47 = vpop.f32.mrb[52].mxu1  ;;  %v9839_v38 = vld [vmem:[#allocation36_spill] sm:$0xff] }
 0x23f   : > { %v6296_v52 = vcombine.low %v3695_v0, %v3705_v61  ;;  %v9376_v42 = vadd.f32 %v6858_v1, %v9309_v62  ;;  %v6763_v5 = vpop.f32.mrb[45].mxu0  ;;  %v9379_v46 = vadd.f32 %v6861_v40, %v9313_v4  ;;  %v6863_v25 = vpop.f32.mrb[53].mxu1  ;;  %v9841_v1 = vld [vmem:[#allocation39_spill] sm:$0xff] }
 0x240   : > { %v6764_v35 = vadd.f32 %v6763_v5, %v6762_v58  ;;  %v6765_v11 = vpop.f32.mrb[46].mxu0  ;;  %v6864_v30 = vadd.f32 %v6863_v25, %v6862_v47  ;;  %v6865_v57 = vpop.f32.mrb[54].mxu1 }
 0x241   : > { %5429 = vmatprep.mubr.bf16.mxu1 %v6296_v52  ;;  %v6766_v22 = vpop.f32.mrb[47].mxu0  ;;  %v6866_v49 = vpop.f32.mrb[55].mxu1 }
 0x242   : > { %5430 = vmatmul.mubr.bf16.gmra.mrb[140].mxu1 %v7443_v8  ;;  %v6767_v27 = vadd.f32 %v6766_v22, %v6765_v11  ;;  %v9381_v17 = vadd.f32 %v6864_v30, %v6752_v7  ;;  %v6867_v21 = vadd.f32 %v6866_v49, %v6865_v57  ;;  %v9842_v22 = vld [vmem:[#allocation40_spill] sm:$0xff] }
 0x244   : > { %v9383_v62 = vadd.f32 %v6867_v21, %v6755_v45 }
 0x246   : > { %v6920_v41 = vpop.f32.mrb[48].mxu0 }
 0x247   : > { %v6921_v12 = vpop.f32.mrb[49].mxu0 }
 0x248   : > { %v6922_v4 = vadd.f32 %v6921_v12, %v6920_v41  ;;  %v6923_v59 = vpop.f32.mrb[50].mxu0  ;;  %v6868_v29 = vpop.f32.mrb[56].mxu1  ;;  %v9843_v12 = vld [vmem:[#allocation41_spill] sm:$0xff] }
 0x249   : > { %v6924_v26 = vpop.f32.mrb[51].mxu0  ;;  %v6869_v24 = vpop.f32.mrb[57].mxu1 }
 0x24a   : > { %v9386_v9 = vadd.f32 %v6922_v4, %v9838_v48  ;;  %v6925_v18 = vadd.f32 %v6924_v26, %v6923_v59  ;;  %v6870_v34 = vadd.f32 %v6869_v24, %v6868_v29  ;;  %v6871_v36 = vpop.f32.mrb[58].mxu1  ;;  %v9844_v4 = vld [vmem:[#allocation28_spill] sm:$0xff]  ;;  %v9845_v26 = vld [vmem:[#allocation29_spill] sm:$0xff] }
 0x24b   : > { %v6872_v44 = vpop.f32.mrb[59].mxu1 }
 0x24c   : > { %v9389_v32 = vadd.f32 %v6925_v18, %v9839_v38  ;;  %v9391_v16 = vadd.f32 %v6870_v34, %v6758_v53  ;;  %v6873_v13 = vadd.f32 %v6872_v44, %v6871_v36 }
 0x24e   : > { %v6926_v37 = vpop.f32.mrb[52].mxu0  ;;  %v9393_v7 = vadd.f32 %v6873_v13, %v6761_v33 }
 0x24f   : > { %v6927_v45 = vpop.f32.mrb[53].mxu0 }
 0x250   : > { %v6928_v14 = vadd.f32 %v6927_v45, %v6926_v37  ;;  %v6929_v2 = vpop.f32.mrb[54].mxu0  ;;  %v6874_v6 = vpop.f32.mrb[60].mxu1 }
 0x251   : > { %v6930_v19 = vpop.f32.mrb[55].mxu0  ;;  %v6875_v15 = vpop.f32.mrb[61].mxu1 }
 0x252   : > { %v9396_v54 = vadd.f32 %v6928_v14, %v9840_v60  ;;  %v6931_v43 = vadd.f32 %v6930_v19, %v6929_v2  ;;  %v6876_v31 = vadd.f32 %v6875_v15, %v6874_v6  ;;  %v6877_v20 = vpop.f32.mrb[62].mxu1  ;;  %v9846_v19 = vld [vmem:[#allocation30_spill] sm:$0xff] }
 0x253   : > { %v6878_v0 = vpop.f32.mrb[63].mxu1 }
 0x254   : > { %v9399_v53 = vadd.f32 %v6931_v43, %v9841_v1  ;;  %v9401_v61 = vadd.f32 %v6876_v31, %v6764_v35  ;;  %v6879_v33 = vadd.f32 %v6878_v0, %v6877_v20  ;;  %v9847_v31 = vld [vmem:[#allocation31_spill] sm:$0xff] }
 0x256   : > { %v6932_v8 = vpop.f32.mrb[56].mxu0  ;;  %v9403_v40 = vadd.f32 %v6879_v33, %v6767_v27 }
 0x257   : > { %v6933_v52 = vpop.f32.mrb[57].mxu0 }
 0x258   : > { %v6934_v58 = vadd.f32 %v6933_v52, %v6932_v8  ;;  %v6935_v5 = vpop.f32.mrb[58].mxu0  ;;  %v6880_v47 = vpop.f32.mrb[64].mxu1 }
 0x259   : > { %v6936_v11 = vpop.f32.mrb[59].mxu0  ;;  %v6881_v25 = vpop.f32.mrb[65].mxu1 }
 0x25a   : > { %v9406_v30 = vadd.f32 %v6934_v58, %v9842_v22  ;;  %v6937_v57 = vadd.f32 %v6936_v11, %v6935_v5  ;;  %v6882_v49 = vadd.f32 %v6881_v25, %v6880_v47  ;;  %v6883_v21 = vpop.f32.mrb[66].mxu1  ;;  %v9848_v22 = vld [vmem:[#allocation32_spill] sm:$0xff] }
 0x25b   : > { %v6884_v41 = vpop.f32.mrb[67].mxu1 }
 0x25c   : > { %v9409_v35 = vadd.f32 %v6937_v57, %v9843_v12  ;;  %v9412_v59 = vadd.f32 %v6882_v49, %v9844_v4  ;;  %v6885_v27 = vadd.f32 %v6884_v41, %v6883_v21  ;;  %v9849_v41 = vld [vmem:[#allocation33_spill] sm:$0xff] }
 0x25e   : > { %v6938_v29 = vpop.f32.mrb[60].mxu0  ;;  %v9415_v24 = vadd.f32 %v6885_v27, %v9845_v26 }
 0x25f   : > { %v6939_v48 = vpop.f32.mrb[61].mxu0 }
 0x260   : > { %v6940_v18 = vadd.f32 %v6939_v48, %v6938_v29  ;;  %v6941_v34 = vpop.f32.mrb[62].mxu0  ;;  %v6886_v36 = vpop.f32.mrb[68].mxu1 }
 0x261   : > { %v6942_v44 = vpop.f32.mrb[63].mxu0  ;;  %v6887_v38 = vpop.f32.mrb[69].mxu1 }
 0x262   : > { %v9418_v13 = vadd.f32 %v6940_v18, %v9287_v10  ;;  %v6943_v37 = vadd.f32 %v6942_v44, %v6941_v34  ;;  %v6888_v45 = vadd.f32 %v6887_v38, %v6886_v36  ;;  %v6889_v14 = vpop.f32.mrb[70].mxu1 }
 0x263   : > { %v6890_v2 = vpop.f32.mrb[71].mxu1 }
 0x264   : > { %v9421_v6 = vadd.f32 %v6943_v37, %v9305_v23  ;;  %v9424_v15 = vadd.f32 %v6888_v45, %v9846_v19  ;;  %v6891_v60 = vadd.f32 %v6890_v2, %v6889_v14 }
 0x266   : > { %v6944_v43 = vpop.f32.mrb[64].mxu0  ;;  %v9427_v20 = vadd.f32 %v6891_v60, %v9847_v31 }
 0x267   : > { %v6945_v0 = vpop.f32.mrb[65].mxu0 }
 0x268   : > { %v6946_v1 = vadd.f32 %v6945_v0, %v6944_v43  ;;  %v6947_v33 = vpop.f32.mrb[66].mxu0  ;;  %v6892_v10 = vpop.f32.mrb[72].mxu1 }
 0x269   : > { %v6948_v8 = vpop.f32.mrb[67].mxu0  ;;  %v6893_v52 = vpop.f32.mrb[73].mxu1 }
 0x26a   : > { %v9430_v58 = vadd.f32 %v6946_v1, %v9322_v51  ;;  %v6949_v5 = vadd.f32 %v6948_v8, %v6947_v33  ;;  %v6894_v23 = vadd.f32 %v6893_v52, %v6892_v10  ;;  %v6895_v47 = vpop.f32.mrb[74].mxu1  ;;  %v9850_v52 = vld [vmem:[#allocation23_spill] sm:$0xff] }
 0x26b   : > { %v6896_v11 = vpop.f32.mrb[75].mxu1 }
 0x26c   : > { %v9433_v25 = vadd.f32 %v6949_v5, %v9331_v3  ;;  %v9436_v57 = vadd.f32 %v6894_v23, %v9848_v22  ;;  %v6897_v49 = vadd.f32 %v6896_v11, %v6895_v47  ;;  %v9851_v47 = vld [vmem:[#allocation24_spill] sm:$0xff] }
 0x26e   : > { %v6950_v21 = vpop.f32.mrb[68].mxu0  ;;  %v9439_v12 = vadd.f32 %v6897_v49, %v9849_v41 }
 0x26f   : > { %v6951_v4 = vpop.f32.mrb[69].mxu0 }
 0x270   : > { %v6952_v27 = vadd.f32 %v6951_v4, %v6950_v21  ;;  %v6953_v29 = vpop.f32.mrb[70].mxu0 }
 0x271   : > { %v6954_v51 = vpop.f32.mrb[71].mxu0 }
 0x272   : > { %v9442_v26 = vadd.f32 %v6952_v27, %v9346_v50  ;;  %v6955_v48 = vadd.f32 %v6954_v51, %v6953_v29 }
 0x274   : > { %v9445_v18 = vadd.f32 %v6955_v48, %v9353_v56 }
 0x276   : > { %v6956_v3 = vpop.f32.mrb[72].mxu0 }
 0x277   : > { %v6957_v34 = vpop.f32.mrb[73].mxu0 }
 0x278   : > { %v6958_v36 = vadd.f32 %v6957_v34, %v6956_v3  ;;  %v6959_v44 = vpop.f32.mrb[74].mxu0 }
 0x279   : > { %v6960_v38 = vpop.f32.mrb[75].mxu0 }
 0x27a   : > { %v9448_v37 = vadd.f32 %v6958_v36, %v9362_v55  ;;  %v6961_v45 = vadd.f32 %v6960_v38, %v6959_v44 }
 0x27c   : > { %v9451_v14 = vadd.f32 %v6961_v45, %v9365_v63 }
 0x27e   : > { %v6962_v2 = vpop.f32.mrb[76].mxu0 }
 0x27f   : > { %v6963_v19 = vpop.f32.mrb[77].mxu0  ;;  %v6898_v31 = vpop.f32.mrb[76].mxu1 }
 0x280   : > { %v6964_v50 = vadd.f32 %v6963_v19, %v6962_v2  ;;  %v6965_v60 = vpop.f32.mrb[78].mxu0  ;;  %v6899_v1 = vpop.f32.mrb[77].mxu1 }
 0x281   : > { %v6966_v43 = vpop.f32.mrb[79].mxu0  ;;  %v6900_v33 = vadd.f32 %v6899_v1, %v6898_v31  ;;  %v6901_v10 = vpop.f32.mrb[78].mxu1 }
 0x282   : > { %v9454_v56 = vadd.f32 %v6964_v50, %v9370_v39  ;;  %v6967_v0 = vadd.f32 %v6966_v43, %v6965_v60  ;;  %v6902_v8 = vpop.f32.mrb[79].mxu1 }
 0x283   : > { %v9460_v63 = vadd.f32 %v6900_v33, %v9850_v52  ;;  %v6903_v5 = vadd.f32 %v6902_v8, %v6901_v10 }
 0x284   : > { %v9457_v55 = vadd.f32 %v6967_v0, %v9373_v28 }
 0x285   : > { %v9463_v11 = vadd.f32 %v6903_v5, %v9851_v47 }
 0x286   : > { %v6968_v23 = vpop.f32.mrb[80].mxu0 }
 0x287   : > { %v6969_v22 = vpop.f32.mrb[81].mxu0  ;;  %v7032_v41 = vpop.f32.mrb[80].mxu1 }
 0x288   : > { %v6970_v49 = vadd.f32 %v6969_v22, %v6968_v23  ;;  %v6971_v39 = vpop.f32.mrb[82].mxu0  ;;  %v7033_v28 = vpop.f32.mrb[81].mxu1 }
 0x289   : > { %v6972_v21 = vpop.f32.mrb[83].mxu0  ;;  %v7034_v29 = vadd.f32 %v7033_v28, %v7032_v41  ;;  %v7035_v51 = vpop.f32.mrb[82].mxu1 }
 0x28a   : > { %v9466_v4 = vadd.f32 %v6970_v49, %v9376_v42  ;;  %v6973_v27 = vadd.f32 %v6972_v21, %v6971_v39  ;;  %v7036_v3 = vpop.f32.mrb[83].mxu1 }
 0x28b   : > { %v7037_v34 = vadd.f32 %v7036_v3, %v7035_v51  ;;  %v9472_v36 = vadd.f32 %v7034_v29, %v9386_v9 }
 0x28c   : > { %v9469_v48 = vadd.f32 %v6973_v27, %v9379_v46 }
 0x28d   : > { %v9475_v45 = vadd.f32 %v7037_v34, %v9389_v32 }
 0x28e   : > { %v6974_v44 = vpop.f32.mrb[84].mxu0 }
 0x28f   : > { %v6975_v38 = vpop.f32.mrb[85].mxu0  ;;  %v7038_v50 = vpop.f32.mrb[84].mxu1 }
 0x290   : > { %v6976_v2 = vadd.f32 %v6975_v38, %v6974_v44  ;;  %v6977_v42 = vpop.f32.mrb[86].mxu0  ;;  %v7039_v46 = vpop.f32.mrb[85].mxu1 }
 0x291   : > { %v6978_v19 = vpop.f32.mrb[87].mxu0  ;;  %v7040_v31 = vadd.f32 %v7039_v46, %v7038_v50  ;;  %v7041_v0 = vpop.f32.mrb[86].mxu1 }
 0x292   : > { %v9478_v60 = vadd.f32 %v6976_v2, %v9381_v17  ;;  %v6979_v43 = vadd.f32 %v6978_v19, %v6977_v42  ;;  %v7042_v9 = vpop.f32.mrb[87].mxu1 }
 0x293   : > { %v7043_v33 = vadd.f32 %v7042_v9, %v7041_v0  ;;  %v9484_v10 = vadd.f32 %v7040_v31, %v9396_v54 }
 0x294   : > { %v9481_v1 = vadd.f32 %v6979_v43, %v9383_v62 }
 0x295   : > { %v9487_v52 = vadd.f32 %v7043_v33, %v9399_v53 }
 0x296   : > { %v6980_v32 = vpop.f32.mrb[88].mxu0 }
 0x297   : > { %v6981_v8 = vpop.f32.mrb[89].mxu0  ;;  %v7044_v47 = vpop.f32.mrb[88].mxu1 }
 0x298   : > { %v6982_v5 = vadd.f32 %v6981_v8, %v6980_v32  ;;  %v6983_v17 = vpop.f32.mrb[90].mxu0  ;;  %v7045_v62 = vpop.f32.mrb[89].mxu1 }
 0x299   : > { %v6984_v23 = vpop.f32.mrb[91].mxu0  ;;  %v7046_v39 = vadd.f32 %v7045_v62, %v7044_v47  ;;  %v7047_v21 = vpop.f32.mrb[90].mxu1 }
 0x29a   : > { %v9490_v22 = vadd.f32 %v6982_v5, %v9391_v16  ;;  %v6985_v49 = vadd.f32 %v6984_v23, %v6983_v17  ;;  %v7048_v54 = vpop.f32.mrb[91].mxu1 }
 0x29b   : > { %v7049_v27 = vadd.f32 %v7048_v54, %v7047_v21  ;;  %v9496_v28 = vadd.f32 %v7046_v39, %v9406_v30 }
 0x29c   : > { %v9493_v41 = vadd.f32 %v6985_v49, %v9393_v7 }
 0x29d   : > { %v9499_v51 = vadd.f32 %v7049_v27, %v9409_v35 }
 0x29e   : > { %v6986_v53 = vpop.f32.mrb[92].mxu0 }
 0x29f   : > { %v6987_v29 = vpop.f32.mrb[93].mxu0  ;;  %v7050_v44 = vpop.f32.mrb[92].mxu1 }
 0x2a0   : > { %v6988_v3 = vadd.f32 %v6987_v29, %v6986_v53  ;;  %v6989_v16 = vpop.f32.mrb[94].mxu0  ;;  %v7051_v7 = vpop.f32.mrb[93].mxu1 }
 0x2a1   : > { %v6990_v34 = vpop.f32.mrb[95].mxu0  ;;  %v7052_v42 = vadd.f32 %v7051_v7, %v7050_v44  ;;  %v7053_v19 = vpop.f32.mrb[94].mxu1 }
 0x2a2   : > { %v9502_v38 = vadd.f32 %v6988_v3, %v9401_v61  ;;  %v6991_v2 = vadd.f32 %v6990_v34, %v6989_v16  ;;  %v7054_v30 = vpop.f32.mrb[95].mxu1 }
 0x2a3   : > { %v7055_v43 = vadd.f32 %v7054_v30, %v7053_v19  ;;  %v9508_v46 = vadd.f32 %v7052_v42, %v9418_v13 }
 0x2a4   : > { %v9505_v50 = vadd.f32 %v6991_v2, %v9403_v40 }
 0x2a5   : > { %v9511_v0 = vadd.f32 %v7055_v43, %v9421_v6 }
 0x2a6   : > { %v6992_v35 = vpop.f32.mrb[96].mxu0 }
 0x2a7   : > { %v6993_v31 = vpop.f32.mrb[97].mxu0 }
 0x2a8   : > { %v6994_v9 = vadd.f32 %v6993_v31, %v6992_v35  ;;  %v6995_v61 = vpop.f32.mrb[98].mxu0 }
 0x2a9   : > { %v6996_v33 = vpop.f32.mrb[99].mxu0 }
 0x2aa   : > { %v9514_v32 = vadd.f32 %v6994_v9, %v9412_v59  ;;  %v6997_v8 = vadd.f32 %v6996_v33, %v6995_v61  ;;  %v7056_v5 = vpop.f32.mrb[96].mxu1 }
 0x2ab   : > { %v7057_v17 = vpop.f32.mrb[97].mxu1 }
 0x2ac   : > { %v9517_v40 = vadd.f32 %v6997_v8, %v9415_v24  ;;  %v7058_v23 = vadd.f32 %v7057_v17, %v7056_v5  ;;  %v7059_v13 = vpop.f32.mrb[98].mxu1 }
 0x2ad   : > { %v7060_v47 = vpop.f32.mrb[99].mxu1 }
 0x2ae   : > { %v7061_v49 = vadd.f32 %v7060_v47, %v7059_v13  ;;  %v9520_v62 = vadd.f32 %v7058_v23, %v9430_v58 }
 0x2b0   : > { %v6998_v6 = vpop.f32.mrb[100].mxu0  ;;  %v9523_v39 = vadd.f32 %v7061_v49, %v9433_v25 }
 0x2b1   : > { %v6999_v21 = vpop.f32.mrb[101].mxu0 }
 0x2b2   : > { %v7000_v59 = vadd.f32 %v6999_v21, %v6998_v6  ;;  %v7001_v54 = vpop.f32.mrb[102].mxu0 }
 0x2b3   : > { %v7002_v27 = vpop.f32.mrb[103].mxu0 }
 0x2b4   : > { %v9526_v53 = vadd.f32 %v7000_v59, %v9424_v15  ;;  %v7003_v24 = vadd.f32 %v7002_v27, %v7001_v54  ;;  %v7062_v29 = vpop.f32.mrb[100].mxu1 }
 0x2b5   : > { %v7063_v3 = vpop.f32.mrb[101].mxu1 }
 0x2b6   : > { %v9529_v16 = vadd.f32 %v7003_v24, %v9427_v20  ;;  %v7064_v34 = vadd.f32 %v7063_v3, %v7062_v29  ;;  %v7065_v58 = vpop.f32.mrb[102].mxu1 }
 0x2b7   : > { %v7066_v44 = vpop.f32.mrb[103].mxu1 }
 0x2b8   : > { %v7067_v2 = vadd.f32 %v7066_v44, %v7065_v58  ;;  %v9532_v25 = vadd.f32 %v7064_v34, %v9442_v26 }
 0x2ba   : > { %v9535_v7 = vadd.f32 %v7067_v2, %v9445_v18 }
 0x2bb   : > { %v7004_v42 = vpop.f32.mrb[104].mxu0 }
 0x2bc   : > { %v7005_v19 = vpop.f32.mrb[105].mxu0 }
 0x2bd   : > { %v7006_v15 = vadd.f32 %v7005_v19, %v7004_v42  ;;  %v7007_v30 = vpop.f32.mrb[106].mxu0 }
 0x2be   : > { %v7008_v43 = vpop.f32.mrb[107].mxu0  ;;  %v7068_v35 = vpop.f32.mrb[104].mxu1 }
 0x2bf   : > { %v9538_v31 = vadd.f32 %v7006_v15, %v9436_v57  ;;  %v7009_v20 = vadd.f32 %v7008_v43, %v7007_v30  ;;  %v7069_v9 = vpop.f32.mrb[105].mxu1 }
 0x2c0   : > { %v7070_v61 = vadd.f32 %v7069_v9, %v7068_v35  ;;  %v7071_v33 = vpop.f32.mrb[106].mxu1 }
 0x2c1   : > { %v9541_v8 = vadd.f32 %v7009_v20, %v9439_v12  ;;  %v7072_v26 = vpop.f32.mrb[107].mxu1 }
 0x2c2   : > { %v7073_v5 = vadd.f32 %v7072_v26, %v7071_v33  ;;  %v9544_v18 = vadd.f32 %v7070_v61, %v9448_v37 }
 0x2c4   : > { %v9547_v17 = vadd.f32 %v7073_v5, %v9451_v14 }
 0x2c8   : > { %v7074_v23 = vpop.f32.mrb[108].mxu1 }
 0x2c9   : > { %v7075_v13 = vpop.f32.mrb[109].mxu1 }
 0x2ca   : > { %v7076_v47 = vadd.f32 %v7075_v13, %v7074_v23  ;;  %v7077_v57 = vpop.f32.mrb[110].mxu1 }
 0x2cb   : > { %v7078_v49 = vpop.f32.mrb[111].mxu1 }
 0x2cc   : > { %v7079_v6 = vadd.f32 %v7078_v49, %v7077_v57  ;;  %v9550_v21 = vadd.f32 %v7076_v47, %v9454_v56 }
 0x2ce   : > { %v9553_v12 = vadd.f32 %v7079_v6, %v9457_v55 }
 0x2d1   : > { %v7010_v59 = vpop.f32.mrb[108].mxu0 }
 0x2d2   : > { %v7011_v54 = vpop.f32.mrb[109].mxu0 }
 0x2d3   : > { %v7012_v27 = vadd.f32 %v7011_v54, %v7010_v59  ;;  %v7013_v37 = vpop.f32.mrb[110].mxu0  ;;  %v7080_v3 = vpop.f32.mrb[112].mxu1 }
 0x2d4   : > { %v7014_v24 = vpop.f32.mrb[111].mxu0  ;;  %v7081_v34 = vpop.f32.mrb[113].mxu1 }
 0x2d5   : > { %v9556_v14 = vadd.f32 %v7012_v27, %v9460_v63  ;;  %v7015_v29 = vadd.f32 %v7014_v24, %v7013_v37  ;;  %v7082_v44 = vadd.f32 %v7081_v34, %v7080_v3  ;;  %v7083_v56 = vpop.f32.mrb[114].mxu1 }
 0x2d6   : > { %v7084_v2 = vpop.f32.mrb[115].mxu1 }
 0x2d7   : > { %v9559_v58 = vadd.f32 %v7015_v29, %v9463_v11  ;;  %v7085_v55 = vadd.f32 %v7084_v2, %v7083_v56  ;;  %v9562_v19 = vadd.f32 %v7082_v44, %v9466_v4 }
 0x2d9   : > { %v7170_v42 = vpop.f32.mrb[112].mxu0  ;;  %v9567_v35 = vadd.f32 %v7085_v55, %v9469_v48 }
 0x2da   : > { %v5481_v15 = vadd.f32 %v7170_v42, %v9484_v10  ;;  %v5472_v30 = vpop.f32.mrb[113].mxu0 }
 0x2db   : > { %v5473_v63 = vadd.f32 %v5472_v30, %v9472_v36  ;;  %v7171_v43 = vpop.f32.mrb[114].mxu0 }
 0x2dc   : > { %v5484_v11 = vadd.f32 %v7171_v43, %v9487_v52  ;;  %v5475_v20 = vpop.f32.mrb[115].mxu0  ;;  %v5799_v10 = vmul.f32 %v5481_v15, %v5481_v15 }
 0x2dd   : > { %v5476_v9 = vadd.f32 %v5475_v20, %v9475_v45  ;;  %v5797_v33 = vmul.f32 %v5473_v63, %v5473_v63 }
 0x2de   : > { %v6578_v61 = vpack.c.bf16 %v5484_v11, %v5481_v15  ;;  %v7086_v36 = vpop.f32.mrb[116].mxu1  ;;  %v5800_v6 = vmul.f32 %v5484_v11, %v5484_v11 }
 0x2df   : > { %v6573_v26 = vpack.c.bf16 %v5476_v9, %v5473_v63  ;;  %v5759_v5 = vadd.f32 %v5476_v9, %v5473_v63  ;;  %v5798_v4 = vmul.f32 %v5476_v9, %v5476_v9  ;;  %v7087_v13 = vpop.f32.mrb[117].mxu1 }
 0x2e0   : > { %6665 = vst [vmem:[%s9573_s29 + $0x8] sm:$0xff] %v6578_v61   ;;  %v7088_v57 = vadd.f32 %v7087_v13, %v7086_v36  ;;  %v7089_v49 = vpop.f32.mrb[118].mxu1 }
 0x2e1   : > { %6574 = vst [vmem:[%s9573_s29] sm:$0xff] %v6573_v26   ;;  %v5760_v48 = vadd.f32 %v5759_v5, %v5481_v15  ;;  %v5829_v23 = vadd.f32 %v5798_v4, %v5797_v33  ;;  %v7174_v52 = vpop.f32.mrb[116].mxu0  ;;  %v7090_v24 = vpop.f32.mrb[119].mxu1 }
 0x2e2   : > { %v5497_v45 = vadd.f32 %v7174_v52, %v9508_v46  ;;  %v5488_v47 = vpop.f32.mrb[117].mxu0  ;;  %v7091_v34 = vadd.f32 %v7090_v24, %v7089_v49  ;;  %v9581_v44 = vadd.f32 %v7088_v57, %v9478_v60 }
 0x2e3   : > { %v5830_v59 = vadd.f32 %v5829_v23, %v5799_v10  ;;  %v5489_v54 = vadd.f32 %v5488_v47, %v9496_v28  ;;  %v5761_v27 = vadd.f32 %v5760_v48, %v5484_v11  ;;  %v7175_v37 = vpop.f32.mrb[118].mxu0 }
 0x2e4   : > { %v5500_v29 = vadd.f32 %v7175_v37, %v9511_v0  ;;  %v5491_v3 = vpop.f32.mrb[119].mxu0  ;;  %v9585_v28 = vadd.f32 %v7091_v34, %v9481_v1  ;;  %v5803_v11 = vmul.f32 %v5497_v45, %v5497_v45 }
 0x2e5   : > { %v5762_v46 = vadd.f32 %v5761_v27, %v5489_v54  ;;  %v5801_v56 = vmul.f32 %v5489_v54, %v5489_v54  ;;  %v5831_v2 = vadd.f32 %v5830_v59, %v5800_v6  ;;  %v5492_v42 = vadd.f32 %v5491_v3, %v9499_v51 }
 0x2e6   : > { %v6588_v55 = vpack.c.bf16 %v5500_v29, %v5497_v45  ;;  %v7092_v0 = vpop.f32.mrb[120].mxu1  ;;  %v5804_v4 = vmul.f32 %v5500_v29, %v5500_v29 }
 0x2e7   : > { %v5832_v15 = vadd.f32 %v5831_v2, %v5801_v56  ;;  %v6583_v30 = vpack.c.bf16 %v5492_v42, %v5489_v54  ;;  %v5763_v63 = vadd.f32 %v5762_v46, %v5492_v42  ;;  %v5802_v43 = vmul.f32 %v5492_v42, %v5492_v42  ;;  %v7093_v61 = vpop.f32.mrb[121].mxu1 }
 0x2e8   : > { %6667 = vst [vmem:[%s9573_s29 + $0x18] sm:$0xff] %v6588_v55   ;;  %v7094_v51 = vadd.f32 %v7093_v61, %v7092_v0  ;;  %v7095_v5 = vpop.f32.mrb[122].mxu1 }
 0x2e9   : > { %6666 = vst [vmem:[%s9573_s29 + $0x10] sm:$0xff] %v6583_v30   ;;  %v5764_v20 = vadd.f32 %v5763_v63, %v5497_v45  ;;  %v5833_v60 = vadd.f32 %v5832_v15, %v5802_v43  ;;  %v7178_v9 = vpop.f32.mrb[120].mxu0  ;;  %v7096_v23 = vpop.f32.mrb[123].mxu1 }
 0x2ea   : > { %v5513_v33 = vadd.f32 %v7178_v9, %v9532_v25  ;;  %v5504_v26 = vpop.f32.mrb[121].mxu0  ;;  %v7097_v45 = vadd.f32 %v7096_v23, %v7095_v5  ;;  %v9593_v47 = vadd.f32 %v7094_v51, %v9490_v22 }
 0x2eb   : > { %v5834_v1 = vadd.f32 %v5833_v60, %v5803_v11  ;;  %v5505_v36 = vadd.f32 %v5504_v26, %v9520_v62  ;;  %v5765_v10 = vadd.f32 %v5764_v20, %v5500_v29  ;;  %v7179_v48 = vpop.f32.mrb[122].mxu0 }
 0x2ec   : > { %v5516_v52 = vadd.f32 %v7179_v48, %v9535_v7  ;;  %v5507_v13 = vpop.f32.mrb[123].mxu0  ;;  %v9597_v62 = vadd.f32 %v7097_v45, %v9493_v41  ;;  %v5807_v7 = vmul.f32 %v5513_v33, %v5513_v33 }
 0x2ed   : > { %v5766_v25 = vadd.f32 %v5765_v10, %v5505_v36  ;;  %v5805_v57 = vmul.f32 %v5505_v36, %v5505_v36  ;;  %v5835_v49 = vadd.f32 %v5834_v1, %v5804_v4  ;;  %v5508_v6 = vadd.f32 %v5507_v13, %v9523_v39 }
 0x2ee   : > { %v6598_v59 = vpack.c.bf16 %v5516_v52, %v5513_v33  ;;  %v5808_v2 = vmul.f32 %v5516_v52, %v5516_v52 }
 0x2ef   : > { %v5836_v54 = vadd.f32 %v5835_v49, %v5805_v57  ;;  %v6593_v27 = vpack.c.bf16 %v5508_v6, %v5505_v36  ;;  %v5767_v37 = vadd.f32 %v5766_v25, %v5508_v6  ;;  %v5806_v24 = vmul.f32 %v5508_v6, %v5508_v6 }
 0x2f0   : > { %6669 = vst [vmem:[%s9573_s29 + $0x28] sm:$0xff] %v6598_v59   ;;  %v7098_v56 = vpop.f32.mrb[124].mxu1 }
 0x2f1   : > { %6668 = vst [vmem:[%s9573_s29 + $0x20] sm:$0xff] %v6593_v27   ;;  %v5768_v29 = vadd.f32 %v5767_v37, %v5513_v33  ;;  %v5837_v3 = vadd.f32 %v5836_v54, %v5806_v24  ;;  %v7182_v22 = vpop.f32.mrb[124].mxu0  ;;  %v7099_v15 = vpop.f32.mrb[125].mxu1 }
 0x2f2   : > { %v5529_v34 = vadd.f32 %v7182_v22, %v9550_v21  ;;  %v5520_v46 = vpop.f32.mrb[125].mxu0  ;;  %v7100_v43 = vadd.f32 %v7099_v15, %v7098_v56  ;;  %v7101_v0 = vpop.f32.mrb[126].mxu1 }
 0x2f3   : > { %v5838_v39 = vadd.f32 %v5837_v3, %v5807_v7  ;;  %v5521_v42 = vadd.f32 %v5520_v46, %v9544_v18  ;;  %v5769_v41 = vadd.f32 %v5768_v29, %v5516_v52  ;;  %v7183_v55 = vpop.f32.mrb[126].mxu0  ;;  %v7102_v9 = vpop.f32.mrb[127].mxu1 }
 0x2f4   : > { %v5532_v30 = vadd.f32 %v7183_v55, %v9553_v12  ;;  %v5523_v63 = vpop.f32.mrb[127].mxu0  ;;  %v7103_v33 = vadd.f32 %v7102_v9, %v7101_v0  ;;  %v5400_v18 = vadd.f32 %v7100_v43, %v9502_v38  ;;  %v5811_v1 = vmul.f32 %v5529_v34, %v5529_v34 }
 0x2f5   : > { %v5770_v11 = vadd.f32 %v5769_v41, %v5521_v42  ;;  %v5809_v20 = vmul.f32 %v5521_v42, %v5521_v42  ;;  %v5839_v60 = vadd.f32 %v5838_v39, %v5808_v2  ;;  %v5524_v21 = vadd.f32 %v5523_v63, %v9547_v17 }
 0x2f6   : > { %v6608_v61 = vpack.c.bf16 %v5532_v30, %v5529_v34  ;;  %v5403_v12 = vadd.f32 %v7103_v33, %v9505_v50  ;;  %v5812_v52 = vmul.f32 %v5532_v30, %v5532_v30 }
 0x2f7   : > { %v5840_v26 = vadd.f32 %v5839_v60, %v5809_v20  ;;  %v6603_v51 = vpack.c.bf16 %v5524_v21, %v5521_v42  ;;  %v5771_v5 = vadd.f32 %v5770_v11, %v5524_v21  ;;  %v5810_v4 = vmul.f32 %v5524_v21, %v5524_v21 }
 0x2f8   : > { %6671 = vst [vmem:[%s9573_s29 + $0x38] sm:$0xff] %v6608_v61  }
 0x2f9   : > { %6670 = vst [vmem:[%s9573_s29 + $0x30] sm:$0xff] %v6603_v51   ;;  %v5772_v36 = vadd.f32 %v5771_v5, %v5529_v34  ;;  %v5841_v10 = vadd.f32 %v5840_v26, %v5810_v4  ;;  %v7186_v48 = vpop.f32.mrb[128].mxu0  ;;  %v7104_v57 = vpop.f32.mrb[128].mxu1 }
 0x2fa   : > { %v5545_v23 = vadd.f32 %v7186_v48, %v9581_v44  ;;  %v5536_v17 = vpop.f32.mrb[129].mxu0  ;;  %v7105_v50 = vpop.f32.mrb[129].mxu1 }
 0x2fb   : > { %v5842_v13 = vadd.f32 %v5841_v10, %v5811_v1  ;;  %v5537_v45 = vadd.f32 %v5536_v17, %v9562_v19  ;;  %v5773_v38 = vadd.f32 %v5772_v36, %v5532_v30  ;;  %v7187_v25 = vpop.f32.mrb[130].mxu0  ;;  %v7107_v44 = vpop.f32.mrb[130].mxu1  ;;  %v7106_v7 = vadd.f32 %v7105_v50, %v7104_v57 }
 0x2fc   : > { %v5548_v49 = vadd.f32 %v7187_v25, %v9585_v28  ;;  %v5539_v6 = vpop.f32.mrb[131].mxu0  ;;  %v7108_v29 = vpop.f32.mrb[131].mxu1  ;;  %v5815_v56 = vmul.f32 %v5545_v23, %v5545_v23 }
 0x2fd   : > { %v5774_v59 = vadd.f32 %v5773_v38, %v5537_v45  ;;  %v5813_v54 = vmul.f32 %v5537_v45, %v5537_v45  ;;  %v5843_v27 = vadd.f32 %v5842_v13, %v5812_v52  ;;  %v5540_v37 = vadd.f32 %v5539_v6, %v9567_v35 }
 0x2fe   : > { %v6618_v24 = vpack.c.bf16 %v5548_v49, %v5545_v23  ;;  %v7109_v46 = vadd.f32 %v7108_v29, %v7107_v44  ;;  %v5408_v28 = vadd.f32 %v7106_v7, %v9514_v32  ;;  %v5816_v15 = vmul.f32 %v5548_v49, %v5548_v49 }
 0x2ff   : > { %v5844_v3 = vadd.f32 %v5843_v27, %v5813_v54  ;;  %v6613_v19 = vpack.c.bf16 %v5540_v37, %v5537_v45  ;;  %v5775_v22 = vadd.f32 %v5774_v59, %v5540_v37  ;;  %v5814_v34 = vmul.f32 %v5540_v37, %v5540_v37 }
 0x300   : > { %6673 = vst [vmem:[%s9573_s29 + $0x48] sm:$0xff] %v6618_v24   ;;  %v5411_v35 = vadd.f32 %v7109_v46, %v9517_v40 }
 0x301   : > { %6672 = vst [vmem:[%s9573_s29 + $0x40] sm:$0xff] %v6613_v19   ;;  %v5776_v2 = vadd.f32 %v5775_v22, %v5545_v23  ;;  %v5845_v39 = vadd.f32 %v5844_v3, %v5814_v34  ;;  %v7190_v42 = vpop.f32.mrb[132].mxu0 }
 0x302   : > { %v5561_v41 = vadd.f32 %v7190_v42, %v5400_v18  ;;  %v5552_v55 = vpop.f32.mrb[133].mxu0 }
 0x303   : > { %v5846_v30 = vadd.f32 %v5845_v39, %v5815_v56  ;;  %v5553_v63 = vadd.f32 %v5552_v55, %v9593_v47  ;;  %v5777_v43 = vadd.f32 %v5776_v2, %v5548_v49  ;;  %v7191_v0 = vpop.f32.mrb[134].mxu0  ;;  %v7110_v60 = vpop.f32.mrb[132].mxu1 }
 0x304   : > { %v5564_v11 = vadd.f32 %v7191_v0, %v5403_v12  ;;  %v5555_v20 = vpop.f32.mrb[135].mxu0  ;;  %v7111_v33 = vpop.f32.mrb[133].mxu1  ;;  %v5819_v10 = vmul.f32 %v5561_v41, %v5561_v41 }
 0x305   : > { %v5778_v32 = vadd.f32 %v5777_v43, %v5553_v63  ;;  %v5817_v21 = vmul.f32 %v5553_v63, %v5553_v63  ;;  %v5847_v9 = vadd.f32 %v5846_v30, %v5816_v15  ;;  %v5556_v61 = vadd.f32 %v5555_v20, %v9597_v62  ;;  %v7113_v40 = vpop.f32.mrb[134].mxu1 }
 0x306   : > { %v6628_v18 = vpack.c.bf16 %v5564_v11, %v5561_v41  ;;  %v7112_v26 = vadd.f32 %v7111_v33, %v7110_v60  ;;  %v7114_v1 = vpop.f32.mrb[135].mxu1  ;;  %v5820_v45 = vmul.f32 %v5564_v11, %v5564_v11 }
 0x307   : > { %v5848_v51 = vadd.f32 %v5847_v9, %v5817_v21  ;;  %v6623_v5 = vpack.c.bf16 %v5556_v61, %v5553_v63  ;;  %v5779_v4 = vadd.f32 %v5778_v32, %v5556_v61  ;;  %v5818_v47 = vmul.f32 %v5556_v61, %v5556_v61 }
 0x308   : > { %6675 = vst [vmem:[%s9573_s29 + $0x58] sm:$0xff] %v6628_v18   ;;  %v7115_v12 = vadd.f32 %v7114_v1, %v7113_v40  ;;  %v5416_v36 = vadd.f32 %v7112_v26, %v9526_v53 }
 0x309   : > { %6674 = vst [vmem:[%s9573_s29 + $0x50] sm:$0xff] %v6623_v5   ;;  %v5780_v48 = vadd.f32 %v5779_v4, %v5561_v41  ;;  %v5849_v23 = vadd.f32 %v5848_v51, %v5818_v47  ;;  %v7194_v17 = vpop.f32.mrb[136].mxu0 }
 0x30a   : > { %v5577_v52 = vadd.f32 %v7194_v17, %v5416_v36  ;;  %v5568_v62 = vpop.f32.mrb[137].mxu0  ;;  %v5419_v13 = vadd.f32 %v7115_v12, %v9529_v16 }
 0x30b   : > { %v5850_v38 = vadd.f32 %v5849_v23, %v5819_v10  ;;  %v5569_v25 = vadd.f32 %v5568_v62, %v5408_v28  ;;  %v5781_v57 = vadd.f32 %v5780_v48, %v5564_v11  ;;  %v7195_v49 = vpop.f32.mrb[138].mxu0 }
 0x30c   : > { %v5580_v6 = vadd.f32 %v7195_v49, %v5419_v13  ;;  %v5571_v50 = vpop.f32.mrb[139].mxu0  ;;  %v5823_v34 = vmul.f32 %v5577_v52, %v5577_v52 }
 0x30d   : > { %v5782_v59 = vadd.f32 %v5781_v57, %v5569_v25  ;;  %v5821_v53 = vmul.f32 %v5569_v25, %v5569_v25  ;;  %v5851_v54 = vadd.f32 %v5850_v38, %v5820_v45  ;;  %v5572_v27 = vadd.f32 %v5571_v50, %v5411_v35  ;;  %v7116_v44 = vpop.f32.mrb[136].mxu1 }
 0x30e   : > { %v6638_v37 = vpack.c.bf16 %v5580_v6, %v5577_v52  ;;  %v7117_v16 = vpop.f32.mrb[137].mxu1  ;;  %v5824_v55 = vmul.f32 %v5580_v6, %v5580_v6 }
 0x30f   : > { %v5852_v24 = vadd.f32 %v5851_v54, %v5821_v53  ;;  %v6633_v7 = vpack.c.bf16 %v5572_v27, %v5569_v25  ;;  %v5783_v29 = vadd.f32 %v5782_v59, %v5572_v27  ;;  %v5822_v3 = vmul.f32 %v5572_v27, %v5572_v27  ;;  %v7119_v22 = vpop.f32.mrb[138].mxu1 }
 0x310   : > { %6677 = vst [vmem:[%s9573_s29 + $0x68] sm:$0xff] %v6638_v37   ;;  %v7118_v19 = vadd.f32 %v7117_v16, %v7116_v44  ;;  %v7120_v56 = vpop.f32.mrb[139].mxu1 }
 0x311   : > { %6676 = vst [vmem:[%s9573_s29 + $0x60] sm:$0xff] %v6633_v7   ;;  %v5784_v46 = vadd.f32 %v5783_v29, %v5577_v52  ;;  %v5853_v28 = vadd.f32 %v5852_v24, %v5822_v3  ;;  %v7198_v2 = vpop.f32.mrb[140].mxu0  ;;  %v7121_v39 = vadd.f32 %v7120_v56, %v7119_v22 }
 0x312   : > { %v5424_v42 = vadd.f32 %v7118_v19, %v9538_v31  ;;  %v5584_v41 = vpop.f32.mrb[141].mxu0 }
 0x313   : > { %v5854_v35 = vadd.f32 %v5853_v28, %v5823_v34  ;;  %v5785_v15 = vadd.f32 %v5784_v46, %v5580_v6  ;;  %v7199_v30 = vpop.f32.mrb[142].mxu0  ;;  %v5427_v43 = vadd.f32 %v7121_v39, %v9541_v8 }
 0x314   : > { %v5585_v63 = vadd.f32 %v5584_v41, %v5424_v42  ;;  %v5587_v0 = vpop.f32.mrb[143].mxu0 }
 0x315   : > { %v5855_v11 = vadd.f32 %v5854_v35, %v5824_v55  ;;  %v5588_v32 = vadd.f32 %v5587_v0, %v5427_v43  ;;  %v7122_v21 = vpop.f32.mrb[140].mxu1 }
 0x316   : > { %v5786_v20 = vadd.f32 %v5785_v15, %v5585_v63  ;;  %v5825_v60 = vmul.f32 %v5585_v63, %v5585_v63  ;;  %v7123_v9 = vpop.f32.mrb[141].mxu1 }
 0x317   : > { %v6643_v31 = vpack.c.bf16 %v5588_v32, %v5585_v63  ;;  %v5826_v18 = vmul.f32 %v5588_v32, %v5588_v32  ;;  %v7125_v26 = vpop.f32.mrb[142].mxu1  ;;  %v7124_v40 = vadd.f32 %v7123_v9, %v7122_v21 }
 0x318   : > { %v5856_v61 = vadd.f32 %v5855_v11, %v5825_v60  ;;  %v5787_v33 = vadd.f32 %v5786_v20, %v5588_v32  ;;  %v7126_v51 = vpop.f32.mrb[143].mxu1 }
 0x319   : > { %6678 = vst [vmem:[%s9573_s29 + $0x70] sm:$0xff] %v6643_v31   ;;  %v7127_v8 = vadd.f32 %v7126_v51, %v7125_v26  ;;  %v5432_v4 = vadd.f32 %v7124_v40, %v9556_v14 }
 0x31a   : > { %v5857_v5 = vadd.f32 %v5856_v61, %v5826_v18 }
 0x31b   : > { %v5435_v47 = vadd.f32 %v7127_v8, %v9559_v58  ;;  %v5593_v1 = vadd.f32 %v7198_v2, %v5432_v4 }
 0x31d   : > { %v5596_v12 = vadd.f32 %v7199_v30, %v5435_v47  ;;  %v5788_v36 = vadd.f32 %v5787_v33, %v5593_v1  ;;  %v5827_v10 = vmul.f32 %v5593_v1, %v5593_v1 }
 0x31f   : > { %v6648_v14 = vpack.c.bf16 %v5596_v12, %v5593_v1  ;;  %v5828_v58 = vmul.f32 %v5596_v12, %v5596_v12  ;;  %v5858_v48 = vadd.f32 %v5857_v5, %v5827_v10  ;;  %v5789_v23 = vadd.f32 %v5788_v36, %v5596_v12 }
 0x321   : > { %6679 = vst [vmem:[%s9573_s29 + $0x78] sm:$0xff] %v6648_v14   ;;  %v5790_v17 = vrot.slane %v5789_v23, 4  ;;  %v5859_v52 = vadd.f32 %v5858_v48, %v5828_v58 }
 0x322   : > { %7577 = shalt.err (!%p7574_p8)
}
 0x323   : > { %s7578_s13 = scalar_lea.hbm %s9635_s21, 2048  ;;  %s7582_s29 = scalar_lea.hbm %s9761_s4, 4096 }
 0x324   : > { %p7579_p12 = scmp.ne.s32.totalorder %s9635_s21, %s7578_s13  ;;  %p7583_p13 = scmp.lt.u32.totalorder %s9635_s21, %s9761_s4 }
 0x325   : > { %p7584_p6 = scmp.lt.u32.totalorder %s7582_s29, %s7578_s13  ;;  %p7586_p5 = scmp.lt.u32.totalorder %s7578_s13, %s9635_s21 }
 0x326   : > { %p7580_p1 = pnand %p7579_p12, %p7916_p10 }
 0x327   : > { %p7585_p3 = por %p7584_p6, %p7583_p13 }
 0x328   : > { %p7581_p11 = pneg %p7580_p1 }
 0x329   : > { %p7587_p7 = por %p7586_p5, %p7585_p3 }
 0x32b   : > { %p7588_p9 = pnand %p7587_p7, %p7581_p11 }
 0x32d   : > { %7591 = shalt.err (!%p7588_p9)
}
 0x32e   : > { %s7724_s28 = smov 64   ;;  %s7725_s18 = smov 4   ;;  %v5791_v62 = vadd.f32 %v5790_v17, %v5789_v23  ;;  %v5860_v13 = vrot.slane %v5859_v52, 4 }
 0x32f   : > { %7230 = dma.vmem_to_hbm [thread:$0]  (%p7916_p10), %s9637_s15, 2048, %s9635_s21, %s5868_s20, %s7724_s28, %s7724_s28, %s7725_s18  }
 0x330   : > { %v5792_v45 = vrot.slane %v5791_v62, 2  ;;  %v5861_v38 = vadd.f32 %v5860_v13, %v5859_v52  ;;  %s5872_s14 = sand.u32 1, %s7794_s27   ;;  %s6436_s8 = sshll.u32 %s7706_s24, 4 }
 0x331   : > { %s344_s9 = scalar_lea.vmem [#allocation13], %s7977_s19  ;;  %s350_s12 = scalar_lea.vmem [#allocation15], %s7977_s19 }
 0x332   : > { %v5862_v25 = vrot.slane %v5861_v38, 2  ;;  %v5793_v57 = vadd.f32 %v5792_v45, %v5791_v62  ;;  %s5907_s13 = sshll.u32 %s344_s9, 4  ;;  %s5921_s30 = sshll.u32 %s350_s12, 4  ;;  %s9675_s13 = int_to_ptr.vmem [resolvable:$true] %s5907_s13  ;;  %s9682_s30 = int_to_ptr.vmem [resolvable:$true] %s5921_s30 }
 0x333   : > { %s9673_s15 = scalar_lea.hbm %s9762_s5, %s6436_s8  ;;  %s9680_s21 = scalar_lea.hbm %s9763_s6, %s6436_s8 }
 0x334   : > { %v5794_v49 = vrot.slane %v5793_v57, 1  ;;  %v5863_v6 = vadd.f32 %v5862_v25, %v5861_v38  ;;  %s9684_s20 = scalar_lea.sflag [#allocation14], %s5872_s14  ;;  %s7592_s16 = scalar_lea.vmem %s9675_s13, 16 }
 0x335   : > { %p7593_p0 = scmp.ne.s32.totalorder %s9675_s13, %s7592_s16  ;;  %s7726_s28 = smov [#allocation13]  }
 0x336   : > { %v5795_v50 = vadd.f32 %v5794_v49, %v5793_v57  ;;  %v5864_v59 = vrot.slane %v5863_v6, 1  ;;  %s7596_s18 = sshll.u32 %s7726_s28, 4  ;;  %s7597_s18 = int_to_ptr.vmem [resolvable:$false] %s7596_s18 }
 0x337   : > { %p7594_p2 = pnand %p7593_p0, %p7916_p10  ;;  %s7598_s29 = scalar_lea.vmem %s7597_s18, 32 }
 0x338   : > { %5796 = vst [vmem:[%s344_s9] sm:$0x1] %v5795_v50  ;;  %v5865_v53 = vadd.f32 %v5864_v59, %v5863_v6  ;;  %p7599_p8 = scmp.lt.s32.totalorder %s9675_s13, %s7597_s18  ;;  %p7600_p12 = scmp.lt.s32.totalorder %s7598_s29, %s7592_s16 }
 0x339   : > { %p7595_p4 = pneg %p7594_p2 }
 0x33a   : > { %p7601_p1 = por %p7600_p12, %p7599_p8 }
 0x33c   : > { %p7602_p11 = pnand %p7601_p1, %p7595_p4 }
 0x33e   : > { %7605 = shalt.err (!%p7602_p11)
}
 0x33f   : > { %s7606_s14 = scalar_lea.hbm %s9673_s15, 16  ;;  %s7610_s7 = scalar_lea.hbm %s9762_s5, 32 }
 0x340   : > { %p7607_p13 = scmp.ne.s32.totalorder %s9673_s15, %s7606_s14  ;;  %p7611_p5 = scmp.lt.u32.totalorder %s9673_s15, %s9762_s5 }
 0x341   : > { %p7612_p7 = scmp.lt.u32.totalorder %s7610_s7, %s7606_s14  ;;  %p7614_p0 = scmp.lt.u32.totalorder %s7606_s14, %s9673_s15 }
 0x342   : > { %p7608_p6 = pnand %p7607_p13, %p7916_p10 }
 0x343   : > { %p7613_p9 = por %p7612_p7, %p7611_p5 }
 0x344   : > { %p7609_p3 = pneg %p7608_p6 }
 0x345   : > { %p7615_p2 = por %p7614_p0, %p7613_p9 }
 0x347   : > { %p7616_p4 = pnand %p7615_p2, %p7609_p3 }
 0x349   : > { %7619 = shalt.err (!%p7616_p4)
}
 0x34a   : > { %7231 = dma.vmem_to_hbm [thread:$0]  (%p7916_p10), %s9675_s13, 16, %s9673_s15, %s9684_s20   ;;  %5866 = vst [vmem:[%s350_s12] sm:$0x1] %v5865_v53 }
 0x34b   : > { %s7620_s16 = scalar_lea.vmem %s9682_s30, 16  ;;  %s7727_s28 = smov [#allocation15]  }
 0x34c   : > { %p7621_p8 = scmp.ne.s32.totalorder %s9682_s30, %s7620_s16  ;;  %s7624_s18 = sshll.u32 %s7727_s28, 4  ;;  %s7625_s18 = int_to_ptr.vmem [resolvable:$false] %s7624_s18 }
 0x34d   : > { %s7626_s29 = scalar_lea.vmem %s7625_s18, 32  ;;  %p7627_p11 = scmp.lt.s32.totalorder %s9682_s30, %s7625_s18 }
 0x34e   : > { %p7622_p12 = pnand %p7621_p8, %p7916_p10  ;;  %p7628_p13 = scmp.lt.s32.totalorder %s7626_s29, %s7620_s16 }
 0x350   : > { %p7623_p1 = pneg %p7622_p12  ;;  %p7629_p6 = por %p7628_p13, %p7627_p11 }
 0x352   : > { %p7630_p3 = pnand %p7629_p6, %p7623_p1 }
 0x354   : > { %7633 = shalt.err (!%p7630_p3)
}
 0x355   : > { %s7634_s19 = scalar_lea.hbm %s9680_s21, 16  ;;  %s7638_s15 = scalar_lea.hbm %s9763_s6, 32 }
 0x356   : > { %p7635_p5 = scmp.ne.s32.totalorder %s9680_s21, %s7634_s19  ;;  %p7639_p0 = scmp.lt.u32.totalorder %s9680_s21, %s9763_s6 }
 0x357   : > { %p7640_p2 = scmp.lt.u32.totalorder %s7638_s15, %s7634_s19  ;;  %p7642_p8 = scmp.lt.u32.totalorder %s7634_s19, %s9680_s21 }
 0x358   : > { %p7636_p7 = pnand %p7635_p5, %p7916_p10 }
 0x359   : > { %p7641_p4 = por %p7640_p2, %p7639_p0 }
 0x35a   : > { %p7637_p9 = pneg %p7636_p7 }
 0x35b   : > { %p7643_p12 = por %p7642_p8, %p7641_p4 }
 0x35d   : > { %p7644_p1 = pnand %p7643_p12, %p7637_p9 }
 0x35f   : > { %7647 = shalt.err (!%p7644_p1)
}
 0x360   : > { %7232 = dma.vmem_to_hbm [thread:$0]  (%p7916_p10), %s9682_s30, 16, %s9680_s21, %s9684_s20  }
 0x361 PF: > { %s9852_s9 = sld [smem:[#allocation21_spill]]  ;;  %s9853_s7 = sld [smem:[#allocation22_spill]] }
 0x362   : > { %p9855_p13 = scmp.ge.s32.totalorder %s7714_s26, 2 }
 0x367   : > { %s5933_s24 = sand.u32 1, %s9852_s9   ;;  %p9854_p11 = scmp.ne.s32.totalorder %s9853_s7, 0 }
 0x368   : > { %s5934_s27 = scalar_lea.sflag [#allocation6], %s5933_s24 }
 0x369   : > { %p7251_p6 = pnand %p9855_p13, %p9854_p11 }
 0x36b   : > { %7685 = dma.done.wait (!%p7251_p6), %s5934_s27, 2048  }
 0x36c   : > { %7687 = vsyncadd (!%p7251_p6), %s5934_s27, 4294965248  ;;  %s9856_s16 = sadd.s32 4294967294, %s7714_s26  }
 0x36d   : > { %s5942_s28 = sand.u32 1, %s9856_s16  }
 0x36e   : > { %s5943_s18 = scalar_lea.sflag [#allocation14], %s5942_s28 }
 0x36f   : > { %7689 = dma.done.wait (!%p7251_p6), %s5943_s18, 32  }
 0x370   : > { %7691 = vsyncadd (!%p7251_p6), %s5943_s18, 4294967264  ;;  %s28_s26 = sadd.s32 1, %s7714_s26   ;;  %s9857_s21 = smov %s7698_s22 }
 0x371   : > { %p25_p10 = scmp.ge.s32.totalorder %s28_s26, 4   ;;  %s9858_s22 = smov %s7702_s23 }
 0x372   : > { %s9859_s23 = smov %s7928_s11  ;;  %s9860_s24 = smov %s7710_s25 }
 0x373   : > { %s9861_s25 = smov %s9863_s17  ;;  %27 = sbr.rel (!%p25_p10) target bundleno = 10 (0xa), region = 133 }
 0x37a   :  { %5955 = vsyncpa [#allocation5], 1 }
 0x37b   :  { %5957 = vsyncpa [#allocation5 + $0x1], 1 }
 0x37c   :  { %5958 = vsyncpa [#allocation8], 1 }
 0x37d   :  { %5959 = vsyncpa [#allocation11], 1 }
 0x37e   :  { %5960 = vsyncpa [#allocation6], 1 }
 0x37f   :  { %5962 = vsyncpa [#allocation6 + $0x1], 1 }
 0x380   :  { %5963 = vsyncpa [#allocation14], 1 }
 0x381   :  { %5965 = vsyncpa [#allocation14 + $0x1], 1 }

</bundles_post_ra>
